<compile_context>
chip_gen: v6e
topology: v6e:2x2x1
jax: 0.10.0
libtpu: 0.0.40
codegen_flags: <defaults>
</compile_context>

<pallas_src>
import functools

import jax
import jax.numpy as jnp
from jax import lax
from jax.experimental import pallas as pl
from jax.experimental.pallas import tpu as pltpu

# ----------------------- small synthetic model config -----------------------
B = 2                       # batch size
MAX_PTS = 8                 # max points per pillar
N_VOX_PER_B = 32
N_VOX = B * N_VOX_PER_B
VOXEL_SIZE = (0.4, 0.4, 4.0)
LIDAR_RANGE = (0.0, -3.2, -3.0, 6.4, 3.2, 1.0)
NX, NY, NZ = 16, 16, 1      # BEV grid
VFE_OUT = 64                # pillar_vfe num_filters=[64]
LAYER_STRIDES = (2, 2)      # base_bev_backbone layer_strides
NUM_FILTERS = (64, 64)      # base_bev_backbone num_filters
LAYER_NUMS = (1, 1)         # base_bev_backbone layer_nums
UP_STRIDES = (1, 2)         # upsample_strides
NUM_UP_FILTERS = (64, 64)   # num_upsample_filter
ANCHOR_NUM = 2
CLS_HEAD_DIM = sum(NUM_UP_FILTERS)   # 128 (no shrink_header -> shrink_flag=False)
BN_EPS = 1e-3

X_OFF = VOXEL_SIZE[0] / 2 + LIDAR_RANGE[0]
Y_OFF = VOXEL_SIZE[1] / 2 + LIDAR_RANGE[1]
Z_OFF = VOXEL_SIZE[2] / 2 + LIDAR_RANGE[2]

VMEM_LIMIT_BYTES = 48 * 1024 * 1024   # explicit scoped-VMEM limit (safe on v5e/v6e/v7x)
MAX_M_TILE = 512                      # row-tile cap: fine on v7x, leave v6e headroom


def _round_up(x, m):
    return (x + m - 1) // m * m


def _pick_m_tile(m):
    """Largest row tile <= MAX_M_TILE (rows are zero-padded to a multiple)."""
    return min(MAX_M_TILE, _round_up(m, 8))


# ============================ Pallas kernels ================================

def _matmul_shift_kernel(x_ref, w_ref, shift_ref, o_ref, *, relu):
    """y = relu?(x @ w + shift). BN scale is pre-folded into w columns."""
    y = jnp.dot(x_ref[...], w_ref[...], preferred_element_type=jnp.float32)
    y = y + shift_ref[...]
    if relu:
        y = jnp.maximum(y, 0.0)
    o_ref[...] = y.astype(o_ref.dtype)


def matmul_shift(x, w, shift, relu=False, out_dtype=jnp.float32):
    """x:(M,K) @ w:(K,N) + shift (+ReLU). bf16 MXU inputs, f32 epilogue.

    M is tiled (tile <= 512, rows padded to a tile multiple) so there is no
    whole-array fallback block; output dtype is selectable (bf16 for
    activations that only feed later bf16 matmuls).
    """
    M, K = x.shape
    N = w.shape[1]
    tm = _pick_m_tile(M)
    Mp = _round_up(M, tm)
    xb = x.astype(jnp.bfloat16)
    if Mp != M:
        xb = jnp.pad(xb, ((0, Mp - M), (0, 0)))
    out = pl.pallas_call(
        functools.partial(_matmul_shift_kernel, relu=relu),
        out_shape=jax.ShapeDtypeStruct((Mp, N), out_dtype),
        grid_spec=pltpu.PrefetchScalarGridSpec(
            num_scalar_prefetch=0,
            grid=(Mp // tm,),
            in_specs=[
                pl.BlockSpec((tm, K), lambda i: (i, 0)),
                pl.BlockSpec((K, N), lambda i: (0, 0)),
                pl.BlockSpec((1, N), lambda i: (0, 0)),
            ],
            out_specs=pl.BlockSpec((tm, N), lambda i: (i, 0)),
        ),
        compiler_params=pltpu.CompilerParams(
            dimension_semantics=("parallel",),
            vmem_limit_bytes=VMEM_LIMIT_BYTES),
    )(xb, w.astype(jnp.bfloat16), shift.reshape(1, N).astype(jnp.float32))
    return out[:M] if Mp != M else out


# ----------------------------- PFN layer ------------------------------------

def _pfn_kernel(f_ref, w_ref, shift_ref, o_ref, *, num_points):
    """PFNLayer tile: one (tile*P, 16) dot, bias+ReLU, max over points."""
    y = jnp.dot(f_ref[...], w_ref[...], preferred_element_type=jnp.float32)
    y = jnp.maximum(y + shift_ref[...], 0.0)
    t_nv, c = o_ref.shape
    y = y.reshape(t_nv, num_points, c)          # pillar-major rows
    o_ref[...] = jnp.max(y, axis=1).astype(o_ref.dtype)


def pfn_layer(features, w, scale, shift):
    """features:(Nv,P,Fin) -> pillar_features:(Nv,C), tiled over pillars.

    Fin is zero-padded 10 -> 16 (numerically identical); K is deliberately
    NOT padded to 128 -- the PFN is stream-bound, not MXU-bound.
    """
    Nv, P, Fin = features.shape
    C = w.shape[1]
    fin_pad = 16
    f = jnp.pad(features, ((0, 0), (0, 0), (0, fin_pad - Fin)))
    t_nv = _pick_m_tile(Nv)
    Np = _round_up(Nv, t_nv)
    if Np != Nv:
        f = jnp.pad(f, ((0, Np - Nv), (0, 0), (0, 0)))
    f = f.reshape(Np * P, fin_pad).astype(jnp.bfloat16)     # pillar-major rows
    w_pad = jnp.pad(w * scale[None, :], ((0, fin_pad - Fin), (0, 0)))
    out = pl.pallas_call(
        functools.partial(_pfn_kernel, num_points=P),
        out_shape=jax.ShapeDtypeStruct((Np, C), jnp.float32),
        grid_spec=pltpu.PrefetchScalarGridSpec(
            num_scalar_prefetch=0,
            grid=(Np // t_nv,),
            in_specs=[
                pl.BlockSpec((t_nv * P, fin_pad), lambda i: (i, 0)),
                pl.BlockSpec((fin_pad, C), lambda i: (0, 0)),
                pl.BlockSpec((1, C), lambda i: (0, 0)),
            ],
            out_specs=pl.BlockSpec((t_nv, C), lambda i: (i, 0)),
        ),
        compiler_params=pltpu.CompilerParams(
            dimension_semantics=("parallel",),
            vmem_limit_bytes=VMEM_LIMIT_BYTES),
    )(f, w_pad.astype(jnp.bfloat16), shift.reshape(1, C).astype(jnp.float32))
    return out[:Nv] if Np != Nv else out


# -------------------- 3x3 conv + BN + ReLU (taps fused) ---------------------

def _conv3x3_kernel(xb_ref, xh_ref, w_ref, shift_ref, o_ref,
                    *, stride, ksize, th, wo):
    """All k*k taps computed in-kernel from a VMEM-resident row window.

    Window = body rows (th*stride) + 2-row halo.  Tap selection uses only
    plain slices and pair reshapes (stride-2 handled via even/odd phase
    planes), so no strided slicing is required.
    """
    x = jnp.concatenate([xb_ref[0], xh_ref[0]], axis=0)   # (th*stride+2, Wp, Cin)
    rows, wp, cin = x.shape
    if stride == 1:
        row_views = [x[kh:kh + th] for kh in range(ksize)]
    else:
        xr = x.reshape(rows // 2, 2, wp, cin)              # row phase planes
        row_views = [xr[kh // 2:kh // 2 + th, kh % 2] for kh in range(ksize)]
    acc = None
    for kh in range(ksize):
        xv = row_views[kh]                                  # (th, Wp, Cin)
        if stride == 2:
            xv = xv.reshape(th, wp // 2, 2, cin)            # col phase planes
        for kw in range(ksize):
            if stride == 1:
                xs = xv[:, kw:kw + wo, :]
            else:
                xs = xv[:, kw // 2:kw // 2 + wo, kw % 2, :]
            part = jnp.dot(xs.reshape(th * wo, cin), w_ref[kh * ksize + kw],
                           preferred_element_type=jnp.float32)
            acc = part if acc is None else acc + part
    acc = jnp.maximum(acc + shift_ref[...], 0.0)
    o_ref[0] = acc.reshape(th, wo, -1).astype(o_ref.dtype)


def _pick_row_tile(ho, stride, cap=64):
    for t in range(min(ho, cap), 0, -1):
        if ho % t == 0 and (t * stride) % 2 == 0:
            return t
    return ho


def conv3x3_bn_relu(x_nhwc, w_oihw, bn, stride):
    """ZeroPad2d(1) + Conv2d(k3, bias=False) + BN + ReLU.  bf16 output."""
    scale, shift = bn
    Cout, Cin, k, _ = w_oihw.shape
    Bn, H, W, _ = x_nhwc.shape
    xp = jnp.pad(x_nhwc.astype(jnp.bfloat16), ((0, 0), (1, 1), (1, 1), (0, 0)))
    Hp, Wp = H + 2, W + 2
    Ho = (Hp - k) // stride + 1
    Wo = (Wp - k) // stride + 1
    th = _pick_row_tile(Ho, stride)
    assert Ho % th == 0 and (th * stride) % 2 == 0
    if stride == 2:
        assert Hp % 2 == 0 and Wp % 2 == 0, "stride-2 conv assumes even padded H/W"
    halo_step = (th * stride) // 2          # block index step of the 2-row halo
    # BN scale folded into the weight taps: (k*k, Cin, Cout)
    w_taps = (jnp.transpose(w_oihw, (2, 3, 1, 0)).reshape(k * k, Cin, Cout)
              * scale[None, None, :])
    kernel = functools.partial(_conv3x3_kernel, stride=stride, ksize=k,
                               th=th, wo=Wo)
    return pl.pallas_call(
        kernel,
        out_shape=jax.ShapeDtypeStruct((Bn, Ho, Wo, Cout), jnp.bfloat16),
        grid_spec=pltpu.PrefetchScalarGridSpec(
            num_scalar_prefetch=0,
            grid=(Bn, Ho // th),
            in_specs=[
                # body rows of the padded input for this output row tile
                pl.BlockSpec((1, th * stride, Wp, Cin),
                             lambda b, i: (b, i, 0, 0)),
                # 2-row halo directly below the body rows
                pl.BlockSpec((1, 2, Wp, Cin),
                             lambda b, i: (b, (i + 1) * halo_step, 0, 0)),
                pl.BlockSpec((k * k, Cin, Cout), lambda b, i: (0, 0, 0)),
                pl.BlockSpec((1, Cout), lambda b, i: (0, 0)),
            ],
            out_specs=pl.BlockSpec((1, th, Wo, Cout), lambda b, i: (b, i, 0, 0)),
        ),
        compiler_params=pltpu.CompilerParams(
            dimension_semantics=("parallel", "parallel"),
            vmem_limit_bytes=VMEM_LIMIT_BYTES),
    )(xp, xp, w_taps.astype(jnp.bfloat16),
      shift.reshape(1, Cout).astype(jnp.float32))


# -------------------- stride-2 transposed conv (deblock-1) ------------------

def deconv_s2_bn_relu(x_nhwc, w_iohw, scale, shift):
    """ConvTranspose2d(kernel=stride=2, bias=False) + BN + ReLU, bf16 output.

    # TODO(synk): fold the (s,s) pixel-shuffle transpose below into the fused
    # tail kernel to avoid this XLA re-layout pass at real BEV sizes.
    """
    Bn, H, W, Cin = x_nhwc.shape
    s = w_iohw.shape[2]
    Cout = w_iohw.shape[1]
    w = jnp.transpose(w_iohw, (0, 2, 3, 1)) * scale        # fold BN scale (Cout)
    w = w.reshape(Cin, s * s * Cout)
    y = matmul_shift(x_nhwc.reshape(Bn * H * W, Cin), w,
                     jnp.tile(shift, s * s), relu=True, out_dtype=jnp.bfloat16)
    y = y.reshape(Bn, H, W, s, s, Cout)
    y = jnp.transpose(y, (0, 1, 3, 2, 4, 5)).reshape(Bn, H * s, W * s, Cout)
    return y


# --------------- fused tail: deblock-0 + concat + cls/reg heads -------------

def _tail_kernel(x1_ref, up1_ref, w0_ref, shift0_ref, wh_ref, bh_ref,
                 feat_ref, head_ref):
    y0 = jnp.dot(x1_ref[...], w0_ref[...], preferred_element_type=jnp.float32)
    y0 = jnp.maximum(y0 + shift0_ref[...], 0.0)
    feat = jnp.concatenate([y0, up1_ref[...].astype(jnp.float32)], axis=-1)
    feat_ref[...] = feat                                    # (tm, 128) f32 output
    h = jnp.dot(feat.astype(jnp.bfloat16), wh_ref[...],
                preferred_element_type=jnp.float32)
    head_ref[...] = h + bh_ref[...]


def tail_fused(x1_flat, up1_flat, w0, shift0, wh, bh):
    """Deblock-0 (1x1 ConvT) + BN + ReLU, channel concat with up1 (bf16 in),
    then cls+reg heads as one 128->128(padded) matmul.  M-tiled."""
    M, C0 = x1_flat.shape
    CF = C0 + up1_flat.shape[1]
    CH = wh.shape[1]
    tm = _pick_m_tile(M)
    Mp = _round_up(M, tm)
    x1b = x1_flat.astype(jnp.bfloat16)
    up1b = up1_flat.astype(jnp.bfloat16)
    if Mp != M:
        x1b = jnp.pad(x1b, ((0, Mp - M), (0, 0)))
        up1b = jnp.pad(up1b, ((0, Mp - M), (0, 0)))
    feat, head = pl.pallas_call(
        _tail_kernel,
        out_shape=(jax.ShapeDtypeStruct((Mp, CF), jnp.float32),
                   jax.ShapeDtypeStruct((Mp, CH), jnp.float32)),
        grid_spec=pltpu.PrefetchScalarGridSpec(
            num_scalar_prefetch=0,
            grid=(Mp // tm,),
            in_specs=[
                pl.BlockSpec((tm, C0), lambda i: (i, 0)),
                pl.BlockSpec((tm, C0), lambda i: (i, 0)),
                pl.BlockSpec((C0, C0), lambda i: (0, 0)),
                pl.BlockSpec((1, C0), lambda i: (0, 0)),
                pl.BlockSpec((CF, CH), lambda i: (0, 0)),
                pl.BlockSpec((1, CH), lambda i: (0, 0)),
            ],
            out_specs=(pl.BlockSpec((tm, CF), lambda i: (i, 0)),
                       pl.BlockSpec((tm, CH), lambda i: (i, 0))),
        ),
        compiler_params=pltpu.CompilerParams(
            dimension_semantics=("parallel",),
            vmem_limit_bytes=VMEM_LIMIT_BYTES),
    )(x1b, up1b, w0.astype(jnp.bfloat16),
      shift0.reshape(1, C0).astype(jnp.float32),
      wh.astype(jnp.bfloat16), bh.reshape(1, CH).astype(jnp.float32))
    if Mp != M:
        feat, head = feat[:M], head[:M]
    return feat, head


# =============================== parameters =================================

def _bn_fold(gamma, beta, mean, var):
    scale = gamma / jnp.sqrt(var + BN_EPS)
    shift = beta - mean * scale
    return scale, shift


def init_params(key):
    ks = iter(jax.random.split(key, 64))

    def nrm(shape, s=0.05):
        return s * jax.random.normal(next(ks), shape, dtype=jnp.float32)

    def bn(c):
        gamma = 1.0 + 0.1 * jax.random.normal(next(ks), (c,), dtype=jnp.float32)
        beta = 0.1 * jax.random.normal(next(ks), (c,), dtype=jnp.float32)
        return _bn_fold(gamma, beta, jnp.zeros((c,), jnp.float32),
                        jnp.ones((c,), jnp.float32))

    p = {}
    # PillarVFE: Linear(10, 64, bias=False) + BatchNorm1d(64)
    p['pfn_w'] = nrm((10, VFE_OUT), 0.1)
    p['pfn_bn'] = bn(VFE_OUT)
    # BaseBEVBackbone: 2 blocks (strided conv + 1 conv each) + 2 deblocks
    c_in = VFE_OUT
    for i in range(2):
        c_out = NUM_FILTERS[i]
        p[f'b{i}_conv0_w'] = nrm((c_out, c_in, 3, 3))
        p[f'b{i}_bn0'] = bn(c_out)
        p[f'b{i}_conv1_w'] = nrm((c_out, c_out, 3, 3))
        p[f'b{i}_bn1'] = bn(c_out)
        s = UP_STRIDES[i]
        p[f'de{i}_w'] = nrm((c_out, NUM_UP_FILTERS[i], s, s))
        p[f'de{i}_bn'] = bn(NUM_UP_FILTERS[i])
        c_in = c_out
    # heads (nn.Conv2d kernel_size=1, bias=True)
    p['cls_w'] = nrm((ANCHOR_NUM, CLS_HEAD_DIM, 1, 1))
    p['cls_b'] = nrm((ANCHOR_NUM,))
    p['reg_w'] = nrm((7 * ANCHOR_NUM, CLS_HEAD_DIM, 1, 1))
    p['reg_b'] = nrm((7 * ANCHOR_NUM,))
    return p


# ================================ forward ===================================

def forward(params, voxel_features, voxel_coords, voxel_num_points):
    f32 = jnp.float32
    vf = voxel_features.astype(f32)                  # (Nv, P, 4)
    coords_f = voxel_coords.astype(f32)              # (Nv, 4) = (batch, z, y, x)
    npts = voxel_num_points.astype(f32)              # (Nv,)

    # ---------------- PillarVFE: feature augmentation (elementwise glue) ----
    normalizer = jnp.maximum(npts, 1.0)[:, None, None]
    points_mean = vf[:, :, :3].sum(axis=1, keepdims=True) / normalizer
    f_cluster = vf[:, :, :3] - points_mean
    fcx = vf[:, :, 0] - (coords_f[:, 3][:, None] * VOXEL_SIZE[0] + X_OFF)
    fcy = vf[:, :, 1] - (coords_f[:, 2][:, None] * VOXEL_SIZE[1] + Y_OFF)
    fcz = vf[:, :, 2] - (coords_f[:, 1][:, None] * VOXEL_SIZE[2] + Z_OFF)
    f_center = jnp.stack([fcx, fcy, fcz], axis=-1)
    features = jnp.concatenate([vf, f_cluster, f_center], axis=-1)   # (Nv,P,10)
    mask = (jnp.arange(MAX_PTS)[None, :] < voxel_num_points[:, None]).astype(f32)
    features = features * mask[:, :, None]

    # ---------------- PFN layer (Pallas, tiled over pillars) ----------------
    scale, shift = params['pfn_bn']
    pillar_features = pfn_layer(features, params['pfn_w'], scale, shift)  # (Nv,64)

    # ---------------- PointPillarScatter ------------------------------------
    # TODO(synk): data-dependent scatter kept in plain JAX (.at[].set); Pallas
    #             version needs scalar-prefetched indices + data-dependent
    #             output index_map + input_output_aliases for the zero canvas.
    spatial_idx = voxel_coords[:, 1] + voxel_coords[:, 2] * NX + voxel_coords[:, 3]
    flat_idx = voxel_coords[:, 0] * (NZ * NY * NX) + spatial_idx
    canvas = jnp.zeros((B * NZ * NY * NX, VFE_OUT), f32).at[flat_idx].set(pillar_features)
    sp_nhwc = canvas.reshape(B, NY, NX, VFE_OUT)
    spatial_features = jnp.transpose(sp_nhwc, (0, 3, 1, 2))          # NCHW (output)

    # ---------------- BaseBEVBackbone (tap-fused convs, bf16 activations) ---
    x = conv3x3_bn_relu(sp_nhwc, params['b0_conv0_w'], params['b0_bn0'],
                        stride=LAYER_STRIDES[0])
    x1 = conv3x3_bn_relu(x, params['b0_conv1_w'], params['b0_bn1'], stride=1)
    x = conv3x3_bn_relu(x1, params['b1_conv0_w'], params['b1_bn0'],
                        stride=LAYER_STRIDES[1])
    x2 = conv3x3_bn_relu(x, params['b1_conv1_w'], params['b1_bn1'], stride=1)

    # deblock-1 (stride-2 transposed conv) -> bf16, pixel-shuffle in wrapper
    de1_scale, de1_shift = params['de1_bn']
    up1 = deconv_s2_bn_relu(x2, params['de1_w'], de1_scale, de1_shift)   # (B,8,8,64)

    # ---------------- fused tail: deblock-0 + concat + cls/reg heads --------
    de0_scale, de0_shift = params['de0_bn']
    w0 = params['de0_w'][:, :, 0, 0] * de0_scale[None, :]                # (64,64)
    Bn, Ho, Wo, C1 = x1.shape
    rows = Bn * Ho * Wo
    n_cls = ANCHOR_NUM
    n_reg = 7 * ANCHOR_NUM
    head_pad = 128                     # lane-dense, unmasked output stores
    wh = jnp.zeros((CLS_HEAD_DIM, head_pad), f32)
    wh = wh.at[:, :n_cls].set(params['cls_w'].reshape(n_cls, CLS_HEAD_DIM).T)
    wh = wh.at[:, n_cls:n_cls + n_reg].set(
        params['reg_w'].reshape(n_reg, CLS_HEAD_DIM).T)
    bh = jnp.zeros((head_pad,), f32)
    bh = bh.at[:n_cls].set(params['cls_b']).at[n_cls:n_cls + n_reg].set(params['reg_b'])

    feat, head = tail_fused(x1.reshape(rows, C1), up1.reshape(rows, C1),
                            w0, de0_shift, wh, bh)

    sp2d_nhwc = feat.reshape(Bn, Ho, Wo, CLS_HEAD_DIM)
    spatial_features_2d = jnp.transpose(sp2d_nhwc, (0, 3, 1, 2))     # NCHW
    psm = jnp.transpose(head[:, :n_cls].reshape(Bn, Ho, Wo, n_cls), (0, 3, 1, 2))
    rm = jnp.transpose(head[:, n_cls:n_cls + n_reg].reshape(Bn, Ho, Wo, n_reg),
                       (0, 3, 1, 2))

    return {'psm': psm, 'rm': rm,
            'spatial_features_2d': spatial_features_2d,
            'spatial_features': spatial_features}


# ================================== main ====================================

if __name__ == "__main__":
    key = jax.random.PRNGKey(0)
    k_par, k_xyz, k_int, k_np, k_c0, k_c1 = jax.random.split(key, 6)

    params = init_params(k_par)

    # voxel coordinates: distinct BEV cells per batch element
    cells0 = jax.random.permutation(k_c0, NY * NX)[:N_VOX_PER_B]
    cells1 = jax.random.permutation(k_c1, NY * NX)[:N_VOX_PER_B]
    cells = jnp.concatenate([cells0, cells1])
    batch_idx = jnp.repeat(jnp.arange(B), N_VOX_PER_B)
    voxel_coords = jnp.stack(
        [batch_idx, jnp.zeros_like(cells), cells // NX, cells % NX],
        axis=1).astype(jnp.int32)                                   # (Nv, 4)

    voxel_num_points = jax.random.randint(k_np, (N_VOX,), 1, MAX_PTS + 1,
                                          dtype=jnp.int32)          # (Nv,)

    lo = jnp.array(LIDAR_RANGE[:3], jnp.float32)
    hi = jnp.array(LIDAR_RANGE[3:], jnp.float32)
    xyz = lo + jax.random.uniform(k_xyz, (N_VOX, MAX_PTS, 3)) * (hi - lo)
    intensity = jax.random.uniform(k_int, (N_VOX, MAX_PTS, 1))
    voxel_features = jnp.concatenate([xyz, intensity], axis=-1)      # (Nv, P, 4)
    pad_mask = (jnp.arange(MAX_PTS)[None, :] < voxel_num_points[:, None])
    voxel_features = voxel_features * pad_mask[:, :, None].astype(jnp.float32)

    out = jax.jit(forward)(params, voxel_features, voxel_coords, voxel_num_points)
    out = jax.block_until_ready(out)

    H2 = NY // 2  # BEV after backbone/upsample: 8x8
    assert out['psm'].shape == (B, ANCHOR_NUM, H2, H2)
    assert out['rm'].shape == (B, 7 * ANCHOR_NUM, H2, H2)
    assert out['spatial_features_2d'].shape == (B, CLS_HEAD_DIM, H2, H2)
    assert out['spatial_features'].shape == (B, VFE_OUT, NY, NX)
    assert all(bool(jnp.all(jnp.isfinite(v))) for v in out.values())

    print("KERNEL_OK")
</pallas_src>

<mosaic_0001>
module attributes {stable_mosaic.version = 11 : i64} {
  func.func @_pfn_kernel(%arg0: i32, %arg1: memref<512x16xbf16, #tpu.memory_space<vmem>>, %arg2: memref<16x64xbf16, #tpu.memory_space<vmem>>, %arg3: memref<1x64xf32, #tpu.memory_space<vmem>>, %arg4: memref<64x64xf32, #tpu.memory_space<vmem>>) attributes {dimension_semantics = [#tpu.dimension_semantics<parallel>], iteration_bounds = array<i64: 1>, scalar_prefetch = 0 : i64, scratch_operands = 0 : i64, tpu.core_type = #tpu.core_type<tc>, window_params = [{transform_indices = @transform_0, window_bounds = array<i64: 512, 16>}, {pipeline_mode = #tpu.pipeline_mode<synchronous>, transform_indices = @transform_1, window_bounds = array<i64: 16, 64>}, {pipeline_mode = #tpu.pipeline_mode<synchronous>, transform_indices = @transform_2, window_bounds = array<i64: 1, 64>}, {transform_indices = @transform_3, window_bounds = array<i64: 64, 64>}]} {
    %c0 = arith.constant 0 : index
    %c0_0 = arith.constant 0 : index
    %0 = vector.load %arg1[%c0, %c0_0] : memref<512x16xbf16, #tpu.memory_space<vmem>>, vector<512x16xbf16>
    %c0_1 = arith.constant 0 : index
    %c0_2 = arith.constant 0 : index
    %1 = vector.load %arg2[%c0_1, %c0_2] : memref<16x64xbf16, #tpu.memory_space<vmem>>, vector<16x64xbf16>
    %cst = arith.constant dense<0.000000e+00> : vector<512x64xf32>
    %2 = tpu.matmul %0, %1, %cst {dimension_numbers = #tpu.dot_dimension_numbers<[1], [0], [0], [1], [0, 0, 1, 1], [], []>} : vector<512x16xbf16>, vector<16x64xbf16>, vector<512x64xf32> -> vector<512x64xf32>
    %c0_3 = arith.constant 0 : index
    %c0_4 = arith.constant 0 : index
    %3 = vector.load %arg3[%c0_3, %c0_4] : memref<1x64xf32, #tpu.memory_space<vmem>>, vector<1x64xf32>
    %4 = vector.broadcast %3 : vector<1x64xf32> to vector<512x64xf32>
    %5 = arith.addf %2, %4 : vector<512x64xf32>
    %cst_5 = arith.constant 0.000000e+00 : f32
    %6 = vector.broadcast %cst_5 : f32 to vector<512x64xf32>
    %7 = arith.maximumf %5, %6 : vector<512x64xf32>
    %8 = vector.shape_cast %7 : vector<512x64xf32> to vector<64x8x64xf32>
    %cst_6 = arith.constant dense<0xFF800000> : vector<64x64xf32>
    %9 = vector.multi_reduction <maximumf>, %8, %cst_6 [1] : vector<64x8x64xf32> to vector<64x64xf32>
    %c0_7 = arith.constant 0 : index
    %c0_8 = arith.constant 0 : index
    %10 = vector.load %arg4[%c0_7, %c0_8] : memref<64x64xf32, #tpu.memory_space<vmem>>, vector<64x64xf32>
    tpu.vector_store %arg4[%c0_7, %c0_8], %9 {strides = array<i32>} : memref<64x64xf32, #tpu.memory_space<vmem>>, vector<64x64xf32>,
    return
  }
  func.func @transform_0(%arg0: i32) -> (i32, i32) {
    %c0_i32 = arith.constant 0 : i32
    %c0_i32_0 = arith.constant 0 : i32
    return %arg0, %c0_i32 : i32, i32
  }
  func.func @transform_1(%arg0: i32) -> (i32, i32) {
    %c0_i32 = arith.constant 0 : i32
    %c0_i32_0 = arith.constant 0 : i32
    %c0_i32_1 = arith.constant 0 : i32
    return %c0_i32, %c0_i32_0 : i32, i32
  }
  func.func @transform_2(%arg0: i32) -> (i32, i32) {
    %c0_i32 = arith.constant 0 : i32
    %c0_i32_0 = arith.constant 0 : i32
    %c0_i32_1 = arith.constant 0 : i32
    return %c0_i32, %c0_i32_0 : i32, i32
  }
  func.func @transform_3(%arg0: i32) -> (i32, i32) {
    %c0_i32 = arith.constant 0 : i32
    %c0_i32_0 = arith.constant 0 : i32
    return %arg0, %c0_i32 : i32, i32
  }
}

module attributes {stable_mosaic.version = 11 : i64} {
  func.func @_conv3x3_kernel(%arg0: i32, %arg1: i32, %arg2: memref<1x16x18x64xbf16, #tpu.memory_space<vmem>>, %arg3: memref<1x2x18x64xbf16, #tpu.memory_space<vmem>>, %arg4: memref<9x64x64xbf16, #tpu.memory_space<vmem>>, %arg5: memref<1x64xf32, #tpu.memory_space<vmem>>, %arg6: memref<1x8x8x64xbf16, #tpu.memory_space<vmem>>) attributes {dimension_semantics = [#tpu.dimension_semantics<parallel>, #tpu.dimension_semantics<parallel>], iteration_bounds = array<i64: 2, 1>, scalar_prefetch = 0 : i64, scratch_operands = 0 : i64, tpu.core_type = #tpu.core_type<tc>, window_params = [{transform_indices = @transform_0, window_bounds = array<i64: 1, 16, 18, 64>}, {transform_indices = @transform_1, window_bounds = array<i64: 1, 2, 18, 64>}, {pipeline_mode = #tpu.pipeline_mode<synchronous>, transform_indices = @transform_2, window_bounds = array<i64: 9, 64, 64>}, {pipeline_mode = #tpu.pipeline_mode<synchronous>, transform_indices = @transform_3, window_bounds = array<i64: 1, 64>}, {transform_indices = @transform_4, window_bounds = array<i64: 1, 8, 8, 64>}]} {
    %c0 = arith.constant 0 : index
    %c0_0 = arith.constant 0 : index
    %c0_1 = arith.constant 0 : index
    %c0_2 = arith.constant 0 : index
    %0 = vector.load %arg2[%c0, %c0_0, %c0_1, %c0_2] : memref<1x16x18x64xbf16, #tpu.memory_space<vmem>>, vector<1x16x18x64xbf16>
    %1 = vector.shape_cast %0 : vector<1x16x18x64xbf16> to vector<16x18x64xbf16>
    %c0_3 = arith.constant 0 : index
    %c0_4 = arith.constant 0 : index
    %c0_5 = arith.constant 0 : index
    %c0_6 = arith.constant 0 : index
    %2 = vector.load %arg3[%c0_3, %c0_4, %c0_5, %c0_6] : memref<1x2x18x64xbf16, #tpu.memory_space<vmem>>, vector<1x2x18x64xbf16>
    %3 = vector.shape_cast %2 : vector<1x2x18x64xbf16> to vector<2x18x64xbf16>
    %4 = tpu.concatenate %1, %3 in 0 : vector<16x18x64xbf16>, vector<2x18x64xbf16> -> vector<18x18x64xbf16>
    %5 = vector.shape_cast %4 : vector<18x18x64xbf16> to vector<9x2x18x64xbf16>
    %6 = vector.extract_strided_slice %5 {offsets = [0, 0, 0, 0], sizes = [8, 1, 18, 64], strides = [1, 1, 1, 1]} : vector<9x2x18x64xbf16> to vector<8x1x18x64xbf16>
    %7 = vector.shape_cast %6 : vector<8x1x18x64xbf16> to vector<8x18x64xbf16>
    %8 = vector.extract_strided_slice %5 {offsets = [0, 1, 0, 0], sizes = [8, 1, 18, 64], strides = [1, 1, 1, 1]} : vector<9x2x18x64xbf16> to vector<8x1x18x64xbf16>
    %9 = vector.shape_cast %8 : vector<8x1x18x64xbf16> to vector<8x18x64xbf16>
    %10 = vector.extract_strided_slice %5 {offsets = [1, 0, 0, 0], sizes = [8, 1, 18, 64], strides = [1, 1, 1, 1]} : vector<9x2x18x64xbf16> to vector<8x1x18x64xbf16>
    %11 = vector.shape_cast %10 : vector<8x1x18x64xbf16> to vector<8x18x64xbf16>
    %12 = vector.shape_cast %7 : vector<8x18x64xbf16> to vector<8x9x2x64xbf16>
    %13 = vector.extract_strided_slice %12 {offsets = [0, 0, 0, 0], sizes = [8, 8, 1, 64], strides = [1, 1, 1, 1]} : vector<8x9x2x64xbf16> to vector<8x8x1x64xbf16>
    %14 = vector.shape_cast %13 : vector<8x8x1x64xbf16> to vector<8x8x64xbf16>
    %15 = vector.shape_cast %14 : vector<8x8x64xbf16> to vector<64x64xbf16>
    %c0_7 = arith.constant 0 : index
    %c0_8 = arith.constant 0 : index
    %c0_9 = arith.constant 0 : index
    %16 = vector.load %arg4[%c0_7, %c0_8, %c0_9] : memref<9x64x64xbf16, #tpu.memory_space<vmem>>, vector<1x64x64xbf16>
    %17 = vector.shape_cast %16 : vector<1x64x64xbf16> to vector<64x64xbf16>
    %cst = arith.constant dense<0.000000e+00> : vector<64x64xf32>
    %18 = tpu.matmul %15, %17, %cst {dimension_numbers = #tpu.dot_dimension_numbers<[1], [0], [0], [1], [0, 0, 1, 1], [], []>} : vector<64x64xbf16>, vector<64x64xbf16>, vector<64x64xf32> -> vector<64x64xf32>
    %19 = vector.extract_strided_slice %12 {offsets = [0, 0, 1, 0], sizes = [8, 8, 1, 64], strides = [1, 1, 1, 1]} : vector<8x9x2x64xbf16> to vector<8x8x1x64xbf16>
    %20 = vector.shape_cast %19 : vector<8x8x1x64xbf16> to vector<8x8x64xbf16>
    %21 = vector.shape_cast %20 : vector<8x8x64xbf16> to vector<64x64xbf16>
    %c1 = arith.constant 1 : index
    %c0_10 = arith.constant 0 : index
    %c0_11 = arith.constant 0 : index
    %22 = vector.load %arg4[%c1, %c0_10, %c0_11] : memref<9x64x64xbf16, #tpu.memory_space<vmem>>, vector<1x64x64xbf16>
    %23 = vector.shape_cast %22 : vector<1x64x64xbf16> to vector<64x64xbf16>
    %cst_12 = arith.constant dense<0.000000e+00> : vector<64x64xf32>
    %24 = tpu.matmul %21, %23, %cst_12 {dimension_numbers = #tpu.dot_dimension_numbers<[1], [0], [0], [1], [0, 0, 1, 1], [], []>} : vector<64x64xbf16>, vector<64x64xbf16>, vector<64x64xf32> -> vector<64x64xf32>
    %25 = arith.addf %18, %24 : vector<64x64xf32>
    %26 = vector.extract_strided_slice %12 {offsets = [0, 1, 0, 0], sizes = [8, 8, 1, 64], strides = [1, 1, 1, 1]} : vector<8x9x2x64xbf16> to vector<8x8x1x64xbf16>
    %27 = vector.shape_cast %26 : vector<8x8x1x64xbf16> to vector<8x8x64xbf16>
    %28 = vector.shape_cast %27 : vector<8x8x64xbf16> to vector<64x64xbf16>
    %c2 = arith.constant 2 : index
    %c0_13 = arith.constant 0 : index
    %c0_14 = arith.constant 0 : index
    %29 = vector.load %arg4[%c2, %c0_13, %c0_14] : memref<9x64x64xbf16, #tpu.memory_space<vmem>>, vector<1x64x64xbf16>
    %30 = vector.shape_cast %29 : vector<1x64x64xbf16> to vector<64x64xbf16>
    %cst_15 = arith.constant dense<0.000000e+00> : vector<64x64xf32>
    %31 = tpu.matmul %28, %30, %cst_15 {dimension_numbers = #tpu.dot_dimension_numbers<[1], [0], [0], [1], [0, 0, 1, 1], [], []>} : vector<64x64xbf16>, vector<64x64xbf16>, vector<64x64xf32> -> vector<64x64xf32>
    %32 = arith.addf %25, %31 : vector<64x64xf32>
    %33 = vector.shape_cast %9 : vector<8x18x64xbf16> to vector<8x9x2x64xbf16>
    %34 = vector.extract_strided_slice %33 {offsets = [0, 0, 0, 0], sizes = [8, 8, 1, 64], strides = [1, 1, 1, 1]} : vector<8x9x2x64xbf16> to vector<8x8x1x64xbf16>
    %35 = vector.shape_cast %34 : vector<8x8x1x64xbf16> to vector<8x8x64xbf16>
    %36 = vector.shape_cast %35 : vector<8x8x64xbf16> to vector<64x64xbf16>
    %c3 = arith.constant 3 : index
    %c0_16 = arith.constant 0 : index
    %c0_17 = arith.constant 0 : index
    %37 = vector.load %arg4[%c3, %c0_16, %c0_17] : memref<9x64x64xbf16, #tpu.memory_space<vmem>>, vector<1x64x64xbf16>
    %38 = vector.shape_cast %37 : vector<1x64x64xbf16> to vector<64x64xbf16>
    %cst_18 = arith.constant dense<0.000000e+00> : vector<64x64xf32>
    %39 = tpu.matmul %36, %38, %cst_18 {dimension_numbers = #tpu.dot_dimension_numbers<[1], [0], [0], [1], [0, 0, 1, 1], [], []>} : vector<64x64xbf16>, vector<64x64xbf16>, vector<64x64xf32> -> vector<64x64xf32>
    %40 = arith.addf %32, %39 : vector<64x64xf32>
    %41 = vector.extract_strided_slice %33 {offsets = [0, 0, 1, 0], sizes = [8, 8, 1, 64], strides = [1, 1, 1, 1]} : vector<8x9x2x64xbf16> to vector<8x8x1x64xbf16>
    %42 = vector.shape_cast %41 : vector<8x8x1x64xbf16> to vector<8x8x64xbf16>
    %43 = vector.shape_cast %42 : vector<8x8x64xbf16> to vector<64x64xbf16>
    %c4 = arith.constant 4 : index
    %c0_19 = arith.constant 0 : index
    %c0_20 = arith.constant 0 : index
    %44 = vector.load %arg4[%c4, %c0_19, %c0_20] : memref<9x64x64xbf16, #tpu.memory_space<vmem>>, vector<1x64x64xbf16>
    %45 = vector.shape_cast %44 : vector<1x64x64xbf16> to vector<64x64xbf16>
    %cst_21 = arith.constant dense<0.000000e+00> : vector<64x64xf32>
    %46 = tpu.matmul %43, %45, %cst_21 {dimension_numbers = #tpu.dot_dimension_numbers<[1], [0], [0], [1], [0, 0, 1, 1], [], []>} : vector<64x64xbf16>, vector<64x64xbf16>, vector<64x64xf32> -> vector<64x64xf32>
    %47 = arith.addf %40, %46 : vector<64x64xf32>
    %48 = vector.extract_strided_slice %33 {offsets = [0, 1, 0, 0], sizes = [8, 8, 1, 64], strides = [1, 1, 1, 1]} : vector<8x9x2x64xbf16> to vector<8x8x1x64xbf16>
    %49 = vector.shape_cast %48 : vector<8x8x1x64xbf16> to vector<8x8x64xbf16>
    %50 = vector.shape_cast %49 : vector<8x8x64xbf16> to vector<64x64xbf16>
    %c5 = arith.constant 5 : index
    %c0_22 = arith.constant 0 : index
    %c0_23 = arith.constant 0 : index
    %51 = vector.load %arg4[%c5, %c0_22, %c0_23] : memref<9x64x64xbf16, #tpu.memory_space<vmem>>, vector<1x64x64xbf16>
    %52 = vector.shape_cast %51 : vector<1x64x64xbf16> to vector<64x64xbf16>
    %cst_24 = arith.constant dense<0.000000e+00> : vector<64x64xf32>
    %53 = tpu.matmul %50, %52, %cst_24 {dimension_numbers = #tpu.dot_dimension_numbers<[1], [0], [0], [1], [0, 0, 1, 1], [], []>} : vector<64x64xbf16>, vector<64x64xbf16>, vector<64x64xf32> -> vector<64x64xf32>
    %54 = arith.addf %47, %53 : vector<64x64xf32>
    %55 = vector.shape_cast %11 : vector<8x18x64xbf16> to vector<8x9x2x64xbf16>
    %56 = vector.extract_strided_slice %55 {offsets = [0, 0, 0, 0], sizes = [8, 8, 1, 64], strides = [1, 1, 1, 1]} : vector<8x9x2x64xbf16> to vector<8x8x1x64xbf16>
    %57 = vector.shape_cast %56 : vector<8x8x1x64xbf16> to vector<8x8x64xbf16>
    %58 = vector.shape_cast %57 : vector<8x8x64xbf16> to vector<64x64xbf16>
    %c6 = arith.constant 6 : index
    %c0_25 = arith.constant 0 : index
    %c0_26 = arith.constant 0 : index
    %59 = vector.load %arg4[%c6, %c0_25, %c0_26] : memref<9x64x64xbf16, #tpu.memory_space<vmem>>, vector<1x64x64xbf16>
    %60 = vector.shape_cast %59 : vector<1x64x64xbf16> to vector<64x64xbf16>
    %cst_27 = arith.constant dense<0.000000e+00> : vector<64x64xf32>
    %61 = tpu.matmul %58, %60, %cst_27 {dimension_numbers = #tpu.dot_dimension_numbers<[1], [0], [0], [1], [0, 0, 1, 1], [], []>} : vector<64x64xbf16>, vector<64x64xbf16>, vector<64x64xf32> -> vector<64x64xf32>
    %62 = arith.addf %54, %61 : vector<64x64xf32>
    %63 = vector.extract_strided_slice %55 {offsets = [0, 0, 1, 0], sizes = [8, 8, 1, 64], strides = [1, 1, 1, 1]} : vector<8x9x2x64xbf16> to vector<8x8x1x64xbf16>
    %64 = vector.shape_cast %63 : vector<8x8x1x64xbf16> to vector<8x8x64xbf16>
    %65 = vector.shape_cast %64 : vector<8x8x64xbf16> to vector<64x64xbf16>
    %c7 = arith.constant 7 : index
    %c0_28 = arith.constant 0 : index
    %c0_29 = arith.constant 0 : index
    %66 = vector.load %arg4[%c7, %c0_28, %c0_29] : memref<9x64x64xbf16, #tpu.memory_space<vmem>>, vector<1x64x64xbf16>
    %67 = vector.shape_cast %66 : vector<1x64x64xbf16> to vector<64x64xbf16>
    %cst_30 = arith.constant dense<0.000000e+00> : vector<64x64xf32>
    %68 = tpu.matmul %65, %67, %cst_30 {dimension_numbers = #tpu.dot_dimension_numbers<[1], [0], [0], [1], [0, 0, 1, 1], [], []>} : vector<64x64xbf16>, vector<64x64xbf16>, vector<64x64xf32> -> vector<64x64xf32>
    %69 = arith.addf %62, %68 : vector<64x64xf32>
    %70 = vector.extract_strided_slice %55 {offsets = [0, 1, 0, 0], sizes = [8, 8, 1, 64], strides = [1, 1, 1, 1]} : vector<8x9x2x64xbf16> to vector<8x8x1x64xbf16>
    %71 = vector.shape_cast %70 : vector<8x8x1x64xbf16> to vector<8x8x64xbf16>
    %72 = vector.shape_cast %71 : vector<8x8x64xbf16> to vector<64x64xbf16>
    %c8 = arith.constant 8 : index
    %c0_31 = arith.constant 0 : index
    %c0_32 = arith.constant 0 : index
    %73 = vector.load %arg4[%c8, %c0_31, %c0_32] : memref<9x64x64xbf16, #tpu.memory_space<vmem>>, vector<1x64x64xbf16>
    %74 = vector.shape_cast %73 : vector<1x64x64xbf16> to vector<64x64xbf16>
    %cst_33 = arith.constant dense<0.000000e+00> : vector<64x64xf32>
    %75 = tpu.matmul %72, %74, %cst_33 {dimension_numbers = #tpu.dot_dimension_numbers<[1], [0], [0], [1], [0, 0, 1, 1], [], []>} : vector<64x64xbf16>, vector<64x64xbf16>, vector<64x64xf32> -> vector<64x64xf32>
    %76 = arith.addf %69, %75 : vector<64x64xf32>
    %c0_34 = arith.constant 0 : index
    %c0_35 = arith.constant 0 : index
    %77 = vector.load %arg5[%c0_34, %c0_35] : memref<1x64xf32, #tpu.memory_space<vmem>>, vector<1x64xf32>
    %78 = vector.broadcast %77 : vector<1x64xf32> to vector<64x64xf32>
    %79 = arith.addf %76, %78 : vector<64x64xf32>
    %cst_36 = arith.constant 0.000000e+00 : f32
    %80 = vector.broadcast %cst_36 : f32 to vector<64x64xf32>
    %81 = arith.maximumf %79, %80 : vector<64x64xf32>
    %82 = vector.shape_cast %81 : vector<64x64xf32> to vector<8x8x64xf32>
    %83 = arith.truncf %82 : vector<8x8x64xf32> to vector<8x8x64xbf16>
    %c0_37 = arith.constant 0 : index
    %c0_38 = arith.constant 0 : index
    %c0_39 = arith.constant 0 : index
    %c0_40 = arith.constant 0 : index
    %84 = vector.load %arg6[%c0_37, %c0_38, %c0_39, %c0_40] : memref<1x8x8x64xbf16, #tpu.memory_space<vmem>>, vector<1x8x8x64xbf16>
    %85 = vector.shape_cast %84 : vector<1x8x8x64xbf16> to vector<8x8x64xbf16>
    %86 = vector.shape_cast %83 : vector<8x8x64xbf16> to vector<1x8x8x64xbf16>
    tpu.vector_store %arg6[%c0_37, %c0_38, %c0_39, %c0_40], %86 {strides = array<i32>} : memref<1x8x8x64xbf16, #tpu.memory_space<vmem>>, vector<1x8x8x64xbf16>,
    return
  }
  func.func @transform_0(%arg0: i32, %arg1: i32) -> (i32, i32, i32, i32) {
    %c0_i32 = arith.constant 0 : i32
    %c0_i32_0 = arith.constant 0 : i32
    %c0_i32_1 = arith.constant 0 : i32
    return %arg0, %arg1, %c0_i32, %c0_i32_0 : i32, i32, i32, i32
  }
  func.func @transform_1(%arg0: i32, %arg1: i32) -> (i32, i32, i32, i32) {
    %c1_i32 = arith.constant 1 : i32
    %0 = arith.addi %arg1, %c1_i32 : i32
    %c8_i32 = arith.constant 8 : i32
    %1 = arith.muli %0, %c8_i32 : i32
    %c0_i32 = arith.constant 0 : i32
    %c0_i32_0 = arith.constant 0 : i32
    %c0_i32_1 = arith.constant 0 : i32
    return %arg0, %1, %c0_i32, %c0_i32_0 : i32, i32, i32, i32
  }
  func.func @transform_2(%arg0: i32, %arg1: i32) -> (i32, i32, i32) {
    %c0_i32 = arith.constant 0 : i32
    %c0_i32_0 = arith.constant 0 : i32
    %c0_i32_1 = arith.constant 0 : i32
    %c0_i32_2 = arith.constant 0 : i32
    return %c0_i32, %c0_i32_0, %c0_i32_1 : i32, i32, i32
  }
  func.func @transform_3(%arg0: i32, %arg1: i32) -> (i32, i32) {
    %c0_i32 = arith.constant 0 : i32
    %c0_i32_0 = arith.constant 0 : i32
    %c0_i32_1 = arith.constant 0 : i32
    return %c0_i32, %c0_i32_0 : i32, i32
  }
  func.func @transform_4(%arg0: i32, %arg1: i32) -> (i32, i32, i32, i32) {
    %c0_i32 = arith.constant 0 : i32
    %c0_i32_0 = arith.constant 0 : i32
    %c0_i32_1 = arith.constant 0 : i32
    return %arg0, %arg1, %c0_i32, %c0_i32_0 : i32, i32, i32, i32
  }
}

module attributes {stable_mosaic.version = 11 : i64} {
  func.func @_conv3x3_kernel(%arg0: i32, %arg1: i32, %arg2: memref<1x8x10x64xbf16, #tpu.memory_space<vmem>>, %arg3: memref<1x2x10x64xbf16, #tpu.memory_space<vmem>>, %arg4: memref<9x64x64xbf16, #tpu.memory_space<vmem>>, %arg5: memref<1x64xf32, #tpu.memory_space<vmem>>, %arg6: memref<1x8x8x64xbf16, #tpu.memory_space<vmem>>) attributes {dimension_semantics = [#tpu.dimension_semantics<parallel>, #tpu.dimension_semantics<parallel>], iteration_bounds = array<i64: 2, 1>, scalar_prefetch = 0 : i64, scratch_operands = 0 : i64, tpu.core_type = #tpu.core_type<tc>, window_params = [{transform_indices = @transform_0, window_bounds = array<i64: 1, 8, 10, 64>}, {transform_indices = @transform_1, window_bounds = array<i64: 1, 2, 10, 64>}, {pipeline_mode = #tpu.pipeline_mode<synchronous>, transform_indices = @transform_2, window_bounds = array<i64: 9, 64, 64>}, {pipeline_mode = #tpu.pipeline_mode<synchronous>, transform_indices = @transform_3, window_bounds = array<i64: 1, 64>}, {transform_indices = @transform_4, window_bounds = array<i64: 1, 8, 8, 64>}]} {
    %c0 = arith.constant 0 : index
    %c0_0 = arith.constant 0 : index
    %c0_1 = arith.constant 0 : index
    %c0_2 = arith.constant 0 : index
    %0 = vector.load %arg2[%c0, %c0_0, %c0_1, %c0_2] : memref<1x8x10x64xbf16, #tpu.memory_space<vmem>>, vector<1x8x10x64xbf16>
    %1 = vector.shape_cast %0 : vector<1x8x10x64xbf16> to vector<8x10x64xbf16>
    %c0_3 = arith.constant 0 : index
    %c0_4 = arith.constant 0 : index
    %c0_5 = arith.constant 0 : index
    %c0_6 = arith.constant 0 : index
    %2 = vector.load %arg3[%c0_3, %c0_4, %c0_5, %c0_6] : memref<1x2x10x64xbf16, #tpu.memory_space<vmem>>, vector<1x2x10x64xbf16>
    %3 = vector.shape_cast %2 : vector<1x2x10x64xbf16> to vector<2x10x64xbf16>
    %4 = tpu.concatenate %1, %3 in 0 : vector<8x10x64xbf16>, vector<2x10x64xbf16> -> vector<10x10x64xbf16>
    %5 = vector.extract_strided_slice %4 {offsets = [0, 0, 0], sizes = [8, 10, 64], strides = [1, 1, 1]} : vector<10x10x64xbf16> to vector<8x10x64xbf16>
    %6 = vector.extract_strided_slice %4 {offsets = [1, 0, 0], sizes = [8, 10, 64], strides = [1, 1, 1]} : vector<10x10x64xbf16> to vector<8x10x64xbf16>
    %7 = vector.extract_strided_slice %4 {offsets = [2, 0, 0], sizes = [8, 10, 64], strides = [1, 1, 1]} : vector<10x10x64xbf16> to vector<8x10x64xbf16>
    %8 = vector.extract_strided_slice %5 {offsets = [0, 0, 0], sizes = [8, 8, 64], strides = [1, 1, 1]} : vector<8x10x64xbf16> to vector<8x8x64xbf16>
    %9 = vector.shape_cast %8 : vector<8x8x64xbf16> to vector<64x64xbf16>
    %c0_7 = arith.constant 0 : index
    %c0_8 = arith.constant 0 : index
    %c0_9 = arith.constant 0 : index
    %10 = vector.load %arg4[%c0_7, %c0_8, %c0_9] : memref<9x64x64xbf16, #tpu.memory_space<vmem>>, vector<1x64x64xbf16>
    %11 = vector.shape_cast %10 : vector<1x64x64xbf16> to vector<64x64xbf16>
    %cst = arith.constant dense<0.000000e+00> : vector<64x64xf32>
    %12 = tpu.matmul %9, %11, %cst {dimension_numbers = #tpu.dot_dimension_numbers<[1], [0], [0], [1], [0, 0, 1, 1], [], []>} : vector<64x64xbf16>, vector<64x64xbf16>, vector<64x64xf32> -> vector<64x64xf32>
    %13 = vector.extract_strided_slice %5 {offsets = [0, 1, 0], sizes = [8, 8, 64], strides = [1, 1, 1]} : vector<8x10x64xbf16> to vector<8x8x64xbf16>
    %14 = vector.shape_cast %13 : vector<8x8x64xbf16> to vector<64x64xbf16>
    %c1 = arith.constant 1 : index
    %c0_10 = arith.constant 0 : index
    %c0_11 = arith.constant 0 : index
    %15 = vector.load %arg4[%c1, %c0_10, %c0_11] : memref<9x64x64xbf16, #tpu.memory_space<vmem>>, vector<1x64x64xbf16>
    %16 = vector.shape_cast %15 : vector<1x64x64xbf16> to vector<64x64xbf16>
    %cst_12 = arith.constant dense<0.000000e+00> : vector<64x64xf32>
    %17 = tpu.matmul %14, %16, %cst_12 {dimension_numbers = #tpu.dot_dimension_numbers<[1], [0], [0], [1], [0, 0, 1, 1], [], []>} : vector<64x64xbf16>, vector<64x64xbf16>, vector<64x64xf32> -> vector<64x64xf32>
    %18 = arith.addf %12, %17 : vector<64x64xf32>
    %19 = vector.extract_strided_slice %5 {offsets = [0, 2, 0], sizes = [8, 8, 64], strides = [1, 1, 1]} : vector<8x10x64xbf16> to vector<8x8x64xbf16>
    %20 = vector.shape_cast %19 : vector<8x8x64xbf16> to vector<64x64xbf16>
    %c2 = arith.constant 2 : index
    %c0_13 = arith.constant 0 : index
    %c0_14 = arith.constant 0 : index
    %21 = vector.load %arg4[%c2, %c0_13, %c0_14] : memref<9x64x64xbf16, #tpu.memory_space<vmem>>, vector<1x64x64xbf16>
    %22 = vector.shape_cast %21 : vector<1x64x64xbf16> to vector<64x64xbf16>
    %cst_15 = arith.constant dense<0.000000e+00> : vector<64x64xf32>
    %23 = tpu.matmul %20, %22, %cst_15 {dimension_numbers = #tpu.dot_dimension_numbers<[1], [0], [0], [1], [0, 0, 1, 1], [], []>} : vector<64x64xbf16>, vector<64x64xbf16>, vector<64x64xf32> -> vector<64x64xf32>
    %24 = arith.addf %18, %23 : vector<64x64xf32>
    %25 = vector.extract_strided_slice %6 {offsets = [0, 0, 0], sizes = [8, 8, 64], strides = [1, 1, 1]} : vector<8x10x64xbf16> to vector<8x8x64xbf16>
    %26 = vector.shape_cast %25 : vector<8x8x64xbf16> to vector<64x64xbf16>
    %c3 = arith.constant 3 : index
    %c0_16 = arith.constant 0 : index
    %c0_17 = arith.constant 0 : index
    %27 = vector.load %arg4[%c3, %c0_16, %c0_17] : memref<9x64x64xbf16, #tpu.memory_space<vmem>>, vector<1x64x64xbf16>
    %28 = vector.shape_cast %27 : vector<1x64x64xbf16> to vector<64x64xbf16>
    %cst_18 = arith.constant dense<0.000000e+00> : vector<64x64xf32>
    %29 = tpu.matmul %26, %28, %cst_18 {dimension_numbers = #tpu.dot_dimension_numbers<[1], [0], [0], [1], [0, 0, 1, 1], [], []>} : vector<64x64xbf16>, vector<64x64xbf16>, vector<64x64xf32> -> vector<64x64xf32>
    %30 = arith.addf %24, %29 : vector<64x64xf32>
    %31 = vector.extract_strided_slice %6 {offsets = [0, 1, 0], sizes = [8, 8, 64], strides = [1, 1, 1]} : vector<8x10x64xbf16> to vector<8x8x64xbf16>
    %32 = vector.shape_cast %31 : vector<8x8x64xbf16> to vector<64x64xbf16>
    %c4 = arith.constant 4 : index
    %c0_19 = arith.constant 0 : index
    %c0_20 = arith.constant 0 : index
    %33 = vector.load %arg4[%c4, %c0_19, %c0_20] : memref<9x64x64xbf16, #tpu.memory_space<vmem>>, vector<1x64x64xbf16>
    %34 = vector.shape_cast %33 : vector<1x64x64xbf16> to vector<64x64xbf16>
    %cst_21 = arith.constant dense<0.000000e+00> : vector<64x64xf32>
    %35 = tpu.matmul %32, %34, %cst_21 {dimension_numbers = #tpu.dot_dimension_numbers<[1], [0], [0], [1], [0, 0, 1, 1], [], []>} : vector<64x64xbf16>, vector<64x64xbf16>, vector<64x64xf32> -> vector<64x64xf32>
    %36 = arith.addf %30, %35 : vector<64x64xf32>
    %37 = vector.extract_strided_slice %6 {offsets = [0, 2, 0], sizes = [8, 8, 64], strides = [1, 1, 1]} : vector<8x10x64xbf16> to vector<8x8x64xbf16>
    %38 = vector.shape_cast %37 : vector<8x8x64xbf16> to vector<64x64xbf16>
    %c5 = arith.constant 5 : index
    %c0_22 = arith.constant 0 : index
    %c0_23 = arith.constant 0 : index
    %39 = vector.load %arg4[%c5, %c0_22, %c0_23] : memref<9x64x64xbf16, #tpu.memory_space<vmem>>, vector<1x64x64xbf16>
    %40 = vector.shape_cast %39 : vector<1x64x64xbf16> to vector<64x64xbf16>
    %cst_24 = arith.constant dense<0.000000e+00> : vector<64x64xf32>
    %41 = tpu.matmul %38, %40, %cst_24 {dimension_numbers = #tpu.dot_dimension_numbers<[1], [0], [0], [1], [0, 0, 1, 1], [], []>} : vector<64x64xbf16>, vector<64x64xbf16>, vector<64x64xf32> -> vector<64x64xf32>
    %42 = arith.addf %36, %41 : vector<64x64xf32>
    %43 = vector.extract_strided_slice %7 {offsets = [0, 0, 0], sizes = [8, 8, 64], strides = [1, 1, 1]} : vector<8x10x64xbf16> to vector<8x8x64xbf16>
    %44 = vector.shape_cast %43 : vector<8x8x64xbf16> to vector<64x64xbf16>
    %c6 = arith.constant 6 : index
    %c0_25 = arith.constant 0 : index
    %c0_26 = arith.constant 0 : index
    %45 = vector.load %arg4[%c6, %c0_25, %c0_26] : memref<9x64x64xbf16, #tpu.memory_space<vmem>>, vector<1x64x64xbf16>
    %46 = vector.shape_cast %45 : vector<1x64x64xbf16> to vector<64x64xbf16>
    %cst_27 = arith.constant dense<0.000000e+00> : vector<64x64xf32>
    %47 = tpu.matmul %44, %46, %cst_27 {dimension_numbers = #tpu.dot_dimension_numbers<[1], [0], [0], [1], [0, 0, 1, 1], [], []>} : vector<64x64xbf16>, vector<64x64xbf16>, vector<64x64xf32> -> vector<64x64xf32>
    %48 = arith.addf %42, %47 : vector<64x64xf32>
    %49 = vector.extract_strided_slice %7 {offsets = [0, 1, 0], sizes = [8, 8, 64], strides = [1, 1, 1]} : vector<8x10x64xbf16> to vector<8x8x64xbf16>
    %50 = vector.shape_cast %49 : vector<8x8x64xbf16> to vector<64x64xbf16>
    %c7 = arith.constant 7 : index
    %c0_28 = arith.constant 0 : index
    %c0_29 = arith.constant 0 : index
    %51 = vector.load %arg4[%c7, %c0_28, %c0_29] : memref<9x64x64xbf16, #tpu.memory_space<vmem>>, vector<1x64x64xbf16>
    %52 = vector.shape_cast %51 : vector<1x64x64xbf16> to vector<64x64xbf16>
    %cst_30 = arith.constant dense<0.000000e+00> : vector<64x64xf32>
    %53 = tpu.matmul %50, %52, %cst_30 {dimension_numbers = #tpu.dot_dimension_numbers<[1], [0], [0], [1], [0, 0, 1, 1], [], []>} : vector<64x64xbf16>, vector<64x64xbf16>, vector<64x64xf32> -> vector<64x64xf32>
    %54 = arith.addf %48, %53 : vector<64x64xf32>
    %55 = vector.extract_strided_slice %7 {offsets = [0, 2, 0], sizes = [8, 8, 64], strides = [1, 1, 1]} : vector<8x10x64xbf16> to vector<8x8x64xbf16>
    %56 = vector.shape_cast %55 : vector<8x8x64xbf16> to vector<64x64xbf16>
    %c8 = arith.constant 8 : index
    %c0_31 = arith.constant 0 : index
    %c0_32 = arith.constant 0 : index
    %57 = vector.load %arg4[%c8, %c0_31, %c0_32] : memref<9x64x64xbf16, #tpu.memory_space<vmem>>, vector<1x64x64xbf16>
    %58 = vector.shape_cast %57 : vector<1x64x64xbf16> to vector<64x64xbf16>
    %cst_33 = arith.constant dense<0.000000e+00> : vector<64x64xf32>
    %59 = tpu.matmul %56, %58, %cst_33 {dimension_numbers = #tpu.dot_dimension_numbers<[1], [0], [0], [1], [0, 0, 1, 1], [], []>} : vector<64x64xbf16>, vector<64x64xbf16>, vector<64x64xf32> -> vector<64x64xf32>
    %60 = arith.addf %54, %59 : vector<64x64xf32>
    %c0_34 = arith.constant 0 : index
    %c0_35 = arith.constant 0 : index
    %61 = vector.load %arg5[%c0_34, %c0_35] : memref<1x64xf32, #tpu.memory_space<vmem>>, vector<1x64xf32>
    %62 = vector.broadcast %61 : vector<1x64xf32> to vector<64x64xf32>
    %63 = arith.addf %60, %62 : vector<64x64xf32>
    %cst_36 = arith.constant 0.000000e+00 : f32
    %64 = vector.broadcast %cst_36 : f32 to vector<64x64xf32>
    %65 = arith.maximumf %63, %64 : vector<64x64xf32>
    %66 = vector.shape_cast %65 : vector<64x64xf32> to vector<8x8x64xf32>
    %67 = arith.truncf %66 : vector<8x8x64xf32> to vector<8x8x64xbf16>
    %c0_37 = arith.constant 0 : index
    %c0_38 = arith.constant 0 : index
    %c0_39 = arith.constant 0 : index
    %c0_40 = arith.constant 0 : index
    %68 = vector.load %arg6[%c0_37, %c0_38, %c0_39, %c0_40] : memref<1x8x8x64xbf16, #tpu.memory_space<vmem>>, vector<1x8x8x64xbf16>
    %69 = vector.shape_cast %68 : vector<1x8x8x64xbf16> to vector<8x8x64xbf16>
    %70 = vector.shape_cast %67 : vector<8x8x64xbf16> to vector<1x8x8x64xbf16>
    tpu.vector_store %arg6[%c0_37, %c0_38, %c0_39, %c0_40], %70 {strides = array<i32>} : memref<1x8x8x64xbf16, #tpu.memory_space<vmem>>, vector<1x8x8x64xbf16>,
    return
  }
  func.func @transform_0(%arg0: i32, %arg1: i32) -> (i32, i32, i32, i32) {
    %c0_i32 = arith.constant 0 : i32
    %c0_i32_0 = arith.constant 0 : i32
    %c0_i32_1 = arith.constant 0 : i32
    return %arg0, %arg1, %c0_i32, %c0_i32_0 : i32, i32, i32, i32
  }
  func.func @transform_1(%arg0: i32, %arg1: i32) -> (i32, i32, i32, i32) {
    %c1_i32 = arith.constant 1 : i32
    %0 = arith.addi %arg1, %c1_i32 : i32
    %c4_i32 = arith.constant 4 : i32
    %1 = arith.muli %0, %c4_i32 : i32
    %c0_i32 = arith.constant 0 : i32
    %c0_i32_0 = arith.constant 0 : i32
    %c0_i32_1 = arith.constant 0 : i32
    return %arg0, %1, %c0_i32, %c0_i32_0 : i32, i32, i32, i32
  }
  func.func @transform_2(%arg0: i32, %arg1: i32) -> (i32, i32, i32) {
    %c0_i32 = arith.constant 0 : i32
    %c0_i32_0 = arith.constant 0 : i32
    %c0_i32_1 = arith.constant 0 : i32
    %c0_i32_2 = arith.constant 0 : i32
    return %c0_i32, %c0_i32_0, %c0_i32_1 : i32, i32, i32
  }
  func.func @transform_3(%arg0: i32, %arg1: i32) -> (i32, i32) {
    %c0_i32 = arith.constant 0 : i32
    %c0_i32_0 = arith.constant 0 : i32
    %c0_i32_1 = arith.constant 0 : i32
    return %c0_i32, %c0_i32_0 : i32, i32
  }
  func.func @transform_4(%arg0: i32, %arg1: i32) -> (i32, i32, i32, i32) {
    %c0_i32 = arith.constant 0 : i32
    %c0_i32_0 = arith.constant 0 : i32
    %c0_i32_1 = arith.constant 0 : i32
    return %arg0, %arg1, %c0_i32, %c0_i32_0 : i32, i32, i32, i32
  }
}

module attributes {stable_mosaic.version = 11 : i64} {
  func.func @_conv3x3_kernel(%arg0: i32, %arg1: i32, %arg2: memref<1x8x10x64xbf16, #tpu.memory_space<vmem>>, %arg3: memref<1x2x10x64xbf16, #tpu.memory_space<vmem>>, %arg4: memref<9x64x64xbf16, #tpu.memory_space<vmem>>, %arg5: memref<1x64xf32, #tpu.memory_space<vmem>>, %arg6: memref<1x4x4x64xbf16, #tpu.memory_space<vmem>>) attributes {dimension_semantics = [#tpu.dimension_semantics<parallel>, #tpu.dimension_semantics<parallel>], iteration_bounds = array<i64: 2, 1>, scalar_prefetch = 0 : i64, scratch_operands = 0 : i64, tpu.core_type = #tpu.core_type<tc>, window_params = [{transform_indices = @transform_0, window_bounds = array<i64: 1, 8, 10, 64>}, {transform_indices = @transform_1, window_bounds = array<i64: 1, 2, 10, 64>}, {pipeline_mode = #tpu.pipeline_mode<synchronous>, transform_indices = @transform_2, window_bounds = array<i64: 9, 64, 64>}, {pipeline_mode = #tpu.pipeline_mode<synchronous>, transform_indices = @transform_3, window_bounds = array<i64: 1, 64>}, {transform_indices = @transform_4, window_bounds = array<i64: 1, 4, 4, 64>}]} {
    %c0 = arith.constant 0 : index
    %c0_0 = arith.constant 0 : index
    %c0_1 = arith.constant 0 : index
    %c0_2 = arith.constant 0 : index
    %0 = vector.load %arg2[%c0, %c0_0, %c0_1, %c0_2] : memref<1x8x10x64xbf16, #tpu.memory_space<vmem>>, vector<1x8x10x64xbf16>
    %1 = vector.shape_cast %0 : vector<1x8x10x64xbf16> to vector<8x10x64xbf16>
    %c0_3 = arith.constant 0 : index
    %c0_4 = arith.constant 0 : index
    %c0_5 = arith.constant 0 : index
    %c0_6 = arith.constant 0 : index
    %2 = vector.load %arg3[%c0_3, %c0_4, %c0_5, %c0_6] : memref<1x2x10x64xbf16, #tpu.memory_space<vmem>>, vector<1x2x10x64xbf16>
    %3 = vector.shape_cast %2 : vector<1x2x10x64xbf16> to vector<2x10x64xbf16>
    %4 = tpu.concatenate %1, %3 in 0 : vector<8x10x64xbf16>, vector<2x10x64xbf16> -> vector<10x10x64xbf16>
    %5 = vector.shape_cast %4 : vector<10x10x64xbf16> to vector<5x2x10x64xbf16>
    %6 = vector.extract_strided_slice %5 {offsets = [0, 0, 0, 0], sizes = [4, 1, 10, 64], strides = [1, 1, 1, 1]} : vector<5x2x10x64xbf16> to vector<4x1x10x64xbf16>
    %7 = vector.shape_cast %6 : vector<4x1x10x64xbf16> to vector<4x10x64xbf16>
    %8 = vector.extract_strided_slice %5 {offsets = [0, 1, 0, 0], sizes = [4, 1, 10, 64], strides = [1, 1, 1, 1]} : vector<5x2x10x64xbf16> to vector<4x1x10x64xbf16>
    %9 = vector.shape_cast %8 : vector<4x1x10x64xbf16> to vector<4x10x64xbf16>
    %10 = vector.extract_strided_slice %5 {offsets = [1, 0, 0, 0], sizes = [4, 1, 10, 64], strides = [1, 1, 1, 1]} : vector<5x2x10x64xbf16> to vector<4x1x10x64xbf16>
    %11 = vector.shape_cast %10 : vector<4x1x10x64xbf16> to vector<4x10x64xbf16>
    %12 = vector.shape_cast %7 : vector<4x10x64xbf16> to vector<4x5x2x64xbf16>
    %13 = vector.extract_strided_slice %12 {offsets = [0, 0, 0, 0], sizes = [4, 4, 1, 64], strides = [1, 1, 1, 1]} : vector<4x5x2x64xbf16> to vector<4x4x1x64xbf16>
    %14 = vector.shape_cast %13 : vector<4x4x1x64xbf16> to vector<4x4x64xbf16>
    %15 = vector.shape_cast %14 : vector<4x4x64xbf16> to vector<16x64xbf16>
    %c0_7 = arith.constant 0 : index
    %c0_8 = arith.constant 0 : index
    %c0_9 = arith.constant 0 : index
    %16 = vector.load %arg4[%c0_7, %c0_8, %c0_9] : memref<9x64x64xbf16, #tpu.memory_space<vmem>>, vector<1x64x64xbf16>
    %17 = vector.shape_cast %16 : vector<1x64x64xbf16> to vector<64x64xbf16>
    %cst = arith.constant dense<0.000000e+00> : vector<16x64xf32>
    %18 = tpu.matmul %15, %17, %cst {dimension_numbers = #tpu.dot_dimension_numbers<[1], [0], [0], [1], [0, 0, 1, 1], [], []>} : vector<16x64xbf16>, vector<64x64xbf16>, vector<16x64xf32> -> vector<16x64xf32>
    %19 = vector.extract_strided_slice %12 {offsets = [0, 0, 1, 0], sizes = [4, 4, 1, 64], strides = [1, 1, 1, 1]} : vector<4x5x2x64xbf16> to vector<4x4x1x64xbf16>
    %20 = vector.shape_cast %19 : vector<4x4x1x64xbf16> to vector<4x4x64xbf16>
    %21 = vector.shape_cast %20 : vector<4x4x64xbf16> to vector<16x64xbf16>
    %c1 = arith.constant 1 : index
    %c0_10 = arith.constant 0 : index
    %c0_11 = arith.constant 0 : index
    %22 = vector.load %arg4[%c1, %c0_10, %c0_11] : memref<9x64x64xbf16, #tpu.memory_space<vmem>>, vector<1x64x64xbf16>
    %23 = vector.shape_cast %22 : vector<1x64x64xbf16> to vector<64x64xbf16>
    %cst_12 = arith.constant dense<0.000000e+00> : vector<16x64xf32>
    %24 = tpu.matmul %21, %23, %cst_12 {dimension_numbers = #tpu.dot_dimension_numbers<[1], [0], [0], [1], [0, 0, 1, 1], [], []>} : vector<16x64xbf16>, vector<64x64xbf16>, vector<16x64xf32> -> vector<16x64xf32>
    %25 = arith.addf %18, %24 : vector<16x64xf32>
    %26 = vector.extract_strided_slice %12 {offsets = [0, 1, 0, 0], sizes = [4, 4, 1, 64], strides = [1, 1, 1, 1]} : vector<4x5x2x64xbf16> to vector<4x4x1x64xbf16>
    %27 = vector.shape_cast %26 : vector<4x4x1x64xbf16> to vector<4x4x64xbf16>
    %28 = vector.shape_cast %27 : vector<4x4x64xbf16> to vector<16x64xbf16>
    %c2 = arith.constant 2 : index
    %c0_13 = arith.constant 0 : index
    %c0_14 = arith.constant 0 : index
    %29 = vector.load %arg4[%c2, %c0_13, %c0_14] : memref<9x64x64xbf16, #tpu.memory_space<vmem>>, vector<1x64x64xbf16>
    %30 = vector.shape_cast %29 : vector<1x64x64xbf16> to vector<64x64xbf16>
    %cst_15 = arith.constant dense<0.000000e+00> : vector<16x64xf32>
    %31 = tpu.matmul %28, %30, %cst_15 {dimension_numbers = #tpu.dot_dimension_numbers<[1], [0], [0], [1], [0, 0, 1, 1], [], []>} : vector<16x64xbf16>, vector<64x64xbf16>, vector<16x64xf32> -> vector<16x64xf32>
    %32 = arith.addf %25, %31 : vector<16x64xf32>
    %33 = vector.shape_cast %9 : vector<4x10x64xbf16> to vector<4x5x2x64xbf16>
    %34 = vector.extract_strided_slice %33 {offsets = [0, 0, 0, 0], sizes = [4, 4, 1, 64], strides = [1, 1, 1, 1]} : vector<4x5x2x64xbf16> to vector<4x4x1x64xbf16>
    %35 = vector.shape_cast %34 : vector<4x4x1x64xbf16> to vector<4x4x64xbf16>
    %36 = vector.shape_cast %35 : vector<4x4x64xbf16> to vector<16x64xbf16>
    %c3 = arith.constant 3 : index
    %c0_16 = arith.constant 0 : index
    %c0_17 = arith.constant 0 : index
    %37 = vector.load %arg4[%c3, %c0_16, %c0_17] : memref<9x64x64xbf16, #tpu.memory_space<vmem>>, vector<1x64x64xbf16>
    %38 = vector.shape_cast %37 : vector<1x64x64xbf16> to vector<64x64xbf16>
    %cst_18 = arith.constant dense<0.000000e+00> : vector<16x64xf32>
    %39 = tpu.matmul %36, %38, %cst_18 {dimension_numbers = #tpu.dot_dimension_numbers<[1], [0], [0], [1], [0, 0, 1, 1], [], []>} : vector<16x64xbf16>, vector<64x64xbf16>, vector<16x64xf32> -> vector<16x64xf32>
    %40 = arith.addf %32, %39 : vector<16x64xf32>
    %41 = vector.extract_strided_slice %33 {offsets = [0, 0, 1, 0], sizes = [4, 4, 1, 64], strides = [1, 1, 1, 1]} : vector<4x5x2x64xbf16> to vector<4x4x1x64xbf16>
    %42 = vector.shape_cast %41 : vector<4x4x1x64xbf16> to vector<4x4x64xbf16>
    %43 = vector.shape_cast %42 : vector<4x4x64xbf16> to vector<16x64xbf16>
    %c4 = arith.constant 4 : index
    %c0_19 = arith.constant 0 : index
    %c0_20 = arith.constant 0 : index
    %44 = vector.load %arg4[%c4, %c0_19, %c0_20] : memref<9x64x64xbf16, #tpu.memory_space<vmem>>, vector<1x64x64xbf16>
    %45 = vector.shape_cast %44 : vector<1x64x64xbf16> to vector<64x64xbf16>
    %cst_21 = arith.constant dense<0.000000e+00> : vector<16x64xf32>
    %46 = tpu.matmul %43, %45, %cst_21 {dimension_numbers = #tpu.dot_dimension_numbers<[1], [0], [0], [1], [0, 0, 1, 1], [], []>} : vector<16x64xbf16>, vector<64x64xbf16>, vector<16x64xf32> -> vector<16x64xf32>
    %47 = arith.addf %40, %46 : vector<16x64xf32>
    %48 = vector.extract_strided_slice %33 {offsets = [0, 1, 0, 0], sizes = [4, 4, 1, 64], strides = [1, 1, 1, 1]} : vector<4x5x2x64xbf16> to vector<4x4x1x64xbf16>
    %49 = vector.shape_cast %48 : vector<4x4x1x64xbf16> to vector<4x4x64xbf16>
    %50 = vector.shape_cast %49 : vector<4x4x64xbf16> to vector<16x64xbf16>
    %c5 = arith.constant 5 : index
    %c0_22 = arith.constant 0 : index
    %c0_23 = arith.constant 0 : index
    %51 = vector.load %arg4[%c5, %c0_22, %c0_23] : memref<9x64x64xbf16, #tpu.memory_space<vmem>>, vector<1x64x64xbf16>
    %52 = vector.shape_cast %51 : vector<1x64x64xbf16> to vector<64x64xbf16>
    %cst_24 = arith.constant dense<0.000000e+00> : vector<16x64xf32>
    %53 = tpu.matmul %50, %52, %cst_24 {dimension_numbers = #tpu.dot_dimension_numbers<[1], [0], [0], [1], [0, 0, 1, 1], [], []>} : vector<16x64xbf16>, vector<64x64xbf16>, vector<16x64xf32> -> vector<16x64xf32>
    %54 = arith.addf %47, %53 : vector<16x64xf32>
    %55 = vector.shape_cast %11 : vector<4x10x64xbf16> to vector<4x5x2x64xbf16>
    %56 = vector.extract_strided_slice %55 {offsets = [0, 0, 0, 0], sizes = [4, 4, 1, 64], strides = [1, 1, 1, 1]} : vector<4x5x2x64xbf16> to vector<4x4x1x64xbf16>
    %57 = vector.shape_cast %56 : vector<4x4x1x64xbf16> to vector<4x4x64xbf16>
    %58 = vector.shape_cast %57 : vector<4x4x64xbf16> to vector<16x64xbf16>
    %c6 = arith.constant 6 : index
    %c0_25 = arith.constant 0 : index
    %c0_26 = arith.constant 0 : index
    %59 = vector.load %arg4[%c6, %c0_25, %c0_26] : memref<9x64x64xbf16, #tpu.memory_space<vmem>>, vector<1x64x64xbf16>
    %60 = vector.shape_cast %59 : vector<1x64x64xbf16> to vector<64x64xbf16>
    %cst_27 = arith.constant dense<0.000000e+00> : vector<16x64xf32>
    %61 = tpu.matmul %58, %60, %cst_27 {dimension_numbers = #tpu.dot_dimension_numbers<[1], [0], [0], [1], [0, 0, 1, 1], [], []>} : vector<16x64xbf16>, vector<64x64xbf16>, vector<16x64xf32> -> vector<16x64xf32>
    %62 = arith.addf %54, %61 : vector<16x64xf32>
    %63 = vector.extract_strided_slice %55 {offsets = [0, 0, 1, 0], sizes = [4, 4, 1, 64], strides = [1, 1, 1, 1]} : vector<4x5x2x64xbf16> to vector<4x4x1x64xbf16>
    %64 = vector.shape_cast %63 : vector<4x4x1x64xbf16> to vector<4x4x64xbf16>
    %65 = vector.shape_cast %64 : vector<4x4x64xbf16> to vector<16x64xbf16>
    %c7 = arith.constant 7 : index
    %c0_28 = arith.constant 0 : index
    %c0_29 = arith.constant 0 : index
    %66 = vector.load %arg4[%c7, %c0_28, %c0_29] : memref<9x64x64xbf16, #tpu.memory_space<vmem>>, vector<1x64x64xbf16>
    %67 = vector.shape_cast %66 : vector<1x64x64xbf16> to vector<64x64xbf16>
    %cst_30 = arith.constant dense<0.000000e+00> : vector<16x64xf32>
    %68 = tpu.matmul %65, %67, %cst_30 {dimension_numbers = #tpu.dot_dimension_numbers<[1], [0], [0], [1], [0, 0, 1, 1], [], []>} : vector<16x64xbf16>, vector<64x64xbf16>, vector<16x64xf32> -> vector<16x64xf32>
    %69 = arith.addf %62, %68 : vector<16x64xf32>
    %70 = vector.extract_strided_slice %55 {offsets = [0, 1, 0, 0], sizes = [4, 4, 1, 64], strides = [1, 1, 1, 1]} : vector<4x5x2x64xbf16> to vector<4x4x1x64xbf16>
    %71 = vector.shape_cast %70 : vector<4x4x1x64xbf16> to vector<4x4x64xbf16>
    %72 = vector.shape_cast %71 : vector<4x4x64xbf16> to vector<16x64xbf16>
    %c8 = arith.constant 8 : index
    %c0_31 = arith.constant 0 : index
    %c0_32 = arith.constant 0 : index
    %73 = vector.load %arg4[%c8, %c0_31, %c0_32] : memref<9x64x64xbf16, #tpu.memory_space<vmem>>, vector<1x64x64xbf16>
    %74 = vector.shape_cast %73 : vector<1x64x64xbf16> to vector<64x64xbf16>
    %cst_33 = arith.constant dense<0.000000e+00> : vector<16x64xf32>
    %75 = tpu.matmul %72, %74, %cst_33 {dimension_numbers = #tpu.dot_dimension_numbers<[1], [0], [0], [1], [0, 0, 1, 1], [], []>} : vector<16x64xbf16>, vector<64x64xbf16>, vector<16x64xf32> -> vector<16x64xf32>
    %76 = arith.addf %69, %75 : vector<16x64xf32>
    %c0_34 = arith.constant 0 : index
    %c0_35 = arith.constant 0 : index
    %77 = vector.load %arg5[%c0_34, %c0_35] : memref<1x64xf32, #tpu.memory_space<vmem>>, vector<1x64xf32>
    %78 = vector.broadcast %77 : vector<1x64xf32> to vector<16x64xf32>
    %79 = arith.addf %76, %78 : vector<16x64xf32>
    %cst_36 = arith.constant 0.000000e+00 : f32
    %80 = vector.broadcast %cst_36 : f32 to vector<16x64xf32>
    %81 = arith.maximumf %79, %80 : vector<16x64xf32>
    %82 = vector.shape_cast %81 : vector<16x64xf32> to vector<4x4x64xf32>
    %83 = arith.truncf %82 : vector<4x4x64xf32> to vector<4x4x64xbf16>
    %c0_37 = arith.constant 0 : index
    %c0_38 = arith.constant 0 : index
    %c0_39 = arith.constant 0 : index
    %c0_40 = arith.constant 0 : index
    %84 = vector.load %arg6[%c0_37, %c0_38, %c0_39, %c0_40] : memref<1x4x4x64xbf16, #tpu.memory_space<vmem>>, vector<1x4x4x64xbf16>
    %85 = vector.shape_cast %84 : vector<1x4x4x64xbf16> to vector<4x4x64xbf16>
    %86 = vector.shape_cast %83 : vector<4x4x64xbf16> to vector<1x4x4x64xbf16>
    tpu.vector_store %arg6[%c0_37, %c0_38, %c0_39, %c0_40], %86 {strides = array<i32>} : memref<1x4x4x64xbf16, #tpu.memory_space<vmem>>, vector<1x4x4x64xbf16>,
    return
  }
  func.func @transform_0(%arg0: i32, %arg1: i32) -> (i32, i32, i32, i32) {
    %c0_i32 = arith.constant 0 : i32
    %c0_i32_0 = arith.constant 0 : i32
    %c0_i32_1 = arith.constant 0 : i32
    return %arg0, %arg1, %c0_i32, %c0_i32_0 : i32, i32, i32, i32
  }
  func.func @transform_1(%arg0: i32, %arg1: i32) -> (i32, i32, i32, i32) {
    %c1_i32 = arith.constant 1 : i32
    %0 = arith.addi %arg1, %c1_i32 : i32
    %c4_i32 = arith.constant 4 : i32
    %1 = arith.muli %0, %c4_i32 : i32
    %c0_i32 = arith.constant 0 : i32
    %c0_i32_0 = arith.constant 0 : i32
    %c0_i32_1 = arith.constant 0 : i32
    return %arg0, %1, %c0_i32, %c0_i32_0 : i32, i32, i32, i32
  }
  func.func @transform_2(%arg0: i32, %arg1: i32) -> (i32, i32, i32) {
    %c0_i32 = arith.constant 0 : i32
    %c0_i32_0 = arith.constant 0 : i32
    %c0_i32_1 = arith.constant 0 : i32
    %c0_i32_2 = arith.constant 0 : i32
    return %c0_i32, %c0_i32_0, %c0_i32_1 : i32, i32, i32
  }
  func.func @transform_3(%arg0: i32, %arg1: i32) -> (i32, i32) {
    %c0_i32 = arith.constant 0 : i32
    %c0_i32_0 = arith.constant 0 : i32
    %c0_i32_1 = arith.constant 0 : i32
    return %c0_i32, %c0_i32_0 : i32, i32
  }
  func.func @transform_4(%arg0: i32, %arg1: i32) -> (i32, i32, i32, i32) {
    %c0_i32 = arith.constant 0 : i32
    %c0_i32_0 = arith.constant 0 : i32
    %c0_i32_1 = arith.constant 0 : i32
    return %arg0, %arg1, %c0_i32, %c0_i32_0 : i32, i32, i32, i32
  }
}

module attributes {stable_mosaic.version = 11 : i64} {
  func.func @_conv3x3_kernel(%arg0: i32, %arg1: i32, %arg2: memref<1x4x6x64xbf16, #tpu.memory_space<vmem>>, %arg3: memref<1x2x6x64xbf16, #tpu.memory_space<vmem>>, %arg4: memref<9x64x64xbf16, #tpu.memory_space<vmem>>, %arg5: memref<1x64xf32, #tpu.memory_space<vmem>>, %arg6: memref<1x4x4x64xbf16, #tpu.memory_space<vmem>>) attributes {dimension_semantics = [#tpu.dimension_semantics<parallel>, #tpu.dimension_semantics<parallel>], iteration_bounds = array<i64: 2, 1>, scalar_prefetch = 0 : i64, scratch_operands = 0 : i64, tpu.core_type = #tpu.core_type<tc>, window_params = [{transform_indices = @transform_0, window_bounds = array<i64: 1, 4, 6, 64>}, {transform_indices = @transform_1, window_bounds = array<i64: 1, 2, 6, 64>}, {pipeline_mode = #tpu.pipeline_mode<synchronous>, transform_indices = @transform_2, window_bounds = array<i64: 9, 64, 64>}, {pipeline_mode = #tpu.pipeline_mode<synchronous>, transform_indices = @transform_3, window_bounds = array<i64: 1, 64>}, {transform_indices = @transform_4, window_bounds = array<i64: 1, 4, 4, 64>}]} {
    %c0 = arith.constant 0 : index
    %c0_0 = arith.constant 0 : index
    %c0_1 = arith.constant 0 : index
    %c0_2 = arith.constant 0 : index
    %0 = vector.load %arg2[%c0, %c0_0, %c0_1, %c0_2] : memref<1x4x6x64xbf16, #tpu.memory_space<vmem>>, vector<1x4x6x64xbf16>
    %1 = vector.shape_cast %0 : vector<1x4x6x64xbf16> to vector<4x6x64xbf16>
    %c0_3 = arith.constant 0 : index
    %c0_4 = arith.constant 0 : index
    %c0_5 = arith.constant 0 : index
    %c0_6 = arith.constant 0 : index
    %2 = vector.load %arg3[%c0_3, %c0_4, %c0_5, %c0_6] : memref<1x2x6x64xbf16, #tpu.memory_space<vmem>>, vector<1x2x6x64xbf16>
    %3 = vector.shape_cast %2 : vector<1x2x6x64xbf16> to vector<2x6x64xbf16>
    %4 = tpu.concatenate %1, %3 in 0 : vector<4x6x64xbf16>, vector<2x6x64xbf16> -> vector<6x6x64xbf16>
    %5 = vector.extract_strided_slice %4 {offsets = [0, 0, 0], sizes = [4, 6, 64], strides = [1, 1, 1]} : vector<6x6x64xbf16> to vector<4x6x64xbf16>
    %6 = vector.extract_strided_slice %4 {offsets = [1, 0, 0], sizes = [4, 6, 64], strides = [1, 1, 1]} : vector<6x6x64xbf16> to vector<4x6x64xbf16>
    %7 = vector.extract_strided_slice %4 {offsets = [2, 0, 0], sizes = [4, 6, 64], strides = [1, 1, 1]} : vector<6x6x64xbf16> to vector<4x6x64xbf16>
    %8 = vector.extract_strided_slice %5 {offsets = [0, 0, 0], sizes = [4, 4, 64], strides = [1, 1, 1]} : vector<4x6x64xbf16> to vector<4x4x64xbf16>
    %9 = vector.shape_cast %8 : vector<4x4x64xbf16> to vector<16x64xbf16>
    %c0_7 = arith.constant 0 : index
    %c0_8 = arith.constant 0 : index
    %c0_9 = arith.constant 0 : index
    %10 = vector.load %arg4[%c0_7, %c0_8, %c0_9] : memref<9x64x64xbf16, #tpu.memory_space<vmem>>, vector<1x64x64xbf16>
    %11 = vector.shape_cast %10 : vector<1x64x64xbf16> to vector<64x64xbf16>
    %cst = arith.constant dense<0.000000e+00> : vector<16x64xf32>
    %12 = tpu.matmul %9, %11, %cst {dimension_numbers = #tpu.dot_dimension_numbers<[1], [0], [0], [1], [0, 0, 1, 1], [], []>} : vector<16x64xbf16>, vector<64x64xbf16>, vector<16x64xf32> -> vector<16x64xf32>
    %13 = vector.extract_strided_slice %5 {offsets = [0, 1, 0], sizes = [4, 4, 64], strides = [1, 1, 1]} : vector<4x6x64xbf16> to vector<4x4x64xbf16>
    %14 = vector.shape_cast %13 : vector<4x4x64xbf16> to vector<16x64xbf16>
    %c1 = arith.constant 1 : index
    %c0_10 = arith.constant 0 : index
    %c0_11 = arith.constant 0 : index
    %15 = vector.load %arg4[%c1, %c0_10, %c0_11] : memref<9x64x64xbf16, #tpu.memory_space<vmem>>, vector<1x64x64xbf16>
    %16 = vector.shape_cast %15 : vector<1x64x64xbf16> to vector<64x64xbf16>
    %cst_12 = arith.constant dense<0.000000e+00> : vector<16x64xf32>
    %17 = tpu.matmul %14, %16, %cst_12 {dimension_numbers = #tpu.dot_dimension_numbers<[1], [0], [0], [1], [0, 0, 1, 1], [], []>} : vector<16x64xbf16>, vector<64x64xbf16>, vector<16x64xf32> -> vector<16x64xf32>
    %18 = arith.addf %12, %17 : vector<16x64xf32>
    %19 = vector.extract_strided_slice %5 {offsets = [0, 2, 0], sizes = [4, 4, 64], strides = [1, 1, 1]} : vector<4x6x64xbf16> to vector<4x4x64xbf16>
    %20 = vector.shape_cast %19 : vector<4x4x64xbf16> to vector<16x64xbf16>
    %c2 = arith.constant 2 : index
    %c0_13 = arith.constant 0 : index
    %c0_14 = arith.constant 0 : index
    %21 = vector.load %arg4[%c2, %c0_13, %c0_14] : memref<9x64x64xbf16, #tpu.memory_space<vmem>>, vector<1x64x64xbf16>
    %22 = vector.shape_cast %21 : vector<1x64x64xbf16> to vector<64x64xbf16>
    %cst_15 = arith.constant dense<0.000000e+00> : vector<16x64xf32>
    %23 = tpu.matmul %20, %22, %cst_15 {dimension_numbers = #tpu.dot_dimension_numbers<[1], [0], [0], [1], [0, 0, 1, 1], [], []>} : vector<16x64xbf16>, vector<64x64xbf16>, vector<16x64xf32> -> vector<16x64xf32>
    %24 = arith.addf %18, %23 : vector<16x64xf32>
    %25 = vector.extract_strided_slice %6 {offsets = [0, 0, 0], sizes = [4, 4, 64], strides = [1, 1, 1]} : vector<4x6x64xbf16> to vector<4x4x64xbf16>
    %26 = vector.shape_cast %25 : vector<4x4x64xbf16> to vector<16x64xbf16>
    %c3 = arith.constant 3 : index
    %c0_16 = arith.constant 0 : index
    %c0_17 = arith.constant 0 : index
    %27 = vector.load %arg4[%c3, %c0_16, %c0_17] : memref<9x64x64xbf16, #tpu.memory_space<vmem>>, vector<1x64x64xbf16>
    %28 = vector.shape_cast %27 : vector<1x64x64xbf16> to vector<64x64xbf16>
    %cst_18 = arith.constant dense<0.000000e+00> : vector<16x64xf32>
    %29 = tpu.matmul %26, %28, %cst_18 {dimension_numbers = #tpu.dot_dimension_numbers<[1], [0], [0], [1], [0, 0, 1, 1], [], []>} : vector<16x64xbf16>, vector<64x64xbf16>, vector<16x64xf32> -> vector<16x64xf32>
    %30 = arith.addf %24, %29 : vector<16x64xf32>
    %31 = vector.extract_strided_slice %6 {offsets = [0, 1, 0], sizes = [4, 4, 64], strides = [1, 1, 1]} : vector<4x6x64xbf16> to vector<4x4x64xbf16>
    %32 = vector.shape_cast %31 : vector<4x4x64xbf16> to vector<16x64xbf16>
    %c4 = arith.constant 4 : index
    %c0_19 = arith.constant 0 : index
    %c0_20 = arith.constant 0 : index
    %33 = vector.load %arg4[%c4, %c0_19, %c0_20] : memref<9x64x64xbf16, #tpu.memory_space<vmem>>, vector<1x64x64xbf16>
    %34 = vector.shape_cast %33 : vector<1x64x64xbf16> to vector<64x64xbf16>
    %cst_21 = arith.constant dense<0.000000e+00> : vector<16x64xf32>
    %35 = tpu.matmul %32, %34, %cst_21 {dimension_numbers = #tpu.dot_dimension_numbers<[1], [0], [0], [1], [0, 0, 1, 1], [], []>} : vector<16x64xbf16>, vector<64x64xbf16>, vector<16x64xf32> -> vector<16x64xf32>
    %36 = arith.addf %30, %35 : vector<16x64xf32>
    %37 = vector.extract_strided_slice %6 {offsets = [0, 2, 0], sizes = [4, 4, 64], strides = [1, 1, 1]} : vector<4x6x64xbf16> to vector<4x4x64xbf16>
    %38 = vector.shape_cast %37 : vector<4x4x64xbf16> to vector<16x64xbf16>
    %c5 = arith.constant 5 : index
    %c0_22 = arith.constant 0 : index
    %c0_23 = arith.constant 0 : index
    %39 = vector.load %arg4[%c5, %c0_22, %c0_23] : memref<9x64x64xbf16, #tpu.memory_space<vmem>>, vector<1x64x64xbf16>
    %40 = vector.shape_cast %39 : vector<1x64x64xbf16> to vector<64x64xbf16>
    %cst_24 = arith.constant dense<0.000000e+00> : vector<16x64xf32>
    %41 = tpu.matmul %38, %40, %cst_24 {dimension_numbers = #tpu.dot_dimension_numbers<[1], [0], [0], [1], [0, 0, 1, 1], [], []>} : vector<16x64xbf16>, vector<64x64xbf16>, vector<16x64xf32> -> vector<16x64xf32>
    %42 = arith.addf %36, %41 : vector<16x64xf32>
    %43 = vector.extract_strided_slice %7 {offsets = [0, 0, 0], sizes = [4, 4, 64], strides = [1, 1, 1]} : vector<4x6x64xbf16> to vector<4x4x64xbf16>
    %44 = vector.shape_cast %43 : vector<4x4x64xbf16> to vector<16x64xbf16>
    %c6 = arith.constant 6 : index
    %c0_25 = arith.constant 0 : index
    %c0_26 = arith.constant 0 : index
    %45 = vector.load %arg4[%c6, %c0_25, %c0_26] : memref<9x64x64xbf16, #tpu.memory_space<vmem>>, vector<1x64x64xbf16>
    %46 = vector.shape_cast %45 : vector<1x64x64xbf16> to vector<64x64xbf16>
    %cst_27 = arith.constant dense<0.000000e+00> : vector<16x64xf32>
    %47 = tpu.matmul %44, %46, %cst_27 {dimension_numbers = #tpu.dot_dimension_numbers<[1], [0], [0], [1], [0, 0, 1, 1], [], []>} : vector<16x64xbf16>, vector<64x64xbf16>, vector<16x64xf32> -> vector<16x64xf32>
    %48 = arith.addf %42, %47 : vector<16x64xf32>
    %49 = vector.extract_strided_slice %7 {offsets = [0, 1, 0], sizes = [4, 4, 64], strides = [1, 1, 1]} : vector<4x6x64xbf16> to vector<4x4x64xbf16>
    %50 = vector.shape_cast %49 : vector<4x4x64xbf16> to vector<16x64xbf16>
    %c7 = arith.constant 7 : index
    %c0_28 = arith.constant 0 : index
    %c0_29 = arith.constant 0 : index
    %51 = vector.load %arg4[%c7, %c0_28, %c0_29] : memref<9x64x64xbf16, #tpu.memory_space<vmem>>, vector<1x64x64xbf16>
    %52 = vector.shape_cast %51 : vector<1x64x64xbf16> to vector<64x64xbf16>
    %cst_30 = arith.constant dense<0.000000e+00> : vector<16x64xf32>
    %53 = tpu.matmul %50, %52, %cst_30 {dimension_numbers = #tpu.dot_dimension_numbers<[1], [0], [0], [1], [0, 0, 1, 1], [], []>} : vector<16x64xbf16>, vector<64x64xbf16>, vector<16x64xf32> -> vector<16x64xf32>
    %54 = arith.addf %48, %53 : vector<16x64xf32>
    %55 = vector.extract_strided_slice %7 {offsets = [0, 2, 0], sizes = [4, 4, 64], strides = [1, 1, 1]} : vector<4x6x64xbf16> to vector<4x4x64xbf16>
    %56 = vector.shape_cast %55 : vector<4x4x64xbf16> to vector<16x64xbf16>
    %c8 = arith.constant 8 : index
    %c0_31 = arith.constant 0 : index
    %c0_32 = arith.constant 0 : index
    %57 = vector.load %arg4[%c8, %c0_31, %c0_32] : memref<9x64x64xbf16, #tpu.memory_space<vmem>>, vector<1x64x64xbf16>
    %58 = vector.shape_cast %57 : vector<1x64x64xbf16> to vector<64x64xbf16>
    %cst_33 = arith.constant dense<0.000000e+00> : vector<16x64xf32>
    %59 = tpu.matmul %56, %58, %cst_33 {dimension_numbers = #tpu.dot_dimension_numbers<[1], [0], [0], [1], [0, 0, 1, 1], [], []>} : vector<16x64xbf16>, vector<64x64xbf16>, vector<16x64xf32> -> vector<16x64xf32>
    %60 = arith.addf %54, %59 : vector<16x64xf32>
    %c0_34 = arith.constant 0 : index
    %c0_35 = arith.constant 0 : index
    %61 = vector.load %arg5[%c0_34, %c0_35] : memref<1x64xf32, #tpu.memory_space<vmem>>, vector<1x64xf32>
    %62 = vector.broadcast %61 : vector<1x64xf32> to vector<16x64xf32>
    %63 = arith.addf %60, %62 : vector<16x64xf32>
    %cst_36 = arith.constant 0.000000e+00 : f32
    %64 = vector.broadcast %cst_36 : f32 to vector<16x64xf32>
    %65 = arith.maximumf %63, %64 : vector<16x64xf32>
    %66 = vector.shape_cast %65 : vector<16x64xf32> to vector<4x4x64xf32>
    %67 = arith.truncf %66 : vector<4x4x64xf32> to vector<4x4x64xbf16>
    %c0_37 = arith.constant 0 : index
    %c0_38 = arith.constant 0 : index
    %c0_39 = arith.constant 0 : index
    %c0_40 = arith.constant 0 : index
    %68 = vector.load %arg6[%c0_37, %c0_38, %c0_39, %c0_40] : memref<1x4x4x64xbf16, #tpu.memory_space<vmem>>, vector<1x4x4x64xbf16>
    %69 = vector.shape_cast %68 : vector<1x4x4x64xbf16> to vector<4x4x64xbf16>
    %70 = vector.shape_cast %67 : vector<4x4x64xbf16> to vector<1x4x4x64xbf16>
    tpu.vector_store %arg6[%c0_37, %c0_38, %c0_39, %c0_40], %70 {strides = array<i32>} : memref<1x4x4x64xbf16, #tpu.memory_space<vmem>>, vector<1x4x4x64xbf16>,
    return
  }
  func.func @transform_0(%arg0: i32, %arg1: i32) -> (i32, i32, i32, i32) {
    %c0_i32 = arith.constant 0 : i32
    %c0_i32_0 = arith.constant 0 : i32
    %c0_i32_1 = arith.constant 0 : i32
    return %arg0, %arg1, %c0_i32, %c0_i32_0 : i32, i32, i32, i32
  }
  func.func @transform_1(%arg0: i32, %arg1: i32) -> (i32, i32, i32, i32) {
    %c1_i32 = arith.constant 1 : i32
    %0 = arith.addi %arg1, %c1_i32 : i32
    %c2_i32 = arith.constant 2 : i32
    %1 = arith.muli %0, %c2_i32 : i32
    %c0_i32 = arith.constant 0 : i32
    %c0_i32_0 = arith.constant 0 : i32
    %c0_i32_1 = arith.constant 0 : i32
    return %arg0, %1, %c0_i32, %c0_i32_0 : i32, i32, i32, i32
  }
  func.func @transform_2(%arg0: i32, %arg1: i32) -> (i32, i32, i32) {
    %c0_i32 = arith.constant 0 : i32
    %c0_i32_0 = arith.constant 0 : i32
    %c0_i32_1 = arith.constant 0 : i32
    %c0_i32_2 = arith.constant 0 : i32
    return %c0_i32, %c0_i32_0, %c0_i32_1 : i32, i32, i32
  }
  func.func @transform_3(%arg0: i32, %arg1: i32) -> (i32, i32) {
    %c0_i32 = arith.constant 0 : i32
    %c0_i32_0 = arith.constant 0 : i32
    %c0_i32_1 = arith.constant 0 : i32
    return %c0_i32, %c0_i32_0 : i32, i32
  }
  func.func @transform_4(%arg0: i32, %arg1: i32) -> (i32, i32, i32, i32) {
    %c0_i32 = arith.constant 0 : i32
    %c0_i32_0 = arith.constant 0 : i32
    %c0_i32_1 = arith.constant 0 : i32
    return %arg0, %arg1, %c0_i32, %c0_i32_0 : i32, i32, i32, i32
  }
}

module attributes {stable_mosaic.version = 11 : i64} {
  func.func @_matmul_shift_kernel(%arg0: i32, %arg1: memref<32x64xbf16, #tpu.memory_space<vmem>>, %arg2: memref<64x256xbf16, #tpu.memory_space<vmem>>, %arg3: memref<1x256xf32, #tpu.memory_space<vmem>>, %arg4: memref<32x256xbf16, #tpu.memory_space<vmem>>) attributes {dimension_semantics = [#tpu.dimension_semantics<parallel>], iteration_bounds = array<i64: 1>, scalar_prefetch = 0 : i64, scratch_operands = 0 : i64, tpu.core_type = #tpu.core_type<tc>, window_params = [{transform_indices = @transform_0, window_bounds = array<i64: 32, 64>}, {pipeline_mode = #tpu.pipeline_mode<synchronous>, transform_indices = @transform_1, window_bounds = array<i64: 64, 256>}, {pipeline_mode = #tpu.pipeline_mode<synchronous>, transform_indices = @transform_2, window_bounds = array<i64: 1, 256>}, {transform_indices = @transform_3, window_bounds = array<i64: 32, 256>}]} {
    %c0 = arith.constant 0 : index
    %c0_0 = arith.constant 0 : index
    %0 = vector.load %arg1[%c0, %c0_0] : memref<32x64xbf16, #tpu.memory_space<vmem>>, vector<32x64xbf16>
    %c0_1 = arith.constant 0 : index
    %c0_2 = arith.constant 0 : index
    %1 = vector.load %arg2[%c0_1, %c0_2] : memref<64x256xbf16, #tpu.memory_space<vmem>>, vector<64x256xbf16>
    %cst = arith.constant dense<0.000000e+00> : vector<32x256xf32>
    %2 = tpu.matmul %0, %1, %cst {dimension_numbers = #tpu.dot_dimension_numbers<[1], [0], [0], [1], [0, 0, 1, 1], [], []>} : vector<32x64xbf16>, vector<64x256xbf16>, vector<32x256xf32> -> vector<32x256xf32>
    %c0_3 = arith.constant 0 : index
    %c0_4 = arith.constant 0 : index
    %3 = vector.load %arg3[%c0_3, %c0_4] : memref<1x256xf32, #tpu.memory_space<vmem>>, vector<1x256xf32>
    %4 = vector.broadcast %3 : vector<1x256xf32> to vector<32x256xf32>
    %5 = arith.addf %2, %4 : vector<32x256xf32>
    %cst_5 = arith.constant 0.000000e+00 : f32
    %6 = vector.broadcast %cst_5 : f32 to vector<32x256xf32>
    %7 = arith.maximumf %5, %6 : vector<32x256xf32>
    %8 = arith.truncf %7 : vector<32x256xf32> to vector<32x256xbf16>
    %c0_6 = arith.constant 0 : index
    %c0_7 = arith.constant 0 : index
    %9 = vector.load %arg4[%c0_6, %c0_7] : memref<32x256xbf16, #tpu.memory_space<vmem>>, vector<32x256xbf16>
    tpu.vector_store %arg4[%c0_6, %c0_7], %8 {strides = array<i32>} : memref<32x256xbf16, #tpu.memory_space<vmem>>, vector<32x256xbf16>,
    return
  }
  func.func @transform_0(%arg0: i32) -> (i32, i32) {
    %c0_i32 = arith.constant 0 : i32
    %c0_i32_0 = arith.constant 0 : i32
    return %arg0, %c0_i32 : i32, i32
  }
  func.func @transform_1(%arg0: i32) -> (i32, i32) {
    %c0_i32 = arith.constant 0 : i32
    %c0_i32_0 = arith.constant 0 : i32
    %c0_i32_1 = arith.constant 0 : i32
    return %c0_i32, %c0_i32_0 : i32, i32
  }
  func.func @transform_2(%arg0: i32) -> (i32, i32) {
    %c0_i32 = arith.constant 0 : i32
    %c0_i32_0 = arith.constant 0 : i32
    %c0_i32_1 = arith.constant 0 : i32
    return %c0_i32, %c0_i32_0 : i32, i32
  }
  func.func @transform_3(%arg0: i32) -> (i32, i32) {
    %c0_i32 = arith.constant 0 : i32
    %c0_i32_0 = arith.constant 0 : i32
    return %arg0, %c0_i32 : i32, i32
  }
}

module attributes {stable_mosaic.version = 11 : i64} {
  func.func @_tail_kernel(%arg0: i32, %arg1: memref<128x64xbf16, #tpu.memory_space<vmem>>, %arg2: memref<128x64xbf16, #tpu.memory_space<vmem>>, %arg3: memref<64x64xbf16, #tpu.memory_space<vmem>>, %arg4: memref<1x64xf32, #tpu.memory_space<vmem>>, %arg5: memref<128x128xbf16, #tpu.memory_space<vmem>>, %arg6: memref<1x128xf32, #tpu.memory_space<vmem>>, %arg7: memref<128x128xf32, #tpu.memory_space<vmem>>, %arg8: memref<128x128xf32, #tpu.memory_space<vmem>>) attributes {dimension_semantics = [#tpu.dimension_semantics<parallel>], iteration_bounds = array<i64: 1>, scalar_prefetch = 0 : i64, scratch_operands = 0 : i64, tpu.core_type = #tpu.core_type<tc>, window_params = [{transform_indices = @transform_0, window_bounds = array<i64: 128, 64>}, {transform_indices = @transform_1, window_bounds = array<i64: 128, 64>}, {pipeline_mode = #tpu.pipeline_mode<synchronous>, transform_indices = @transform_2, window_bounds = array<i64: 64, 64>}, {pipeline_mode = #tpu.pipeline_mode<synchronous>, transform_indices = @transform_3, window_bounds = array<i64: 1, 64>}, {pipeline_mode = #tpu.pipeline_mode<synchronous>, transform_indices = @transform_4, window_bounds = array<i64: 128, 128>}, {pipeline_mode = #tpu.pipeline_mode<synchronous>, transform_indices = @transform_5, window_bounds = array<i64: 1, 128>}, {transform_indices = @transform_6, window_bounds = array<i64: 128, 128>}, {transform_indices = @transform_7, window_bounds = array<i64: 128, 128>}]} {
    %c0 = arith.constant 0 : index
    %c0_0 = arith.constant 0 : index
    %0 = vector.load %arg1[%c0, %c0_0] : memref<128x64xbf16, #tpu.memory_space<vmem>>, vector<128x64xbf16>
    %c0_1 = arith.constant 0 : index
    %c0_2 = arith.constant 0 : index
    %1 = vector.load %arg3[%c0_1, %c0_2] : memref<64x64xbf16, #tpu.memory_space<vmem>>, vector<64x64xbf16>
    %cst = arith.constant dense<0.000000e+00> : vector<128x64xf32>
    %2 = tpu.matmul %0, %1, %cst {dimension_numbers = #tpu.dot_dimension_numbers<[1], [0], [0], [1], [0, 0, 1, 1], [], []>} : vector<128x64xbf16>, vector<64x64xbf16>, vector<128x64xf32> -> vector<128x64xf32>
    %c0_3 = arith.constant 0 : index
    %c0_4 = arith.constant 0 : index
    %3 = vector.load %arg4[%c0_3, %c0_4] : memref<1x64xf32, #tpu.memory_space<vmem>>, vector<1x64xf32>
    %4 = vector.broadcast %3 : vector<1x64xf32> to vector<128x64xf32>
    %5 = arith.addf %2, %4 : vector<128x64xf32>
    %cst_5 = arith.constant 0.000000e+00 : f32
    %6 = vector.broadcast %cst_5 : f32 to vector<128x64xf32>
    %7 = arith.maximumf %5, %6 : vector<128x64xf32>
    %c0_6 = arith.constant 0 : index
    %c0_7 = arith.constant 0 : index
    %8 = vector.load %arg2[%c0_6, %c0_7] : memref<128x64xbf16, #tpu.memory_space<vmem>>, vector<128x64xbf16>
    %9 = arith.extf %8 : vector<128x64xbf16> to vector<128x64xf32>
    %10 = tpu.concatenate %7, %9 in 1 : vector<128x64xf32>, vector<128x64xf32> -> vector<128x128xf32>
    %c0_8 = arith.constant 0 : index
    %c0_9 = arith.constant 0 : index
    %11 = vector.load %arg7[%c0_8, %c0_9] : memref<128x128xf32, #tpu.memory_space<vmem>>, vector<128x128xf32>
    tpu.vector_store %arg7[%c0_8, %c0_9], %10 {strides = array<i32>} : memref<128x128xf32, #tpu.memory_space<vmem>>, vector<128x128xf32>,
    %12 = arith.truncf %10 : vector<128x128xf32> to vector<128x128xbf16>
    %c0_10 = arith.constant 0 : index
    %c0_11 = arith.constant 0 : index
    %13 = vector.load %arg5[%c0_10, %c0_11] : memref<128x128xbf16, #tpu.memory_space<vmem>>, vector<128x128xbf16>
    %cst_12 = arith.constant dense<0.000000e+00> : vector<128x128xf32>
    %14 = tpu.matmul %12, %13, %cst_12 {dimension_numbers = #tpu.dot_dimension_numbers<[1], [0], [0], [1], [0, 0, 1, 1], [], []>} : vector<128x128xbf16>, vector<128x128xbf16>, vector<128x128xf32> -> vector<128x128xf32>
    %c0_13 = arith.constant 0 : index
    %c0_14 = arith.constant 0 : index
    %15 = vector.load %arg6[%c0_13, %c0_14] : memref<1x128xf32, #tpu.memory_space<vmem>>, vector<1x128xf32>
    %16 = vector.broadcast %15 : vector<1x128xf32> to vector<128x128xf32>
    %17 = arith.addf %14, %16 : vector<128x128xf32>
    %c0_15 = arith.constant 0 : index
    %c0_16 = arith.constant 0 : index
    %18 = vector.load %arg8[%c0_15, %c0_16] : memref<128x128xf32, #tpu.memory_space<vmem>>, vector<128x128xf32>
    tpu.vector_store %arg8[%c0_15, %c0_16], %17 {strides = array<i32>} : memref<128x128xf32, #tpu.memory_space<vmem>>, vector<128x128xf32>,
    return
  }
  func.func @transform_0(%arg0: i32) -> (i32, i32) {
    %c0_i32 = arith.constant 0 : i32
    %c0_i32_0 = arith.constant 0 : i32
    return %arg0, %c0_i32 : i32, i32
  }
  func.func @transform_1(%arg0: i32) -> (i32, i32) {
    %c0_i32 = arith.constant 0 : i32
    %c0_i32_0 = arith.constant 0 : i32
    return %arg0, %c0_i32 : i32, i32
  }
  func.func @transform_2(%arg0: i32) -> (i32, i32) {
    %c0_i32 = arith.constant 0 : i32
    %c0_i32_0 = arith.constant 0 : i32
    %c0_i32_1 = arith.constant 0 : i32
    return %c0_i32, %c0_i32_0 : i32, i32
  }
  func.func @transform_3(%arg0: i32) -> (i32, i32) {
    %c0_i32 = arith.constant 0 : i32
    %c0_i32_0 = arith.constant 0 : i32
    %c0_i32_1 = arith.constant 0 : i32
    return %c0_i32, %c0_i32_0 : i32, i32
  }
  func.func @transform_4(%arg0: i32) -> (i32, i32) {
    %c0_i32 = arith.constant 0 : i32
    %c0_i32_0 = arith.constant 0 : i32
    %c0_i32_1 = arith.constant 0 : i32
    return %c0_i32, %c0_i32_0 : i32, i32
  }
  func.func @transform_5(%arg0: i32) -> (i32, i32) {
    %c0_i32 = arith.constant 0 : i32
    %c0_i32_0 = arith.constant 0 : i32
    %c0_i32_1 = arith.constant 0 : i32
    return %c0_i32, %c0_i32_0 : i32, i32
  }
  func.func @transform_6(%arg0: i32) -> (i32, i32) {
    %c0_i32 = arith.constant 0 : i32
    %c0_i32_0 = arith.constant 0 : i32
    return %arg0, %c0_i32 : i32, i32
  }
  func.func @transform_7(%arg0: i32) -> (i32, i32) {
    %c0_i32 = arith.constant 0 : i32
    %c0_i32_0 = arith.constant 0 : i32
    return %arg0, %c0_i32 : i32, i32
  }
}

</mosaic_0001>

<bundles_post_ra>
// kernel: forward.7
= control target key start
LH: loop header
LB: loop body
LE: loop exit
PB: predicated region body
PF: predicated region fallthrough
CT: control target
= control target key end

     0   :  { %vm254_vm0 = vcmask 130048   ;;  %vm704_vm1 = vcmask 523264   ;;  %vm1217_vm2 = vcmask 1041409   ;;  %vm1219_vm3 = vcmask 1042434   ;;  %s1878_s1 = inlined_call_operand.vmem [shape: bf16[16,64], index: 1, kind: input, shape index: {}]   ;;  %s1879_s0 = inlined_call_operand.vmem [shape: bf16[512,16], index: 0, kind: input, shape index: {}]   ;;  %s1880_s2 = inlined_call_operand.vmem [shape: f32[1,64], index: 2, kind: input, shape index: {}]   ;;  %s1881_s3 = inlined_call_operand.vmem [shape: f32[64,64], index: 3, kind: output, shape index: {}]  }
   0x1   :  { %v1467_v0 = vld [vmem:[%s1878_s1] sm:$0xff]   ;;  %v1470_v3 = vld [vmem:[%s1879_s0 + $0x8] sm:$0xff]   ;;  %v1472_v5 = vld [vmem:[%s1879_s0 + $0x10] sm:$0xff]   ;;  %vm1221_vm4 = vcmask 1043459   ;;  %vm1223_vm5 = vcmask 1044484   ;;  %vm1225_vm6 = vcmask 1045509  }
   0x2   :  { %v1468_v1 = vld [vmem:[%s1879_s0] sm:$0xff]   ;;  %1399 = vmatprep.subr.bf16.mxu0 %v1467_v0  ;;  %1465 = vmatprep.subr.bf16.mxu1 %v1467_v0  ;;  %v1471_v4 = vld [vmem:[%s1879_s0 + $0x88] sm:$0xff]   ;;  %v1473_v6 = vld [vmem:[%s1879_s0 + $0x90] sm:$0xff]   ;;  %vm1227_vm7 = vcmask 1046534   ;;  %vm1229_vm8 = vcmask 1047559  }
   0x3   :  { %v1469_v2 = vld [vmem:[%s1879_s0 + $0x80] sm:$0xff]   ;;  %1400 = vmatpush3.bf16.msra.mxu0 %v1467_v0  ;;  %1466 = vmatpush3.bf16.msra.mxu1 %v1467_v0  ;;  %v1474_v7 = vld [vmem:[%s1879_s0 + $0x18] sm:$0xff]   ;;  %v1478_v11 = vld [vmem:[%s1879_s0 + $0x28] sm:$0xff]  }
   0x4   :  { %1401 = vmatprep.mubr.msk.bf16.mxu0 %vm254_vm0, %v1468_v1  ;;  %1433 = vmatprep.mubr.msk.bf16.mxu1 %vm254_vm0, %v1469_v2  ;;  %v1475_v8 = vld [vmem:[%s1879_s0 + $0x98] sm:$0xff]   ;;  %v1476_v9 = vld [vmem:[%s1879_s0 + $0x20] sm:$0xff]   ;;  %v1479_v12 = vld [vmem:[%s1879_s0 + $0xa8] sm:$0xff]  }
   0x5   :  { %v1477_v10 = vld [vmem:[%s1879_s0 + $0xa0] sm:$0xff]   ;;  %v1480_v13 = vld [vmem:[%s1879_s0 + $0x30] sm:$0xff]   ;;  %v1482_v15 = vld [vmem:[%s1879_s0 + $0x38] sm:$0xff]  }
   0x6   :  { %1402 = vmatmul.mubr.msk.bf16.vlgmr.msra.gmra.mxu0 %vm254_vm0, %v1470_v3  ;;  %1434 = vmatmul.mubr.msk.bf16.vlgmr.msra.gmra.mxu1 %vm254_vm0, %v1471_v4  ;;  %v1481_v14 = vld [vmem:[%s1879_s0 + $0xb0] sm:$0xff]   ;;  %v1483_v16 = vld [vmem:[%s1879_s0 + $0xb8] sm:$0xff]   ;;  %v1484_v17 = vld [vmem:[%s1879_s0 + $0x40] sm:$0xff]  }
   0x7   :  { %1405 = vmatprep.mubr.msk.bf16.mxu0 %vm254_vm0, %v1472_v5  ;;  %1437 = vmatprep.mubr.msk.bf16.mxu1 %vm254_vm0, %v1473_v6  ;;  %v1485_v18 = vld [vmem:[%s1879_s0 + $0xc0] sm:$0xff]   ;;  %v1486_v19 = vld [vmem:[%s1879_s0 + $0x48] sm:$0xff]   ;;  %v1488_v21 = vld [vmem:[%s1879_s0 + $0x50] sm:$0xff]  }
   0x8   :  { %v1487_v20 = vld [vmem:[%s1879_s0 + $0xc8] sm:$0xff]   ;;  %v1489_v22 = vld [vmem:[%s1879_s0 + $0xd0] sm:$0xff]   ;;  %v1490_v23 = vld [vmem:[%s1879_s0 + $0x58] sm:$0xff]  }
   0x9   :  { %v1491_v24 = vld [vmem:[%s1879_s0 + $0xd8] sm:$0xff]   ;;  %v1492_v25 = vld [vmem:[%s1879_s0 + $0x60] sm:$0xff]   ;;  %v1494_v27 = vld [vmem:[%s1879_s0 + $0x68] sm:$0xff]  }
   0xa   :  { %v1493_v26 = vld [vmem:[%s1879_s0 + $0xe0] sm:$0xff]   ;;  %v1495_v28 = vld [vmem:[%s1879_s0 + $0xe8] sm:$0xff]   ;;  %v1496_v29 = vld [vmem:[%s1879_s0 + $0x70] sm:$0xff]  }
   0xb   :  { %v1497_v30 = vld [vmem:[%s1879_s0 + $0xf0] sm:$0xff]   ;;  %v1498_v31 = vld [vmem:[%s1879_s0 + $0x78] sm:$0xff]   ;;  %v1655_v33 = vld [vmem:[%s1880_s2] ss:$0 sm:$0xff] }
   0xc   :  { %v1499_v32 = vld [vmem:[%s1879_s0 + $0xf8] sm:$0xff]  }
   0xe   :  { %1406 = vmatmul.mubr.msk.bf16.gmra.mxu0 %vm254_vm0, %v1474_v7  ;;  %1438 = vmatmul.mubr.msk.bf16.gmra.mxu1 %vm254_vm0, %v1475_v8 }
   0xf   :  { %1409 = vmatprep.mubr.msk.bf16.mxu0 %vm254_vm0, %v1476_v9  ;;  %1441 = vmatprep.mubr.msk.bf16.mxu1 %vm254_vm0, %v1477_v10 }
  0x16   :  { %1410 = vmatmul.mubr.msk.bf16.gmra.mxu0 %vm254_vm0, %v1478_v11  ;;  %1442 = vmatmul.mubr.msk.bf16.gmra.mxu1 %vm254_vm0, %v1479_v12 }
  0x17   :  { %1413 = vmatprep.mubr.msk.bf16.mxu0 %vm254_vm0, %v1480_v13  ;;  %1445 = vmatprep.mubr.msk.bf16.mxu1 %vm254_vm0, %v1481_v14 }
  0x1e   :  { %1414 = vmatmul.mubr.msk.bf16.gmra.mxu0 %vm254_vm0, %v1482_v15  ;;  %1446 = vmatmul.mubr.msk.bf16.gmra.mxu1 %vm254_vm0, %v1483_v16 }
  0x1f   :  { %1417 = vmatprep.mubr.msk.bf16.mxu0 %vm254_vm0, %v1484_v17  ;;  %1449 = vmatprep.mubr.msk.bf16.mxu1 %vm254_vm0, %v1485_v18 }
  0x26   :  { %1418 = vmatmul.mubr.msk.bf16.gmra.mxu0 %vm254_vm0, %v1486_v19  ;;  %1450 = vmatmul.mubr.msk.bf16.gmra.mxu1 %vm254_vm0, %v1487_v20 }
  0x27   :  { %1421 = vmatprep.mubr.msk.bf16.mxu0 %vm254_vm0, %v1488_v21  ;;  %1453 = vmatprep.mubr.msk.bf16.mxu1 %vm254_vm0, %v1489_v22 }
  0x2e   :  { %1422 = vmatmul.mubr.msk.bf16.gmra.mxu0 %vm254_vm0, %v1490_v23  ;;  %1454 = vmatmul.mubr.msk.bf16.gmra.mxu1 %vm254_vm0, %v1491_v24 }
  0x2f   :  { %1425 = vmatprep.mubr.msk.bf16.mxu0 %vm254_vm0, %v1492_v25  ;;  %1457 = vmatprep.mubr.msk.bf16.mxu1 %vm254_vm0, %v1493_v26 }
  0x36   :  { %1426 = vmatmul.mubr.msk.bf16.gmra.mxu0 %vm254_vm0, %v1494_v27  ;;  %1458 = vmatmul.mubr.msk.bf16.gmra.mxu1 %vm254_vm0, %v1495_v28 }
  0x37   :  { %1429 = vmatprep.mubr.msk.bf16.mxu0 %vm254_vm0, %v1496_v29  ;;  %1461 = vmatprep.mubr.msk.bf16.mxu1 %vm254_vm0, %v1497_v30 }
  0x3e   :  { %1430 = vmatmul.mubr.msk.bf16.gmra.mxu0 %vm254_vm0, %v1498_v31  ;;  %1462 = vmatmul.mubr.msk.bf16.gmra.mxu1 %vm254_vm0, %v1499_v32 }
  0xc6   :  { %v1403_v34 = vpop.f32.mrf.mxu0  ;;  %v1435_v35 = vpop.f32.mrf.mxu1 }
  0xc7   :  { %v394_v36 = vadd.f32 %v1403_v34, %v1655_v33  ;;  %v522_v37 = vadd.f32 %v1435_v35, %v1655_v33 }
  0xc8   :  { %v385_v38 = vpop.f32.mrf.mxu0  ;;  %v513_v39 = vpop.f32.mrf.mxu1 }
  0xc9   :  { %v642_v40 = vmax.f32 %v394_v36, 0.0  ;;  %v674_v41 = vmax.f32 %v522_v37, 0.0  ;;  %v386_v42 = vadd.f32 %v1655_v33, %v385_v38  ;;  %v514_v43 = vadd.f32 %v1655_v33, %v513_v39 }
  0xca   :  { %v1404_v44 = vpop.f32.mrf.mxu0  ;;  %v1436_v45 = vpop.f32.mrf.mxu1 }
  0xcb   :  { %v719_v46 = vsel %vm704_vm1, %v642_v40, -inf  ;;  %v943_v47 = vsel %vm704_vm1, %v674_v41, -inf  ;;  %v640_v48 = vmax.f32 %v386_v42, 0.0  ;;  %v672_v49 = vmax.f32 %v514_v43, 0.0 }
  0xcc   :  { %v720_v50 = vrot.slane %v719_v46, 4  ;;  %v944_v51 = vrot.slane %v943_v47, 4  ;;  %v397_v52 = vadd.f32 %v1404_v44, %v1655_v33  ;;  %v525_v53 = vadd.f32 %v1436_v45, %v1655_v33  ;;  %v388_v54 = vpop.f32.mrf.mxu0  ;;  %v516_v55 = vpop.f32.mrf.mxu1 }
  0xcd   :  { %v705_v56 = vsel %vm704_vm1, %v640_v48, -inf  ;;  %v929_v57 = vsel %vm704_vm1, %v672_v49, -inf  ;;  %v389_v58 = vadd.f32 %v1655_v33, %v388_v54  ;;  %v517_v59 = vadd.f32 %v1655_v33, %v516_v55 }
  0xce   :  { %v721_v60 = vmax.f32 %v719_v46, %v720_v50  ;;  %v945_v61 = vmax.f32 %v943_v47, %v944_v51  ;;  %v706_v62 = vrot.slane %v705_v56, 4  ;;  %v930_v63 = vrot.slane %v929_v57, 4  ;;  %v1407_v18 = vpop.f32.mrf.mxu0  ;;  %v1439_v19 = vpop.f32.mrf.mxu1 }
  0xcf   :  { %v643_v0 = vmax.f32 %v397_v52, 0.0  ;;  %v675_v1 = vmax.f32 %v525_v53, 0.0  ;;  %v641_v2 = vmax.f32 %v389_v58, 0.0  ;;  %v673_v3 = vmax.f32 %v517_v59, 0.0 }
  0xd0   :  { %v722_v4 = vrot.slane %v721_v60, 2  ;;  %v946_v5 = vrot.slane %v945_v61, 2  ;;  %v707_v6 = vmax.f32 %v705_v56, %v706_v62  ;;  %v931_v7 = vmax.f32 %v929_v57, %v930_v63  ;;  %v401_v30 = vpop.f32.mrf.mxu0  ;;  %v529_v31 = vpop.f32.mrf.mxu1 }
  0xd1   :  { %v726_v8 = vsel %vm704_vm1, %v643_v0, -inf  ;;  %v950_v9 = vsel %vm704_vm1, %v675_v1, -inf  ;;  %v712_v10 = vsel %vm704_vm1, %v641_v2, -inf  ;;  %v936_v11 = vsel %vm704_vm1, %v673_v3, -inf }
  0xd2   :  { %v708_v12 = vrot.slane %v707_v6, 2  ;;  %v932_v13 = vrot.slane %v931_v7, 2  ;;  %v727_v14 = vrot.slane %v726_v8, 4  ;;  %v951_v15 = vrot.slane %v950_v9, 4  ;;  %v1408_v53 = vpop.f32.mrf.mxu0  ;;  %v1440_v54 = vpop.f32.mrf.mxu1 }
  0xd3   :  { %v713_v16 = vrot.slane %v712_v10, 4  ;;  %v937_v17 = vrot.slane %v936_v11, 4  ;;  %v723_v20 = vmax.f32 %v721_v60, %v722_v4  ;;  %v947_v21 = vmax.f32 %v945_v61, %v946_v5 }
  0xd4   :  { %v728_v22 = vmax.f32 %v726_v8, %v727_v14  ;;  %v952_v23 = vmax.f32 %v950_v9, %v951_v15  ;;  %v709_v26 = vmax.f32 %v707_v6, %v708_v12  ;;  %v933_v27 = vmax.f32 %v931_v7, %v932_v13  ;;  %v404_v5 = vpop.f32.mrf.mxu0  ;;  %v532_v6 = vpop.f32.mrf.mxu1 }
  0xd5   :  { %v714_v24 = vmax.f32 %v712_v10, %v713_v16  ;;  %v938_v25 = vmax.f32 %v936_v11, %v937_v17  ;;  %v724_v32 = vrot.slane %v723_v20, 1  ;;  %v948_v34 = vrot.slane %v947_v21, 1 }
  0xd6   :  { %v410_v35 = vadd.f32 %v1407_v18, %v1655_v33  ;;  %v538_v36 = vadd.f32 %v1439_v19, %v1655_v33  ;;  %v729_v37 = vrot.slane %v728_v22, 2  ;;  %v953_v38 = vrot.slane %v952_v23, 2 }
  0xd7   :  { %v715_v28 = vrot.slane %v714_v24, 2  ;;  %v939_v29 = vrot.slane %v938_v25, 2  ;;  %v402_v43 = vadd.f32 %v1655_v33, %v401_v30  ;;  %v530_v44 = vadd.f32 %v1655_v33, %v529_v31  ;;  %v1411_v31 = vpop.f32.mrf.mxu0 }
  0xd8   :  { %v646_v41 = vmax.f32 %v410_v35, 0.0  ;;  %v678_v42 = vmax.f32 %v538_v36, 0.0  ;;  %v710_v45 = vrot.slane %v709_v26, 1  ;;  %v934_v46 = vrot.slane %v933_v27, 1 }
  0xd9   :  { %v716_v39 = vmax.f32 %v714_v24, %v715_v28  ;;  %v940_v40 = vmax.f32 %v938_v25, %v939_v29  ;;  %v644_v51 = vmax.f32 %v402_v43, 0.0  ;;  %v676_v52 = vmax.f32 %v530_v44, 0.0 }
  0xda   :  { %v747_v49 = vsel %vm704_vm1, %v646_v41, -inf  ;;  %v971_v50 = vsel %vm704_vm1, %v678_v42, -inf  ;;  %v730_v55 = vmax.f32 %v728_v22, %v729_v37  ;;  %v954_v56 = vmax.f32 %v952_v23, %v953_v38 }
  0xdb   :  { %v717_v47 = vrot.slane %v716_v39, 1  ;;  %v941_v48 = vrot.slane %v940_v40, 1  ;;  %v748_v57 = vrot.slane %v747_v49, 4  ;;  %v972_v58 = vrot.slane %v971_v50, 4 }
  0xdc   :  { %v733_v59 = vsel %vm704_vm1, %v644_v51, -inf  ;;  %v957_v60 = vsel %vm704_vm1, %v676_v52, -inf  ;;  %v725_v61 = vmax.f32 %v723_v20, %v724_v32  ;;  %v949_v62 = vmax.f32 %v947_v21, %v948_v34  ;;  %v1443_v32 = vpop.f32.mrf.mxu1 }
  0xdd   :  { %v734_v63 = vrot.slane %v733_v59, 4  ;;  %v958_v0 = vrot.slane %v957_v60, 4  ;;  %v711_v1 = vmax.f32 %v709_v26, %v710_v45  ;;  %v935_v2 = vmax.f32 %v933_v27, %v934_v46 }
  0xde   :  { %v718_v3 = vmax.f32 %v716_v39, %v717_v47  ;;  %v942_v4 = vmax.f32 %v940_v40, %v941_v48  ;;  %v749_v7 = vmax.f32 %v747_v49, %v748_v57  ;;  %v973_v8 = vmax.f32 %v971_v50, %v972_v58  ;;  %v417_v50 = vpop.f32.mrf.mxu0  ;;  %v545_v51 = vpop.f32.mrf.mxu1 }
  0xdf   :  { %v735_v9 = vmax.f32 %v733_v59, %v734_v63  ;;  %v959_v10 = vmax.f32 %v957_v60, %v958_v0  ;;  %v731_v11 = vrot.slane %v730_v55, 1  ;;  %v955_v12 = vrot.slane %v954_v56, 1 }
  0xe0   :  { %v413_v13 = vadd.f32 %v1408_v53, %v1655_v33  ;;  %v541_v14 = vadd.f32 %v1440_v54, %v1655_v33  ;;  %v405_v17 = vadd.f32 %v1655_v33, %v404_v5  ;;  %v533_v18 = vadd.f32 %v1655_v33, %v532_v6 }
  0xe1   :  { %v736_v15 = vrot.slane %v735_v9, 2  ;;  %v960_v16 = vrot.slane %v959_v10, 2  ;;  %v1218_v19 = vsel %vm1217_vm2, %v718_v3, %v711_v1  ;;  %v1252_v20 = vsel %vm1217_vm2, %v942_v4, %v935_v2 }
  0xe2   :  { %v647_v21 = vmax.f32 %v413_v13, 0.0  ;;  %v679_v22 = vmax.f32 %v541_v14, 0.0  ;;  %v750_v23 = vrot.slane %v749_v7, 2  ;;  %v974_v24 = vrot.slane %v973_v8, 2  ;;  %v1444_v13 = vpop.f32.mrf.mxu1 }
  0xe3   :  { %v645_v25 = vmax.f32 %v405_v17, 0.0  ;;  %v677_v26 = vmax.f32 %v533_v18, 0.0  ;;  %v732_v27 = vmax.f32 %v730_v55, %v731_v11  ;;  %v956_v28 = vmax.f32 %v954_v56, %v955_v12  ;;  %v1412_v12 = vpop.f32.mrf.mxu0 }
  0xe4   :  { %v754_v29 = vsel %vm704_vm1, %v647_v21, -inf  ;;  %v978_v30 = vsel %vm704_vm1, %v679_v22, -inf  ;;  %v737_v34 = vmax.f32 %v735_v9, %v736_v15  ;;  %v961_v35 = vmax.f32 %v959_v10, %v960_v16 }
  0xe5   :  { %v755_v36 = vrot.slane %v754_v29, 4  ;;  %v979_v37 = vrot.slane %v978_v30, 4  ;;  %v1220_v38 = vsel %vm1219_vm3, %v725_v61, %v1218_v19  ;;  %v1253_v39 = vsel %vm1219_vm3, %v949_v62, %v1252_v20 }
  0xe6   :  { %v740_v40 = vsel %vm704_vm1, %v645_v25, -inf  ;;  %v964_v41 = vsel %vm704_vm1, %v677_v26, -inf  ;;  %v751_v42 = vmax.f32 %v749_v7, %v750_v23  ;;  %v975_v43 = vmax.f32 %v973_v8, %v974_v24 }
  0xe7   :  { %v756_v44 = vmax.f32 %v754_v29, %v755_v36  ;;  %v980_v45 = vmax.f32 %v978_v30, %v979_v37  ;;  %v741_v46 = vrot.slane %v740_v40, 4  ;;  %v965_v47 = vrot.slane %v964_v41, 4  ;;  %v420_v30 = vpop.f32.mrf.mxu0 }
  0xe8   :  { %v426_v48 = vadd.f32 %v1411_v31, %v1655_v33  ;;  %v554_v49 = vadd.f32 %v1443_v32, %v1655_v33  ;;  %v738_v52 = vrot.slane %v737_v34, 1  ;;  %v962_v53 = vrot.slane %v961_v35, 1  ;;  %v548_v31 = vpop.f32.mrf.mxu1 }
  0xe9   :  { %v757_v54 = vrot.slane %v756_v44, 2  ;;  %v981_v55 = vrot.slane %v980_v45, 2  ;;  %v742_v56 = vmax.f32 %v740_v40, %v741_v46  ;;  %v966_v57 = vmax.f32 %v964_v41, %v965_v47  ;;  %v1415_v47 = vpop.f32.mrf.mxu0 }
  0xea   :  { %v650_v58 = vmax.f32 %v426_v48, 0.0  ;;  %v682_v59 = vmax.f32 %v554_v49, 0.0  ;;  %v418_v62 = vadd.f32 %v1655_v33, %v417_v50  ;;  %v546_v63 = vadd.f32 %v1655_v33, %v545_v51  ;;  %v1447_v48 = vpop.f32.mrf.mxu1 }
  0xeb   :  { %v758_v60 = vmax.f32 %v756_v44, %v757_v54  ;;  %v982_v61 = vmax.f32 %v980_v45, %v981_v55  ;;  %v752_v0 = vrot.slane %v751_v42, 1  ;;  %v976_v1 = vrot.slane %v975_v43, 1 }
  0xec   :  { %v743_v2 = vrot.slane %v742_v56, 2  ;;  %v967_v3 = vrot.slane %v966_v57, 2  ;;  %v739_v4 = vmax.f32 %v737_v34, %v738_v52  ;;  %v1222_v5 = vsel %vm1221_vm4, %v732_v27, %v1220_v38 }
  0xed   :  { %v963_v6 = vmax.f32 %v961_v35, %v962_v53  ;;  %v1254_v7 = vsel %vm1221_vm4, %v956_v28, %v1253_v39  ;;  %v775_v10 = vsel %vm704_vm1, %v650_v58, -inf  ;;  %v999_v11 = vsel %vm704_vm1, %v682_v59, -inf }
  0xee   :  { %v744_v8 = vmax.f32 %v742_v56, %v743_v2  ;;  %v968_v9 = vmax.f32 %v966_v57, %v967_v3  ;;  %v759_v14 = vrot.slane %v758_v60, 1  ;;  %v983_v15 = vrot.slane %v982_v61, 1  ;;  %v433_v3 = vpop.f32.mrf.mxu0 }
  0xef   :  { %v648_v16 = vmax.f32 %v418_v62, 0.0  ;;  %v680_v17 = vmax.f32 %v546_v63, 0.0  ;;  %v753_v18 = vmax.f32 %v751_v42, %v752_v0  ;;  %v977_v19 = vmax.f32 %v975_v43, %v976_v1 }
  0xf0   :  { %v745_v20 = vrot.slane %v744_v8, 1  ;;  %v969_v21 = vrot.slane %v968_v9, 1  ;;  %v1224_v22 = vsel %vm1223_vm5, %v739_v4, %v1222_v5  ;;  %v1255_v23 = vsel %vm1223_vm5, %v963_v6, %v1254_v7  ;;  %v561_v4 = vpop.f32.mrf.mxu1 }
  0xf1   :  { %v776_v24 = vrot.slane %v775_v10, 4  ;;  %v1000_v25 = vrot.slane %v999_v11, 4  ;;  %v429_v28 = vadd.f32 %v1412_v12, %v1655_v33  ;;  %v557_v29 = vadd.f32 %v1444_v13, %v1655_v33 }
  0xf2   :  { %v746_v26 = vmax.f32 %v744_v8, %v745_v20  ;;  %v970_v27 = vmax.f32 %v968_v9, %v969_v21  ;;  %v760_v32 = vmax.f32 %v758_v60, %v759_v14  ;;  %v984_v34 = vmax.f32 %v982_v61, %v983_v15 }
  0xf3   :  { %v761_v35 = vsel %vm704_vm1, %v648_v16, -inf  ;;  %v985_v36 = vsel %vm704_vm1, %v680_v17, -inf  ;;  %v651_v39 = vmax.f32 %v429_v28, 0.0  ;;  %v683_v40 = vmax.f32 %v557_v29, 0.0  ;;  %v1416_v29 = vpop.f32.mrf.mxu0 }
  0xf4   :  { %v1226_v37 = vsel %vm1225_vm6, %v746_v26, %v1224_v22  ;;  %v1256_v38 = vsel %vm1225_vm6, %v970_v27, %v1255_v23  ;;  %v762_v45 = vrot.slane %v761_v35, 4  ;;  %v986_v46 = vrot.slane %v985_v36, 4 }
  0xf5   :  { %v1228_v41 = vsel %vm1227_vm7, %v753_v18, %v1226_v37  ;;  %v1257_v42 = vsel %vm1227_vm7, %v977_v19, %v1256_v38  ;;  %v782_v49 = vsel %vm704_vm1, %v651_v39, -inf  ;;  %v1006_v50 = vsel %vm704_vm1, %v683_v40, -inf }
  0xf6   :  { %v1230_v43 = vsel %vm1229_vm8, %v760_v32, %v1228_v41  ;;  %v1258_v44 = vsel %vm1229_vm8, %v984_v34, %v1257_v42  ;;  %v777_v51 = vmax.f32 %v775_v10, %v776_v24  ;;  %v1001_v52 = vmax.f32 %v999_v11, %v1000_v25 }
  0xf7   :  { %1288 = vst.msk [vmem:[%s1881_s3] sm:$0xff] %vm704_vm1, %v1230_v43  ;;  %1292 = vst.msk [vmem:[%s1881_s3 + $0x20] sm:$0xff] %vm704_vm1, %v1258_v44  ;;  %v783_v53 = vrot.slane %v782_v49, 4  ;;  %v1007_v54 = vrot.slane %v1006_v50, 4  ;;  %v421_v55 = vadd.f32 %v1655_v33, %v420_v30  ;;  %v549_v56 = vadd.f32 %v1655_v33, %v548_v31  ;;  %v1448_v30 = vpop.f32.mrf.mxu1 }
  0xf8   :  { %v442_v57 = vadd.f32 %v1415_v47, %v1655_v33  ;;  %v570_v58 = vadd.f32 %v1447_v48, %v1655_v33  ;;  %v763_v59 = vmax.f32 %v761_v35, %v762_v45  ;;  %v987_v60 = vmax.f32 %v985_v36, %v986_v46 }
  0xf9   :  { %v649_v61 = vmax.f32 %v421_v55, 0.0  ;;  %v681_v62 = vmax.f32 %v549_v56, 0.0  ;;  %v778_v1 = vrot.slane %v777_v51, 2  ;;  %v1002_v2 = vrot.slane %v1001_v52, 2  ;;  %v436_v56 = vpop.f32.mrf.mxu0 }
  0xfa   :  { %v654_v63 = vmax.f32 %v442_v57, 0.0  ;;  %v686_v0 = vmax.f32 %v570_v58, 0.0  ;;  %v784_v5 = vmax.f32 %v782_v49, %v783_v53  ;;  %v1008_v6 = vmax.f32 %v1006_v50, %v1007_v54  ;;  %v564_v57 = vpop.f32.mrf.mxu1 }
  0xfb   :  { %v768_v7 = vsel %vm704_vm1, %v649_v61, -inf  ;;  %v992_v8 = vsel %vm704_vm1, %v681_v62, -inf  ;;  %v764_v9 = vrot.slane %v763_v59, 2  ;;  %v988_v10 = vrot.slane %v987_v60, 2 }
  0xfc   :  { %v769_v11 = vrot.slane %v768_v7, 4  ;;  %v993_v12 = vrot.slane %v992_v8, 4  ;;  %v803_v13 = vsel %vm704_vm1, %v654_v63, -inf  ;;  %v1027_v14 = vsel %vm704_vm1, %v686_v0, -inf }
  0xfd   :  { %v434_v15 = vadd.f32 %v1655_v33, %v433_v3  ;;  %v562_v16 = vadd.f32 %v1655_v33, %v561_v4  ;;  %v779_v17 = vmax.f32 %v777_v51, %v778_v1  ;;  %v1003_v18 = vmax.f32 %v1001_v52, %v1002_v2 }
  0xfe   :  { %v770_v19 = vmax.f32 %v768_v7, %v769_v11  ;;  %v994_v20 = vmax.f32 %v992_v8, %v993_v12  ;;  %v785_v21 = vrot.slane %v784_v5, 2  ;;  %v1009_v22 = vrot.slane %v1008_v6, 2  ;;  %v1451_v11 = vpop.f32.mrf.mxu1 }
  0xff   :  { %v652_v23 = vmax.f32 %v434_v15, 0.0  ;;  %v684_v24 = vmax.f32 %v562_v16, 0.0  ;;  %v804_v27 = vrot.slane %v803_v13, 4  ;;  %v1028_v28 = vrot.slane %v1027_v14, 4 }
 0x100   :  { %v771_v25 = vrot.slane %v770_v19, 2  ;;  %v995_v26 = vrot.slane %v994_v20, 2  ;;  %v765_v31 = vmax.f32 %v763_v59, %v764_v9  ;;  %v989_v32 = vmax.f32 %v987_v60, %v988_v10  ;;  %v1419_v10 = vpop.f32.mrf.mxu0 }
 0x101   :  { %v789_v34 = vsel %vm704_vm1, %v652_v23, -inf  ;;  %v1013_v35 = vsel %vm704_vm1, %v684_v24, -inf  ;;  %v780_v40 = vrot.slane %v779_v17, 1  ;;  %v1004_v41 = vrot.slane %v1003_v18, 1 }
 0x102   :  { %v772_v36 = vmax.f32 %v770_v19, %v771_v25  ;;  %v996_v37 = vmax.f32 %v994_v20, %v995_v26  ;;  %v790_v38 = vrot.slane %v789_v34, 4  ;;  %v1014_v39 = vrot.slane %v1013_v35, 4 }
 0x103   :  { %v445_v42 = vadd.f32 %v1416_v29, %v1655_v33  ;;  %v573_v43 = vadd.f32 %v1448_v30, %v1655_v33  ;;  %v786_v44 = vmax.f32 %v784_v5, %v785_v21  ;;  %v1010_v45 = vmax.f32 %v1008_v6, %v1009_v22  ;;  %v577_v29 = vpop.f32.mrf.mxu1 }
 0x104   :  { %v805_v46 = vmax.f32 %v803_v13, %v804_v27  ;;  %v1029_v47 = vmax.f32 %v1027_v14, %v1028_v28  ;;  %v766_v48 = vrot.slane %v765_v31, 1  ;;  %v990_v49 = vrot.slane %v989_v32, 1  ;;  %v449_v28 = vpop.f32.mrf.mxu0 }
 0x105   :  { %v655_v50 = vmax.f32 %v445_v42, 0.0  ;;  %v687_v51 = vmax.f32 %v573_v43, 0.0  ;;  %v773_v52 = vrot.slane %v772_v36, 1  ;;  %v997_v53 = vrot.slane %v996_v37, 1 }
 0x106   :  { %v791_v54 = vmax.f32 %v789_v34, %v790_v38  ;;  %v1015_v55 = vmax.f32 %v1013_v35, %v1014_v39  ;;  %v781_v58 = vmax.f32 %v779_v17, %v780_v40  ;;  %v1005_v59 = vmax.f32 %v1003_v18, %v1004_v41 }
 0x107   :  { %v810_v60 = vsel %vm704_vm1, %v655_v50, -inf  ;;  %v1034_v61 = vsel %vm704_vm1, %v687_v51, -inf  ;;  %v787_v62 = vrot.slane %v786_v44, 1  ;;  %v1011_v63 = vrot.slane %v1010_v45, 1 }
 0x108   :  { %v806_v0 = vrot.slane %v805_v46, 2  ;;  %v1030_v1 = vrot.slane %v1029_v47, 2  ;;  %v767_v2 = vmax.f32 %v765_v31, %v766_v48  ;;  %v991_v3 = vmax.f32 %v989_v32, %v990_v49  ;;  %v1452_v48 = vpop.f32.mrf.mxu1 }
 0x109   :  { %v811_v4 = vrot.slane %v810_v60, 4  ;;  %v1035_v5 = vrot.slane %v1034_v61, 4  ;;  %v774_v6 = vmax.f32 %v772_v36, %v773_v52  ;;  %v998_v7 = vmax.f32 %v996_v37, %v997_v53 }
 0x10a   :  { %v792_v8 = vrot.slane %v791_v54, 2  ;;  %v1016_v9 = vrot.slane %v1015_v55, 2  ;;  %v437_v14 = vadd.f32 %v1655_v33, %v436_v56  ;;  %v565_v15 = vadd.f32 %v1655_v33, %v564_v57 }
 0x10b   :  { %v812_v12 = vmax.f32 %v810_v60, %v811_v4  ;;  %v1036_v13 = vmax.f32 %v1034_v61, %v1035_v5  ;;  %v788_v16 = vmax.f32 %v786_v44, %v787_v62  ;;  %v1012_v17 = vmax.f32 %v1010_v45, %v1011_v63 }
 0x10c   :  { %v807_v18 = vmax.f32 %v805_v46, %v806_v0  ;;  %v1031_v19 = vmax.f32 %v1029_v47, %v1030_v1  ;;  %v653_v20 = vmax.f32 %v437_v14, 0.0  ;;  %v685_v21 = vmax.f32 %v565_v15, 0.0  ;;  %v1420_v47 = vpop.f32.mrf.mxu0 }
 0x10d   :  { %v458_v22 = vadd.f32 %v1419_v10, %v1655_v33  ;;  %v586_v23 = vadd.f32 %v1451_v11, %v1655_v33  ;;  %v1231_v24 = vsel %vm1217_vm2, %v774_v6, %v767_v2  ;;  %v1259_v25 = vsel %vm1217_vm2, %v998_v7, %v991_v3  ;;  %v580_v10 = vpop.f32.mrf.mxu1 }
 0x10e   :  { %v793_v26 = vmax.f32 %v791_v54, %v792_v8  ;;  %v1017_v27 = vmax.f32 %v1015_v55, %v1016_v9  ;;  %v813_v30 = vrot.slane %v812_v12, 2  ;;  %v1037_v31 = vrot.slane %v1036_v13, 2  ;;  %v452_v9 = vpop.f32.mrf.mxu0 }
 0x10f   :  { %v796_v32 = vsel %vm704_vm1, %v653_v20, -inf  ;;  %v1020_v34 = vsel %vm704_vm1, %v685_v21, -inf  ;;  %v808_v35 = vrot.slane %v807_v18, 1  ;;  %v1032_v36 = vrot.slane %v1031_v19, 1 }
 0x110   :  { %v797_v37 = vrot.slane %v796_v32, 4  ;;  %v1021_v38 = vrot.slane %v1020_v34, 4  ;;  %v1232_v39 = vsel %vm1219_vm3, %v781_v58, %v1231_v24  ;;  %v1260_v40 = vsel %vm1219_vm3, %v1005_v59, %v1259_v25 }
 0x111   :  { %v658_v41 = vmax.f32 %v458_v22, 0.0  ;;  %v690_v42 = vmax.f32 %v586_v23, 0.0  ;;  %v794_v43 = vrot.slane %v793_v26, 1  ;;  %v1018_v44 = vrot.slane %v1017_v27, 1 }
 0x112   :  { %v798_v45 = vmax.f32 %v796_v32, %v797_v37  ;;  %v1022_v46 = vmax.f32 %v1020_v34, %v1021_v38  ;;  %v814_v49 = vmax.f32 %v812_v12, %v813_v30  ;;  %v1038_v50 = vmax.f32 %v1036_v13, %v1037_v31 }
 0x113   :  { %v450_v51 = vadd.f32 %v1655_v33, %v449_v28  ;;  %v578_v52 = vadd.f32 %v1655_v33, %v577_v29  ;;  %v1233_v53 = vsel %vm1221_vm4, %v788_v16, %v1232_v39  ;;  %v1261_v54 = vsel %vm1221_vm4, %v1012_v17, %v1260_v40  ;;  %v1455_v28 = vpop.f32.mrf.mxu1 }
 0x114   :  { %v799_v55 = vrot.slane %v798_v45, 2  ;;  %v1023_v56 = vrot.slane %v1022_v46, 2  ;;  %v831_v57 = vsel %vm704_vm1, %v658_v41, -inf  ;;  %v1055_v58 = vsel %vm704_vm1, %v690_v42, -inf }
 0x115   :  { %v461_v59 = vadd.f32 %v1420_v47, %v1655_v33  ;;  %v589_v60 = vadd.f32 %v1452_v48, %v1655_v33  ;;  %v795_v61 = vmax.f32 %v793_v26, %v794_v43  ;;  %v1019_v62 = vmax.f32 %v1017_v27, %v1018_v44  ;;  %v1423_v27 = vpop.f32.mrf.mxu0  ;;  %v593_v43 = vpop.f32.mrf.mxu1 }
 0x116   :  { %v800_v63 = vmax.f32 %v798_v45, %v799_v55  ;;  %v1024_v0 = vmax.f32 %v1022_v46, %v1023_v56  ;;  %v815_v1 = vrot.slane %v814_v49, 1  ;;  %v1039_v2 = vrot.slane %v1038_v50, 1 }
 0x117   :  { %v656_v3 = vmax.f32 %v450_v51, 0.0  ;;  %v688_v4 = vmax.f32 %v578_v52, 0.0  ;;  %v832_v7 = vrot.slane %v831_v57, 4  ;;  %v1056_v8 = vrot.slane %v1055_v58, 4  ;;  %v465_v42 = vpop.f32.mrf.mxu0 }
 0x118   :  { %v801_v5 = vrot.slane %v800_v63, 1  ;;  %v1025_v6 = vrot.slane %v1024_v0, 1  ;;  %v809_v11 = vmax.f32 %v807_v18, %v808_v35  ;;  %v1033_v12 = vmax.f32 %v1031_v19, %v1032_v36 }
 0x119   :  { %v659_v13 = vmax.f32 %v461_v59, 0.0  ;;  %v691_v14 = vmax.f32 %v589_v60, 0.0  ;;  %v1234_v15 = vsel %vm1223_vm5, %v795_v61, %v1233_v53  ;;  %v1262_v16 = vsel %vm1223_vm5, %v1019_v62, %v1261_v54 }
 0x11a   :  { %v802_v17 = vmax.f32 %v800_v63, %v801_v5  ;;  %v1026_v20 = vmax.f32 %v1024_v0, %v1025_v6  ;;  %v816_v21 = vmax.f32 %v814_v49, %v815_v1  ;;  %v1040_v22 = vmax.f32 %v1038_v50, %v1039_v2  ;;  %v1456_v5 = vpop.f32.mrf.mxu1 }
 0x11b   :  { %v817_v23 = vsel %vm704_vm1, %v656_v3, -inf  ;;  %v1041_v24 = vsel %vm704_vm1, %v688_v4, -inf  ;;  %v833_v18 = vmax.f32 %v831_v57, %v832_v7  ;;  %v1057_v19 = vmax.f32 %v1055_v58, %v1056_v8  ;;  %v1424_v4 = vpop.f32.mrf.mxu0 }
 0x11c   :  { %v1235_v25 = vsel %vm1225_vm6, %v802_v17, %v1234_v15  ;;  %v1263_v26 = vsel %vm1225_vm6, %v1026_v20, %v1262_v16  ;;  %v838_v31 = vsel %vm704_vm1, %v659_v13, -inf  ;;  %v1062_v32 = vsel %vm704_vm1, %v691_v14, -inf }
 0x11d   :  { %v1236_v29 = vsel %vm1227_vm7, %v809_v11, %v1235_v25  ;;  %v1264_v30 = vsel %vm1227_vm7, %v1033_v12, %v1263_v26  ;;  %v818_v36 = vrot.slane %v817_v23, 4  ;;  %v1042_v37 = vrot.slane %v1041_v24, 4 }
 0x11e   :  { %v1237_v34 = vsel %vm1229_vm8, %v816_v21, %v1236_v29  ;;  %v1265_v35 = vsel %vm1229_vm8, %v1040_v22, %v1264_v30  ;;  %v453_v38 = vadd.f32 %v1655_v33, %v452_v9  ;;  %v581_v39 = vadd.f32 %v1655_v33, %v580_v10 }
 0x11f   :  { %1289 = vst.msk [vmem:[%s1881_s3 + $0x8] sm:$0xff] %vm704_vm1, %v1237_v34  ;;  %1293 = vst.msk [vmem:[%s1881_s3 + $0x28] sm:$0xff] %vm704_vm1, %v1265_v35  ;;  %v839_v40 = vrot.slane %v838_v31, 4  ;;  %v1063_v41 = vrot.slane %v1062_v32, 4  ;;  %v474_v46 = vadd.f32 %v1423_v27, %v1655_v33  ;;  %v602_v47 = vadd.f32 %v1455_v28, %v1655_v33 }
 0x120   :  { %v657_v44 = vmax.f32 %v453_v38, 0.0  ;;  %v689_v45 = vmax.f32 %v581_v39, 0.0  ;;  %v834_v48 = vrot.slane %v833_v18, 2  ;;  %v1058_v49 = vrot.slane %v1057_v19, 2  ;;  %v468_v39 = vpop.f32.mrf.mxu0 }
 0x121   :  { %v819_v50 = vmax.f32 %v817_v23, %v818_v36  ;;  %v1043_v51 = vmax.f32 %v1041_v24, %v1042_v37  ;;  %v466_v54 = vadd.f32 %v1655_v33, %v465_v42  ;;  %v594_v55 = vadd.f32 %v1655_v33, %v593_v43 }
 0x122   :  { %v824_v52 = vsel %vm704_vm1, %v657_v44, -inf  ;;  %v1048_v53 = vsel %vm704_vm1, %v689_v45, -inf  ;;  %v840_v56 = vmax.f32 %v838_v31, %v839_v40  ;;  %v1064_v57 = vmax.f32 %v1062_v32, %v1063_v41  ;;  %v596_v40 = vpop.f32.mrf.mxu1 }
 0x123   :  { %v825_v58 = vrot.slane %v824_v52, 4  ;;  %v1049_v59 = vrot.slane %v1048_v53, 4  ;;  %v662_v60 = vmax.f32 %v474_v46, 0.0  ;;  %v694_v61 = vmax.f32 %v602_v47, 0.0 }
 0x124   :  { %v660_v62 = vmax.f32 %v466_v54, 0.0  ;;  %v692_v63 = vmax.f32 %v594_v55, 0.0  ;;  %v835_v0 = vmax.f32 %v833_v18, %v834_v48  ;;  %v1059_v1 = vmax.f32 %v1057_v19, %v1058_v49  ;;  %v1427_v55 = vpop.f32.mrf.mxu0 }
 0x125   :  { %v826_v2 = vmax.f32 %v824_v52, %v825_v58  ;;  %v1050_v3 = vmax.f32 %v1048_v53, %v1049_v59  ;;  %v820_v6 = vrot.slane %v819_v50, 2  ;;  %v1044_v7 = vrot.slane %v1043_v51, 2 }
 0x126   :  { %v845_v8 = vsel %vm704_vm1, %v660_v62, -inf  ;;  %v1069_v9 = vsel %vm704_vm1, %v692_v63, -inf  ;;  %v841_v10 = vrot.slane %v840_v56, 2  ;;  %v1065_v11 = vrot.slane %v1064_v57, 2 }
 0x127   :  { %v827_v12 = vrot.slane %v826_v2, 2  ;;  %v1051_v13 = vrot.slane %v1050_v3, 2  ;;  %v859_v14 = vsel %vm704_vm1, %v662_v60, -inf  ;;  %v1083_v15 = vsel %vm704_vm1, %v694_v61, -inf }
 0x128   :  { %v477_v16 = vadd.f32 %v1424_v4, %v1655_v33  ;;  %v605_v17 = vadd.f32 %v1456_v5, %v1655_v33  ;;  %v846_v22 = vrot.slane %v845_v8, 4  ;;  %v1070_v23 = vrot.slane %v1069_v9, 4 }
 0x129   :  { %v828_v20 = vmax.f32 %v826_v2, %v827_v12  ;;  %v1052_v21 = vmax.f32 %v1050_v3, %v1051_v13  ;;  %v836_v24 = vrot.slane %v835_v0, 1  ;;  %v1060_v25 = vrot.slane %v1059_v1, 1 }
 0x12a   :  { %v663_v26 = vmax.f32 %v477_v16, 0.0  ;;  %v695_v18 = vmax.f32 %v605_v17, 0.0  ;;  %v821_v19 = vmax.f32 %v819_v50, %v820_v6  ;;  %v1045_v27 = vmax.f32 %v1043_v51, %v1044_v7 }
 0x12b   :  { %v842_v28 = vmax.f32 %v840_v56, %v841_v10  ;;  %v1066_v29 = vmax.f32 %v1064_v57, %v1065_v11  ;;  %v860_v30 = vrot.slane %v859_v14, 4  ;;  %v1084_v31 = vrot.slane %v1083_v15, 4  ;;  %v1459_v56 = vpop.f32.mrf.mxu1 }
 0x12c   :  { %v866_v32 = vsel %vm704_vm1, %v663_v26, -inf  ;;  %v1090_v34 = vsel %vm704_vm1, %v695_v18, -inf  ;;  %v829_v35 = vrot.slane %v828_v20, 1  ;;  %v1053_v36 = vrot.slane %v1052_v21, 1 }
 0x12d   :  { %v847_v37 = vmax.f32 %v845_v8, %v846_v22  ;;  %v1071_v38 = vmax.f32 %v1069_v9, %v1070_v23  ;;  %v867_v41 = vrot.slane %v866_v32, 4  ;;  %v1091_v42 = vrot.slane %v1090_v34, 4  ;;  %v481_v9 = vpop.f32.mrf.mxu0  ;;  %v609_v10 = vpop.f32.mrf.mxu1 }
 0x12e   :  { %v822_v43 = vrot.slane %v821_v19, 1  ;;  %v1046_v44 = vrot.slane %v1045_v27, 1  ;;  %v843_v45 = vrot.slane %v842_v28, 1  ;;  %v1067_v46 = vrot.slane %v1066_v29, 1 }
 0x12f   :  { %v837_v47 = vmax.f32 %v835_v0, %v836_v24  ;;  %v1061_v48 = vmax.f32 %v1059_v1, %v1060_v25  ;;  %v861_v49 = vmax.f32 %v859_v14, %v860_v30  ;;  %v1085_v50 = vmax.f32 %v1083_v15, %v1084_v31 }
 0x130   :  { %v830_v51 = vmax.f32 %v828_v20, %v829_v35  ;;  %v1054_v52 = vmax.f32 %v1052_v21, %v1053_v36  ;;  %v848_v53 = vrot.slane %v847_v37, 2  ;;  %v1072_v54 = vrot.slane %v1071_v38, 2 }
 0x131   :  { %v868_v57 = vmax.f32 %v866_v32, %v867_v41  ;;  %v1092_v58 = vmax.f32 %v1090_v34, %v1091_v42  ;;  %v469_v59 = vadd.f32 %v1655_v33, %v468_v39  ;;  %v597_v60 = vadd.f32 %v1655_v33, %v596_v40 }
 0x132   :  { %v823_v61 = vmax.f32 %v821_v19, %v822_v43  ;;  %v1047_v62 = vmax.f32 %v1045_v27, %v1046_v44  ;;  %v844_v63 = vmax.f32 %v842_v28, %v843_v45  ;;  %v1068_v2 = vmax.f32 %v1066_v29, %v1067_v46  ;;  %v1428_v27 = vpop.f32.mrf.mxu0  ;;  %v1460_v28 = vpop.f32.mrf.mxu1 }
 0x133   :  { %v862_v0 = vrot.slane %v861_v49, 2  ;;  %v1086_v1 = vrot.slane %v1085_v50, 2  ;;  %v661_v3 = vmax.f32 %v469_v59, 0.0  ;;  %v693_v4 = vmax.f32 %v597_v60, 0.0 }
 0x134   :  { %v1238_v5 = vsel %vm1217_vm2, %v830_v51, %v823_v61  ;;  %v1266_v6 = vsel %vm1217_vm2, %v1054_v52, %v1047_v62  ;;  %v849_v7 = vmax.f32 %v847_v37, %v848_v53  ;;  %v1073_v8 = vmax.f32 %v1071_v38, %v1072_v54  ;;  %v484_v45 = vpop.f32.mrf.mxu0  ;;  %v612_v46 = vpop.f32.mrf.mxu1 }
 0x135   :  { %v869_v11 = vrot.slane %v868_v57, 2  ;;  %v1093_v12 = vrot.slane %v1092_v58, 2  ;;  %v852_v13 = vsel %vm704_vm1, %v661_v3, -inf  ;;  %v1076_v14 = vsel %vm704_vm1, %v693_v4, -inf }
 0x136   :  { %v853_v15 = vrot.slane %v852_v13, 4  ;;  %v1077_v16 = vrot.slane %v1076_v14, 4  ;;  %v490_v17 = vadd.f32 %v1427_v55, %v1655_v33  ;;  %v618_v20 = vadd.f32 %v1459_v56, %v1655_v33 }
 0x137   :  { %v863_v21 = vmax.f32 %v861_v49, %v862_v0  ;;  %v1087_v22 = vmax.f32 %v1085_v50, %v1086_v1  ;;  %v482_v23 = vadd.f32 %v1655_v33, %v481_v9  ;;  %v610_v24 = vadd.f32 %v1655_v33, %v609_v10 }
 0x138   :  { %v850_v25 = vrot.slane %v849_v7, 1  ;;  %v1074_v26 = vrot.slane %v1073_v8, 1  ;;  %v854_v18 = vmax.f32 %v852_v13, %v853_v15  ;;  %v1078_v19 = vmax.f32 %v1076_v14, %v1077_v16  ;;  %v1822_v13 = vld [vmem:[%s1880_s2] ss:$0 sm:$0xff] }
 0x139   :  { %v1239_v29 = vsel %vm1219_vm3, %v837_v47, %v1238_v5  ;;  %v1267_v30 = vsel %vm1219_vm3, %v1061_v48, %v1266_v6  ;;  %v870_v31 = vmax.f32 %v868_v57, %v869_v11  ;;  %v1094_v32 = vmax.f32 %v1092_v58, %v1093_v12 }
 0x13a   :  { %v855_v34 = vrot.slane %v854_v18, 2  ;;  %v1079_v35 = vrot.slane %v1078_v19, 2  ;;  %v666_v36 = vmax.f32 %v490_v17, 0.0  ;;  %v698_v37 = vmax.f32 %v618_v20, 0.0 }
 0x13b   :  { %v864_v38 = vrot.slane %v863_v21, 1  ;;  %v1088_v39 = vrot.slane %v1087_v22, 1  ;;  %v664_v40 = vmax.f32 %v482_v23, 0.0  ;;  %v696_v33 = vmax.f32 %v610_v24, 0.0 }
 0x13c   :  { %v851_v41 = vmax.f32 %v849_v7, %v850_v25  ;;  %v1075_v42 = vmax.f32 %v1073_v8, %v1074_v26  ;;  %v856_v43 = vmax.f32 %v854_v18, %v855_v34  ;;  %v1080_v44 = vmax.f32 %v1078_v19, %v1079_v35 }
 0x13d   :  { %v1240_v47 = vsel %vm1221_vm4, %v844_v63, %v1239_v29  ;;  %v1268_v48 = vsel %vm1221_vm4, %v1068_v2, %v1267_v30  ;;  %v871_v49 = vrot.slane %v870_v31, 1  ;;  %v1095_v50 = vrot.slane %v1094_v32, 1  ;;  %v1431_v63 = vpop.f32.mrf.mxu0  ;;  %v1463_v2 = vpop.f32.mrf.mxu1 }
 0x13e   :  { %v857_v51 = vrot.slane %v856_v43, 1  ;;  %v1081_v52 = vrot.slane %v1080_v44, 1  ;;  %v887_v53 = vsel %vm704_vm1, %v666_v36, -inf  ;;  %v1111_v54 = vsel %vm704_vm1, %v698_v37, -inf }
 0x13f   :  { %v865_v55 = vmax.f32 %v863_v21, %v864_v38  ;;  %v1089_v56 = vmax.f32 %v1087_v22, %v1088_v39  ;;  %v873_v57 = vsel %vm704_vm1, %v664_v40, -inf  ;;  %v1097_v58 = vsel %vm704_vm1, %v696_v33, -inf  ;;  %v497_v16 = vpop.f32.mrf.mxu0  ;;  %v625_v17 = vpop.f32.mrf.mxu1 }
 0x140   :  { %v1241_v59 = vsel %vm1223_vm5, %v851_v41, %v1240_v47  ;;  %v1269_v60 = vsel %vm1223_vm5, %v1075_v42, %v1268_v48  ;;  %v858_v61 = vmax.f32 %v856_v43, %v857_v51  ;;  %v1082_v62 = vmax.f32 %v1080_v44, %v1081_v52 }
 0x141   :  { %v872_v0 = vmax.f32 %v870_v31, %v871_v49  ;;  %v1096_v1 = vmax.f32 %v1094_v32, %v1095_v50  ;;  %v888_v3 = vrot.slane %v887_v53, 4  ;;  %v1112_v4 = vrot.slane %v1111_v54, 4  ;;  %v1432_v42 = vpop.f32.mrf.mxu0  ;;  %v1464_v43 = vpop.f32.mrf.mxu1 }
 0x142   :  { %v1242_v5 = vsel %vm1225_vm6, %v858_v61, %v1241_v59  ;;  %v1270_v6 = vsel %vm1225_vm6, %v1082_v62, %v1269_v60  ;;  %v874_v7 = vrot.slane %v873_v57, 4  ;;  %v1098_v8 = vrot.slane %v1097_v58, 4 }
 0x143   :  { %v1243_v9 = vsel %vm1227_vm7, %v865_v55, %v1242_v5  ;;  %v1271_v10 = vsel %vm1227_vm7, %v1089_v56, %v1270_v6  ;;  %v493_v14 = vadd.f32 %v1822_v13, %v1428_v27  ;;  %v621_v15 = vadd.f32 %v1822_v13, %v1460_v28 }
 0x144   :  { %v1244_v11 = vsel %vm1229_vm8, %v872_v0, %v1243_v9  ;;  %v1272_v12 = vsel %vm1229_vm8, %v1096_v1, %v1271_v10  ;;  %v485_v20 = vadd.f32 %v1822_v13, %v484_v45  ;;  %v613_v21 = vadd.f32 %v1822_v13, %v612_v46 }
 0x145   :  { %1290 = vst.msk [vmem:[%s1881_s3 + $0x10] sm:$0xff] %vm704_vm1, %v1244_v11  ;;  %1294 = vst.msk [vmem:[%s1881_s3 + $0x30] sm:$0xff] %vm704_vm1, %v1272_v12  ;;  %v889_v22 = vmax.f32 %v887_v53, %v888_v3  ;;  %v1113_v23 = vmax.f32 %v1111_v54, %v1112_v4  ;;  %v875_v24 = vmax.f32 %v873_v57, %v874_v7  ;;  %v667_v28 = vmax.f32 %v493_v14, 0.0 }
 0x146   :  { %v1099_v25 = vmax.f32 %v1097_v58, %v1098_v8  ;;  %v665_v26 = vmax.f32 %v485_v20, 0.0  ;;  %v697_v18 = vmax.f32 %v613_v21, 0.0  ;;  %v498_v19 = vadd.f32 %v1822_v13, %v497_v16 }
 0x147   :  { %v626_v27 = vadd.f32 %v1822_v13, %v625_v17  ;;  %v699_v29 = vmax.f32 %v621_v15, 0.0  ;;  %v506_v30 = vadd.f32 %v1822_v13, %v1431_v63  ;;  %v634_v31 = vadd.f32 %v1822_v13, %v1463_v2 }
 0x148   :  { %v880_v32 = vsel %vm704_vm1, %v665_v26, -inf  ;;  %v1104_v34 = vsel %vm704_vm1, %v697_v18, -inf  ;;  %v668_v35 = vmax.f32 %v498_v19, 0.0  ;;  %v890_v39 = vrot.slane %v889_v22, 2 }
 0x149   :  { %v700_v36 = vmax.f32 %v626_v27, 0.0  ;;  %v881_v37 = vrot.slane %v880_v32, 4  ;;  %v1105_v38 = vrot.slane %v1104_v34, 4  ;;  %v1114_v40 = vrot.slane %v1113_v23, 2 }
 0x14a   :  { %v876_v33 = vrot.slane %v875_v24, 2  ;;  %v1100_v41 = vrot.slane %v1099_v25, 2  ;;  %v894_v44 = vsel %vm704_vm1, %v667_v28, -inf  ;;  %v1118_v45 = vsel %vm704_vm1, %v699_v29, -inf }
 0x14b   :  { %v882_v46 = vmax.f32 %v880_v32, %v881_v37  ;;  %v1106_v47 = vmax.f32 %v1104_v34, %v1105_v38  ;;  %v670_v48 = vmax.f32 %v506_v30, 0.0  ;;  %v702_v49 = vmax.f32 %v634_v31, 0.0 }
 0x14c   :  { %v901_v50 = vsel %vm704_vm1, %v668_v35, -inf  ;;  %v1125_v51 = vsel %vm704_vm1, %v700_v36, -inf  ;;  %v509_v54 = vadd.f32 %v1822_v13, %v1432_v42  ;;  %v637_v55 = vadd.f32 %v1822_v13, %v1464_v43 }
 0x14d   :  { %v883_v52 = vrot.slane %v882_v46, 2  ;;  %v1107_v53 = vrot.slane %v1106_v47, 2  ;;  %v895_v56 = vrot.slane %v894_v44, 4  ;;  %v1119_v57 = vrot.slane %v1118_v45, 4 }
 0x14e   :  { %v902_v58 = vrot.slane %v901_v50, 4  ;;  %v1126_v59 = vrot.slane %v1125_v51, 4  ;;  %v671_v60 = vmax.f32 %v509_v54, 0.0  ;;  %v703_v61 = vmax.f32 %v637_v55, 0.0 }
 0x14f   :  { %v884_v62 = vmax.f32 %v882_v46, %v883_v52  ;;  %v1108_v63 = vmax.f32 %v1106_v47, %v1107_v53  ;;  %v915_v2 = vsel %vm704_vm1, %v670_v48, -inf  ;;  %v1139_v0 = vsel %vm704_vm1, %v702_v49, -inf }
 0x150   :  { %v891_v1 = vmax.f32 %v889_v22, %v890_v39  ;;  %v1115_v3 = vmax.f32 %v1113_v23, %v1114_v40  ;;  %v877_v4 = vmax.f32 %v875_v24, %v876_v33  ;;  %v1101_v5 = vmax.f32 %v1099_v25, %v1100_v41  ;;  %v500_v22 = vpop.f32.mrf.mxu0  ;;  %v628_v23 = vpop.f32.mrf.mxu1 }
 0x151   :  { %v896_v6 = vmax.f32 %v894_v44, %v895_v56  ;;  %v1120_v7 = vmax.f32 %v1118_v45, %v1119_v57  ;;  %v922_v8 = vsel %vm704_vm1, %v671_v60, -inf  ;;  %v1146_v9 = vsel %vm704_vm1, %v703_v61, -inf }
 0x152   :  { %v916_v10 = vrot.slane %v915_v2, 4  ;;  %v1140_v11 = vrot.slane %v1139_v0, 4  ;;  %v903_v12 = vmax.f32 %v901_v50, %v902_v58  ;;  %v1127_v14 = vmax.f32 %v1125_v51, %v1126_v59 }
 0x153   :  { %v885_v15 = vrot.slane %v884_v62, 1  ;;  %v1109_v16 = vrot.slane %v1108_v63, 1  ;;  %v878_v17 = vrot.slane %v877_v4, 1  ;;  %v1102_v20 = vrot.slane %v1101_v5, 1 }
 0x154   :  { %v923_v21 = vrot.slane %v922_v8, 4  ;;  %v1147_v26 = vrot.slane %v1146_v9, 4  ;;  %v892_v24 = vrot.slane %v891_v1, 1  ;;  %v1116_v25 = vrot.slane %v1115_v3, 1 }
 0x155   :  { %v897_v18 = vrot.slane %v896_v6, 2  ;;  %v1121_v19 = vrot.slane %v1120_v7, 2  ;;  %v917_v27 = vmax.f32 %v915_v2, %v916_v10  ;;  %v1141_v28 = vmax.f32 %v1139_v0, %v1140_v11 }
 0x156   :  { %v904_v29 = vrot.slane %v903_v12, 2  ;;  %v1128_v30 = vrot.slane %v1127_v14, 2  ;;  %v886_v31 = vmax.f32 %v884_v62, %v885_v15  ;;  %v1110_v32 = vmax.f32 %v1108_v63, %v1109_v16 }
 0x157   :  { %v501_v34 = vadd.f32 %v1822_v13, %v500_v22  ;;  %v629_v35 = vadd.f32 %v1822_v13, %v628_v23  ;;  %v879_v36 = vmax.f32 %v877_v4, %v878_v17  ;;  %v1103_v37 = vmax.f32 %v1101_v5, %v1102_v20 }
 0x158   :  { %v924_v38 = vmax.f32 %v922_v8, %v923_v21  ;;  %v1148_v39 = vmax.f32 %v1146_v9, %v1147_v26  ;;  %v898_v40 = vmax.f32 %v896_v6, %v897_v18  ;;  %v1122_v33 = vmax.f32 %v1120_v7, %v1121_v19 }
 0x159   :  { %v669_v41 = vmax.f32 %v501_v34, 0.0  ;;  %v701_v42 = vmax.f32 %v629_v35, 0.0  ;;  %v918_v43 = vrot.slane %v917_v27, 2  ;;  %v1142_v44 = vrot.slane %v1141_v28, 2 }
 0x15a   :  { %v905_v45 = vmax.f32 %v903_v12, %v904_v29  ;;  %v1129_v46 = vmax.f32 %v1127_v14, %v1128_v30  ;;  %v1245_v47 = vsel %vm1217_vm2, %v886_v31, %v879_v36  ;;  %v1273_v48 = vsel %vm1217_vm2, %v1110_v32, %v1103_v37 }
 0x15b   :  { %v908_v49 = vsel %vm704_vm1, %v669_v41, -inf  ;;  %v1132_v13 = vsel %vm704_vm1, %v701_v42, -inf  ;;  %v925_v50 = vrot.slane %v924_v38, 2  ;;  %v1149_v51 = vrot.slane %v1148_v39, 2 }
 0x15c   :  { %v909_v52 = vrot.slane %v908_v49, 4  ;;  %v1133_v53 = vrot.slane %v1132_v13, 4  ;;  %v893_v54 = vmax.f32 %v891_v1, %v892_v24  ;;  %v1117_v55 = vmax.f32 %v1115_v3, %v1116_v25 }
 0x15d   :  { %v899_v56 = vrot.slane %v898_v40, 1  ;;  %v1123_v57 = vrot.slane %v1122_v33, 1  ;;  %v919_v58 = vmax.f32 %v917_v27, %v918_v43  ;;  %v1143_v59 = vmax.f32 %v1141_v28, %v1142_v44 }
 0x15e   :  { %v910_v60 = vmax.f32 %v908_v49, %v909_v52  ;;  %v1134_v61 = vmax.f32 %v1132_v13, %v1133_v53  ;;  %v1246_v62 = vsel %vm1219_vm3, %v893_v54, %v1245_v47  ;;  %v1274_v63 = vsel %vm1219_vm3, %v1117_v55, %v1273_v48 }
 0x15f   :  { %v906_v2 = vrot.slane %v905_v45, 1  ;;  %v1130_v0 = vrot.slane %v1129_v46, 1  ;;  %v926_v4 = vmax.f32 %v924_v38, %v925_v50  ;;  %v1150_v5 = vmax.f32 %v1148_v39, %v1149_v51 }
 0x160   :  { %v911_v6 = vrot.slane %v910_v60, 2  ;;  %v1135_v7 = vrot.slane %v1134_v61, 2  ;;  %v900_v8 = vmax.f32 %v898_v40, %v899_v56  ;;  %v1124_v9 = vmax.f32 %v1122_v33, %v1123_v57 }
 0x161   :  { %v920_v1 = vrot.slane %v919_v58, 1  ;;  %v1144_v3 = vrot.slane %v1143_v59, 1  ;;  %v907_v12 = vmax.f32 %v905_v45, %v906_v2  ;;  %v1131_v15 = vmax.f32 %v1129_v46, %v1130_v0 }
 0x162   :  { %v912_v10 = vmax.f32 %v910_v60, %v911_v6  ;;  %v1136_v11 = vmax.f32 %v1134_v61, %v1135_v7  ;;  %v1247_v14 = vsel %vm1221_vm4, %v900_v8, %v1246_v62  ;;  %v1275_v16 = vsel %vm1221_vm4, %v1124_v9, %v1274_v63 }
 0x163   :  { %v927_v17 = vrot.slane %v926_v4, 1  ;;  %v1151_v20 = vrot.slane %v1150_v5, 1  ;;  %v921_v24 = vmax.f32 %v919_v58, %v920_v1  ;;  %v1145_v25 = vmax.f32 %v1143_v59, %v1144_v3 }
 0x164   :  { %v913_v21 = vrot.slane %v912_v10, 1  ;;  %v1137_v26 = vrot.slane %v1136_v11, 1  ;;  %v1248_v18 = vsel %vm1223_vm5, %v907_v12, %v1247_v14  ;;  %v1276_v19 = vsel %vm1223_vm5, %v1131_v15, %v1275_v16 }
 0x165   :  { %v928_v27 = vmax.f32 %v926_v4, %v927_v17  ;;  %v1152_v28 = vmax.f32 %v1150_v5, %v1151_v20 }
 0x166   :  { %v914_v22 = vmax.f32 %v912_v10, %v913_v21  ;;  %v1138_v23 = vmax.f32 %v1136_v11, %v1137_v26 }
 0x168   :  { %v1249_v29 = vsel %vm1225_vm6, %v914_v22, %v1248_v18  ;;  %v1277_v30 = vsel %vm1225_vm6, %v1138_v23, %v1276_v19 }
 0x169   :  { %v1250_v31 = vsel %vm1227_vm7, %v921_v24, %v1249_v29  ;;  %v1278_v32 = vsel %vm1227_vm7, %v1145_v25, %v1277_v30 }
 0x16a   :  { %v1251_v34 = vsel %vm1229_vm8, %v928_v27, %v1250_v31  ;;  %v1279_v35 = vsel %vm1229_vm8, %v1152_v28, %v1278_v32 }
 0x16b   :  { %1291 = vst.msk [vmem:[%s1881_s3 + $0x18] sm:$0xff] %vm704_vm1, %v1251_v34  ;;  %1295 = vst.msk [vmem:[%s1881_s3 + $0x38] sm:$0xff] %vm704_vm1, %v1279_v35 }

// kernel: forward.9
= control target key start
LH: loop header
LB: loop body
LE: loop exit
PB: predicated region body
PF: predicated region fallthrough
CT: control target
= control target key end

     0   :  { %s2304_s15 = smov 0   ;;  %s2306_s16 = smov 0   ;;  %s2813_s0 = inlined_call_operand.vmem [shape: bf16[2,10,10,64], index: 0, kind: input, shape index: {}, may-alias: {0,1}]   ;;  %s2814_s1 = inlined_call_operand.vmem [shape: bf16[2,10,10,64], index: 1, kind: input, shape index: {}, may-alias: {0,1}]   ;;  %s2815_s2 = inlined_call_operand.vmem [shape: bf16[9,64,64], index: 2, kind: input, shape index: {}]   ;;  %s2816_s3 = inlined_call_operand.vmem [shape: f32[1,64], index: 3, kind: input, shape index: {}]   ;;  %s2817_s4 = inlined_call_operand.vmem [shape: bf16[2,8,8,64], index: 4, kind: output, shape index: {}]  }
   0x1   :  { %s2308_s17 = smov 0  }
   0x2 LB: > { %s26_s18 = sadd.s32 1, %s2273_s16  ;;  %p1776_p0 = scmp.ge.s32.totalorder %s2277_s17, 1  ;;  %s2277_s17 = sphi %s2308_s17, %s14_s17   ;;  %s2273_s16 = sphi %s2306_s16, %s2831_s16   ;;  %s2269_s15 = sphi %s2304_s15, %s2830_s15  }
   0x3   : > { %p28_p1 = scmp.ge.s32.totalorder %s26_s18, 2  ;;  %p220_p2 = scmp.lt.s32.totalorder %s2277_s17, 3 }
   0x5   : > { %s2833_s18 = smov (%p28_p1, %s26_s18), 0  ;;  %p221_p3 = pnand %p1776_p0, %p220_p2 }
   0x7   : > { %224 = sbr.rel (%p221_p3) target bundleno = 312 (0x138), region = 36 }
   0xc   : > { %v2211_v0 = vld [vmem:[%s2815_s2 + $0x38] sm:$0xff]   ;;  %p278_p4 = scmp.lt.s32.totalorder %s2269_s15, 1  ;;  %v2213_v2 = vld [vmem:[%s2815_s2 + $0x30] sm:$0xff]   ;;  %v2215_v4 = vld [vmem:[%s2815_s2 + $0x28] sm:$0xff]   ;;  %vm507_vm0 = vcmask 523264   ;;  %vm714_vm4 = vcmask 1042432  }
   0xd   : > { %v2212_v1 = vld [vmem:[%s2815_s2 + $0x18] sm:$0xff]   ;;  %2032 = vmatprep.subr.bf16.mxu0 %v2211_v0  ;;  %v2214_v3 = vld [vmem:[%s2815_s2 + $0x10] sm:$0xff]   ;;  %v2216_v5 = vld [vmem:[%s2815_s2 + $0x8] sm:$0xff]   ;;  %vm347_vm1 = vsmask.f32 3328  ;;  %vm715_vm5 = vcmask 1046532  }
   0xe   : > { %s2835_s15 = smov (!%p278_p4, %s2269_s15), 1  ;;  %2048 = vmatprep.subr.bf16.mxu1 %v2212_v1  ;;  %2033 = vmatpush3.bf16.msra.mxu0 %v2211_v0  ;;  %v2217_v6 = vld [vmem:[%s2815_s2 + $0x20] sm:$0xff]   ;;  %v2390_v20 = vld [vmem:[%s2815_s2 + $0x58] sm:$0xff]   ;;  %vm348_vm2 = vsmask.f32 7440  ;;  %v2224_v59 = vld [vmem:[%s2815_s2 + $0x70] sm:$0xff]  }
   0xf   : > { %2049 = vmatpush3.bf16.msra.mxu1 %v2212_v1  ;;  %2034 = vmatprep.subr.bf16.mxu0 %v2213_v2  ;;  %s2184_s29 = smul.u32 80, %s2835_s15  ;;  %v2218_v9 = vld [vmem:[%s2815_s2] sm:$0xff]   ;;  %v2222_v33 = vld [vmem:[%s2815_s2 + $0x78] sm:$0xff]   ;;  %vm2413_vm3 = vmor %vm347_vm1, %vm348_vm2  ;;  %s1959_s10 = sshll.u32 %s2835_s15, 5  ;;  %vm1652_vm7 = vcmask 519168  }
  0x10   : > { %2050 = vmatprep.subr.bf16.mxu1 %v2214_v3  ;;  %vm2508_vm6 = vmor %vm714_vm4, %vm715_vm5  ;;  %v2254_v39 = vld [vmem:[%s2815_s2 + $0x100] sm:$0xff]   ;;  %s2784_s12 = scalar_lea.vmem %s2817_s4, %s1959_s10 }
  0x11   : > { %s2348_s8 = scalar_lea.vmem %s2813_s0, %s2184_s29 }
  0x12   : > { %2035 = vmatpush3.bf16.msra.mxu0 %v2213_v2  ;;  %v2354_v7 = vld [vmem:[%s2348_s8] sm:$0xf]  ;;  %v2357_v8 = vld [vmem:[%s2348_s8 + $0x8] sm:$0xf]  ;;  %v2367_v13 = vld [vmem:[%s2348_s8 + $0x4] sm:$0x1] }
  0x13   : > { %2051 = vmatpush3.bf16.msra.mxu1 %v2214_v3  ;;  %2036 = vmatprep.subr.bf16.mxu0 %v2215_v4  ;;  %v351_v10 = vshrl.u32 %v2354_v7, 16  ;;  %v354_v11 = vshll.u32 %v2354_v7, 16  ;;  %v1801_v12 = vcombine.low %v2354_v7, %v2357_v8  ;;  %v2370_v14 = vld [vmem:[%s2348_s8 + $0xc] sm:$0x1]  ;;  %v2373_v15 = vld [vmem:[%s2348_s8 + $0x10] sm:$0xf] }
  0x14   : > { %2052 = vmatprep.subr.bf16.mxu1 %v2216_v5  ;;  %v2376_v16 = vld [vmem:[%s2348_s8 + $0x18] sm:$0xf]  ;;  %v1813_v17 = vrot.slane %v2354_v7, 9  ;;  %v2381_v18 = vld [vmem:[%s2348_s8 + $0x14] sm:$0x1]  ;;  %v360_v25 = vshll.u32 %v2367_v13, 16 }
  0x15   : > { %2056 = vmatprep.mubr.msk.bf16.mxu1 %vm507_vm0, %v1801_v12  ;;  %v2385_v19 = vcombine.low %v2373_v15, %v2376_v16  ;;  %v2393_v21 = vld [vmem:[%s2348_s8 + $0x1c] sm:$0x1]  ;;  %v353_v22 = vrot.slane %v351_v10, 4  ;;  %v356_v23 = vrot.slane %v354_v11, 5  ;;  %v2396_v24 = vld [vmem:[%s2348_s8 + $0x20] sm:$0xf] }
  0x16   : > { %2037 = vmatpush3.bf16.msra.mxu0 %v2215_v4  ;;  %v365_v26 = vshrl.u32 %v2357_v8, 16  ;;  %v368_v27 = vshll.u32 %v2357_v8, 16  ;;  %v374_v28 = vshll.u32 %v2370_v14, 16  ;;  %v379_v30 = vshrl.u32 %v2373_v15, 16  ;;  %v2409_v34 = vld [vmem:[%s2348_s8 + $0x24] sm:$0x1] }
  0x17   : > { %2053 = vmatpush3.bf16.msra.mxu1 %v2216_v5  ;;  %2038 = vmatprep.subr.bf16.mxu0 %v2217_v6  ;;  %v357_v29 = vor.u32 %v356_v23, %v353_v22  ;;  %v382_v31 = vshll.u32 %v2373_v15, 16  ;;  %v388_v32 = vshll.u32 %v2381_v18, 16  ;;  %v362_v35 = vrot.slane %v360_v25, 5  ;;  %v2439_v3 = vld [vmem:[%s2348_s8 + $0x28] sm:$0xf]  ;;  %v2223_v23 = vld [vmem:[%s2815_s2 + $0x50] sm:$0xff]  }
  0x18   : > { %2054 = vmatprep.subr.bf16.mxu1 %v2218_v9  ;;  %v367_v36 = vrot.slane %v365_v26, 4  ;;  %v370_v37 = vrot.slane %v368_v27, 5  ;;  %v376_v38 = vrot.slane %v374_v28, 5  ;;  %v381_v41 = vrot.slane %v379_v30, 4  ;;  %v2442_v4 = vld [vmem:[%s2348_s8 + $0x2c] sm:$0x1] }
  0x19   : > { %v358_v40 = vrot.slane %v357_v29, 4  ;;  %v384_v42 = vrot.slane %v382_v31, 5  ;;  %v390_v43 = vrot.slane %v388_v32, 5  ;;  %v393_v45 = vshrl.u32 %v2376_v16, 16  ;;  %v2228_v5 = vld [vmem:[%s2815_s2 + $0x68] sm:$0xff]  }
  0x1a   : > { %2039 = vmatpush3.bf16.msra.mxu0 %v2217_v6  ;;  %v371_v44 = vor.u32 %v370_v37, %v367_v36  ;;  %v396_v46 = vshll.u32 %v2376_v16, 16  ;;  %v402_v47 = vshll.u32 %v2393_v21, 16  ;;  %v407_v49 = vshrl.u32 %v2396_v24, 16  ;;  %v2452_v11 = vld [vmem:[%s2348_s8 + $0x30] sm:$0xf] }
  0x1b   : > { %2055 = vmatpush3.bf16.msra.mxu1 %v2218_v9  ;;  %2064 = vmatprep.subr.bf16.mxu0 %v2390_v20  ;;  %v385_v48 = vor.u32 %v384_v42, %v381_v41  ;;  %v410_v50 = vshll.u32 %v2396_v24, 16  ;;  %v363_v51 = vsel %vm2413_vm3, %v358_v40, %v362_v35  ;;  %v395_v53 = vrot.slane %v393_v45, 4  ;;  %v2465_v26 = vld [vmem:[%s2348_s8 + $0x38] sm:$0xf]  ;;  %v2474_v30 = vld [vmem:[%s2348_s8 + $0x34] sm:$0x1] }
  0x1c   : > { %2080 = vmatprep.subr.bf16.mxu1 %v2222_v33  ;;  %v372_v52 = vrot.slane %v371_v44, 4  ;;  %v398_v54 = vrot.slane %v396_v46, 5  ;;  %v409_v56 = vrot.slane %v407_v49, 4  ;;  %v416_v58 = vshll.u32 %v2409_v34, 16  ;;  %v2484_v35 = vld [vmem:[%s2348_s8 + $0x3c] sm:$0x1] }
  0x1d   : > { %v386_v55 = vrot.slane %v385_v48, 4  ;;  %v412_v57 = vrot.slane %v410_v50, 5  ;;  %v404_v62 = vrot.slane %v402_v47, 5  ;;  %v719_v63 = vrot.slane %v2367_v13, 5  ;;  %v2230_v44 = vld [vmem:[%s2815_s2 + $0x60] sm:$0xff]   ;;  %v2227_v46 = vld [vmem:[%s2815_s2 + $0x48] sm:$0xff]  }
  0x1e   : > { %2057 = vmatmul.mubr.msk.bf16.vlgmr.msra.gmra.mxu1 %vm507_vm0, %v2385_v19  ;;  %v2433_v60 = vsel %vm2413_vm3, %v372_v52, %v376_v38  ;;  %v399_v61 = vor.u32 %v398_v54, %v395_v53  ;;  %v723_v2 = vrot.slane %v2370_v14, 5  ;;  %v418_v10 = vrot.slane %v416_v58, 5  ;;  %v2234_v53 = vld [vmem:[%s2815_s2 + $0xb8] sm:$0xff]   ;;  %s1958_s8 = sadd.s32 64, %s2184_s29 }
  0x1f   : > { %2081 = vmatpush3.bf16.msra.mxu1 %v2222_v33  ;;  %v413_v0 = vor.u32 %v412_v57, %v409_v56  ;;  %v1789_v1 = vcombine.low %v363_v51, %v2433_v60  ;;  %v2449_v6 = vsel %vm2413_vm3, %v386_v55, %v390_v43  ;;  %v1815_v12 = vrot.slane %v2373_v15, 9  ;;  %s2568_s20 = scalar_lea.vmem %s2814_s1, %s1958_s8 }
  0x20   : > { %2082 = vmatprep.subr.bf16.mxu1 %v2224_v59  ;;  %v400_v9 = vrot.slane %v399_v61, 4  ;;  %v727_v22 = vrot.slane %v2381_v18, 5  ;;  %v2462_v25 = vcombine.low %v2396_v24, %v2439_v3  ;;  %v421_v28 = vshrl.u32 %v2439_v3, 16 }
  0x21   : > { %2040 = vmatprep.mubr.msk.bf16.mxu0 %vm507_vm0, %v1789_v1  ;;  %v424_v29 = vshll.u32 %v2439_v3, 16  ;;  %v414_v31 = vrot.slane %v413_v0, 4  ;;  %v430_v33 = vshll.u32 %v2442_v4, 16  ;;  %v1849_v38 = vcombine.low %v2357_v8, %v2373_v15 }
  0x22   : > { %v2469_v27 = vsel %vm2413_vm3, %v400_v9, %v404_v62  ;;  %2060 = vmatprep.mubr.msk.bf16.mxu1 %vm507_vm0, %v2462_v25  ;;  %v423_v36 = vrot.slane %v421_v28, 4  ;;  %v2492_v41 = vcombine.low %v2452_v11, %v2465_v26  ;;  %v435_v42 = vshrl.u32 %v2452_v11, 16  ;;  %v2236_v28 = vld [vmem:[%s2815_s2 + $0xb0] sm:$0xff]  }
  0x23   : > { %2083 = vmatpush3.bf16.msra.mxu1 %v2224_v59  ;;  %v2478_v32 = vcombine.low %v2449_v6, %v2469_v27  ;;  %v426_v37 = vrot.slane %v424_v29, 5  ;;  %v432_v40 = vrot.slane %v430_v33, 5  ;;  %v438_v43 = vshll.u32 %v2452_v11, 16 }
  0x24   : > { %2084 = vmatprep.subr.bf16.mxu1 %v2228_v5  ;;  %v444_v47 = vshll.u32 %v2474_v30, 16  ;;  %v449_v48 = vshrl.u32 %v2465_v26, 16  ;;  %v452_v49 = vshll.u32 %v2465_v26, 16  ;;  %v458_v52 = vshll.u32 %v2484_v35, 16 }
  0x25   : > { %2041 = vmatmul.mubr.msk.bf16.vlgmr.msra.gmra.mxu0 %vm507_vm0, %v2478_v32  ;;  %v427_v45 = vor.u32 %v426_v37, %v423_v36  ;;  %v440_v51 = vrot.slane %v438_v43, 5  ;;  %v2520_v54 = vsel %vm2413_vm3, %v414_v31, %v418_v10  ;;  %v1814_v61 = vrot.slane %v2357_v8, 9  ;;  %v2229_v10 = vld [vmem:[%s2815_s2 + $0x40] sm:$0xff]  }
  0x26   : > { %2065 = vmatpush3.bf16.msra.mxu0 %v2390_v20  ;;  %2061 = vmatmul.mubr.msk.bf16.gmra.mxu1 %vm507_vm0, %v2492_v41  ;;  %v437_v20 = vrot.slane %v435_v42, 4  ;;  %v451_v56 = vrot.slane %v449_v48, 4  ;;  %v454_v57 = vrot.slane %v452_v49, 5  ;;  %v446_v59 = vrot.slane %v444_v47, 5  ;;  %v2235_v48 = vld [vmem:[%s2815_s2 + $0x90] sm:$0xff]  }
  0x27   : > { %2085 = vmatpush3.bf16.msra.mxu1 %v2228_v5  ;;  %2066 = vmatprep.subr.bf16.mxu0 %v2223_v23  ;;  %v428_v55 = vrot.slane %v427_v45, 4  ;;  %v460_v1 = vrot.slane %v458_v52, 5  ;;  %v720_v5 = vsel %vm2508_vm6, %v1813_v17, %v719_v63  ;;  %v724_v7 = vsel %vm2508_vm6, %v1814_v61, %v723_v2  ;;  %v2238_v52 = vld [vmem:[%s2815_s2 + $0x88] sm:$0xff]  }
  0x28   : > { %2086 = vmatprep.subr.bf16.mxu1 %v2230_v44  ;;  %2088 = vmatprep.mubr.msk.bf16.mxu1 %vm507_vm0, %v1849_v38  ;;  %v441_v58 = vor.u32 %v440_v51, %v437_v20  ;;  %v455_v0 = vor.u32 %v454_v57, %v451_v56  ;;  %v1850_v13 = vcombine.low %v2376_v16, %v2396_v24  ;;  %v1816_v17 = vrot.slane %v2376_v16, 9  ;;  %v2233_v16 = vld [vmem:[%s2815_s2 + $0x98] sm:$0xff]   ;;  %v2645_v57 = vld [vmem:[%s2568_s20 + $0x8] sm:$0xf] }
  0x29   : > { %v2526_v62 = vsel %vm2413_vm3, %v428_v55, %v432_v40  ;;  %v731_v63 = vrot.slane %v2393_v21, 5  ;;  %v1851_v29 = vcombine.low %v2439_v3, %v2452_v11  ;;  %v1829_v2 = vcombine.low %v720_v5, %v724_v7  ;;  %v2585_v40 = vld [vmem:[%s2568_s20] sm:$0xf]  ;;  %v2245_v55 = vld [vmem:[%s2815_s2 + $0xf0] sm:$0xff]  }
  0x2a   : > { %2067 = vmatpush3.bf16.msra.mxu0 %v2223_v23  ;;  %v2538_v8 = vcombine.low %v2520_v54, %v2526_v62  ;;  %v442_v9 = vrot.slane %v441_v58, 4  ;;  %v456_v23 = vrot.slane %v455_v0, 4  ;;  %v1817_v31 = vrot.slane %v2396_v24, 9  ;;  %v2239_v24 = vld [vmem:[%s2815_s2 + $0xa8] sm:$0xff]   ;;  %v2240_v5 = vld [vmem:[%s2815_s2 + $0x80] sm:$0xff]  }
  0x2b   : > { %2087 = vmatpush3.bf16.msra.mxu1 %v2230_v44  ;;  %2068 = vmatprep.subr.bf16.mxu0 %v2227_v46  ;;  %v735_v33 = vrot.slane %v2409_v34, 5  ;;  %v1818_v37 = vrot.slane %v2439_v3, 9  ;;  %v739_v38 = vrot.slane %v2442_v4, 5  ;;  %v728_v34 = vsel %vm2508_vm6, %v1815_v12, %v727_v22  ;;  %v2241_v44 = vld [vmem:[%s2815_s2 + $0xa0] sm:$0xff]  }
  0x2c   : > { %2112 = vmatprep.subr.bf16.mxu1 %v2234_v53  ;;  %2044 = vmatprep.mubr.msk.bf16.mxu0 %vm507_vm0, %v2538_v8  ;;  %v2560_v14 = vsel %vm2413_vm3, %v442_v9, %v446_v59  ;;  %v2572_v21 = vsel %vm2413_vm3, %v456_v23, %v460_v1  ;;  %v732_v3 = vsel %vm2508_vm6, %v1816_v17, %v731_v63  ;;  %v1819_v22 = vrot.slane %v2452_v11, 9  ;;  %v2243_v11 = vld [vmem:[%s2815_s2 + $0xf8] sm:$0xff]  }
  0x2d   : > { %v2578_v36 = vcombine.low %v2560_v14, %v2572_v21  ;;  %v736_v4 = vsel %vm2508_vm6, %v1817_v31, %v735_v33  ;;  %v740_v42 = vsel %vm2508_vm6, %v1818_v37, %v739_v38  ;;  %v1852_v18 = vcombine.low %v2465_v26, %v2585_v40  ;;  %v2242_v17 = vld [vmem:[%s2815_s2 + $0xd8] sm:$0xff]   ;;  %v2244_v38 = vld [vmem:[%s2815_s2 + $0xd0] sm:$0xff]  }
  0x2e   : > { %2069 = vmatpush3.bf16.msra.mxu0 %v2227_v46  ;;  %2089 = vmatmul.mubr.msk.bf16.vlgmr.msra.gmra.mxu1 %vm507_vm0, %v1850_v13  ;;  %v1890_v15 = vcombine.low %v724_v7, %v728_v34  ;;  %v2607_v12 = vcombine.low %v728_v34, %v732_v3  ;;  %v743_v43 = vrot.slane %v2474_v30, 5  ;;  %v2614_v45 = vcombine.low %v736_v4, %v740_v42 }
  0x2f   : > { %2070 = vmatprep.subr.bf16.mxu0 %v2229_v10  ;;  %2113 = vmatpush3.bf16.msra.mxu1 %v2234_v53  ;;  %v1820_v46 = vrot.slane %v2465_v26, 9  ;;  %v747_v47 = vrot.slane %v2484_v35, 5  ;;  %v336_v26 = vld [vmem:[%s2568_s20 + $0x4] sm:$0x1]  ;;  %v1004_v49 = vshrl.u32 %v2585_v40, 16  ;;  %v1007_v20 = vshll.u32 %v2585_v40, 16 }
  0x30   : > { %2092 = vmatprep.mubr.msk.bf16.mxu1 %vm507_vm0, %v1851_v29  ;;  %2045 = vmatmul.mubr.msk.bf16.gmra.mxu0 %vm507_vm0, %v2578_v36  ;;  %v744_v30 = vsel %vm2508_vm6, %v1819_v22, %v743_v43  ;;  %v1891_v51 = vcombine.low %v732_v3, %v736_v4  ;;  %v1881_v53 = vrot.slane %v2585_v40, 9  ;;  %v1143_v58 = vrot.slane %v336_v26, 5  ;;  %v2251_v4 = vld [vmem:[%s2815_s2 + $0x110] sm:$0xff]  }
  0x31   : > { %2114 = vmatprep.subr.bf16.mxu1 %v2236_v28  ;;  %2072 = vmatprep.mubr.msk.bf16.mxu0 %vm507_vm0, %v1829_v2  ;;  %v748_v35 = vsel %vm2508_vm6, %v1820_v46, %v747_v47  ;;  %v1892_v56 = vcombine.low %v740_v42, %v744_v30  ;;  %v1869_v61 = vcombine.low %v2433_v60, %v2449_v6  ;;  %v1006_v0 = vrot.slane %v1004_v49, 4  ;;  %v2247_v6 = vld [vmem:[%s2815_s2 + $0xe8] sm:$0xff]   ;;  %v2249_v2 = vld [vmem:[%s2815_s2 + $0xe0] sm:$0xff]  }
  0x32   : > { %2071 = vmatpush3.bf16.msra.mxu0 %v2229_v10  ;;  %v2647_v59 = vcombine.low %v744_v30, %v748_v35  ;;  %v1009_v1 = vrot.slane %v1007_v20, 5  ;;  %v2658_v9 = vsel %vm2508_vm6, %v1881_v53, %v1143_v58  ;;  %v1381_v10 = vshrl.u32 %v2645_v57, 16  ;;  %v2248_v42 = vld [vmem:[%s2815_s2 + $0xc0] sm:$0xff]  }
  0x33   : > { %2096 = vmatprep.subr.bf16.mxu0 %v2233_v16  ;;  %2115 = vmatpush3.bf16.msra.mxu1 %v2236_v28  ;;  %v1384_v60 = vshll.u32 %v2645_v57, 16  ;;  %v1013_v13 = vshll.u32 %v336_v26, 16  ;;  %v1893_v63 = vcombine.low %v748_v35, %v2658_v9  ;;  %v1870_v29 = vcombine.low %v2469_v27, %v2520_v54 }
  0x34   : > { %2116 = vmatprep.subr.bf16.mxu1 %v2239_v24  ;;  %v1010_v7 = vor.u32 %v1009_v1, %v1006_v0  ;;  %v1383_v23 = vrot.slane %v1381_v10, 4  ;;  %v1871_v31 = vcombine.low %v2526_v62, %v2560_v14  ;;  %v2250_v62 = vld [vmem:[%s2815_s2 + $0x118] sm:$0xff]   ;;  %v1910_v50 = vcombine.low %v2585_v40, %v2645_v57 }
  0x35   : > { %v1386_v28 = vrot.slane %v1384_v60, 5  ;;  %v1015_v37 = vrot.slane %v1013_v13, 5 }
  0x36   : > { %2093 = vmatmul.mubr.msk.bf16.gmra.mxu1 %vm507_vm0, %v1852_v18  ;;  %v1011_v33 = vrot.slane %v1010_v7, 4  ;;  %v2252_v18 = vld [vmem:[%s2815_s2 + $0x108] sm:$0xff]  }
  0x37   : > { %2117 = vmatpush3.bf16.msra.mxu1 %v2239_v24  ;;  %2120 = vmatprep.mubr.msk.bf16.mxu1 %vm507_vm0, %v1890_v15  ;;  %v1387_v27 = vor.u32 %v1386_v28, %v1383_v23  ;;  %v1936_v15 = vrot.slane %v2645_v57, 9 }
  0x38   : > { %2073 = vmatmul.mubr.msk.bf16.vlgmr.msra.gmra.mxu0 %vm507_vm0, %v2607_v12  ;;  %2118 = vmatprep.subr.bf16.mxu1 %v2241_v44  ;;  %v1016_v14 = vsel %vm2413_vm3, %v1011_v33, %v1015_v37 }
  0x39   : > { %2097 = vmatpush3.bf16.msra.mxu0 %v2233_v16  ;;  %2076 = vmatprep.mubr.msk.bf16.mxu0 %vm507_vm0, %v2614_v45  ;;  %v338_v16 = vld [vmem:[%s2568_s20 + $0xc] sm:$0x1]  ;;  %v1388_v24 = vrot.slane %v1387_v27, 4  ;;  %v1872_v3 = vcombine.low %v2572_v21, %v1016_v14 }
  0x3a   : > { %2098 = vmatprep.subr.bf16.mxu0 %v2235_v48  ;;  %v1390_v54 = vshll.u32 %v338_v16, 16  ;;  %v1508_v22 = vrot.slane %v338_v16, 5 }
  0x3b   : > { %2119 = vmatpush3.bf16.msra.mxu1 %v2241_v44 }
  0x3c   : > { %2144 = vmatprep.subr.bf16.mxu1 %v2243_v11  ;;  %v1392_v34 = vrot.slane %v1390_v54, 5 }
  0x3d   : > { %2099 = vmatpush3.bf16.msra.mxu0 %v2235_v48 }
  0x3e   : > { %2100 = vmatprep.subr.bf16.mxu0 %v2238_v52  ;;  %2121 = vmatmul.mubr.msk.bf16.vlgmr.msra.gmra.mxu1 %vm507_vm0, %v1891_v51  ;;  %v1393_v21 = vsel %vm2413_vm3, %v1388_v24, %v1392_v34 }
  0x3f   : > { %2145 = vmatpush3.bf16.msra.mxu1 %v2243_v11  ;;  %2124 = vmatprep.mubr.msk.bf16.mxu1 %vm507_vm0, %v1892_v56 }
  0x40   : > { %2077 = vmatmul.mubr.msk.bf16.gmra.mxu0 %vm507_vm0, %v2647_v59  ;;  %2146 = vmatprep.subr.bf16.mxu1 %v2245_v55 }
  0x41   : > { %2101 = vmatpush3.bf16.msra.mxu0 %v2238_v52  ;;  %2104 = vmatprep.mubr.msk.bf16.mxu0 %vm507_vm0, %v1869_v61 }
  0x42   : > { %2102 = vmatprep.subr.bf16.mxu0 %v2240_v5 }
  0x43   : > { %2147 = vmatpush3.bf16.msra.mxu1 %v2245_v55 }
  0x44   : > { %2148 = vmatprep.subr.bf16.mxu1 %v2247_v6 }
  0x45   : > { %2103 = vmatpush3.bf16.msra.mxu0 %v2240_v5 }
  0x46   : > { %2128 = vmatprep.subr.bf16.mxu0 %v2242_v17  ;;  %2125 = vmatmul.mubr.msk.bf16.gmra.mxu1 %vm507_vm0, %v1893_v63 }
  0x47   : > { %2149 = vmatpush3.bf16.msra.mxu1 %v2247_v6  ;;  %2152 = vmatprep.mubr.msk.bf16.mxu1 %vm507_vm0, %v2478_v32  ;;  %v2246_v32 = vld [vmem:[%s2815_s2 + $0xc8] sm:$0xff]  }
  0x48   : > { %2105 = vmatmul.mubr.msk.bf16.vlgmr.msra.gmra.mxu0 %vm507_vm0, %v1870_v29  ;;  %2150 = vmatprep.subr.bf16.mxu1 %v2249_v2 }
  0x49   : > { %2129 = vmatpush3.bf16.msra.mxu0 %v2242_v17  ;;  %2108 = vmatprep.mubr.msk.bf16.mxu0 %vm507_vm0, %v1871_v31 }
  0x4a   : > { %2130 = vmatprep.subr.bf16.mxu0 %v2244_v38 }
  0x4b   : > { %2151 = vmatpush3.bf16.msra.mxu1 %v2249_v2 }
  0x4c   : > { %2176 = vmatprep.subr.bf16.mxu1 %v2250_v62 }
  0x4d   : > { %2131 = vmatpush3.bf16.msra.mxu0 %v2244_v38 }
  0x4e   : > { %2132 = vmatprep.subr.bf16.mxu0 %v2246_v32  ;;  %2153 = vmatmul.mubr.msk.bf16.vlgmr.msra.gmra.mxu1 %vm507_vm0, %v2538_v8  ;;  %v1927_v8 = vcombine.low %v1016_v14, %v1393_v21 }
  0x4f   : > { %2180 = vmatpush3.bf16.msra.mxu1 %v2250_v62  ;;  %2156 = vmatprep.mubr.msk.bf16.mxu1 %vm507_vm0, %v2578_v36  ;;  %v1509_v36 = vsel %vm2508_vm6, %v1936_v15, %v1508_v22 }
  0x50   : > { %2109 = vmatmul.mubr.msk.bf16.gmra.mxu0 %vm507_vm0, %v1872_v3  ;;  %2177 = vmatprep.subr.bf16.mxu1 %v2251_v4 }
  0x51   : > { %2133 = vmatpush3.bf16.msra.mxu0 %v2246_v32  ;;  %2136 = vmatprep.mubr.msk.bf16.mxu0 %vm507_vm0, %v2385_v19  ;;  %v1945_v19 = vcombine.low %v2658_v9, %v1509_v36 }
  0x52   : > { %2134 = vmatprep.subr.bf16.mxu0 %v2248_v42 }
  0x53   : > { %2181 = vmatpush3.bf16.msra.mxu1 %v2251_v4 }
  0x54   : > { %2178 = vmatprep.subr.bf16.mxu1 %v2252_v18 }
  0x55   : > { %2135 = vmatpush3.bf16.msra.mxu0 %v2248_v42 }
  0x56   : > { %2160 = vmatprep.subr.bf16.mxu0 %v2250_v62  ;;  %2157 = vmatmul.mubr.msk.bf16.gmra.mxu1 %vm507_vm0, %v1927_v8 }
  0x57   : > { %2182 = vmatpush3.bf16.msra.mxu1 %v2252_v18  ;;  %2172 = vmatprep.mubr.msk.bf16.mxu1 %vm507_vm0, %v2647_v59 }
  0x58   : > { %2137 = vmatmul.mubr.msk.bf16.vlgmr.msra.gmra.mxu0 %vm507_vm0, %v2462_v25  ;;  %2179 = vmatprep.subr.bf16.mxu1 %v2254_v39 }
  0x59   : > { %2161 = vmatpush3.bf16.msra.mxu0 %v2250_v62  ;;  %2140 = vmatprep.mubr.msk.bf16.mxu0 %vm507_vm0, %v2492_v41 }
  0x5a   : > { %2162 = vmatprep.subr.bf16.mxu0 %v2251_v4 }
  0x5b   : > { %2183 = vmatpush3.bf16.msra.mxu1 %v2254_v39 }
  0x5d   : > { %2163 = vmatpush3.bf16.msra.mxu0 %v2251_v4 }
  0x5e   : > { %2164 = vmatprep.subr.bf16.mxu0 %v2252_v18  ;;  %2173 = vmatmul.mubr.msk.bf16.vlgmr.msra.gmra.mxu1 %vm507_vm0, %v1945_v19 }
  0x60   : > { %2141 = vmatmul.mubr.msk.bf16.gmra.mxu0 %vm507_vm0, %v1910_v50 }
  0x61   : > { %2165 = vmatpush3.bf16.msra.mxu0 %v2252_v18  ;;  %2168 = vmatprep.mubr.msk.bf16.mxu0 %vm507_vm0, %v2607_v12 }
  0x62   : > { %2166 = vmatprep.subr.bf16.mxu0 %v2254_v39 }
  0x65   : > { %2167 = vmatpush3.bf16.msra.mxu0 %v2254_v39 }
  0x68   : > { %2169 = vmatmul.mubr.msk.bf16.vlgmr.msra.gmra.mxu0 %vm507_vm0, %v2614_v45 }
  0xde   : > { %v2058_v25 = vpop.f32.mrf.mxu1 }
  0xe0   : > { %v675_v41 = vpop.f32.mrf.mxu1 }
  0xe2   : > { %v2059_v43 = vpop.f32.mrf.mxu1 }
  0xe4   : > { %v2737_v44 = vpop.f32.mrf.mxu1 }
  0xe5   : > { %v2042_v40 = vpop.f32.mrf.mxu0 }
  0xe6   : > { %v2062_v47 = vpop.f32.mrf.mxu1  ;;  %v684_v24 = vadd.f32 %v2058_v25, %v2042_v40 }
  0xe7   : > { %v554_v46 = vpop.f32.mrf.mxu0 }
  0xe8   : > { %v691_v11 = vpop.f32.mrf.mxu1  ;;  %v676_v21 = vadd.f32 %v675_v41, %v554_v46 }
  0xe9   : > { %v2043_v48 = vpop.f32.mrf.mxu0 }
  0xea   : > { %v2063_v26 = vpop.f32.mrf.mxu1  ;;  %v687_v36 = vadd.f32 %v2059_v43, %v2043_v48 }
  0xeb   : > { %v557_v30 = vpop.f32.mrf.mxu0 }
  0xec   : > { %v694_v35 = vpop.f32.mrf.mxu1  ;;  %v679_v25 = vadd.f32 %v2737_v44, %v557_v30 }
  0xee   : > { %v2090_v49 = vpop.f32.mrf.mxu1 }
  0xf0   : > { %v2046_v12 = vpop.f32.mrf.mxu0  ;;  %v2739_v20 = vpop.f32.mrf.mxu1 }
  0xf1   : > { %v700_v32 = vadd.f32 %v2062_v47, %v2046_v12 }
  0xf2   : > { %v570_v51 = vpop.f32.mrf.mxu0  ;;  %v2741_v52 = vpop.f32.mrf.mxu1 }
  0xf3   : > { %v692_v4 = vadd.f32 %v691_v11, %v570_v51 }
  0xf4   : > { %v2047_v45 = vpop.f32.mrf.mxu0  ;;  %v2743_v53 = vpop.f32.mrf.mxu1 }
  0xf5   : > { %v703_v22 = vadd.f32 %v2063_v26, %v2047_v45 }
  0xf6   : > { %v573_v55 = vpop.f32.mrf.mxu0  ;;  %v2094_v56 = vpop.f32.mrf.mxu1 }
  0xf8   : > { %v2074_v57 = vpop.f32.mrf.mxu0  ;;  %v980_v58 = vpop.f32.mrf.mxu1 }
  0xf9   : > { %v873_v18 = vadd.f32 %v2074_v57, %v684_v24 }
  0xfa   : > { %v840_v59 = vpop.f32.mrf.mxu0  ;;  %v2095_v61 = vpop.f32.mrf.mxu1 }
  0xfb   : > { %v871_v19 = vadd.f32 %v840_v59, %v676_v21  ;;  %v997_v47 = vadd.f32 %v2090_v49, %v873_v18 }
  0xfc   : > { %v2075_v0 = vpop.f32.mrf.mxu0  ;;  %v983_v1 = vpop.f32.mrf.mxu1 }
  0xfd   : > { %v874_v40 = vadd.f32 %v2075_v0, %v687_v36  ;;  %v995_v26 = vadd.f32 %v2739_v20, %v871_v19 }
  0xfe   : > { %v843_v5 = vpop.f32.mrf.mxu0  ;;  %v2745_v9 = vpop.f32.mrf.mxu1 }
  0xff   : > { %v872_v57 = vadd.f32 %v843_v5, %v679_v25 }
 0x100   : > { %v2078_v10 = vpop.f32.mrf.mxu0  ;;  %v2747_v60 = vpop.f32.mrf.mxu1 }
 0x101   : > { %v877_v42 = vadd.f32 %v2078_v10, %v700_v32 }
 0x102   : > { %v856_v6 = vpop.f32.mrf.mxu0  ;;  %v2749_v7 = vpop.f32.mrf.mxu1 }
 0x103   : > { %v875_v39 = vadd.f32 %v856_v6, %v692_v4 }
 0x104   : > { %v2079_v13 = vpop.f32.mrf.mxu0  ;;  %v2751_v17 = vpop.f32.mrf.mxu1 }
 0x105   : > { %2822 = vst [vmem:[#allocation2_spill] sm:$0xff] %v2751_v17  ;;  %v878_v17 = vadd.f32 %v2079_v13, %v703_v22  ;;  %v999_v46 = vadd.f32 %v980_v58, %v875_v39  ;;  %v996_v13 = vadd.f32 %v2743_v53, %v872_v57 }
 0x106   : > { %v859_v63 = vpop.f32.mrf.mxu0  ;;  %v2126_v23 = vpop.f32.mrf.mxu1 }
 0x107   : > { %v1002_v59 = vadd.f32 %v2095_v61, %v878_v17 }
 0x108   : > { %v2106_v28 = vpop.f32.mrf.mxu0  ;;  %v1245_v29 = vpop.f32.mrf.mxu1 }
 0x109   : > { %v1134_v10 = vadd.f32 %v2106_v28, %v997_v47 }
 0x10a   : > { %v1101_v16 = vpop.f32.mrf.mxu0  ;;  %v2753_v2 = vpop.f32.mrf.mxu1 }
 0x10b   : > { %v1262_v58 = vadd.f32 %v2745_v9, %v1134_v10  ;;  %v1954_v9 = vld [vmem:[%s2816_s3] ss:$0 sm:$0xff] }
 0x10c   : > { %v2107_v31 = vpop.f32.mrf.mxu0  ;;  %v2755_v33 = vpop.f32.mrf.mxu1 }
 0x10e   : > { %v1104_v37 = vpop.f32.mrf.mxu0  ;;  %v2757_v38 = vpop.f32.mrf.mxu1 }
 0x10f   : > { %2823 = vst [vmem:[#allocation3_spill] sm:$0xff] %v2757_v38  ;;  %v695_v38 = vadd.f32 %v694_v35, %v573_v55  ;;  %v1132_v35 = vadd.f32 %v1101_v16, %v995_v26  ;;  %v998_v55 = vadd.f32 %v2741_v52, %v874_v40 }
 0x110   : > { %v2110_v27 = vpop.f32.mrf.mxu0  ;;  %v2759_v54 = vpop.f32.mrf.mxu1 }
 0x111   : > { %2824 = vst [vmem:[#allocation4_spill] sm:$0xff] %v2759_v54  ;;  %v876_v51 = vadd.f32 %v859_v63, %v695_v38  ;;  %v1135_v6 = vadd.f32 %v2107_v31, %v998_v55  ;;  %v1260_v17 = vadd.f32 %v2747_v60, %v1132_v35 }
 0x112   : > { %v1117_v62 = vpop.f32.mrf.mxu0  ;;  %v2761_v14 = vpop.f32.mrf.mxu1 }
 0x113   : > { %2825 = vst [vmem:[#allocation5_spill] sm:$0xff] %v2761_v14  ;;  %v1001_v14 = vadd.f32 %v2094_v56, %v877_v42  ;;  %v1136_v45 = vadd.f32 %v1117_v62, %v999_v46  ;;  %v1000_v49 = vadd.f32 %v983_v1, %v876_v51  ;;  %v1263_v53 = vadd.f32 %v2749_v7, %v1135_v6 }
 0x114   : > { %v2111_v34 = vpop.f32.mrf.mxu0  ;;  %v2763_v3 = vpop.f32.mrf.mxu1 }
 0x115   : > { %v1138_v41 = vadd.f32 %v2110_v27, %v1001_v14  ;;  %v1139_v30 = vadd.f32 %v2111_v34, %v1002_v59  ;;  %v1264_v28 = vadd.f32 %v1245_v29, %v1136_v45  ;;  %v1133_v27 = vadd.f32 %v1104_v37, %v996_v13  ;;  %v2826_v34 = vld [vmem:[#allocation2_spill] sm:$0xff] }
 0x116   : > { %v1120_v8 = vpop.f32.mrf.mxu0  ;;  %v2158_v15 = vpop.f32.mrf.mxu1  ;;  %v2827_v42 = vld [vmem:[#allocation3_spill] sm:$0xff] }
 0x117   : > { %v1266_v0 = vadd.f32 %v2126_v23, %v1138_v41  ;;  %v1137_v63 = vadd.f32 %v1120_v8, %v1000_v49  ;;  %v1267_v62 = vadd.f32 %v2753_v2, %v1139_v30  ;;  %v1261_v4 = vadd.f32 %v2826_v34, %v1133_v27 }
 0x118   : > { %v2138_v50 = vpop.f32.mrf.mxu0  ;;  %v1482_v54 = vpop.f32.mrf.mxu1  ;;  %v2828_v36 = vld [vmem:[#allocation4_spill] sm:$0xff] }
 0x119   : > { %v1374_v61 = vadd.f32 %v2138_v50, %v1262_v58  ;;  %v1265_v37 = vadd.f32 %v2755_v33, %v1137_v63 }
 0x11a   : > { %v1341_v12 = vpop.f32.mrf.mxu0  ;;  %v2159_v11 = vpop.f32.mrf.mxu1 }
 0x11b   : > { %v1372_v23 = vadd.f32 %v1341_v12, %v1260_v17  ;;  %v1499_v21 = vadd.f32 %v2827_v42, %v1374_v61  ;;  %v2829_v12 = vld [vmem:[#allocation5_spill] sm:$0xff] }
 0x11c   : > { %v2139_v43 = vpop.f32.mrf.mxu0  ;;  %v1485_v48 = vpop.f32.mrf.mxu1 }
 0x11d   : > { %v1375_v24 = vadd.f32 %v2139_v43, %v1263_v53  ;;  %v1497_v19 = vadd.f32 %v2828_v36, %v1372_v23 }
 0x11e   : > { %v1344_v56 = vpop.f32.mrf.mxu0  ;;  %v2174_v44 = vpop.f32.mrf.mxu1 }
 0x11f   : > { %v1373_v22 = vadd.f32 %v1344_v56, %v1261_v4  ;;  %v1500_v51 = vadd.f32 %v2829_v12, %v1375_v24 }
 0x120   : > { %v2142_v5 = vpop.f32.mrf.mxu0  ;;  %v1598_v38 = vpop.f32.mrf.mxu1 }
 0x121   : > { %v1378_v20 = vadd.f32 %v2142_v5, %v1266_v0  ;;  %v1498_v59 = vadd.f32 %v2763_v3, %v1373_v22 }
 0x122   : > { %v1357_v52 = vpop.f32.mrf.mxu0  ;;  %v2175_v60 = vpop.f32.mrf.mxu1 }
 0x123   : > { %v1376_v16 = vadd.f32 %v1357_v52, %v1264_v28  ;;  %v1503_v1 = vadd.f32 %v2158_v15, %v1378_v20 }
 0x124   : > { %v2143_v31 = vpop.f32.mrf.mxu0  ;;  %v1601_v40 = vpop.f32.mrf.mxu1 }
 0x125   : > { %v1379_v29 = vadd.f32 %v2143_v31, %v1267_v62  ;;  %v1619_v14 = vadd.f32 %v2174_v44, %v1503_v1  ;;  %v1501_v32 = vadd.f32 %v1482_v54, %v1376_v16 }
 0x126   : > { %v1360_v2 = vpop.f32.mrf.mxu0 }
 0x127   : > { %v1377_v18 = vadd.f32 %v1360_v2, %v1265_v37  ;;  %v1634_v7 = vadd.f32 %v1954_v9, %v1619_v14  ;;  %v1617_v8 = vadd.f32 %v1598_v38, %v1501_v32  ;;  %v1504_v15 = vadd.f32 %v2159_v11, %v1379_v29 }
 0x128   : > { %v2170_v39 = vpop.f32.mrf.mxu0 }
 0x129   : > { %v1642_v50 = vmax.f32 %v1634_v7, 0.0  ;;  %v1615_v33 = vadd.f32 %v2170_v39, %v1499_v21  ;;  %v1632_v25 = vadd.f32 %v1954_v9, %v1617_v8  ;;  %v1620_v54 = vadd.f32 %v2175_v60, %v1504_v15 }
 0x12a   : > { %v1582_v47 = vpop.f32.mrf.mxu0  ;;  %v1502_v11 = vadd.f32 %v1485_v48, %v1377_v18 }
 0x12b   : > { %v1650_v41 = vpack.c.bf16 %v1642_v50, %v1642_v50  ;;  %v1630_v46 = vadd.f32 %v1954_v9, %v1615_v33  ;;  %v1640_v57 = vmax.f32 %v1632_v25, 0.0  ;;  %v1613_v10 = vadd.f32 %v1582_v47, %v1497_v19 }
 0x12c   : > { %v1635_v26 = vadd.f32 %v1954_v9, %v1620_v54  ;;  %v2171_v43 = vpop.f32.mrf.mxu0  ;;  %v1618_v45 = vadd.f32 %v1601_v40, %v1502_v11 }
 0x12d   : > { %1659 = vst.msk [vmem:[%s2784_s12 + $0x18] sm:$0xf] %vm1652_vm7, %v1650_v41  ;;  %v1638_v35 = vmax.f32 %v1630_v46, 0.0  ;;  %v1648_v55 = vpack.c.bf16 %v1640_v57, %v1640_v57  ;;  %v1628_v56 = vadd.f32 %v1954_v9, %v1613_v10  ;;  %v1616_v44 = vadd.f32 %v2171_v43, %v1500_v51 }
 0x12e   : > { %v1643_v30 = vmax.f32 %v1635_v26, 0.0  ;;  %v1633_v48 = vadd.f32 %v1954_v9, %v1618_v45  ;;  %v1585_v49 = vpop.f32.mrf.mxu0 }
 0x12f   : > { %v1646_v0 = vpack.c.bf16 %v1638_v35, %v1638_v35  ;;  %1657 = vst.msk [vmem:[%s2784_s12 + $0x10] sm:$0xf] %vm1652_vm7, %v1648_v55  ;;  %v1636_v6 = vmax.f32 %v1628_v56, 0.0  ;;  %v1631_v13 = vadd.f32 %v1954_v9, %v1616_v44  ;;  %v1614_v3 = vadd.f32 %v1585_v49, %v1498_v59 }
 0x130   : > { %v1651_v58 = vpack.c.bf16 %v1643_v30, %v1643_v30  ;;  %v1641_v5 = vmax.f32 %v1633_v48, 0.0 }
 0x131   : > { %1655 = vst.msk [vmem:[%s2784_s12 + $0x8] sm:$0xf] %vm1652_vm7, %v1646_v0  ;;  %v1644_v63 = vpack.c.bf16 %v1636_v6, %v1636_v6  ;;  %v1639_v20 = vmax.f32 %v1631_v13, 0.0  ;;  %v1629_v28 = vadd.f32 %v1954_v9, %v1614_v3 }
 0x132   : > { %1660 = vst.msk [vmem:[%s2784_s12 + $0x1c] sm:$0xf] %vm1652_vm7, %v1651_v58  ;;  %v1649_v38 = vpack.c.bf16 %v1641_v5, %v1641_v5 }
 0x133   : > { %1653 = vst.msk [vmem:[%s2784_s12] sm:$0xf] %vm1652_vm7, %v1644_v63  ;;  %v1647_v27 = vpack.c.bf16 %v1639_v20, %v1639_v20  ;;  %v1637_v61 = vmax.f32 %v1629_v28, 0.0 }
 0x134   : > { %1658 = vst.msk [vmem:[%s2784_s12 + $0x14] sm:$0xf] %vm1652_vm7, %v1649_v38 }
 0x135   : > { %1656 = vst.msk [vmem:[%s2784_s12 + $0xc] sm:$0xf] %vm1652_vm7, %v1647_v27  ;;  %v1645_v17 = vpack.c.bf16 %v1637_v61, %v1637_v61 }
 0x137   : > { %1654 = vst.msk [vmem:[%s2784_s12 + $0x4] sm:$0xf] %vm1652_vm7, %v1645_v17 }
 0x138 PF: > { %s14_s17 = sadd.s32 1, %s2277_s17   ;;  %s2830_s15 = smov %s2273_s16 }
 0x139   : > { %p11_p5 = scmp.ge.s32.totalorder %s14_s17, 4   ;;  %s2831_s16 = smov %s2833_s18 }
 0x13b   :  { %13 = sbr.rel (!%p11_p5) target bundleno = 2 (0x2), region = 77 }

// kernel: forward.11
= control target key start
LH: loop header
LB: loop body
LE: loop exit
PB: predicated region body
PF: predicated region fallthrough
CT: control target
= control target key end

     0   :  { %s1862_s15 = smov 0   ;;  %s1864_s16 = smov 0   ;;  %s2271_s0 = inlined_call_operand.vmem [shape: bf16[2,6,6,64], index: 0, kind: input, shape index: {}, may-alias: {0,1}]   ;;  %s2272_s1 = inlined_call_operand.vmem [shape: bf16[2,6,6,64], index: 1, kind: input, shape index: {}, may-alias: {0,1}]   ;;  %s2273_s2 = inlined_call_operand.vmem [shape: bf16[9,64,64], index: 2, kind: input, shape index: {}]   ;;  %s2274_s3 = inlined_call_operand.vmem [shape: f32[1,64], index: 3, kind: input, shape index: {}]   ;;  %s2275_s4 = inlined_call_operand.vmem [shape: bf16[2,4,4,64], index: 4, kind: output, shape index: {}]  }
   0x1   :  { %s1866_s17 = smov 0  }
   0x2 LB: > { %s26_s18 = sadd.s32 1, %s1828_s16  ;;  %p1461_p0 = scmp.ge.s32.totalorder %s1832_s17, 1  ;;  %s1832_s17 = sphi %s1866_s17, %s14_s17   ;;  %s1828_s16 = sphi %s1864_s16, %s2281_s16   ;;  %s1824_s15 = sphi %s1862_s15, %s2280_s15  }
   0x3   : > { %p28_p1 = scmp.ge.s32.totalorder %s26_s18, 2  ;;  %p216_p2 = scmp.lt.s32.totalorder %s1832_s17, 3 }
   0x5   : > { %s2283_s18 = smov (%p28_p1, %s26_s18), 0  ;;  %p217_p3 = pnand %p1461_p0, %p216_p2 }
   0x6   : > { %p270_p4 = scmp.lt.s32.totalorder (!%p217_p3), %s1824_s15, 1 }
   0x7   : > { %220 = sbr.rel (%p217_p3) target bundleno = 315 (0x13b), region = 36 }
   0xc   : > { %v1770_v0 = vld [vmem:[%s2273_s2 + $0x38] sm:$0xff]   ;;  %v1834_v1 = vmov 0.0   ;;  %v1772_v3 = vld [vmem:[%s2273_s2 + $0x30] sm:$0xff]   ;;  %vm1835_vm0 = vmmov 0   ;;  %s2285_s15 = smov (!%p270_p4, %s1824_s15), 1  ;;  %v329_v5 = vlaneseq  ;;  %v1774_v6 = vld [vmem:[%s2273_s2 + $0x28] sm:$0xff]  }
   0xd   : > { %1632 = vmatprep.subr.bf16.mxu0 %v1834_v1  ;;  %1644 = vmatprep.subr.bf16.mxu1 %v1834_v1  ;;  %v1771_v2 = vld [vmem:[%s2273_s2 + $0x18] sm:$0xff]   ;;  %v1773_v4 = vld [vmem:[%s2273_s2 + $0x10] sm:$0xff]   ;;  %s1740_s29 = smul.u32 24, %s2285_s15  ;;  %v1775_v7 = vld [vmem:[%s2273_s2 + $0x8] sm:$0xff]   ;;  %v1836_v8 = vmov 1983009808  }
   0xe   : > { %1633 = vmatpush3.bf16.msra.mxu0 %v1770_v0  ;;  %1640 = vmatprep.mubr.msk.bf16.mxu0 %vm1835_vm0, %v1834_v1  ;;  %v327_v9 = vunpack.c.l.s4 %v1836_v8  ;;  %v330_v10 = vshrl.u32 %v329_v5, 7  ;;  %v1776_v11 = vld [vmem:[%s2273_s2 + $0x20] sm:$0xff]   ;;  %vm358_vm1 = vsmask.f32 1280  ;;  %vm359_vm2 = vsmask.f32 3336 }
   0xf   : > { %1645 = vmatpush3.bf16.msra.mxu1 %v1771_v2  ;;  %1634 = vmatprep.subr.bf16.mxu0 %v1834_v1  ;;  %s277_s8 = scalar_lea.vmem %s2271_s0, %s1740_s29  ;;  %v1777_v12 = vld [vmem:[%s2273_s2] sm:$0xff]   ;;  %vm361_vm3 = vsmask.f32 5392  ;;  %vm363_vm4 = vsmask.f32 7448  ;;  %vm360_vm5 = vmor %vm358_vm1, %vm359_vm2  ;;  %s1585_s13 = sadd.s32 16, %s1740_s29 }
  0x10   : > { %1646 = vmatprep.subr.bf16.mxu1 %v1834_v1  ;;  %1652 = vmatprep.mubr.msk.bf16.mxu1 %vm1835_vm0, %v1834_v1  ;;  %v1923_v13 = vld [vmem:[%s277_s8] sm:$0x7]  ;;  %v1925_v14 = vld [vmem:[%s277_s8 + $0x4] sm:$0x7]  ;;  %v328_v15 = vunpack.c.0.s8 %v327_v9  ;;  %v1928_v16 = vld [vmem:[%s277_s8 + $0x8] sm:$0x7]  ;;  %s2003_s20 = scalar_lea.vmem %s2272_s1, %s1585_s13 }
  0x11   : > { %v1930_v17 = vld [vmem:[%s277_s8 + $0xc] sm:$0x7]  ;;  %vm362_vm6 = vmor %vm360_vm5, %vm361_vm3  ;;  %v516_v50 = vcombine.low %v1923_v13, %v1925_v14  ;;  %vm601_vm8 = vcmask 1040384   ;;  %vm602_vm9 = vcmask 1042434   ;;  %vm604_vm11 = vcmask 1044484   ;;  %v1800_v47 = vld [vmem:[%s2273_s2 + $0xd0] sm:$0xff]  }
  0x12   : > { %1635 = vmatpush3.bf16.msra.mxu0 %v1772_v3  ;;  %v1932_v18 = vsub.s32 %v328_v15, %v330_v10  ;;  %vm1980_vm7 = vmor %vm362_vm6, %vm363_vm4  ;;  %v517_v57 = vcombine.low %v1928_v16, %v1930_v17  ;;  %vm471_vm12 = vcmask 523264   ;;  %vm606_vm14 = vcmask 1046534   ;;  %s1586_s9 = sshll.u32 %s2285_s15, 3 }
  0x13   : > { %1647 = vmatpush3.bf16.msra.mxu1 %v1773_v4  ;;  %1636 = vmatprep.subr.bf16.mxu0 %v1834_v1  ;;  %vm603_vm10 = vmor %vm601_vm8, %vm602_vm9  ;;  %s305_s12 = scalar_lea.vmem %s2275_s4, %s1586_s9 }
  0x14   : > { %1648 = vmatprep.subr.bf16.mxu1 %v1834_v1  ;;  %v1937_v19 = vrot.slane %v1923_v13, %v1932_v18  ;;  %v1941_v20 = vrot.slane %v1925_v14, %v1932_v18  ;;  %v1945_v21 = vrot.slane %v1928_v16, %v1932_v18  ;;  %v1949_v22 = vrot.slane %v1930_v17, %v1932_v18  ;;  %vm605_vm13 = vmor %vm603_vm10, %vm604_vm11 }
  0x15   : > { %v524_v0 = vrot.slane %v516_v50, %v1932_v18  ;;  %v2010_v4 = vrot.slane %v517_v57, %v1932_v18  ;;  %vm2043_vm15 = vmor %vm605_vm13, %vm606_vm14 }
  0x16   : > { %1637 = vmatpush3.bf16.msra.mxu0 %v1774_v6  ;;  %v1954_v23 = vcombine.high %v1937_v19, %v1937_v19  ;;  %v1958_v24 = vcombine.high %v1941_v20, %v1941_v20  ;;  %v1962_v25 = vcombine.high %v1945_v21, %v1945_v21  ;;  %v366_v26 = vshrl.u32 %v1937_v19, 16  ;;  %v1782_v6 = vld [vmem:[%s2273_s2 + $0x78] sm:$0xff]  }
  0x17   : > { %1649 = vmatpush3.bf16.msra.mxu1 %v1775_v7  ;;  %1638 = vmatprep.subr.bf16.mxu0 %v1834_v1  ;;  %v1967_v27 = vcombine.high %v1949_v22, %v1949_v22  ;;  %v369_v28 = vshll.u32 %v1937_v19, 16  ;;  %v380_v29 = vshrl.u32 %v1941_v20, 16  ;;  %v383_v30 = vshll.u32 %v1941_v20, 16  ;;  %v2020_v7 = vld [vmem:[%s2003_s20] sm:$0x7] }
  0x18   : > { %1650 = vmatprep.subr.bf16.mxu1 %v1834_v1  ;;  %v368_v31 = vrot.slane %v366_v26, 6  ;;  %v375_v32 = vshll.u32 %v1954_v23, 16  ;;  %v389_v33 = vshll.u32 %v1958_v24, 16  ;;  %v394_v34 = vshrl.u32 %v1945_v21, 16 }
  0x19   : > { %v371_v35 = vrot.slane %v369_v28, 7  ;;  %v382_v36 = vrot.slane %v380_v29, 6  ;;  %v385_v37 = vrot.slane %v383_v30, 7  ;;  %v397_v38 = vshll.u32 %v1945_v21, 16 }
  0x1a   : > { %1639 = vmatpush3.bf16.msra.mxu0 %v1776_v11  ;;  %v377_v39 = vrot.slane %v375_v32, 7  ;;  %v391_v40 = vrot.slane %v389_v33, 7  ;;  %v396_v41 = vrot.slane %v394_v34, 6  ;;  %v403_v42 = vshll.u32 %v1962_v25, 16  ;;  %v1781_v11 = vld [vmem:[%s2273_s2 + $0x58] sm:$0xff]  }
  0x1b   : > { %1651 = vmatpush3.bf16.msra.mxu1 %v1777_v12  ;;  %1656 = vmatprep.subr.bf16.mxu0 %v1834_v1  ;;  %v372_v43 = vor.u32 %v371_v35, %v368_v31  ;;  %v386_v44 = vor.u32 %v385_v37, %v382_v36  ;;  %v399_v45 = vrot.slane %v397_v38, 7  ;;  %v408_v46 = vshrl.u32 %v1949_v22, 16  ;;  %v1784_v12 = vld [vmem:[%s2273_s2 + $0x70] sm:$0xff]   ;;  %v1788_v38 = vld [vmem:[%s2273_s2 + $0x60] sm:$0xff]  }
  0x1c   : > { %1668 = vmatprep.subr.bf16.mxu1 %v1834_v1  ;;  %v411_v48 = vshll.u32 %v1949_v22, 16  ;;  %v417_v49 = vshll.u32 %v1967_v27, 16  ;;  %v405_v55 = vrot.slane %v403_v42, 7  ;;  %v532_v10 = vcombine.low %v524_v0, %v2010_v4  ;;  %v1793_v0 = vld [vmem:[%s2273_s2 + $0xb0] sm:$0xff]  }
  0x1d   : > { %v373_v51 = vrot.slane %v372_v43, 2  ;;  %v387_v52 = vrot.slane %v386_v44, 2  ;;  %v400_v53 = vor.u32 %v399_v45, %v396_v41  ;;  %v410_v54 = vrot.slane %v408_v46, 6  ;;  %v2101_v45 = vld [vmem:[%s2003_s20 + $0x4] sm:$0x7] }
  0x1e   : > { %v413_v56 = vrot.slane %v411_v48, 7  ;;  %v419_v62 = vrot.slane %v417_v49, 7  ;;  %v1484_v13 = vrot.slane %v1937_v19, 9  ;;  %v2038_v26 = vrot.slane %v2020_v7, %v1932_v18  ;;  %1653 = vmatmul.mubr.msk.bf16.vlgmr.msra.gmra.mxu1 %vm471_vm12, %v532_v10 }
  0x1f   : > { %v378_v58 = vsel %vm1980_vm7, %v373_v51, %v377_v39  ;;  %v1996_v59 = vsel %vm1980_vm7, %v387_v52, %v391_v40  ;;  %v401_v60 = vrot.slane %v400_v53, 2  ;;  %v610_v28 = vrot.slane %v1954_v23, 7  ;;  %1669 = vmatpush3.bf16.msra.mxu1 %v1782_v6  ;;  %1676 = vmatprep.mubr.msk.bf16.mxu1 %vm1835_vm0, %v1834_v1  ;;  %v1787_v53 = vld [vmem:[%s2273_s2 + $0x40] sm:$0xff]  }
  0x20   : > { %v414_v61 = vor.u32 %v413_v56, %v410_v54  ;;  %v430_v63 = vcombine.low %v378_v58, %v1996_v59  ;;  %v1485_v29 = vrot.slane %v1941_v20, 9  ;;  %v614_v19 = vrot.slane %v1958_v24, 7  ;;  %1670 = vmatprep.subr.bf16.mxu1 %v1834_v1  ;;  %v1791_v54 = vld [vmem:[%s2273_s2 + $0xb8] sm:$0xff]  }
  0x21   : > { %v2007_v2 = vsel %vm1980_vm7, %v401_v60, %v405_v55  ;;  %v1486_v31 = vrot.slane %v1945_v21, 9  ;;  %v618_v32 = vrot.slane %v1962_v25, 7  ;;  %v1487_v33 = vrot.slane %v1949_v22, 9  ;;  %v1783_v21 = vld [vmem:[%s2273_s2 + $0x50] sm:$0xff]  }
  0x22   : > { %v415_v3 = vrot.slane %v414_v61, 2  ;;  %v438_v9 = vrot.slane %v430_v63, %v1932_v18  ;;  %v622_v20 = vrot.slane %v1967_v27, 7  ;;  %v826_v34 = vshrl.u32 %v2038_v26, 16  ;;  %v1786_v27 = vld [vmem:[%s2273_s2 + $0x68] sm:$0xff]   ;;  %v1789_v63 = vld [vmem:[%s2273_s2 + $0x98] sm:$0xff]  }
  0x23   : > { %v611_v22 = vsel %vm2043_vm15, %v1484_v13, %v610_v28  ;;  %v730_v24 = vcombine.low %v1925_v14, %v1928_v16  ;;  %v731_v25 = vcombine.low %v1930_v17, %v2020_v7  ;;  %v829_v35 = vshll.u32 %v2038_v26, 16  ;;  %1671 = vmatpush3.bf16.msra.mxu1 %v1784_v12  ;;  %v1785_v17 = vld [vmem:[%s2273_s2 + $0x48] sm:$0xff]   ;;  %v1792_v13 = vld [vmem:[%s2273_s2 + $0x90] sm:$0xff]  }
  0x24   : > { %v2014_v5 = vsel %vm1980_vm7, %v415_v3, %v419_v62  ;;  %v2073_v36 = vsel %vm2043_vm15, %v1485_v29, %v614_v19  ;;  %v2077_v37 = vsel %vm2043_vm15, %v1486_v31, %v618_v32  ;;  %v2081_v14 = vsel %vm2043_vm15, %v1487_v33, %v622_v20  ;;  %1672 = vmatprep.subr.bf16.mxu1 %v1834_v1  ;;  %v1797_v20 = vld [vmem:[%s2273_s2 + $0xa0] sm:$0xff]  }
  0x25   : > { %v431_v8 = vcombine.low %v2007_v2, %v2014_v5  ;;  %v824_v16 = vcombine.high %v2038_v26, %v2038_v26  ;;  %v633_v39 = vcombine.low %v611_v22, %v2073_v36  ;;  %v634_v40 = vcombine.low %v2077_v37, %v2081_v14  ;;  %v1796_v22 = vld [vmem:[%s2273_s2 + $0x80] sm:$0xff]  }
  0x26   : > { %v738_v41 = vrot.slane %v730_v24, %v1932_v18  ;;  %v745_v42 = vrot.slane %v731_v25, %v1932_v18  ;;  %v828_v43 = vrot.slane %v826_v34, 6  ;;  %v831_v44 = vrot.slane %v829_v35, 7  ;;  %v1799_v24 = vld [vmem:[%s2273_s2 + $0xf8] sm:$0xff]  }
  0x27   : > { %v2034_v15 = vrot.slane %v431_v8, %v1932_v18  ;;  %1673 = vmatpush3.bf16.msra.mxu1 %v1786_v27  ;;  %v835_v46 = vshll.u32 %v824_v16, 16  ;;  %v641_v48 = vrot.slane %v633_v39, %v1932_v18  ;;  %v2107_v49 = vrot.slane %v634_v40, %v1932_v18  ;;  %v1798_v27 = vld [vmem:[%s2273_s2 + $0xd8] sm:$0xff]   ;;  %v1805_v39 = vld [vmem:[%s2273_s2 + $0xe0] sm:$0xff]  }
  0x28   : > { %1674 = vmatprep.subr.bf16.mxu1 %v1834_v1  ;;  %v746_v50 = vcombine.low %v738_v41, %v745_v42  ;;  %v832_v51 = vor.u32 %v831_v44, %v828_v43  ;;  %v2111_v52 = vrot.slane %v2101_v45, %v1932_v18  ;;  %v1527_v55 = vrot.slane %v2038_v26, 9  ;;  %v1795_v26 = vld [vmem:[%s2273_s2 + $0xa8] sm:$0xff]   ;;  %v1806_v43 = vld [vmem:[%s2273_s2 + $0x118] sm:$0xff]  }
  0x29   : > { %v446_v23 = vcombine.low %v438_v9, %v2034_v15  ;;  %v937_v56 = vrot.slane %v824_v16, 7  ;;  %v837_v57 = vrot.slane %v835_v46, 7  ;;  %v649_v58 = vcombine.low %v641_v48, %v2107_v49  ;;  %v1808_v48 = vld [vmem:[%s2273_s2 + $0x108] sm:$0xff]  }
  0x2a   : > { %v833_v60 = vrot.slane %v832_v51, 2  ;;  %v1133_v61 = vshrl.u32 %v2111_v52, 16  ;;  %v1136_v62 = vshll.u32 %v2111_v52, 16  ;;  %v948_v6 = vcombine.low %v2073_v36, %v2077_v37  ;;  %v1801_v36 = vld [vmem:[%s2273_s2 + $0xf0] sm:$0xff]   ;;  %v1809_v51 = vld [vmem:[%s2273_s2 + $0x100] sm:$0xff]  }
  0x2b   : > { %1641 = vmatmul.mubr.msk.bf16.vlgmr.msra.gmra.mxu0 %vm471_vm12, %v446_v23  ;;  %1675 = vmatpush3.bf16.msra.mxu1 %v1788_v38  ;;  %v2134_v3 = vsel %vm2043_vm15, %v1527_v55, %v937_v56  ;;  %v2149_v10 = vcombine.high %v2111_v52, %v2111_v52  ;;  %v848_v28 = vcombine.low %v1996_v59, %v2007_v2  ;;  %v1794_v23 = vld [vmem:[%s2273_s2 + $0x88] sm:$0xff]  }
  0x2c   : > { %1657 = vmatpush3.bf16.msra.mxu0 %v1781_v11  ;;  %1664 = vmatprep.mubr.msk.bf16.mxu0 %vm1835_vm0, %v1834_v1  ;;  %v949_v8 = vcombine.low %v2081_v14, %v2134_v3  ;;  %v838_v9 = vsel %vm1980_vm7, %v833_v60, %v837_v57  ;;  %v1135_v11 = vrot.slane %v1133_v61, 6  ;;  %v1138_v12 = vrot.slane %v1136_v62, 7  ;;  %v1803_v14 = vld [vmem:[%s2273_s2 + $0xe8] sm:$0xff]  }
  0x2d   : > { %1658 = vmatprep.subr.bf16.mxu0 %v1834_v1  ;;  %1692 = vmatprep.subr.bf16.mxu1 %v1834_v1  ;;  %v849_v29 = vcombine.low %v2014_v5, %v838_v9  ;;  %v956_v19 = vrot.slane %v948_v6, %v1932_v18  ;;  %v1142_v33 = vshll.u32 %v2149_v10, 16  ;;  %v856_v59 = vrot.slane %v848_v28, %v1932_v18  ;;  %v1802_v38 = vld [vmem:[%s2273_s2 + $0xc8] sm:$0xff]  }
  0x2e   : > { %1677 = vmatmul.mubr.msk.bf16.vlgmr.msra.gmra.mxu1 %vm471_vm12, %v746_v50  ;;  %v963_v31 = vrot.slane %v949_v8, %v1932_v18  ;;  %v1139_v32 = vor.u32 %v1138_v12, %v1135_v11  ;;  %v1236_v44 = vrot.slane %v2149_v10, 7 }
  0x2f   : > { %1693 = vmatpush3.bf16.msra.mxu1 %v1791_v54  ;;  %1700 = vmatprep.mubr.msk.bf16.mxu1 %vm1835_vm0, %v1834_v1  ;;  %v863_v2 = vrot.slane %v849_v29, %v1932_v18 }
  0x30   : > { %1659 = vmatpush3.bf16.msra.mxu0 %v1783_v21  ;;  %1694 = vmatprep.subr.bf16.mxu1 %v1834_v1  ;;  %v964_v5 = vcombine.low %v956_v19, %v963_v31  ;;  %v1140_v34 = vrot.slane %v1139_v32, 2  ;;  %v1144_v21 = vrot.slane %v1142_v33, 7 }
  0x31   : > { %1660 = vmatprep.subr.bf16.mxu0 %v1834_v1  ;;  %v864_v25 = vcombine.low %v856_v59, %v863_v2 }
  0x32   : > { %v1145_v35 = vsel %vm1980_vm7, %v1140_v34, %v1144_v21 }
  0x33   : > { %1695 = vmatpush3.bf16.msra.mxu1 %v1793_v0  ;;  %v1155_v37 = vcombine.low %v838_v9, %v1145_v35 }
  0x34   : > { %1661 = vmatpush3.bf16.msra.mxu0 %v1785_v17  ;;  %1696 = vmatprep.subr.bf16.mxu1 %v1834_v1  ;;  %v1045_v17 = vcombine.low %v2020_v7, %v2101_v45  ;;  %v1804_v7 = vld [vmem:[%s2273_s2 + $0xc0] sm:$0xff]  }
  0x35   : > { %1662 = vmatprep.subr.bf16.mxu0 %v1834_v1  ;;  %v1162_v16 = vrot.slane %v1155_v37, %v1932_v18 }
  0x36   : > { %v1052_v41 = vrot.slane %v1045_v17, %v1932_v18 }
  0x37   : > { %1697 = vmatpush3.bf16.msra.mxu1 %v1795_v26  ;;  %v1163_v40 = vcombine.low %v2034_v15, %v1162_v16  ;;  %v1567_v15 = vrot.slane %v2111_v52, 9  ;;  %v1581_v16 = vld [vmem:[%s2274_s3] ss:$0 sm:$0xff] }
  0x38   : > { %1663 = vmatpush3.bf16.msra.mxu0 %v1787_v53  ;;  %1698 = vmatprep.subr.bf16.mxu1 %v1834_v1  ;;  %v1053_v42 = vcombine.low %v2010_v4, %v1052_v41  ;;  %v1807_v4 = vld [vmem:[%s2273_s2 + $0x110] sm:$0xff]  }
  0x39   : > { %1680 = vmatprep.subr.bf16.mxu0 %v1834_v1  ;;  %v1237_v45 = vsel %vm2043_vm15, %v1567_v15, %v1236_v44 }
  0x3a   : > { %v1247_v46 = vcombine.low %v2134_v3, %v1237_v45 }
  0x3b   : > { %1665 = vmatmul.mubr.msk.bf16.vlgmr.msra.gmra.mxu0 %vm471_vm12, %v649_v58  ;;  %1699 = vmatpush3.bf16.msra.mxu1 %v1797_v20 }
  0x3c   : > { %1681 = vmatpush3.bf16.msra.mxu0 %v1789_v63  ;;  %1688 = vmatprep.mubr.msk.bf16.mxu0 %vm1835_vm0, %v1834_v1  ;;  %v1254_v50 = vrot.slane %v1247_v46, %v1932_v18 }
  0x3d   : > { %1682 = vmatprep.subr.bf16.mxu0 %v1834_v1  ;;  %1716 = vmatprep.subr.bf16.mxu1 %v1834_v1 }
  0x3e   : > { %1701 = vmatmul.mubr.msk.bf16.vlgmr.msra.gmra.mxu1 %vm471_vm12, %v964_v5  ;;  %v1255_v30 = vcombine.low %v2107_v49, %v1254_v50 }
  0x3f   : > { %1717 = vmatpush3.bf16.msra.mxu1 %v1799_v24  ;;  %1724 = vmatprep.mubr.msk.bf16.mxu1 %vm1835_vm0, %v1834_v1 }
  0x40   : > { %1683 = vmatpush3.bf16.msra.mxu0 %v1792_v13  ;;  %1718 = vmatprep.subr.bf16.mxu1 %v1834_v1 }
  0x41   : > { %1684 = vmatprep.subr.bf16.mxu0 %v1834_v1 }
  0x43   : > { %1719 = vmatpush3.bf16.msra.mxu1 %v1801_v36 }
  0x44   : > { %1685 = vmatpush3.bf16.msra.mxu0 %v1794_v23  ;;  %1720 = vmatprep.subr.bf16.mxu1 %v1834_v1 }
  0x45   : > { %1686 = vmatprep.subr.bf16.mxu0 %v1834_v1 }
  0x47   : > { %1721 = vmatpush3.bf16.msra.mxu1 %v1803_v14 }
  0x48   : > { %1687 = vmatpush3.bf16.msra.mxu0 %v1796_v22  ;;  %1722 = vmatprep.subr.bf16.mxu1 %v1834_v1 }
  0x49   : > { %1704 = vmatprep.subr.bf16.mxu0 %v1834_v1 }
  0x4b   : > { %1689 = vmatmul.mubr.msk.bf16.vlgmr.msra.gmra.mxu0 %vm471_vm12, %v864_v25  ;;  %1723 = vmatpush3.bf16.msra.mxu1 %v1805_v39 }
  0x4c   : > { %1705 = vmatpush3.bf16.msra.mxu0 %v1798_v27  ;;  %1712 = vmatprep.mubr.msk.bf16.mxu0 %vm1835_vm0, %v1834_v1 }
  0x4d   : > { %1706 = vmatprep.subr.bf16.mxu0 %v1834_v1 }
  0x4e   : > { %1725 = vmatmul.mubr.msk.bf16.vlgmr.msra.gmra.mxu1 %vm471_vm12, %v1163_v40 }
  0x50   : > { %1707 = vmatpush3.bf16.msra.mxu0 %v1800_v47 }
  0x51   : > { %1708 = vmatprep.subr.bf16.mxu0 %v1834_v1 }
  0x54   : > { %1709 = vmatpush3.bf16.msra.mxu0 %v1802_v38 }
  0x55   : > { %1710 = vmatprep.subr.bf16.mxu0 %v1834_v1 }
  0x58   : > { %1711 = vmatpush3.bf16.msra.mxu0 %v1804_v7 }
  0x59   : > { %1728 = vmatprep.subr.bf16.mxu0 %v1834_v1 }
  0x5b   : > { %1713 = vmatmul.mubr.msk.bf16.vlgmr.msra.gmra.mxu0 %vm471_vm12, %v1053_v42 }
  0x5c   : > { %1729 = vmatpush3.bf16.msra.mxu0 %v1806_v43  ;;  %1736 = vmatprep.mubr.msk.bf16.mxu0 %vm1835_vm0, %v1834_v1  ;;  %vm1347_vm0 = vcmask 517120  }
  0x5d   : > { %1730 = vmatprep.subr.bf16.mxu0 %v1834_v1 }
  0x60   : > { %1731 = vmatpush3.bf16.msra.mxu0 %v1807_v4 }
  0x61   : > { %1732 = vmatprep.subr.bf16.mxu0 %v1834_v1 }
  0x64   : > { %1733 = vmatpush3.bf16.msra.mxu0 %v1808_v48 }
  0x65   : > { %1734 = vmatprep.subr.bf16.mxu0 %v1834_v1 }
  0x68   : > { %1735 = vmatpush3.bf16.msra.mxu0 %v1809_v51 }
  0x6b   : > { %1737 = vmatmul.mubr.msk.bf16.vlgmr.msra.gmra.mxu0 %vm471_vm12, %v1255_v30 }
  0xde   : > { %v594_v52 = vpop.f32.mrf.mxu1 }
  0xe0   : > { %v1654_v53 = vpop.f32.mrf.mxu1 }
  0xe2   : > { %v597_v55 = vpop.f32.mrf.mxu1 }
  0xe4   : > { %v1655_v57 = vpop.f32.mrf.mxu1 }
  0xeb   : > { %v509_v54 = vpop.f32.mrf.mxu0 }
  0xec   : > { %v595_v29 = vadd.f32 %v594_v52, %v509_v54 }
  0xed   : > { %v1642_v56 = vpop.f32.mrf.mxu0 }
  0xee   : > { %v808_v60 = vpop.f32.mrf.mxu1 }
  0xef   : > { %v512_v58 = vpop.f32.mrf.mxu0 }
  0xf0   : > { %v1678_v61 = vpop.f32.mrf.mxu1  ;;  %v598_v23 = vadd.f32 %v597_v55, %v512_v58 }
  0xf1   : > { %v1643_v18 = vpop.f32.mrf.mxu0 }
  0xf2   : > { %v811_v63 = vpop.f32.mrf.mxu1 }
  0xf4   : > { %v1679_v3 = vpop.f32.mrf.mxu1 }
  0xfb   : > { %v711_v62 = vpop.f32.mrf.mxu0 }
  0xfc   : > { %v718_v31 = vadd.f32 %v711_v62, %v595_v29 }
  0xfd   : > { %v1666_v0 = vpop.f32.mrf.mxu0 }
  0xfe   : > { %v1026_v49 = vpop.f32.mrf.mxu1  ;;  %v815_v2 = vadd.f32 %v808_v60, %v718_v31 }
  0xff   : > { %v714_v1 = vpop.f32.mrf.mxu0 }
 0x100   : > { %v1702_v8 = vpop.f32.mrf.mxu1  ;;  %v719_v5 = vadd.f32 %v714_v1, %v598_v23 }
 0x101   : > { %v1667_v6 = vpop.f32.mrf.mxu0 }
 0x102   : > { %v1029_v10 = vpop.f32.mrf.mxu1  ;;  %v816_v24 = vadd.f32 %v811_v63, %v719_v5 }
 0x104   : > { %v1703_v12 = vpop.f32.mrf.mxu1 }
 0x10b   : > { %v926_v9 = vpop.f32.mrf.mxu0 }
 0x10c   : > { %v933_v21 = vadd.f32 %v926_v9, %v815_v2 }
 0x10d   : > { %v1690_v11 = vpop.f32.mrf.mxu0 }
 0x10e   : > { %v1225_v28 = vpop.f32.mrf.mxu1  ;;  %v1033_v25 = vadd.f32 %v1026_v49, %v933_v21 }
 0x10f   : > { %v929_v13 = vpop.f32.mrf.mxu0 }
 0x110   : > { %v1726_v19 = vpop.f32.mrf.mxu1  ;;  %v934_v35 = vadd.f32 %v929_v13, %v816_v24 }
 0x111   : > { %v1691_v26 = vpop.f32.mrf.mxu0 }
 0x112   : > { %v1228_v33 = vpop.f32.mrf.mxu1  ;;  %v1034_v36 = vadd.f32 %v1029_v10, %v934_v35 }
 0x114   : > { %v1727_v59 = vpop.f32.mrf.mxu1 }
 0x11b   : > { %v1115_v32 = vpop.f32.mrf.mxu0 }
 0x11c   : > { %v1122_v27 = vadd.f32 %v1115_v32, %v1033_v25 }
 0x11d   : > { %v1714_v20 = vpop.f32.mrf.mxu0 }
 0x11e   : > { %v1232_v37 = vadd.f32 %v1225_v28, %v1122_v27 }
 0x11f   : > { %v1118_v34 = vpop.f32.mrf.mxu0 }
 0x120   : > { %v1123_v47 = vadd.f32 %v1118_v34, %v1034_v36 }
 0x121   : > { %v1715_v22 = vpop.f32.mrf.mxu0 }
 0x122   : > { %v1233_v39 = vadd.f32 %v1228_v33, %v1123_v47 }
 0x12b   : > { %v1317_v14 = vpop.f32.mrf.mxu0 }
 0x12c   : > { %v1324_v17 = vadd.f32 %v1317_v14, %v1232_v37 }
 0x12d   : > { %v1738_v38 = vpop.f32.mrf.mxu0 }
 0x12e   : > { %v1333_v40 = vadd.f32 %v1581_v16, %v1324_v17 }
 0x12f   : > { %v1320_v41 = vpop.f32.mrf.mxu0 }
 0x130   : > { %v1335_v7 = vmax.f32 %v1333_v40, 0.0  ;;  %v1325_v42 = vadd.f32 %v1320_v41, %v1233_v39 }
 0x131   : > { %v1739_v43 = vpop.f32.mrf.mxu0 }
 0x132   : > { %v1339_v15 = vcombine.high %v1335_v7, %v1335_v7  ;;  %v1343_v44 = vpack.c.bf16 %v1335_v7, %v1335_v7  ;;  %v1334_v4 = vadd.f32 %v1581_v16, %v1325_v42 }
 0x134   : > { %v1344_v45 = vpack.c.bf16 %v1339_v15, %v1339_v15  ;;  %1348 = vst.msk [vmem:[%s305_s12] sm:$0x3] %vm1347_vm0, %v1343_v44  ;;  %v1336_v46 = vmax.f32 %v1334_v4, 0.0 }
 0x136   : > { %1349 = vst.msk [vmem:[%s305_s12 + $0x2] sm:$0x3] %vm1347_vm0, %v1344_v45  ;;  %v1340_v48 = vcombine.high %v1336_v46, %v1336_v46  ;;  %v1345_v50 = vpack.c.bf16 %v1336_v46, %v1336_v46 }
 0x138   : > { %v1346_v51 = vpack.c.bf16 %v1340_v48, %v1340_v48  ;;  %1350 = vst.msk [vmem:[%s305_s12 + $0x4] sm:$0x3] %vm1347_vm0, %v1345_v50 }
 0x13a   : > { %1351 = vst.msk [vmem:[%s305_s12 + $0x6] sm:$0x3] %vm1347_vm0, %v1346_v51 }
 0x13b PF: > { %s14_s17 = sadd.s32 1, %s1832_s17   ;;  %s2280_s15 = smov %s1828_s16 }
 0x13c   : > { %p11_p5 = scmp.ge.s32.totalorder %s14_s17, 4   ;;  %s2281_s16 = smov %s2283_s18 }
 0x13e   :  { %13 = sbr.rel (!%p11_p5) target bundleno = 2 (0x2), region = 77 }

// kernel: forward.10
= control target key start
LH: loop header
LB: loop body
LE: loop exit
PB: predicated region body
PF: predicated region fallthrough
CT: control target
= control target key end

     0   :  { %s2867_s15 = smov 0   ;;  %s2869_s16 = smov 0   ;;  %s3606_s0 = inlined_call_operand.vmem [shape: bf16[2,10,10,64], index: 0, kind: input, shape index: {}, may-alias: {0,1}]   ;;  %s3607_s1 = inlined_call_operand.vmem [shape: bf16[2,10,10,64], index: 1, kind: input, shape index: {}, may-alias: {0,1}]   ;;  %s3608_s2 = inlined_call_operand.vmem [shape: bf16[9,64,64], index: 2, kind: input, shape index: {}]   ;;  %s3609_s3 = inlined_call_operand.vmem [shape: f32[1,64], index: 3, kind: input, shape index: {}]   ;;  %s3610_s4 = inlined_call_operand.vmem [shape: bf16[2,4,4,64], index: 4, kind: output, shape index: {}]  }
   0x1   :  { %s2871_s17 = smov 0  }
   0x2 LB: > { %s26_s18 = sadd.s32 1, %s2833_s16  ;;  %p2458_p0 = scmp.ge.s32.totalorder %s2837_s17, 1  ;;  %s2837_s17 = sphi %s2871_s17, %s14_s17   ;;  %s2833_s16 = sphi %s2869_s16, %s3612_s16   ;;  %s2829_s15 = sphi %s2867_s15, %s3611_s15  }
   0x3   : > { %p28_p1 = scmp.ge.s32.totalorder %s26_s18, 2  ;;  %p220_p2 = scmp.lt.s32.totalorder %s2837_s17, 3 }
   0x5   : > { %s3614_s18 = smov (%p28_p1, %s26_s18), 0  ;;  %p221_p3 = pnand %p2458_p0, %p220_p2 }
   0x6   : > { %p278_p4 = scmp.lt.s32.totalorder (!%p221_p3), %s2829_s15, 1 }
   0x7   : > { %224 = sbr.rel (%p221_p3) target bundleno = 342 (0x156), region = 36 }
   0xc   : > { %v2779_v0 = vld [vmem:[%s3608_s2 + $0x38] sm:$0xff]   ;;  %v2839_v1 = vmov 0.0   ;;  %v2781_v3 = vld [vmem:[%s3608_s2 + $0x30] sm:$0xff]   ;;  %vm2840_vm0 = vmmov 0   ;;  %s3616_s15 = smov (!%p278_p4, %s2829_s15), 1  ;;  %v356_v5 = vlaneseq  ;;  %v2783_v6 = vld [vmem:[%s3608_s2 + $0x28] sm:$0xff]  }
   0xd   : > { %2641 = vmatprep.subr.bf16.mxu0 %v2839_v1  ;;  %2653 = vmatprep.subr.bf16.mxu1 %v2839_v1  ;;  %v2780_v2 = vld [vmem:[%s3608_s2 + $0x18] sm:$0xff]   ;;  %v2782_v4 = vld [vmem:[%s3608_s2 + $0x10] sm:$0xff]   ;;  %s2749_s29 = smul.u32 80, %s3616_s15  ;;  %v2784_v7 = vld [vmem:[%s3608_s2 + $0x8] sm:$0xff]   ;;  %v2841_v9 = vmov 1966171168  }
   0xe   : > { %2642 = vmatpush3.bf16.msra.mxu0 %v2779_v0  ;;  %2649 = vmatprep.mubr.msk.bf16.mxu0 %vm2840_vm0, %v2839_v1  ;;  %v354_v10 = vunpack.c.l.s4 %v2841_v9  ;;  %v357_v11 = vshrl.u32 %v356_v5, 7  ;;  %v2785_v12 = vld [vmem:[%s3608_s2 + $0x20] sm:$0xff]   ;;  %vm755_vm1 = vcmask 1041409   ;;  %vm758_vm2 = vcmask 1042434   ;;  %s2595_s11 = sshll.u32 %s3616_s15, 3 }
   0xf   : > { %2654 = vmatpush3.bf16.msra.mxu1 %v2780_v2  ;;  %2643 = vmatprep.subr.bf16.mxu0 %v2839_v1  ;;  %s2921_s8 = scalar_lea.vmem %s3606_s0, %s2749_s29  ;;  %v2786_v13 = vld [vmem:[%s3608_s2] sm:$0xff]   ;;  %vm761_vm3 = vcmask 1043459   ;;  %vm764_vm4 = vcmask 1044484   ;;  %vm767_vm5 = vcmask 1045509   ;;  %vm770_vm6 = vcmask 1046534   ;;  %s2594_s23 = sadd.s32 64, %s2749_s29 }
  0x10   : > { %2655 = vmatprep.subr.bf16.mxu1 %v2839_v1  ;;  %2661 = vmatprep.mubr.msk.bf16.mxu1 %vm2840_vm0, %v2839_v1  ;;  %v2463_v8 = vld.sshfl [vmem:[%s2921_s8] sm:$0x33 pattern:$0x75316420]  ;;  %v355_v17 = vunpack.c.0.s8 %v354_v10  ;;  %vm773_vm7 = vcmask 1047559   ;;  %vm814_vm8 = vcmask 523264   ;;  %s3365_s25 = scalar_lea.vmem %s3607_s1, %s2594_s23  ;;  %s316_s14 = scalar_lea.vmem %s3610_s4, %s2595_s11 }
  0x11   : > { %v2465_v14 = vld.sshfl [vmem:[%s2921_s8 + $0x10] sm:$0x33 pattern:$0x75316420]  ;;  %v352_v16 = vcombine.high %v2463_v8, %v2463_v8  ;;  %vm2338_vm9 = vcmask 517120  }
  0x12   : > { %2644 = vmatpush3.bf16.msra.mxu0 %v2781_v3  ;;  %v2467_v15 = vld.sshfl [vmem:[%s2921_s8 + $0x20] sm:$0x33 pattern:$0x75316420]  ;;  %v390_v19 = vcombine.high %v2465_v14, %v2465_v14  ;;  %v2935_v21 = vsub.s32 %v355_v17, %v357_v11 }
  0x13   : > { %2656 = vmatpush3.bf16.msra.mxu1 %v2782_v4  ;;  %2645 = vmatprep.subr.bf16.mxu0 %v2839_v1  ;;  %v2469_v18 = vld.sshfl [vmem:[%s2921_s8 + $0x30] sm:$0x33 pattern:$0x75316420]  ;;  %v428_v20 = vcombine.high %v2467_v15, %v2467_v15 }
  0x14   : > { %2657 = vmatprep.subr.bf16.mxu1 %v2839_v1  ;;  %v466_v22 = vcombine.high %v2469_v18, %v2469_v18  ;;  %v359_v23 = vrot.slane %v2463_v8, %v2935_v21  ;;  %v366_v24 = vrot.slane %v352_v16, %v2935_v21  ;;  %v397_v25 = vrot.slane %v2465_v14, %v2935_v21 }
  0x15   : > { %v404_v26 = vrot.slane %v390_v19, %v2935_v21  ;;  %v435_v27 = vrot.slane %v2467_v15, %v2935_v21  ;;  %v442_v28 = vrot.slane %v428_v20, %v2935_v21  ;;  %v473_v29 = vrot.slane %v2469_v18, %v2935_v21 }
  0x16   : > { %2646 = vmatpush3.bf16.msra.mxu0 %v2783_v6  ;;  %v367_v30 = vcombine.high %v359_v23, %v359_v23  ;;  %v368_v31 = vcombine.high %v366_v24, %v366_v24  ;;  %v405_v32 = vcombine.high %v397_v25, %v397_v25  ;;  %v480_v33 = vrot.slane %v466_v22, %v2935_v21 }
  0x17   : > { %2658 = vmatpush3.bf16.msra.mxu1 %v2784_v7  ;;  %2647 = vmatprep.subr.bf16.mxu0 %v2839_v1  ;;  %v406_v34 = vcombine.high %v404_v26, %v404_v26  ;;  %v443_v35 = vcombine.high %v435_v27, %v435_v27  ;;  %v444_v36 = vcombine.high %v442_v28, %v442_v28 }
  0x18   : > { %2659 = vmatprep.subr.bf16.mxu1 %v2839_v1  ;;  %v481_v37 = vcombine.high %v473_v29, %v473_v29  ;;  %v482_v38 = vcombine.high %v480_v33, %v480_v33  ;;  %v520_v39 = vrot.slane %v359_v23, %v2935_v21  ;;  %v534_v40 = vrot.slane %v366_v24, %v2935_v21 }
  0x19   : > { %v548_v41 = vrot.slane %v367_v30, %v2935_v21  ;;  %v562_v42 = vrot.slane %v368_v31, %v2935_v21  ;;  %v576_v43 = vrot.slane %v397_v25, %v2935_v21  ;;  %v590_v44 = vrot.slane %v404_v26, %v2935_v21 }
  0x1a   : > { %2648 = vmatpush3.bf16.msra.mxu0 %v2785_v12  ;;  %v604_v45 = vrot.slane %v405_v32, %v2935_v21  ;;  %v2955_v46 = vrot.slane %v520_v39, %v2935_v21  ;;  %v541_v47 = vrot.slane %v534_v40, %v2935_v21  ;;  %v618_v49 = vrot.slane %v406_v34, %v2935_v21 }
  0x1b   : > { %2660 = vmatpush3.bf16.msra.mxu1 %v2786_v13  ;;  %2665 = vmatprep.subr.bf16.mxu0 %v2839_v1  ;;  %v555_v48 = vrot.slane %v548_v41, %v2935_v21  ;;  %v569_v50 = vrot.slane %v562_v42, %v2935_v21  ;;  %v583_v51 = vrot.slane %v576_v43, %v2935_v21 }
  0x1c   : > { %2677 = vmatprep.subr.bf16.mxu1 %v2839_v1  ;;  %v597_v52 = vrot.slane %v590_v44, %v2935_v21  ;;  %v611_v53 = vrot.slane %v604_v45, %v2935_v21  ;;  %v625_v54 = vrot.slane %v618_v49, %v2935_v21  ;;  %v632_v55 = vrot.slane %v435_v27, %v2935_v21 }
  0x1d   : > { %v646_v56 = vrot.slane %v442_v28, %v2935_v21  ;;  %v660_v57 = vrot.slane %v443_v35, %v2935_v21  ;;  %v674_v58 = vrot.slane %v444_v36, %v2935_v21  ;;  %v688_v59 = vrot.slane %v473_v29, %v2935_v21 }
  0x1e   : > { %v702_v60 = vrot.slane %v480_v33, %v2935_v21  ;;  %v716_v61 = vrot.slane %v481_v37, %v2935_v21  ;;  %v639_v62 = vrot.slane %v632_v55, %v2935_v21  ;;  %v730_v2 = vrot.slane %v482_v38, %v2935_v21 }
  0x1f   : > { %v653_v63 = vrot.slane %v646_v56, %v2935_v21  ;;  %v667_v0 = vrot.slane %v660_v57, %v2935_v21  ;;  %v681_v3 = vrot.slane %v674_v58, %v2935_v21  ;;  %v695_v4 = vrot.slane %v688_v59, %v2935_v21 }
  0x20   : > { %v709_v5 = vrot.slane %v702_v60, %v2935_v21  ;;  %v723_v6 = vrot.slane %v716_v61, %v2935_v21  ;;  %v737_v7 = vrot.slane %v730_v2, %v2935_v21  ;;  %v738_v8 = vunpack.c.l.b16 %v2955_v46  ;;  %v2787_v60 = vld [vmem:[%s3608_s2 + $0x58] sm:$0xff]   ;;  %v2464_v61 = vld.sshfl [vmem:[%s2921_s8 + $0x4] sm:$0x1 pattern:$0x75316420] }
  0x21   : > { %v2982_v9 = vunpack.c.l.b16 %v541_v47  ;;  %v2984_v10 = vunpack.c.l.b16 %v555_v48  ;;  %v2986_v11 = vunpack.c.l.b16 %v569_v50  ;;  %v2988_v12 = vunpack.c.l.b16 %v583_v51 }
  0x22   : > { %v2990_v13 = vunpack.c.l.b16 %v597_v52  ;;  %v2992_v14 = vunpack.c.l.b16 %v611_v53  ;;  %v2994_v15 = vunpack.c.l.b16 %v625_v54  ;;  %v2996_v16 = vunpack.c.l.b16 %v639_v62  ;;  %v2466_v62 = vld.sshfl [vmem:[%s2921_s8 + $0x14] sm:$0x1 pattern:$0x75316420] }
  0x23   : > { %v2998_v17 = vunpack.c.l.b16 %v653_v63  ;;  %v3000_v18 = vunpack.c.l.b16 %v667_v0  ;;  %v3002_v19 = vunpack.c.l.b16 %v681_v3  ;;  %v3004_v20 = vunpack.c.l.b16 %v695_v4  ;;  %v2468_v4 = vld.sshfl [vmem:[%s2921_s8 + $0x24] sm:$0x1 pattern:$0x75316420] }
  0x24   : > { %v3006_v22 = vunpack.c.l.b16 %v709_v5  ;;  %v3008_v23 = vunpack.c.l.b16 %v723_v6  ;;  %v3010_v24 = vunpack.c.l.b16 %v737_v7  ;;  %v754_v25 = vrot.slane %v738_v8, 1  ;;  %v2470_v5 = vld.sshfl [vmem:[%s2921_s8 + $0x34] sm:$0x1 pattern:$0x75316420] }
  0x25   : > { %v757_v26 = vrot.slane %v2984_v10, 7  ;;  %v760_v27 = vrot.slane %v2986_v11, 6  ;;  %v763_v28 = vrot.slane %v2988_v12, 5  ;;  %v766_v29 = vrot.slane %v2990_v13, 4 }
  0x26   : > { %v769_v30 = vrot.slane %v2992_v14, 3  ;;  %v772_v31 = vrot.slane %v2994_v15, 2  ;;  %v756_v32 = vsel %vm755_vm1, %v2982_v9, %v754_v25  ;;  %v775_v33 = vrot.slane %v2996_v16, 1 }
  0x27   : > { %v777_v34 = vrot.slane %v3000_v18, 7  ;;  %v779_v35 = vrot.slane %v3002_v19, 6  ;;  %v759_v36 = vsel %vm758_vm2, %v757_v26, %v756_v32  ;;  %v781_v37 = vrot.slane %v3004_v20, 5 }
  0x28   : > { %v783_v38 = vrot.slane %v3006_v22, 4  ;;  %v785_v39 = vrot.slane %v3008_v23, 3  ;;  %v762_v40 = vsel %vm761_vm3, %v760_v27, %v759_v36  ;;  %v776_v41 = vsel %vm755_vm1, %v2998_v17, %v775_v33 }
  0x29   : > { %v787_v42 = vrot.slane %v3010_v24, 2  ;;  %v859_v43 = vrot.slane %v2982_v9, 7  ;;  %v765_v44 = vsel %vm764_vm4, %v763_v28, %v762_v40  ;;  %v778_v45 = vsel %vm758_vm2, %v777_v34, %v776_v41 }
  0x2a   : > { %v861_v46 = vrot.slane %v2984_v10, 6  ;;  %v863_v47 = vrot.slane %v2986_v11, 5  ;;  %v768_v48 = vsel %vm767_vm5, %v766_v29, %v765_v44  ;;  %v780_v49 = vsel %vm761_vm3, %v779_v35, %v778_v45 }
  0x2b   : > { %v860_v50 = vsel %vm755_vm1, %v859_v43, %v738_v8  ;;  %v865_v51 = vrot.slane %v2988_v12, 4  ;;  %v771_v52 = vsel %vm770_vm6, %v769_v30, %v768_v48  ;;  %v782_v53 = vsel %vm764_vm4, %v781_v37, %v780_v49  ;;  %v2789_v49 = vld [vmem:[%s3608_s2 + $0x50] sm:$0xff]  }
  0x2c   : > { %v862_v54 = vsel %vm758_vm2, %v861_v46, %v860_v50  ;;  %v867_v55 = vrot.slane %v2990_v13, 3  ;;  %v774_v56 = vsel %vm773_vm7, %v772_v31, %v771_v52  ;;  %v784_v57 = vsel %vm767_vm5, %v783_v38, %v782_v53  ;;  %v2502_v52 = vld.sshfl [vmem:[%s2921_s8 + $0x8] sm:$0x33 pattern:$0x75316420] }
  0x2d   : > { %v864_v58 = vsel %vm761_vm3, %v863_v47, %v862_v54  ;;  %v869_v59 = vrot.slane %v2992_v14, 2  ;;  %v786_v63 = vsel %vm770_vm6, %v785_v39, %v784_v57  ;;  %v871_v2 = vrot.slane %v2994_v15, 1  ;;  %v2504_v57 = vld.sshfl [vmem:[%s2921_s8 + $0x18] sm:$0x33 pattern:$0x75316420] }
  0x2e   : > { %v866_v0 = vsel %vm764_vm4, %v865_v51, %v864_v58  ;;  %v873_v3 = vrot.slane %v2998_v17, 7  ;;  %v788_v6 = vsel %vm773_vm7, %v787_v42, %v786_v63  ;;  %v875_v8 = vrot.slane %v3000_v18, 6  ;;  %v2788_v63 = vld [vmem:[%s3608_s2 + $0x78] sm:$0xff]  }
  0x2f   : > { %v868_v7 = vsel %vm767_vm5, %v867_v55, %v866_v0  ;;  %v877_v25 = vrot.slane %v3002_v19, 5  ;;  %v789_v28 = vpack.c.b16 %v788_v6, %v774_v56  ;;  %v879_v36 = vrot.slane %v3004_v20, 4 }
  0x30   : > { %v870_v32 = vsel %vm770_vm6, %v869_v59, %v868_v7  ;;  %v874_v33 = vsel %vm755_vm1, %v873_v3, %v2996_v16  ;;  %v881_v41 = vrot.slane %v3006_v22, 3  ;;  %v883_v43 = vrot.slane %v3008_v23, 2 }
  0x31   : > { %v872_v37 = vsel %vm773_vm7, %v871_v2, %v870_v32  ;;  %v876_v40 = vsel %vm758_vm2, %v875_v8, %v874_v33  ;;  %2650 = vmatmul.mubr.msk.bf16.vlgmr.msra.gmra.mxu0 %vm814_vm8, %v789_v28  ;;  %v885_v45 = vrot.slane %v3010_v24, 1  ;;  %v382_v46 = vrot.slane %v2464_v61, %v2935_v21  ;;  %v2791_v2 = vld [vmem:[%s3608_s2 + $0x48] sm:$0xff]   ;;  %v2790_v8 = vld [vmem:[%s3608_s2 + $0x70] sm:$0xff]  }
  0x32   : > { %v878_v44 = vsel %vm761_vm3, %v877_v25, %v876_v40  ;;  %v420_v47 = vrot.slane %v2466_v62, %v2935_v21  ;;  %2666 = vmatpush3.bf16.msra.mxu0 %v2787_v60  ;;  %2673 = vmatprep.mubr.msk.bf16.mxu0 %vm2840_vm0, %v2839_v1  ;;  %v458_v50 = vrot.slane %v2468_v4, %v2935_v21  ;;  %v1997_v61 = vrot.slane %v2990_v13, 7 }
  0x33   : > { %v880_v48 = vsel %vm764_vm4, %v879_v36, %v878_v44  ;;  %v496_v51 = vrot.slane %v2470_v5, %v2935_v21  ;;  %2667 = vmatprep.subr.bf16.mxu0 %v2839_v1  ;;  %v971_v54 = vrot.slane %v382_v46, %v2935_v21  ;;  %v1025_v56 = vsel %vm755_vm1, %v757_v26, %v2982_v9  ;;  %v2793_v44 = vld [vmem:[%s3608_s2 + $0x40] sm:$0xff]  }
  0x34   : > { %v882_v53 = vsel %vm767_vm5, %v881_v41, %v880_v48  ;;  %v985_v55 = vrot.slane %v420_v47, %v2935_v21  ;;  %v999_v59 = vrot.slane %v458_v50, %v2935_v21  ;;  %v1026_v9 = vsel %vm758_vm2, %v760_v27, %v1025_v56  ;;  %v2508_v41 = vld.sshfl [vmem:[%s2921_s8 + $0x38] sm:$0x33 pattern:$0x75316420]  ;;  %v2792_v56 = vld [vmem:[%s3608_s2 + $0x68] sm:$0xff]  }
  0x35   : > { %v884_v58 = vsel %vm770_vm6, %v883_v43, %v882_v53  ;;  %v1013_v60 = vrot.slane %v496_v51, %v2935_v21  ;;  %v978_v0 = vrot.slane %v971_v54, %v2935_v21  ;;  %v1034_v5 = vsel %vm755_vm1, %v777_v34, %v2998_v17  ;;  %v2506_v34 = vld.sshfl [vmem:[%s2921_s8 + $0x28] sm:$0x33 pattern:$0x75316420] }
  0x36   : > { %v886_v62 = vsel %vm773_vm7, %v885_v45, %v884_v58  ;;  %v992_v10 = vrot.slane %v985_v55, %v2935_v21  ;;  %2668 = vmatpush3.bf16.msra.mxu0 %v2789_v49  ;;  %v1006_v3 = vrot.slane %v999_v59, %v2935_v21  ;;  %v1129_v6 = vcombine.high %v2502_v52, %v2502_v52 }
  0x37   : > { %v887_v26 = vpack.c.b16 %v886_v62, %v872_v37  ;;  %v1020_v4 = vrot.slane %v1013_v60, %v2935_v21  ;;  %2669 = vmatprep.subr.bf16.mxu0 %v2839_v1  ;;  %v1021_v11 = vunpack.c.l.b16 %v978_v0  ;;  %v1136_v7 = vrot.slane %v2502_v52, %v2935_v21 }
  0x38   : > { %v3137_v27 = vunpack.c.l.b16 %v992_v10  ;;  %v3144_v25 = vunpack.c.l.b16 %v1006_v3  ;;  %v1167_v32 = vcombine.high %v2504_v57, %v2504_v57  ;;  %v3150_v33 = vrot.slane %v2504_v57, %v2935_v21 }
  0x39   : > { %2662 = vmatmul.mubr.msk.bf16.vlgmr.msra.gmra.mxu1 %vm814_vm8, %v887_v26  ;;  %v3146_v28 = vunpack.c.l.b16 %v1020_v4  ;;  %v1027_v36 = vrot.slane %v1021_v11, 5  ;;  %v1035_v40 = vsel %vm758_vm2, %v779_v35, %v1034_v5  ;;  %v1143_v43 = vrot.slane %v1129_v6, %v2935_v21 }
  0x3a   : > { %2678 = vmatpush3.bf16.msra.mxu1 %v2788_v63  ;;  %v1032_v37 = vrot.slane %v3137_v27, 1  ;;  %2685 = vmatprep.mubr.msk.bf16.mxu1 %vm2840_vm0, %v2839_v1  ;;  %v1036_v45 = vrot.slane %v3144_v25, 5  ;;  %v2230_v47 = vrot.slane %v3137_v27, 5  ;;  %v1144_v35 = vcombine.high %v1136_v7, %v1136_v7  ;;  %v2813_v27 = vld [vmem:[%s3608_s2 + $0x108] sm:$0xff]  }
  0x3b   : > { %2679 = vmatprep.subr.bf16.mxu1 %v2839_v1  ;;  %2670 = vmatpush3.bf16.msra.mxu0 %v2791_v2  ;;  %v1041_v46 = vrot.slane %v3146_v28, 1  ;;  %v1028_v48 = vsel %vm761_vm3, %v1027_v36, %v1026_v9  ;;  %v1145_v49 = vcombine.high %v1143_v43, %v1143_v43  ;;  %v1181_v50 = vrot.slane %v1167_v32, %v2935_v21 }
  0x3c   : > { %2671 = vmatprep.subr.bf16.mxu0 %v2839_v1  ;;  %v1182_v51 = vcombine.high %v3150_v33, %v3150_v33  ;;  %v1029_v52 = vsel %vm764_vm4, %v766_v29, %v1028_v48  ;;  %v1037_v53 = vsel %vm761_vm3, %v1036_v45, %v1035_v40  ;;  %v1205_v54 = vcombine.high %v2506_v34, %v2506_v34 }
  0x3d   : > { %v1212_v55 = vrot.slane %v2506_v34, %v2935_v21  ;;  %v1030_v57 = vsel %vm767_vm5, %v769_v30, %v1029_v52  ;;  %v1038_v58 = vsel %vm764_vm4, %v783_v38, %v1037_v53  ;;  %v1183_v59 = vcombine.high %v1181_v50, %v1181_v50 }
  0x3e   : > { %2680 = vmatpush3.bf16.msra.mxu1 %v2790_v8  ;;  %v1243_v29 = vcombine.high %v2508_v41, %v2508_v41  ;;  %v1031_v60 = vsel %vm770_vm6, %v772_v31, %v1030_v57  ;;  %v1039_v62 = vsel %vm767_vm5, %v785_v39, %v1038_v58  ;;  %v1219_v63 = vrot.slane %v1205_v54, %v2935_v21  ;;  %v2795_v39 = vld [vmem:[%s3608_s2 + $0x98] sm:$0xff]  }
  0x3f   : > { %2681 = vmatprep.subr.bf16.mxu1 %v2839_v1  ;;  %2672 = vmatpush3.bf16.msra.mxu0 %v2793_v44  ;;  %v1999_v30 = vrot.slane %v2992_v14, 6  ;;  %v1033_v0 = vsel %vm773_vm7, %v1032_v37, %v1031_v60  ;;  %v1040_v38 = vsel %vm770_vm6, %v787_v42, %v1039_v62  ;;  %v1220_v10 = vcombine.high %v1212_v55, %v1212_v55  ;;  %v2794_v42 = vld [vmem:[%s3608_s2 + $0x60] sm:$0xff]  }
  0x40   : > { %2689 = vmatprep.subr.bf16.mxu0 %v2839_v1  ;;  %v1250_v9 = vrot.slane %v2508_v41, %v2935_v21  ;;  %v1042_v31 = vsel %vm773_vm7, %v1041_v46, %v1040_v38  ;;  %v1221_v26 = vcombine.high %v1219_v63, %v1219_v63  ;;  %v1257_v2 = vrot.slane %v1243_v29, %v2935_v21  ;;  %v2797_v46 = vld [vmem:[%s3608_s2 + $0x90] sm:$0xff]  }
  0x41   : > { %v1289_v3 = vrot.slane %v1136_v7, %v2935_v21  ;;  %v1043_v4 = vpack.c.b16 %v1042_v31, %v1033_v0  ;;  %v1303_v11 = vrot.slane %v1143_v43, %v2935_v21  ;;  %v1317_v6 = vrot.slane %v1144_v35, %v2935_v21 }
  0x42   : > { %2682 = vmatpush3.bf16.msra.mxu1 %v2792_v56  ;;  %v1258_v5 = vcombine.high %v1250_v9, %v1250_v9  ;;  %v1259_v8 = vcombine.high %v1257_v2, %v1257_v2  ;;  %v1331_v32 = vrot.slane %v1145_v49, %v2935_v21  ;;  %v1345_v7 = vrot.slane %v3150_v33, %v2935_v21 }
  0x43   : > { %2683 = vmatprep.subr.bf16.mxu1 %v2839_v1  ;;  %v3214_v34 = vrot.slane %v1289_v3, %v2935_v21  ;;  %2674 = vmatmul.mubr.msk.bf16.vlgmr.msra.gmra.mxu0 %vm814_vm8, %v1043_v4  ;;  %v1310_v36 = vrot.slane %v1303_v11, %v2935_v21  ;;  %v1324_v37 = vrot.slane %v1317_v6, %v2935_v21 }
  0x44   : > { %v1359_v40 = vrot.slane %v1181_v50, %v2935_v21  ;;  %v1373_v41 = vrot.slane %v1182_v51, %v2935_v21  ;;  %2690 = vmatpush3.bf16.msra.mxu0 %v2795_v39  ;;  %v1338_v43 = vrot.slane %v1331_v32, %v2935_v21  ;;  %v3226_v44 = vrot.slane %v1345_v7, %v2935_v21  ;;  %v2801_v32 = vld [vmem:[%s3608_s2 + $0x80] sm:$0xff]  }
  0x45   : > { %v1387_v45 = vrot.slane %v1183_v59, %v2935_v21  ;;  %v1401_v33 = vrot.slane %v1212_v55, %v2935_v21  ;;  %v1415_v49 = vrot.slane %v1219_v63, %v2935_v21  ;;  %v1429_v50 = vrot.slane %v1220_v10, %v2935_v21  ;;  %2691 = vmatprep.subr.bf16.mxu0 %v2839_v1  ;;  %v2799_v63 = vld [vmem:[%s3608_s2 + $0x88] sm:$0xff]  }
  0x46   : > { %2684 = vmatpush3.bf16.msra.mxu1 %v2794_v42  ;;  %v3234_v35 = vrot.slane %v1359_v40, %v2935_v21  ;;  %v1380_v48 = vrot.slane %v1373_v41, %v2935_v21  ;;  %v1443_v53 = vrot.slane %v1221_v26, %v2935_v21  ;;  %v1457_v54 = vrot.slane %v1250_v9, %v2935_v21 }
  0x47   : > { %v1394_v51 = vrot.slane %v1387_v45, %v2935_v21  ;;  %v3241_v52 = vrot.slane %v1401_v33, %v2935_v21  ;;  %2701 = vmatprep.subr.bf16.mxu1 %v2839_v1  ;;  %v1422_v55 = vrot.slane %v1415_v49, %v2935_v21  ;;  %v1436_v56 = vrot.slane %v1429_v50, %v2935_v21 }
  0x48   : > { %v1471_v57 = vrot.slane %v1257_v2, %v2935_v21  ;;  %v1485_v58 = vrot.slane %v1258_v5, %v2935_v21  ;;  %v1450_v59 = vrot.slane %v1443_v53, %v2935_v21  ;;  %v3253_v29 = vrot.slane %v1457_v54, %v2935_v21  ;;  %2692 = vmatpush3.bf16.msra.mxu0 %v2797_v46 }
  0x49   : > { %v1499_v60 = vrot.slane %v1259_v8, %v2935_v21  ;;  %v1507_v62 = vunpack.c.l.b16 %v3214_v34  ;;  %2697 = vmatprep.mubr.msk.bf16.mxu0 %vm2840_vm0, %v2839_v1  ;;  %v3266_v10 = vunpack.c.l.b16 %v1310_v36  ;;  %v3268_v9 = vunpack.c.l.b16 %v1324_v37  ;;  %2693 = vmatprep.subr.bf16.mxu0 %v2839_v1 }
  0x4a   : > { %v3263_v0 = vrot.slane %v1471_v57, %v2935_v21  ;;  %v1492_v38 = vrot.slane %v1485_v58, %v2935_v21  ;;  %v3272_v39 = vunpack.c.l.b16 %v1338_v43  ;;  %v1511_v26 = vunpack.c.l.b16 %v3226_v44 }
  0x4b   : > { %v1506_v31 = vrot.slane %v1499_v60, %v2935_v21  ;;  %v1512_v2 = vunpack.c.l.b16 %v3234_v35  ;;  %v3276_v3 = vunpack.c.l.b16 %v1380_v48  ;;  %v3278_v42 = vunpack.c.l.b16 %v1394_v51 }
  0x4c   : > { %v1515_v4 = vunpack.c.l.b16 %v3241_v52  ;;  %v3281_v5 = vunpack.c.l.b16 %v1422_v55  ;;  %v3283_v11 = vunpack.c.l.b16 %v1436_v56  ;;  %v3285_v6 = vunpack.c.l.b16 %v1450_v59  ;;  %2694 = vmatpush3.bf16.msra.mxu0 %v2799_v63 }
  0x4d   : > { %v1519_v8 = vunpack.c.l.b16 %v3253_v29  ;;  %v1520_v34 = vunpack.c.l.b16 %v3263_v0  ;;  %v3292_v7 = vunpack.c.l.b16 %v1492_v38  ;;  %v3294_v36 = vunpack.c.l.b16 %v1506_v31  ;;  %2695 = vmatprep.subr.bf16.mxu0 %v2839_v1 }
  0x4e   : > { %v1523_v37 = vrot.slane %v3266_v10, 7  ;;  %v1525_v40 = vrot.slane %v3268_v9, 6  ;;  %v1527_v41 = vrot.slane %v3272_v39, 5  ;;  %v1529_v43 = vrot.slane %v1511_v26, 4 }
  0x4f   : > { %v1531_v44 = vrot.slane %v1512_v2, 3  ;;  %v1533_v45 = vrot.slane %v3276_v3, 2  ;;  %v1535_v46 = vrot.slane %v3278_v42, 1  ;;  %v1537_v35 = vrot.slane %v3281_v5, 7 }
  0x50   : > { %v1524_v33 = vsel %vm755_vm1, %v1523_v37, %v1507_v62  ;;  %v1539_v48 = vrot.slane %v3283_v11, 6  ;;  %v1541_v50 = vrot.slane %v3285_v6, 5  ;;  %v1543_v51 = vrot.slane %v1519_v8, 4  ;;  %2696 = vmatpush3.bf16.msra.mxu0 %v2801_v32 }
  0x51   : > { %v1526_v49 = vsel %vm758_vm2, %v1525_v40, %v1524_v33  ;;  %v1545_v52 = vrot.slane %v1520_v34, 3  ;;  %v1538_v54 = vsel %vm755_vm1, %v1537_v35, %v1515_v4  ;;  %v1547_v55 = vrot.slane %v3292_v7, 2  ;;  %2713 = vmatprep.subr.bf16.mxu0 %v2839_v1  ;;  %v2503_v33 = vld.sshfl [vmem:[%s2921_s8 + $0xc] sm:$0x1 pattern:$0x75316420] }
  0x52   : > { %v1528_v53 = vsel %vm761_vm3, %v1527_v41, %v1526_v49  ;;  %v1549_v56 = vrot.slane %v3294_v36, 1  ;;  %v1540_v58 = vsel %vm758_vm2, %v1539_v48, %v1538_v54  ;;  %v1631_v59 = vrot.slane %v1507_v62, 1 }
  0x53   : > { %v1530_v57 = vsel %vm764_vm4, %v1529_v43, %v1528_v53  ;;  %v1633_v29 = vrot.slane %v3268_v9, 7  ;;  %v1542_v63 = vsel %vm761_vm3, %v1541_v50, %v1540_v58  ;;  %v1635_v0 = vrot.slane %v3272_v39, 6  ;;  %v2796_v39 = vld [vmem:[%s3608_s2 + $0xb8] sm:$0xff]  }
  0x54   : > { %v1532_v60 = vsel %vm767_vm5, %v1531_v44, %v1530_v57  ;;  %v1637_v38 = vrot.slane %v1511_v26, 5  ;;  %v1544_v32 = vsel %vm764_vm4, %v1543_v51, %v1542_v63  ;;  %v1632_v37 = vsel %vm755_vm1, %v3266_v10, %v1631_v59  ;;  %v2505_v50 = vld.sshfl [vmem:[%s2921_s8 + $0x1c] sm:$0x1 pattern:$0x75316420] }
  0x55   : > { %v1534_v31 = vsel %vm770_vm6, %v1533_v45, %v1532_v60  ;;  %v3322_v40 = vrot.slane %v1512_v2, 4  ;;  %v1546_v9 = vsel %vm767_vm5, %v1545_v52, %v1544_v32  ;;  %v1634_v26 = vsel %vm758_vm2, %v1633_v29, %v1632_v37 }
  0x56   : > { %v1536_v62 = vsel %vm773_vm7, %v1535_v46, %v1534_v31  ;;  %v1641_v41 = vrot.slane %v3276_v3, 3  ;;  %v1548_v43 = vsel %vm770_vm6, %v1547_v55, %v1546_v9  ;;  %v1636_v2 = vsel %vm761_vm3, %v1635_v0, %v1634_v26 }
  0x57   : > { %v1643_v44 = vrot.slane %v3278_v42, 2  ;;  %v1645_v45 = vrot.slane %v1515_v4, 1  ;;  %v1550_v46 = vsel %vm773_vm7, %v1549_v56, %v1548_v43  ;;  %v1638_v35 = vsel %vm764_vm4, %v1637_v38, %v1636_v2  ;;  %v2507_v4 = vld.sshfl [vmem:[%s2921_s8 + $0x2c] sm:$0x1 pattern:$0x75316420] }
  0x58   : > { %v1647_v48 = vrot.slane %v3283_v11, 7  ;;  %v1649_v49 = vrot.slane %v3285_v6, 6  ;;  %v1551_v51 = vpack.c.b16 %v1550_v46, %v1536_v62  ;;  %v1640_v52 = vsel %vm767_vm5, %v3322_v40, %v1638_v35  ;;  %v2509_v6 = vld.sshfl [vmem:[%s2921_s8 + $0x3c] sm:$0x1 pattern:$0x75316420] }
  0x59   : > { %v1646_v53 = vsel %vm755_vm1, %v3281_v5, %v1645_v45  ;;  %v1651_v54 = vrot.slane %v1519_v8, 5  ;;  %v1642_v55 = vsel %vm770_vm6, %v1641_v41, %v1640_v52  ;;  %v3351_v57 = vrot.slane %v1520_v34, 4  ;;  %v2798_v34 = vld [vmem:[%s3608_s2 + $0xb0] sm:$0xff]   ;;  %v2803_v35 = vld [vmem:[%s3608_s2 + $0xd8] sm:$0xff]  }
  0x5a   : > { %v1648_v56 = vsel %vm758_vm2, %v1647_v48, %v1646_v53  ;;  %v1655_v11 = vrot.slane %v3292_v7, 3  ;;  %2686 = vmatmul.mubr.msk.bf16.vlgmr.msra.gmra.mxu1 %vm814_vm8, %v1551_v51  ;;  %v1644_v58 = vsel %vm773_vm7, %v1643_v44, %v1642_v55  ;;  %v1657_v59 = vrot.slane %v3294_v36, 2 }
  0x5b   : > { %v1650_v8 = vsel %vm761_vm3, %v1649_v49, %v1648_v56  ;;  %v1159_v60 = vrot.slane %v2503_v33, %v2935_v21  ;;  %2702 = vmatpush3.bf16.msra.mxu1 %v2796_v39  ;;  %2709 = vmatprep.mubr.msk.bf16.mxu1 %vm2840_vm0, %v2839_v1  ;;  %v1197_v38 = vrot.slane %v2505_v50, %v2935_v21  ;;  %v2001_v32 = vrot.slane %v2994_v15, 5  ;;  %v2549_v33 = vld.sshfl [vmem:[%s3365_s25] sm:$0x33 pattern:$0x75316420] }
  0x5c   : > { %v1652_v63 = vsel %vm764_vm4, %v1651_v54, %v1650_v8  ;;  %v1235_v31 = vrot.slane %v2507_v4, %v2935_v21  ;;  %2703 = vmatprep.subr.bf16.mxu1 %v2839_v1  ;;  %v1273_v62 = vrot.slane %v2509_v6, %v2935_v21  ;;  %v1799_v39 = vsel %vm755_vm1, %v1633_v29, %v3266_v10 }
  0x5d   : > { %v1654_v37 = vsel %vm767_vm5, %v3351_v57, %v1652_v63  ;;  %v1745_v9 = vrot.slane %v1159_v60, %v2935_v21  ;;  %v1759_v43 = vrot.slane %v1197_v38, %v2935_v21  ;;  %v1800_v45 = vsel %vm758_vm2, %v1635_v0, %v1799_v39  ;;  %v2800_v0 = vld [vmem:[%s3608_s2 + $0xa8] sm:$0xff]  }
  0x5e   : > { %v1656_v26 = vsel %vm770_vm6, %v1655_v11, %v1654_v37  ;;  %v1773_v2 = vrot.slane %v1235_v31, %v2935_v21  ;;  %v1787_v29 = vrot.slane %v1273_v62, %v2935_v21  ;;  %v1808_v50 = vsel %vm755_vm1, %v1647_v48, %v3281_v5 }
  0x5f   : > { %v1658_v46 = vsel %vm773_vm7, %v1657_v59, %v1656_v26  ;;  %v1752_v10 = vrot.slane %v1745_v9, %v2935_v21  ;;  %2704 = vmatpush3.bf16.msra.mxu1 %v2798_v34  ;;  %v1766_v52 = vrot.slane %v1759_v43, %v2935_v21  ;;  %v1809_v54 = vsel %vm758_vm2, %v1649_v49, %v1808_v50  ;;  %v2805_v34 = vld [vmem:[%s3608_s2 + $0xd0] sm:$0xff]  }
  0x60   : > { %v1659_v51 = vpack.c.b16 %v1658_v46, %v1644_v58  ;;  %v1780_v53 = vrot.slane %v1773_v2, %v2935_v21  ;;  %2705 = vmatprep.subr.bf16.mxu1 %v2839_v1  ;;  %v1794_v4 = vrot.slane %v1787_v29, %v2935_v21  ;;  %v1897_v56 = vcombine.high %v2549_v33, %v2549_v33  ;;  %v2807_v29 = vld [vmem:[%s3608_s2 + $0xc8] sm:$0xff]  }
  0x61   : > { %v1795_v55 = vunpack.c.l.b16 %v1752_v10  ;;  %v1904_v5 = vrot.slane %v2549_v33, %v2935_v21  ;;  %v1796_v48 = vunpack.c.l.b16 %v1766_v52  ;;  %v1998_v58 = vsel %vm755_vm1, %v1997_v61, %v2988_v12  ;;  %v2802_v61 = vld [vmem:[%s3608_s2 + $0xa0] sm:$0xff]  }
  0x62   : > { %2698 = vmatmul.mubr.msk.bf16.vlgmr.msra.gmra.mxu0 %vm814_vm8, %v1659_v51  ;;  %v1797_v6 = vunpack.c.l.b16 %v1780_v53  ;;  %v2003_v8 = vrot.slane %v2996_v16, 4  ;;  %v1798_v49 = vunpack.c.l.b16 %v1794_v4  ;;  %v1911_v63 = vrot.slane %v1897_v56, %v2935_v21  ;;  %v2809_v4 = vld [vmem:[%s3608_s2 + $0xc0] sm:$0xff]  }
  0x63   : > { %2714 = vmatpush3.bf16.msra.mxu0 %v2803_v35  ;;  %v1801_v60 = vrot.slane %v1795_v55, 5  ;;  %2721 = vmatprep.mubr.msk.bf16.mxu0 %vm2840_vm0, %v2839_v1  ;;  %v1912_v38 = vcombine.high %v1904_v5, %v1904_v5  ;;  %v1806_v31 = vrot.slane %v1796_v48, 1  ;;  %v1943_v62 = vrot.slane %v1904_v5, %v2935_v21 }
  0x64   : > { %2706 = vmatpush3.bf16.msra.mxu1 %v2800_v0  ;;  %v1810_v37 = vrot.slane %v1797_v6, 5  ;;  %2715 = vmatprep.subr.bf16.mxu0 %v2839_v1  ;;  %v2000_v9 = vsel %vm758_vm2, %v1999_v30, %v1998_v58  ;;  %v1815_v26 = vrot.slane %v1798_v49, 1  ;;  %v1913_v43 = vcombine.high %v1911_v63, %v1911_v63 }
  0x65   : > { %2707 = vmatprep.subr.bf16.mxu1 %v2839_v1  ;;  %v1802_v39 = vsel %vm761_vm3, %v1801_v60, %v1800_v45  ;;  %v1957_v2 = vrot.slane %v1911_v63, %v2935_v21  ;;  %v3436_v35 = vrot.slane %v1943_v62, %v2935_v21  ;;  %v1971_v10 = vrot.slane %v1912_v38, %v2935_v21  ;;  %v2806_v63 = vld [vmem:[%s3608_s2 + $0xf0] sm:$0xff]  }
  0x66   : > { %v1803_v33 = vsel %vm764_vm4, %v3322_v40, %v1802_v39  ;;  %v1811_v46 = vsel %vm761_vm3, %v1810_v37, %v1809_v54  ;;  %v1985_v50 = vrot.slane %v1913_v43, %v2935_v21  ;;  %v2002_v36 = vsel %vm761_vm3, %v2001_v32, %v2000_v9 }
  0x67   : > { %v1804_v30 = vsel %vm767_vm5, %v1641_v41, %v1803_v33  ;;  %v1812_v45 = vsel %vm764_vm4, %v3351_v57, %v1811_v46  ;;  %2716 = vmatpush3.bf16.msra.mxu0 %v2805_v34  ;;  %v3448_v40 = vrot.slane %v1957_v2, %v2935_v21  ;;  %v1978_v57 = vrot.slane %v1971_v10, %v2935_v21  ;;  %v2808_v10 = vld [vmem:[%s3608_s2 + $0xe8] sm:$0xff]  }
  0x68   : > { %2708 = vmatpush3.bf16.msra.mxu1 %v2802_v61  ;;  %v1805_v3 = vsel %vm770_vm6, %v1643_v44, %v1804_v30  ;;  %v1813_v41 = vsel %vm767_vm5, %v1655_v11, %v1812_v45  ;;  %2717 = vmatprep.subr.bf16.mxu0 %v2839_v1  ;;  %v1993_v0 = vunpack.c.l.b16 %v3436_v35  ;;  %v1992_v42 = vrot.slane %v1985_v50, %v2935_v21  ;;  %v2804_v11 = vld [vmem:[%s3608_s2 + $0xf8] sm:$0xff]  }
  0x69   : > { %v1807_v51 = vsel %vm773_vm7, %v1806_v31, %v1805_v3  ;;  %v1814_v52 = vsel %vm770_vm6, %v1657_v59, %v1813_v41  ;;  %2725 = vmatprep.subr.bf16.mxu1 %v2839_v1  ;;  %v1994_v7 = vunpack.c.l.b16 %v3448_v40  ;;  %v3471_v53 = vunpack.c.l.b16 %v1978_v57  ;;  %v2550_v40 = vld.sshfl [vmem:[%s3365_s25 + $0x4] sm:$0x1 pattern:$0x75316420]  ;;  %v2811_v3 = vld [vmem:[%s3608_s2 + $0x118] sm:$0xff]  }
  0x6a   : > { %v1816_v44 = vsel %vm773_vm7, %v1815_v26, %v1814_v52  ;;  %v2005_v59 = vrot.slane %v2998_v17, 3  ;;  %v3480_v55 = vunpack.c.l.b16 %v1992_v42  ;;  %v2004_v56 = vsel %vm764_vm4, %v2003_v8, %v2002_v36 }
  0x6b   : > { %v1817_v54 = vpack.c.b16 %v1816_v44, %v1807_v51  ;;  %2718 = vmatpush3.bf16.msra.mxu0 %v2807_v29  ;;  %v2007_v5 = vrot.slane %v3000_v18, 2  ;;  %v2009_v32 = vrot.slane %v3002_v19, 1  ;;  %v2011_v6 = vrot.slane %v3006_v22, 7 }
  0x6c   : > { %2719 = vmatprep.subr.bf16.mxu0 %v2839_v1  ;;  %v2006_v48 = vsel %vm767_vm5, %v2005_v59, %v2004_v56  ;;  %v2013_v58 = vrot.slane %v3008_v23, 6  ;;  %v2015_v60 = vrot.slane %v3010_v24, 5  ;;  %v2017_v34 = vrot.slane %v1993_v0, 4 }
  0x6d   : > { %2710 = vmatmul.mubr.msk.bf16.vlgmr.msra.gmra.mxu1 %vm814_vm8, %v1817_v54  ;;  %v2008_v49 = vsel %vm770_vm6, %v2007_v5, %v2006_v48  ;;  %v2019_v8 = vrot.slane %v1994_v7, 3  ;;  %v2012_v61 = vsel %vm755_vm1, %v2011_v6, %v3004_v20  ;;  %v2021_v31 = vrot.slane %v3471_v53, 2 }
  0x6e   : > { %2726 = vmatpush3.bf16.msra.mxu1 %v2804_v11  ;;  %v2010_v38 = vsel %vm773_vm7, %v2009_v32, %v2008_v49  ;;  %v2023_v37 = vrot.slane %v3480_v55, 1  ;;  %2733 = vmatprep.mubr.msk.bf16.mxu1 %vm2840_vm0, %v2839_v1  ;;  %v2014_v62 = vsel %vm758_vm2, %v2013_v58, %v2012_v61  ;;  %v2105_v9 = vrot.slane %v2988_v12, 1 }
  0x6f   : > { %2727 = vmatprep.subr.bf16.mxu1 %v2839_v1  ;;  %2720 = vmatpush3.bf16.msra.mxu0 %v2809_v4  ;;  %v2107_v39 = vrot.slane %v2992_v14, 7  ;;  %v2109_v26 = vrot.slane %v2994_v15, 6  ;;  %v2016_v43 = vsel %vm761_vm3, %v2015_v60, %v2014_v62  ;;  %v2111_v2 = vrot.slane %v2996_v16, 5 }
  0x70   : > { %2737 = vmatprep.subr.bf16.mxu0 %v2839_v1  ;;  %v2113_v33 = vrot.slane %v2998_v17, 4  ;;  %v2115_v46 = vrot.slane %v3000_v18, 3  ;;  %v2018_v35 = vsel %vm764_vm4, %v2017_v34, %v2016_v43  ;;  %v2106_v12 = vsel %vm755_vm1, %v2990_v13, %v2105_v9 }
  0x71   : > { %v2117_v14 = vrot.slane %v3002_v19, 2  ;;  %v2119_v15 = vrot.slane %v3004_v20, 1  ;;  %v2020_v16 = vsel %vm767_vm5, %v2019_v8, %v2018_v35  ;;  %v2108_v17 = vsel %vm758_vm2, %v2107_v39, %v2106_v12 }
  0x72   : > { %2728 = vmatpush3.bf16.msra.mxu1 %v2806_v63  ;;  %v2121_v18 = vrot.slane %v3008_v23, 7  ;;  %v2123_v30 = vrot.slane %v3010_v24, 6  ;;  %v2022_v45 = vsel %vm770_vm6, %v2021_v31, %v2020_v16  ;;  %v2110_v19 = vsel %vm761_vm3, %v2109_v26, %v2108_v17 }
  0x73   : > { %2729 = vmatprep.subr.bf16.mxu1 %v2839_v1  ;;  %v2120_v20 = vsel %vm755_vm1, %v3006_v22, %v2119_v15  ;;  %v2125_v29 = vrot.slane %v1993_v0, 5  ;;  %v2024_v50 = vsel %vm773_vm7, %v2023_v37, %v2022_v45  ;;  %v2112_v23 = vsel %vm764_vm4, %v2111_v2, %v2110_v19  ;;  %v2810_v0 = vld [vmem:[%s3608_s2 + $0xe0] sm:$0xff]  }
  0x74   : > { %v2122_v24 = vsel %vm758_vm2, %v2121_v18, %v2120_v20  ;;  %v2127_v41 = vrot.slane %v1994_v7, 4  ;;  %v2025_v57 = vpack.c.b16 %v2024_v50, %v2010_v38  ;;  %v2114_v51 = vsel %vm767_vm5, %v2113_v33, %v2112_v23  ;;  %v2814_v37 = vld [vmem:[%s3608_s2 + $0x100] sm:$0xff]  }
  0x75   : > { %v2124_v52 = vsel %vm761_vm3, %v2123_v30, %v2122_v24  ;;  %v2129_v42 = vrot.slane %v3471_v53, 3  ;;  %v2116_v44 = vsel %vm770_vm6, %v2115_v46, %v2114_v51  ;;  %v2131_v36 = vrot.slane %v3480_v55, 2  ;;  %v2812_v55 = vld [vmem:[%s3608_s2 + $0x110] sm:$0xff]  }
  0x76   : > { %2730 = vmatpush3.bf16.msra.mxu1 %v2808_v10  ;;  %v2126_v11 = vsel %vm764_vm4, %v2125_v29, %v2124_v52  ;;  %v1927_v7 = vrot.slane %v2550_v40, %v2935_v21  ;;  %v2239_v59 = vrot.slane %v3146_v28, 5  ;;  %2722 = vmatmul.mubr.msk.bf16.vlgmr.msra.gmra.mxu0 %vm814_vm8, %v2025_v57  ;;  %v2118_v53 = vsel %vm773_vm7, %v2117_v14, %v2116_v44 }
  0x77   : > { %2731 = vmatprep.subr.bf16.mxu1 %v2839_v1  ;;  %v2128_v54 = vsel %vm767_vm5, %v2127_v41, %v2126_v11  ;;  %v2228_v4 = vsel %vm755_vm1, %v2107_v39, %v2990_v13  ;;  %2738 = vmatpush3.bf16.msra.mxu0 %v2811_v3  ;;  %v2235_v32 = vrot.slane %v3144_v25, 1  ;;  %v2237_v6 = vsel %vm755_vm1, %v2121_v18, %v3006_v22 }
  0x78   : > { %v2130_v56 = vsel %vm770_vm6, %v2129_v42, %v2128_v54  ;;  %2745 = vmatprep.mubr.msk.bf16.mxu0 %vm2840_vm0, %v2839_v1  ;;  %v2219_v28 = vrot.slane %v1927_v7, %v2935_v21  ;;  %v2229_v5 = vsel %vm758_vm2, %v2109_v26, %v2228_v4  ;;  %2739 = vmatprep.subr.bf16.mxu0 %v2839_v1 }
  0x79   : > { %v2132_v48 = vsel %vm773_vm7, %v2131_v36, %v2130_v56  ;;  %v2231_v13 = vsel %vm761_vm3, %v2230_v47, %v2229_v5  ;;  %v2238_v34 = vsel %vm758_vm2, %v2123_v30, %v2237_v6  ;;  %v2590_v6 = vld [vmem:[%s3609_s3] ss:$0 sm:$0xff] }
  0x7a   : > { %2732 = vmatpush3.bf16.msra.mxu1 %v2810_v0  ;;  %v2133_v58 = vpack.c.b16 %v2132_v48, %v2118_v53  ;;  %v2226_v49 = vrot.slane %v2219_v28, %v2935_v21  ;;  %v2232_v60 = vsel %vm764_vm4, %v2113_v33, %v2231_v13  ;;  %v2240_v63 = vsel %vm761_vm3, %v2239_v59, %v2238_v34 }
  0x7b   : > { %v2233_v8 = vsel %vm767_vm5, %v2115_v46, %v2232_v60  ;;  %2740 = vmatpush3.bf16.msra.mxu0 %v2812_v55  ;;  %v2241_v47 = vsel %vm764_vm4, %v2127_v41, %v2240_v63 }
  0x7c   : > { %v2227_v25 = vunpack.c.l.b16 %v2226_v49  ;;  %v2234_v22 = vsel %vm770_vm6, %v2117_v14, %v2233_v8  ;;  %2741 = vmatprep.subr.bf16.mxu0 %v2839_v1  ;;  %v2242_v38 = vsel %vm767_vm5, %v2129_v42, %v2241_v47 }
  0x7d   : > { %2734 = vmatmul.mubr.msk.bf16.vlgmr.msra.gmra.mxu1 %vm814_vm8, %v2133_v58  ;;  %v2236_v21 = vsel %vm773_vm7, %v2235_v32, %v2234_v22  ;;  %v2243_v61 = vsel %vm770_vm6, %v2131_v36, %v2242_v38 }
  0x7e   : > { %v2244_v31 = vrot.slane %v2227_v25, 1 }
  0x7f   : > { %2742 = vmatpush3.bf16.msra.mxu0 %v2813_v27 }
  0x80   : > { %v2245_v62 = vsel %vm773_vm7, %v2244_v31, %v2243_v61  ;;  %2743 = vmatprep.subr.bf16.mxu0 %v2839_v1 }
  0x81   : > { %v2246_v9 = vpack.c.b16 %v2245_v62, %v2236_v21 }
  0x83   : > { %2744 = vmatpush3.bf16.msra.mxu0 %v2814_v37 }
  0x86   : > { %2746 = vmatmul.mubr.msk.bf16.vlgmr.msra.gmra.mxu0 %vm814_vm8, %v2246_v9 }
  0xf1   : > { %v852_v39 = vpop.f32.mrf.mxu0 }
  0xf3   : > { %v2651_v26 = vpop.f32.mrf.mxu0 }
  0xf5   : > { %v855_v43 = vpop.f32.mrf.mxu0 }
  0xf7   : > { %v2652_v2 = vpop.f32.mrf.mxu0 }
  0xf9   : > { %v949_v33 = vpop.f32.mrf.mxu1 }
  0xfa   : > { %v950_v46 = vadd.f32 %v949_v33, %v852_v39 }
  0xfb   : > { %v2663_v35 = vpop.f32.mrf.mxu1 }
  0xfd   : > { %v952_v12 = vpop.f32.mrf.mxu1 }
  0xfe   : > { %v953_v14 = vadd.f32 %v952_v12, %v855_v43 }
  0xff   : > { %v2664_v15 = vpop.f32.mrf.mxu1 }
 0x103   : > { %v1105_v10 = vpop.f32.mrf.mxu0 }
 0x104   : > { %v1112_v57 = vadd.f32 %v1105_v10, %v950_v46 }
 0x105   : > { %v2675_v16 = vpop.f32.mrf.mxu0 }
 0x107   : > { %v1108_v17 = vpop.f32.mrf.mxu0 }
 0x108   : > { %v1113_v0 = vadd.f32 %v1108_v17, %v953_v14 }
 0x109   : > { %v2676_v18 = vpop.f32.mrf.mxu0 }
 0x11a   : > { %v1613_v30 = vpop.f32.mrf.mxu1 }
 0x11b   : > { %v1620_v42 = vadd.f32 %v1613_v30, %v1112_v57 }
 0x11c   : > { %v2687_v1 = vpop.f32.mrf.mxu1 }
 0x11e   : > { %v1616_v45 = vpop.f32.mrf.mxu1 }
 0x11f   : > { %v1621_v59 = vadd.f32 %v1616_v45, %v1113_v0 }
 0x120   : > { %v2688_v19 = vpop.f32.mrf.mxu1 }
 0x122   : > { %v1721_v20 = vpop.f32.mrf.mxu0 }
 0x123   : > { %v1728_v11 = vadd.f32 %v1721_v20, %v1620_v42 }
 0x124   : > { %v2699_v29 = vpop.f32.mrf.mxu0 }
 0x126   : > { %v1724_v40 = vpop.f32.mrf.mxu0 }
 0x127   : > { %v1729_v4 = vadd.f32 %v1724_v40, %v1621_v59 }
 0x128   : > { %v2700_v50 = vpop.f32.mrf.mxu0 }
 0x12d   : > { %v1879_v3 = vpop.f32.mrf.mxu1 }
 0x12e   : > { %v1886_v54 = vadd.f32 %v1879_v3, %v1728_v11 }
 0x12f   : > { %v2711_v23 = vpop.f32.mrf.mxu1 }
 0x131   : > { %v1882_v24 = vpop.f32.mrf.mxu1 }
 0x132   : > { %v1887_v5 = vadd.f32 %v1882_v24, %v1729_v4 }
 0x133   : > { %v2712_v41 = vpop.f32.mrf.mxu1 }
 0x136   : > { %v2087_v51 = vpop.f32.mrf.mxu0 }
 0x137   : > { %v2094_v55 = vadd.f32 %v2087_v51, %v1886_v54 }
 0x138   : > { %v2723_v52 = vpop.f32.mrf.mxu0 }
 0x13a   : > { %v2090_v44 = vpop.f32.mrf.mxu0 }
 0x13b   : > { %v2095_v13 = vadd.f32 %v2090_v44, %v1887_v5 }
 0x13c   : > { %v2724_v7 = vpop.f32.mrf.mxu0 }
 0x13d   : > { %v2195_v36 = vpop.f32.mrf.mxu1 }
 0x13e   : > { %v2202_v48 = vadd.f32 %v2195_v36, %v2094_v55 }
 0x13f   : > { %v2735_v53 = vpop.f32.mrf.mxu1 }
 0x141   : > { %v2198_v56 = vpop.f32.mrf.mxu1 }
 0x142   : > { %v2203_v60 = vadd.f32 %v2198_v56, %v2095_v13 }
 0x143   : > { %v2736_v28 = vpop.f32.mrf.mxu1 }
 0x146   : > { %v2308_v32 = vpop.f32.mrf.mxu0 }
 0x147   : > { %v2315_v58 = vadd.f32 %v2308_v32, %v2202_v48 }
 0x148   : > { %v2747_v49 = vpop.f32.mrf.mxu0 }
 0x149   : > { %v2324_v34 = vadd.f32 %v2590_v6, %v2315_v58 }
 0x14a   : > { %v2311_v8 = vpop.f32.mrf.mxu0 }
 0x14b   : > { %v2326_v63 = vmax.f32 %v2324_v34, 0.0  ;;  %v2316_v27 = vadd.f32 %v2311_v8, %v2203_v60 }
 0x14c   : > { %v2748_v25 = vpop.f32.mrf.mxu0 }
 0x14d   : > { %v2330_v22 = vcombine.high %v2326_v63, %v2326_v63  ;;  %v2334_v47 = vpack.c.bf16 %v2326_v63, %v2326_v63  ;;  %v2325_v21 = vadd.f32 %v2590_v6, %v2316_v27 }
 0x14f   : > { %v2335_v38 = vpack.c.bf16 %v2330_v22, %v2330_v22  ;;  %2339 = vst.msk [vmem:[%s316_s14] sm:$0x3] %vm2338_vm9, %v2334_v47  ;;  %v2327_v61 = vmax.f32 %v2325_v21, 0.0 }
 0x151   : > { %2340 = vst.msk [vmem:[%s316_s14 + $0x2] sm:$0x3] %vm2338_vm9, %v2335_v38  ;;  %v2331_v31 = vcombine.high %v2327_v61, %v2327_v61  ;;  %v2336_v37 = vpack.c.bf16 %v2327_v61, %v2327_v61 }
 0x153   : > { %v2337_v62 = vpack.c.bf16 %v2331_v31, %v2331_v31  ;;  %2341 = vst.msk [vmem:[%s316_s14 + $0x4] sm:$0x3] %vm2338_vm9, %v2336_v37 }
 0x155   : > { %2342 = vst.msk [vmem:[%s316_s14 + $0x6] sm:$0x3] %vm2338_vm9, %v2337_v62 }
 0x156 PF: > { %s14_s17 = sadd.s32 1, %s2837_s17   ;;  %s3611_s15 = smov %s2833_s16 }
 0x157   : > { %p11_p5 = scmp.ge.s32.totalorder %s14_s17, 4   ;;  %s3612_s16 = smov %s3614_s18 }
 0x159   :  { %13 = sbr.rel (!%p11_p5) target bundleno = 2 (0x2), region = 77 }

// kernel: tile.8
= control target key start
LH: loop header
LB: loop body
LE: loop exit
PB: predicated region body
PF: predicated region fallthrough
CT: control target
= control target key end

     0   :  { %s22_s0 = inlined_call_operand.vmem [shape: f32[64], index: 0, kind: input, shape index: {}]   ;;  %s23_s1 = inlined_call_operand.vmem [shape: f32[4,64], index: 1, kind: output, shape index: {}]  }
   0x1   :  { %v4_v0 = vld [vmem:[%s22_s0] ss:$0 sm:$0xff] }
   0x2   :  { %5 = vst [vmem:[%s23_s1] sm:$0xf] %v4_v0 }

// kernel: tile.9
= control target key start
LH: loop header
LB: loop body
LE: loop exit
PB: predicated region body
PF: predicated region fallthrough
CT: control target
= control target key end

     0   :  { %s7_s8 = smov 3  ;;  %vm9_vm0 = vcmask 523264   ;;  %s34_s9 = smov 64   ;;  %vm16_vm1 = vcmask 1048064   ;;  %s54_s0 = inlined_call_operand.vmem [shape: f32[4,64], index: 0, kind: input, shape index: {}]   ;;  %s55_s1 = inlined_call_operand.vmem [shape: f32[1,256], index: 1, kind: output, shape index: {}]  }
   0x1   :  { %v5_v0 = vld [vmem:[%s54_s0] sm:$0xf]  ;;  %s12_s0 = smov 3 }
   0x2   :  { %6 = vst [vmem:[#allocation1] sm:$0xf] %v5_v0 }
   0x9   :  { %v13_v1 = vld [vmem:[#allocation1 + $0x1] ss:$2 sm:%s12_s0]   ;;  %v8_v2 = vld [vmem:[#allocation1] ss:$2 sm:%s7_s8]  }
   0xa   :  { %14 = vrot.lane.b32.xlu0 %v13_v1, %s34_s9  ;;  %10 = vst.msk [vmem:[#allocation0] ss:$8 sm:$0x3] %vm9_vm0, %v8_v2  }
  0x7c   :  { %v15_v3 = vpop.permute.xlu0 %14  }
  0x7d   :  { %17 = vst.msk [vmem:[#allocation0] ss:$8 sm:$0x3] %vm16_vm1, %v15_v3  }
  0x84   :  { %v22_v4 = vld [vmem:[#allocation0] sm:$0x1]  ;;  %v27_v5 = vld [vmem:[#allocation0 + $0x8] sm:$0x1] }
  0x85   :  { %25 = vst [vmem:[%s55_s1] sm:$0x1] %v22_v4  ;;  %32 = vst [vmem:[%s55_s1 + $0x1] sm:$0x1] %v27_v5 }

// kernel: forward.12
= control target key start
LH: loop header
LB: loop body
LE: loop exit
PB: predicated region body
PF: predicated region fallthrough
CT: control target
= control target key end

     0   :  { %v232_v1 = vmov 0   ;;  %vm89_vm0 = vcmask 523264   ;;  %v29_v11 = vlaneseq  ;;  %s298_s1 = inlined_call_operand.vmem [shape: bf16[64,256], index: 1, kind: input, shape index: {}]   ;;  %s299_s0 = inlined_call_operand.vmem [shape: bf16[32,64], index: 0, kind: input, shape index: {}]   ;;  %s300_s2 = inlined_call_operand.vmem [shape: f32[1,256], index: 2, kind: input, shape index: {}]   ;;  %s301_s3 = inlined_call_operand.vmem [shape: bf16[32,256], index: 3, kind: output, shape index: {}]  }
   0x1   :  { %v218_v0 = vld [vmem:[%s298_s1 + $0x34] ss:$8 sps:$4 sm:$0xff]   ;;  %128 = vmatprep.mubr.bf16.mxu0 %v232_v1  ;;  %138 = vmatprep.mubr.bf16.mxu1 %v232_v1  ;;  %v220_v2 = vld [vmem:[%s298_s1 + $0x30] ss:$8 sps:$4 sm:$0xff]   ;;  %v221_v3 = vld [vmem:[%s298_s1 + $0x24] ss:$8 sps:$4 sm:$0xff]  }
   0x2   :  { %104 = vmatprep.subr.bf16.mxu0 %v218_v0  ;;  %209 = vmatprep.subr.bf16.mxu1 %v218_v0  ;;  %v223_v4 = vld [vmem:[%s298_s1 + $0x20] ss:$8 sps:$4 sm:$0xff]   ;;  %v224_v5 = vld [vmem:[%s298_s1 + $0x14] ss:$8 sps:$4 sm:$0xff]   ;;  %v226_v6 = vld [vmem:[%s298_s1 + $0x10] ss:$8 sps:$4 sm:$0xff]  }
   0x3   :  { %105 = vmatpush1.bf16.msra.mxu0 %v220_v2  ;;  %213 = vmatpush1.bf16.msra.mxu1 %v220_v2  ;;  %v227_v7 = vld [vmem:[%s298_s1 + $0x4] ss:$8 sps:$4 sm:$0xff]   ;;  %v229_v8 = vld [vmem:[%s298_s1] ss:$8 sps:$4 sm:$0xff]   ;;  %v30_v12 = vshrl.u32 %v29_v11, 7 }
   0x4   :  { %106 = vmatprep.subr.bf16.mxu0 %v221_v3  ;;  %210 = vmatprep.subr.bf16.mxu1 %v221_v3  ;;  %v230_v9 = vld [vmem:[%s299_s0] sm:$0xff]   ;;  %v231_v10 = vld [vmem:[%s299_s0 + $0x8] sm:$0xff]  }
   0x5   :  { %v31_v13 = vsub.s32 0, %v30_v12  ;;  %v27_v14 = vld [vmem:[%s300_s2] sm:$0x3]  ;;  %v35_v15 = vsub.s32 1, %v30_v12 }
   0x7   :  { %107 = vmatpush1.bf16.msra.mxu0 %v223_v4  ;;  %214 = vmatpush1.bf16.msra.mxu1 %v223_v4  ;;  %v32_v16 = vrot.slane %v27_v14, %v31_v13  ;;  %v36_v17 = vrot.slane %v27_v14, %v35_v15 }
   0x8   :  { %108 = vmatprep.subr.bf16.mxu0 %v224_v5  ;;  %211 = vmatprep.subr.bf16.mxu1 %v224_v5 }
   0xb   :  { %109 = vmatpush1.bf16.msra.mxu0 %v226_v6  ;;  %215 = vmatpush1.bf16.msra.mxu1 %v226_v6 }
   0xc   :  { %110 = vmatprep.subr.bf16.mxu0 %v227_v7  ;;  %212 = vmatprep.subr.bf16.mxu1 %v227_v7 }
   0xf   :  { %111 = vmatpush1.bf16.msra.mxu0 %v229_v8  ;;  %216 = vmatpush1.bf16.msra.mxu1 %v229_v8 }
  0x12   :  { %199 = vmatmul.mubr.msk.bf16.vlgmr.msra.gmra.mxu0 %vm89_vm0, %v230_v9  ;;  %200 = vmatmul.mubr.msk.bf16.vlgmr.msra.gmra.mxu1 %vm89_vm0, %v231_v10 }
  0xd2   :  { %v130_v18 = vpop.f32.mrf.mxu0  ;;  %v140_v19 = vpop.f32.mrf.mxu1 }
  0xd3   :  { %v131_v20 = vadd.f32 %v130_v18, %v32_v16  ;;  %v141_v21 = vadd.f32 %v140_v19, %v32_v16 }
  0xd4   :  { %v132_v22 = vpop.f32.mrf.mxu0  ;;  %v142_v23 = vpop.f32.mrf.mxu1 }
  0xd5   :  { %v133_v24 = vadd.f32 %v132_v22, %v36_v17  ;;  %v143_v25 = vadd.f32 %v142_v23, %v36_v17  ;;  %v149_v28 = vmax.f32 %v131_v20, 0.0  ;;  %v153_v29 = vmax.f32 %v141_v21, 0.0 }
  0xd6   :  { %v134_v26 = vpop.f32.mrf.mxu0  ;;  %v144_v27 = vpop.f32.mrf.mxu1 }
  0xd7   :  { %v150_v30 = vmax.f32 %v133_v24, 0.0  ;;  %v154_v31 = vmax.f32 %v143_v25, 0.0  ;;  %v135_v32 = vadd.f32 %v134_v26, %v32_v16  ;;  %v145_v33 = vadd.f32 %v144_v27, %v32_v16 }
  0xd8   :  { %v136_v34 = vpop.f32.mrf.mxu0  ;;  %v146_v35 = vpop.f32.mrf.mxu1 }
  0xd9   :  { %v205_v36 = vpack.c.bf16 %v150_v30, %v149_v28  ;;  %v207_v37 = vpack.c.bf16 %v154_v31, %v153_v29  ;;  %v137_v38 = vadd.f32 %v136_v34, %v36_v17  ;;  %v147_v39 = vadd.f32 %v146_v35, %v36_v17 }
  0xda   :  { %v151_v40 = vmax.f32 %v135_v32, 0.0  ;;  %v155_v41 = vmax.f32 %v145_v33, 0.0 }
  0xdb   :  { %181 = vst [vmem:[%s301_s3] sm:$0xff] %v205_v36  ;;  %183 = vst [vmem:[%s301_s3 + $0x10] sm:$0xff] %v207_v37  ;;  %v152_v42 = vmax.f32 %v137_v38, 0.0  ;;  %v156_v43 = vmax.f32 %v147_v39, 0.0 }
  0xdd   :  { %v206_v44 = vpack.c.bf16 %v152_v42, %v151_v40  ;;  %v208_v45 = vpack.c.bf16 %v156_v43, %v155_v41 }
  0xdf   :  { %182 = vst [vmem:[%s301_s3 + $0x8] sm:$0xff] %v206_v44  ;;  %184 = vst [vmem:[%s301_s3 + $0x18] sm:$0xff] %v208_v45 }

// kernel: forward.13
= control target key start
LH: loop header
LB: loop body
LE: loop exit
PB: predicated region body
PF: predicated region fallthrough
CT: control target
= control target key end

     0   :  { %vm122_vm0 = vcmask 523264   ;;  %s855_s30 = smov 64   ;;  %s1102_s0 = inlined_call_operand.vmem [shape: bf16[128,64], index: 0, kind: input, shape index: {}]   ;;  %s1103_s1 = inlined_call_operand.vmem [shape: bf16[128,64], index: 1, kind: input, shape index: {}]   ;;  %s1104_s2 = inlined_call_operand.vmem [shape: bf16[64,64], index: 2, kind: input, shape index: {}]   ;;  %s1105_s3 = inlined_call_operand.vmem [shape: f32[1,64], index: 3, kind: input, shape index: {}]   ;;  %s1106_s4 = inlined_call_operand.vmem [shape: bf16[128,128], index: 4, kind: input, shape index: {}]   ;;  %s1107_s5 = inlined_call_operand.vmem [shape: f32[1,128], index: 5, kind: input, shape index: {}]   ;;  %s1108_s6 = inlined_call_operand.hbm [shape: f32[128,128], index: 6, kind: output, shape index: {0}]   ;;  %s1109_s7 = inlined_call_operand.vmem [shape: f32[128,128], index: 7, kind: output, shape index: {1}]  }
   0x1   :  { %v813_v0 = vld [vmem:[%s1104_s2 + $0x18] sm:$0xff]   ;;  %v814_v1 = vld [vmem:[%s1104_s2 + $0x10] sm:$0xff]   ;;  %v815_v2 = vld [vmem:[%s1104_s2 + $0x8] sm:$0xff]  }
   0x2   :  { %697 = vmatprep.subr.bf16.mxu0 %v813_v0  ;;  %v817_v3 = vld [vmem:[%s1102_s0] sm:$0xff]   ;;  %v663_v5 = vld [vmem:[%s1103_s1 + $0x10] sm:$0xff]   ;;  %v664_v6 = vld [vmem:[%s1103_s1 + $0x18] sm:$0xff]  }
   0x3   :  { %698 = vmatpush3.bf16.msra.mxu0 %v813_v0  ;;  %705 = vmatprep.mubr.msk.bf16.mxu0 %vm122_vm0, %v817_v3  ;;  %v816_v4 = vld [vmem:[%s1104_s2] sm:$0xff]   ;;  %v818_v7 = vld [vmem:[%s1102_s0 + $0x8] sm:$0xff]   ;;  %v640_v8 = vunpack.c.l.bf16 %v663_v5  ;;  %v641_v9 = vunpack.c.h.bf16 %v663_v5  ;;  %v644_v10 = vunpack.c.l.bf16 %v664_v6  ;;  %v645_v11 = vunpack.c.h.bf16 %v664_v6  ;;  %v819_v14 = vld [vmem:[%s1102_s0 + $0x10] sm:$0xff]  }
   0x4   :  { %699 = vmatprep.subr.bf16.mxu0 %v814_v1  ;;  %v665_v12 = vld [vmem:[%s1103_s1 + $0x20] sm:$0xff]   ;;  %v666_v13 = vld [vmem:[%s1103_s1 + $0x28] sm:$0xff]   ;;  %v825_v19 = vld [vmem:[%s1106_s4 + $0x38] sm:$0xff]  }
   0x5   :  { %v631_v15 = vld [vmem:[%s1103_s1] sm:$0xff]   ;;  %v773_v16 = vpack.i.bf16 %v641_v9, %v640_v8  ;;  %v648_v17 = vunpack.c.l.bf16 %v665_v12  ;;  %v649_v18 = vunpack.c.h.bf16 %v665_v12  ;;  %v662_v20 = vld [vmem:[%s1103_s1 + $0x8] sm:$0xff]   ;;  %v652_v21 = vunpack.c.l.bf16 %v666_v13  ;;  %v667_v23 = vld [vmem:[%s1103_s1 + $0x30] sm:$0xff]   ;;  %753 = vmatprep.subr.bf16.mxu1 %v825_v19 }
   0x6   :  { %v653_v22 = vunpack.c.h.bf16 %v666_v13  ;;  %v778_v24 = vpack.i.bf16 %v645_v11, %v644_v10  ;;  %v632_v25 = vunpack.c.l.bf16 %v631_v15  ;;  %v633_v26 = vunpack.c.h.bf16 %v631_v15  ;;  %v826_v28 = vld [vmem:[%s1106_s4 + $0x30] sm:$0xff]   ;;  %v668_v29 = vld [vmem:[%s1103_s1 + $0x38] sm:$0xff]   ;;  %v827_v33 = vld [vmem:[%s1106_s4 + $0x28] sm:$0xff]   ;;  %761 = vmatpush3.bf16.msra.mxu1 %v825_v19 }
   0x7   :  { %700 = vmatpush3.bf16.msra.mxu0 %v814_v1  ;;  %774 = vrot.lane.b32.xlu0 %v773_v16, %s855_s30  ;;  %v783_v27 = vpack.i.bf16 %v649_v18, %v648_v17  ;;  %v656_v31 = vunpack.c.l.bf16 %v667_v23  ;;  %v657_v32 = vunpack.c.h.bf16 %v667_v23  ;;  %v636_v35 = vunpack.c.l.bf16 %v662_v20 }
   0x8   :  { %701 = vmatprep.subr.bf16.mxu0 %v815_v2  ;;  %v788_v30 = vpack.i.bf16 %v653_v22, %v652_v21  ;;  %v793_v34 = vpack.i.bf16 %v633_v26, %v632_v25  ;;  %v637_v36 = vunpack.c.h.bf16 %v662_v20 }
   0x9   :  { %784 = vrot.lane.b32.xlu1 %v783_v27, %s855_s30 }
   0xb   :  { %702 = vmatpush3.bf16.msra.mxu0 %v815_v2  ;;  %779 = vrot.lane.b32.xlu0 %v778_v24, %s855_s30 }
   0xc   :  { %703 = vmatprep.subr.bf16.mxu0 %v816_v4 }
   0xf   :  { %704 = vmatpush3.bf16.msra.mxu0 %v816_v4 }
  0x10   :  { %721 = vmatprep.subr.bf16.mxu0 %v825_v19 }
  0x12   :  { %706 = vmatmul.mubr.msk.bf16.vlgmr.msra.gmra.mxu0 %vm122_vm0, %v818_v7 }
  0x13   :  { %709 = vmatprep.mubr.msk.bf16.mxu0 %vm122_vm0, %v819_v14  ;;  %722 = vmatpush3.bf16.msra.mxu0 %v825_v19 }
  0x14   :  { %723 = vmatprep.subr.bf16.mxu0 %v826_v28 }
  0x15   :  { %13 = vsyncpa [#allocation3], 0  ;;  %v820_v37 = vld [vmem:[%s1102_s0 + $0x18] sm:$0xff]   ;;  %754 = vmatprep.subr.bf16.mxu1 %v826_v28  ;;  %v821_v38 = vld [vmem:[%s1102_s0 + $0x20] sm:$0xff]   ;;  %789 = vrot.lane.b32.xlu1 %v788_v30, %s855_s30  ;;  %v798_v39 = vpack.i.bf16 %v657_v32, %v656_v31  ;;  %v660_v40 = vunpack.c.l.bf16 %v668_v29  ;;  %v661_v41 = vunpack.c.h.bf16 %v668_v29  ;;  %v803_v42 = vpack.i.bf16 %v637_v36, %v636_v35 }
  0x16   :  { %762 = vmatpush3.bf16.msra.mxu1 %v826_v28  ;;  %794 = vrot.lane.b32.xlu0 %v793_v34, %s855_s30  ;;  %v828_v43 = vld [vmem:[%s1106_s4 + $0x20] sm:$0xff]   ;;  %v829_v45 = vld [vmem:[%s1106_s4 + $0x18] sm:$0xff]   ;;  %v822_v46 = vld [vmem:[%s1102_s0 + $0x28] sm:$0xff]  }
  0x17   :  { %724 = vmatpush3.bf16.msra.mxu0 %v826_v28  ;;  %755 = vmatprep.subr.bf16.mxu1 %v827_v33  ;;  %v808_v44 = vpack.i.bf16 %v661_v41, %v660_v40  ;;  %v823_v47 = vld [vmem:[%s1102_s0 + $0x30] sm:$0xff]   ;;  %v824_v48 = vld [vmem:[%s1102_s0 + $0x38] sm:$0xff]   ;;  %v831_v50 = vld [vmem:[%s1106_s4 + $0x8] sm:$0xff]  }
  0x18   :  { %725 = vmatprep.subr.bf16.mxu0 %v827_v33  ;;  %v830_v49 = vld [vmem:[%s1106_s4 + $0x10] sm:$0xff]   ;;  %v832_v51 = vld [vmem:[%s1106_s4] sm:$0xff]  }
  0x19   :  { %799 = vrot.lane.b32.xlu1 %v798_v39, %s855_s30  ;;  %v1004_v55 = vld [vmem:[%s1105_s3] ss:$0 sm:$0xff]  ;;  %s856_s3 = smov [#allocation2]  }
  0x1a   :  { %710 = vmatmul.mubr.msk.bf16.gmra.mxu0 %vm122_vm0, %v820_v37  ;;  %763 = vmatpush3.bf16.msra.mxu1 %v827_v33  ;;  %s585_s4 = sshll.u32 %s856_s3, 4  ;;  %s586_s4 = int_to_ptr.vmem [resolvable:$true] %s585_s4 }
  0x1b   :  { %713 = vmatprep.mubr.msk.bf16.mxu0 %vm122_vm0, %v821_v38  ;;  %726 = vmatpush3.bf16.msra.mxu0 %v827_v33  ;;  %s833_s10 = scalar_lea.vmem %s586_s4, 2048  ;;  %p838_p1 = scmp.lt.s32.totalorder %s586_s4, %s586_s4 }
  0x1c   :  { %804 = vrot.lane.b32.xlu0 %v803_v42, %s855_s30  ;;  %727 = vmatprep.subr.bf16.mxu0 %v828_v43  ;;  %p834_p0 = scmp.ne.s32.totalorder %s586_s4, %s833_s10  ;;  %p839_p2 = scmp.lt.s32.totalorder %s833_s10, %s833_s10 }
  0x1d   :  { %756 = vmatprep.subr.bf16.mxu1 %v828_v43  ;;  %809 = vrot.lane.b32.xlu1 %v808_v44, %s855_s30 }
  0x1e   :  { %764 = vmatpush3.bf16.msra.mxu1 %v828_v43  ;;  %p840_p3 = por %p839_p2, %p838_p1 }
  0x1f   :  { %728 = vmatpush3.bf16.msra.mxu0 %v828_v43  ;;  %757 = vmatprep.subr.bf16.mxu1 %v829_v45 }
  0x20   :  { %729 = vmatprep.subr.bf16.mxu0 %v829_v45  ;;  %p841_p4 = pnand %p840_p3, %p834_p0 }
  0x22   :  { %714 = vmatmul.mubr.msk.bf16.gmra.mxu0 %vm122_vm0, %v822_v46  ;;  %765 = vmatpush3.bf16.msra.mxu1 %v829_v45 }
  0x23   :  { %717 = vmatprep.mubr.msk.bf16.mxu0 %vm122_vm0, %v823_v47  ;;  %730 = vmatpush3.bf16.msra.mxu0 %v829_v45 }
  0x24   :  { %731 = vmatprep.subr.bf16.mxu0 %v830_v49  ;;  %758 = vmatprep.subr.bf16.mxu1 %v830_v49 }
  0x26   :  { %766 = vmatpush3.bf16.msra.mxu1 %v830_v49 }
  0x27   :  { %732 = vmatpush3.bf16.msra.mxu0 %v830_v49  ;;  %759 = vmatprep.subr.bf16.mxu1 %v831_v50 }
  0x28   :  { %733 = vmatprep.subr.bf16.mxu0 %v831_v50 }
  0x2a   :  { %718 = vmatmul.mubr.msk.bf16.gmra.mxu0 %vm122_vm0, %v824_v48  ;;  %767 = vmatpush3.bf16.msra.mxu1 %v831_v50 }
  0x2b   :  { %734 = vmatpush3.bf16.msra.mxu0 %v831_v50  ;;  %760 = vmatprep.subr.bf16.mxu1 %v832_v51 }
  0x2c   :  { %735 = vmatprep.subr.bf16.mxu0 %v832_v51 }
  0x2e   :  { %768 = vmatpush3.bf16.msra.mxu1 %v832_v51 }
  0x2f   :  { %736 = vmatpush3.bf16.msra.mxu0 %v832_v51 }
  0x79   :  { %v999_v52 = vpop.permute.xlu0 %774 }
  0x7a   :  { %v776_v18 = vunpack.i.l.bf16 %v999_v52  ;;  %v777_v33 = vunpack.i.h.bf16 %v999_v52 }
  0x7b   :  { %v1008_v1 = vpop.permute.xlu1 %784 }
  0x7c   :  { %v786_v41 = vunpack.i.l.bf16 %v1008_v1 }
  0x7d   :  { %v780_v53 = vpop.permute.xlu0 %779 }
  0x7e   :  { %v781_v12 = vunpack.i.l.bf16 %v780_v53  ;;  %v782_v22 = vunpack.i.h.bf16 %v780_v53 }
  0x87   :  { %v790_v17 = vpop.permute.xlu1 %789 }
  0x88   :  { %v795_v54 = vpop.permute.xlu0 %794  ;;  %v791_v38 = vunpack.i.l.bf16 %v790_v17  ;;  %v792_v45 = vunpack.i.h.bf16 %v790_v17 }
  0x89   :  { %v796_v61 = vunpack.i.l.bf16 %v795_v54  ;;  %v797_v7 = vunpack.i.h.bf16 %v795_v54 }
  0x8b   :  { %v1024_v35 = vpop.permute.xlu1 %799 }
  0x8e   :  { %v805_v56 = vpop.permute.xlu0 %804 }
  0x8f   :  { %v806_v59 = vunpack.i.l.bf16 %v805_v56  ;;  %v807_v2 = vunpack.i.h.bf16 %v805_v56  ;;  %v810_v53 = vpop.permute.xlu1 %809 }
  0xd2   :  { %v707_v57 = vpop.f32.mrf.mxu0 }
  0xd3   :  { %v190_v58 = vadd.f32 %v707_v57, %v1004_v55 }
  0xd4   :  { %v181_v60 = vpop.f32.mrf.mxu0 }
  0xd5   :  { %v246_v62 = vmax.f32 %v190_v58, 0.0  ;;  %v182_v63 = vadd.f32 %v1004_v55, %v181_v60  ;;  %v787_v58 = vunpack.i.h.bf16 %v1008_v1 }
  0xd6   :  { %v708_v0 = vpop.f32.mrf.mxu0 }
  0xd7   :  { %v358_v3 = vsel %vm122_vm0, %v246_v62, %v806_v59  ;;  %v244_v4 = vmax.f32 %v182_v63, 0.0  ;;  %v193_v5 = vadd.f32 %v708_v0, %v1004_v55  ;;  %v811_v62 = vunpack.i.l.bf16 %v810_v53 }
  0xd8   :  { %374 = vst [vmem:[#allocation2 + $0x10] sm:$0xff] %v358_v3  ;;  %v184_v6 = vpop.f32.mrf.mxu0 }
  0xd9   :  { %v247_v8 = vmax.f32 %v193_v5, 0.0  ;;  %v185_v9 = vadd.f32 %v1004_v55, %v184_v6  ;;  %v356_v10 = vsel %vm122_vm0, %v244_v4, %v796_v61  ;;  %v812_v6 = vunpack.i.h.bf16 %v810_v53 }
  0xda   :  { %v711_v11 = vpop.f32.mrf.mxu0  ;;  %372 = vst [vmem:[#allocation2] sm:$0xff] %v356_v10 }
  0xdb   :  { %v359_v13 = vsel %vm122_vm0, %v247_v8, %v807_v2  ;;  %v245_v14 = vmax.f32 %v185_v9, 0.0  ;;  %v206_v15 = vadd.f32 %v711_v11, %v1004_v55  ;;  %v801_v2 = vunpack.i.l.bf16 %v1024_v35 }
  0xdc   :  { %375 = vst [vmem:[#allocation2 + $0x18] sm:$0xff] %v359_v13  ;;  %v197_v16 = vpop.f32.mrf.mxu0  ;;  %v389_v25 = vpack.c.bf16 %v359_v13, %v358_v3 }
  0xdd   :  { %v250_v19 = vmax.f32 %v206_v15, 0.0  ;;  %v198_v20 = vadd.f32 %v1004_v55, %v197_v16  ;;  %v357_v21 = vsel %vm122_vm0, %v245_v14, %v797_v7  ;;  %v802_v16 = vunpack.i.h.bf16 %v1024_v35 }
  0xde   :  { %v712_v23 = vpop.f32.mrf.mxu0  ;;  %373 = vst [vmem:[#allocation2 + $0x8] sm:$0xff] %v357_v21  ;;  %v388_v24 = vpack.c.bf16 %v357_v21, %v356_v10 }
  0xdf   :  { %v248_v26 = vmax.f32 %v198_v20, 0.0  ;;  %v209_v27 = vadd.f32 %v712_v23, %v1004_v55  ;;  %v362_v28 = vsel %vm122_vm0, %v250_v19, %v781_v12 }
  0xe0   :  { %v200_v29 = vpop.f32.mrf.mxu0  ;;  %737 = vmatprep.mubr.bf16.mxu0 %v388_v24  ;;  %378 = vst [vmem:[#allocation2 + $0x30] sm:$0xff] %v362_v28 }
  0xe1   :  { %v251_v30 = vmax.f32 %v209_v27, 0.0  ;;  %v201_v31 = vadd.f32 %v1004_v55, %v200_v29  ;;  %738 = vmatmul.mubr.bf16.vlgmr.msra.gmra.mxu0 %v389_v25  ;;  %v360_v32 = vsel %vm122_vm0, %v248_v26, %v776_v18 }
  0xe2   :  { %v715_v34 = vpop.f32.mrf.mxu0  ;;  %376 = vst [vmem:[#allocation2 + $0x20] sm:$0xff] %v360_v32 }
  0xe3   :  { %v249_v36 = vmax.f32 %v201_v31, 0.0  ;;  %v222_v37 = vadd.f32 %v715_v34, %v1004_v55  ;;  %v363_v39 = vsel %vm122_vm0, %v251_v30, %v782_v22 }
  0xe4   :  { %v213_v40 = vpop.f32.mrf.mxu0  ;;  %379 = vst [vmem:[#allocation2 + $0x38] sm:$0xff] %v363_v39  ;;  %v391_v50 = vpack.c.bf16 %v363_v39, %v362_v28 }
  0xe5   :  { %v254_v42 = vmax.f32 %v222_v37, 0.0  ;;  %v214_v43 = vadd.f32 %v1004_v55, %v213_v40  ;;  %v361_v44 = vsel %vm122_vm0, %v249_v36, %v777_v33 }
  0xe6   :  { %v716_v46 = vpop.f32.mrf.mxu0  ;;  %377 = vst [vmem:[#allocation2 + $0x28] sm:$0xff] %v361_v44  ;;  %v390_v47 = vpack.c.bf16 %v361_v44, %v360_v32 }
  0xe7   :  { %v252_v48 = vmax.f32 %v214_v43, 0.0  ;;  %v225_v49 = vadd.f32 %v716_v46, %v1004_v55  ;;  %v366_v51 = vsel %vm122_vm0, %v254_v42, %v791_v38 }
  0xe8   :  { %v216_v52 = vpop.f32.mrf.mxu0  ;;  %741 = vmatprep.mubr.bf16.mxu1 %v390_v47  ;;  %382 = vst [vmem:[#allocation2 + $0x50] sm:$0xff] %v366_v51 }
  0xe9   :  { %v255_v54 = vmax.f32 %v225_v49, 0.0  ;;  %v217_v56 = vadd.f32 %v1004_v55, %v216_v52  ;;  %742 = vmatmul.mubr.bf16.vlgmr.msra.gmra.mxu1 %v391_v50  ;;  %v364_v57 = vsel %vm122_vm0, %v252_v48, %v786_v41 }
  0xea   :  { %v719_v59 = vpop.f32.mrf.mxu0  ;;  %380 = vst [vmem:[#allocation2 + $0x40] sm:$0xff] %v364_v57 }
  0xeb   :  { %v253_v60 = vmax.f32 %v217_v56, 0.0  ;;  %v238_v61 = vadd.f32 %v719_v59, %v1004_v55  ;;  %v367_v63 = vsel %vm122_vm0, %v255_v54, %v792_v45 }
  0xec   :  { %v229_v0 = vpop.f32.mrf.mxu0  ;;  %383 = vst [vmem:[#allocation2 + $0x58] sm:$0xff] %v367_v63  ;;  %v393_v10 = vpack.c.bf16 %v367_v63, %v366_v51 }
  0xed   :  { %v258_v3 = vmax.f32 %v238_v61, 0.0  ;;  %v230_v4 = vadd.f32 %v1004_v55, %v229_v0  ;;  %v365_v5 = vsel %vm122_vm0, %v253_v60, %v787_v58 }
  0xee   :  { %v720_v7 = vpop.f32.mrf.mxu0  ;;  %381 = vst [vmem:[#allocation2 + $0x48] sm:$0xff] %v365_v5  ;;  %v392_v1 = vpack.c.bf16 %v365_v5, %v364_v57 }
  0xef   :  { %v256_v8 = vmax.f32 %v230_v4, 0.0  ;;  %v241_v9 = vadd.f32 %v720_v7, %v1004_v55  ;;  %v370_v11 = vsel %vm122_vm0, %v258_v3, %v811_v62 }
  0xf0   :  { %v232_v12 = vpop.f32.mrf.mxu0  ;;  %745 = vmatprep.mubr.bf16.mxu1 %v392_v1  ;;  %386 = vst [vmem:[#allocation2 + $0x70] sm:$0xff] %v370_v11 }
  0xf1   :  { %v259_v13 = vmax.f32 %v241_v9, 0.0  ;;  %v233_v14 = vadd.f32 %v1004_v55, %v232_v12  ;;  %746 = vmatmul.mubr.bf16.gmra.mxu1 %v393_v10  ;;  %v368_v15 = vsel %vm122_vm0, %v256_v8, %v801_v2 }
  0xf2   :  { %384 = vst [vmem:[#allocation2 + $0x60] sm:$0xff] %v368_v15 }
  0xf3   :  { %v257_v17 = vmax.f32 %v233_v14, 0.0  ;;  %v371_v18 = vsel %vm122_vm0, %v259_v13, %v812_v6 }
  0xf4   :  { %387 = vst [vmem:[#allocation2 + $0x78] sm:$0xff] %v371_v18  ;;  %v395_v21 = vpack.c.bf16 %v371_v18, %v370_v11 }
  0xf5   :  { %v369_v19 = vsel %vm122_vm0, %v257_v17, %v802_v16 }
  0xf6   :  { %385 = vst [vmem:[#allocation2 + $0x68] sm:$0xff] %v369_v19  ;;  %v394_v20 = vpack.c.bf16 %v369_v19, %v368_v15 }
  0xf8   :  { %749 = vmatprep.mubr.bf16.mxu1 %v394_v20 }
  0xf9   :  { %750 = vmatmul.mubr.bf16.gmra.mxu1 %v395_v21 }
  0xfa   :  { %844 = shalt.err (!%p841_p4)
}
  0xfb   :  { %s857_s11 = smov 128   ;;  %s858_s12 = smov 8   ;;  %v621_v55 = vld [vmem:[%s1107_s5] ss:$0 sm:$0xff] }
  0xfc   :  { %591 = dma.vmem_to_hbm [thread:$0]  %s586_s4, 2048, %s1108_s6, [#allocation3], %s857_s11, %s857_s11, %s858_s12  }
 0x1a1   :  { %v739_v22 = vpop.f32.mrf.mxu0 }
 0x1a2   :  { %v510_v23 = vadd.f32 %v739_v22, %v621_v55 }
 0x1a3   :  { %v501_v24 = vpop.f32.mrf.mxu0 }
 0x1a4   :  { %566 = vst [vmem:[%s1109_s7 + $0x10] sm:$0xff] %v510_v23  ;;  %v502_v25 = vadd.f32 %v621_v55, %v501_v24 }
 0x1a5   :  { %v740_v26 = vpop.f32.mrf.mxu0 }
 0x1a6   :  { %564 = vst [vmem:[%s1109_s7] sm:$0xff] %v502_v25  ;;  %v513_v27 = vadd.f32 %v740_v26, %v621_v55 }
 0x1a7   :  { %v504_v28 = vpop.f32.mrf.mxu0 }
 0x1a8   :  { %567 = vst [vmem:[%s1109_s7 + $0x18] sm:$0xff] %v513_v27  ;;  %v505_v29 = vadd.f32 %v621_v55, %v504_v28 }
 0x1a9   :  { %v743_v30 = vpop.f32.mrf.mxu1 }
 0x1aa   :  { %565 = vst [vmem:[%s1109_s7 + $0x8] sm:$0xff] %v505_v29  ;;  %v526_v31 = vadd.f32 %v743_v30, %v621_v55 }
 0x1ab   :  { %v517_v32 = vpop.f32.mrf.mxu1 }
 0x1ac   :  { %570 = vst [vmem:[%s1109_s7 + $0x30] sm:$0xff] %v526_v31  ;;  %v518_v33 = vadd.f32 %v621_v55, %v517_v32 }
 0x1ad   :  { %v744_v34 = vpop.f32.mrf.mxu1 }
 0x1ae   :  { %568 = vst [vmem:[%s1109_s7 + $0x20] sm:$0xff] %v518_v33  ;;  %v529_v35 = vadd.f32 %v744_v34, %v621_v55 }
 0x1af   :  { %v520_v36 = vpop.f32.mrf.mxu1 }
 0x1b0   :  { %571 = vst [vmem:[%s1109_s7 + $0x38] sm:$0xff] %v529_v35  ;;  %v521_v37 = vadd.f32 %v621_v55, %v520_v36 }
 0x1b1   :  { %v747_v38 = vpop.f32.mrf.mxu1 }
 0x1b2   :  { %569 = vst [vmem:[%s1109_s7 + $0x28] sm:$0xff] %v521_v37  ;;  %v542_v39 = vadd.f32 %v747_v38, %v621_v55 }
 0x1b3   :  { %v533_v40 = vpop.f32.mrf.mxu1 }
 0x1b4   :  { %574 = vst [vmem:[%s1109_s7 + $0x50] sm:$0xff] %v542_v39  ;;  %v534_v41 = vadd.f32 %v621_v55, %v533_v40 }
 0x1b5   :  { %v748_v42 = vpop.f32.mrf.mxu1 }
 0x1b6   :  { %572 = vst [vmem:[%s1109_s7 + $0x40] sm:$0xff] %v534_v41  ;;  %v545_v43 = vadd.f32 %v748_v42, %v621_v55 }
 0x1b7   :  { %v536_v44 = vpop.f32.mrf.mxu1 }
 0x1b8   :  { %575 = vst [vmem:[%s1109_s7 + $0x58] sm:$0xff] %v545_v43  ;;  %v537_v45 = vadd.f32 %v621_v55, %v536_v44 }
 0x1b9   :  { %v751_v46 = vpop.f32.mrf.mxu1 }
 0x1ba   :  { %573 = vst [vmem:[%s1109_s7 + $0x48] sm:$0xff] %v537_v45  ;;  %v558_v47 = vadd.f32 %v751_v46, %v621_v55 }
 0x1bb   :  { %v549_v48 = vpop.f32.mrf.mxu1 }
 0x1bc   :  { %578 = vst [vmem:[%s1109_s7 + $0x70] sm:$0xff] %v558_v47  ;;  %v550_v49 = vadd.f32 %v621_v55, %v549_v48 }
 0x1bd   :  { %v752_v50 = vpop.f32.mrf.mxu1 }
 0x1be   :  { %576 = vst [vmem:[%s1109_s7 + $0x60] sm:$0xff] %v550_v49  ;;  %v561_v51 = vadd.f32 %v752_v50, %v621_v55 }
 0x1bf   :  { %v552_v52 = vpop.f32.mrf.mxu1 }
 0x1c0   :  { %579 = vst [vmem:[%s1109_s7 + $0x78] sm:$0xff] %v561_v51  ;;  %v553_v53 = vadd.f32 %v621_v55, %v552_v52 }
 0x1c2   :  { %577 = vst [vmem:[%s1109_s7 + $0x68] sm:$0xff] %v553_v53 }
 0x1c3   :  { %853 = dma.done.wait [#allocation3], 2048  }
 0x1c4   :  { %854 = vsyncadd [#allocation3], 4294965248 }
 0x1c5   :  { %599 = vsyncpa [#allocation3], 1 }

// kernel: forward.8
= control target key start
LH: loop header
LB: loop body
LE: loop exit
PB: predicated region body
PF: predicated region fallthrough
CT: control target
= control target key end

     0   :  { %s6163_s15 = smov 0   ;;  %s6165_s16 = smov 0   ;;  %s8331_s0 = inlined_call_operand.vmem [shape: bf16[2,18,18,64], index: 0, kind: input, shape index: {}, may-alias: {0,1}]   ;;  %s8332_s1 = inlined_call_operand.vmem [shape: bf16[2,18,18,64], index: 1, kind: input, shape index: {}, may-alias: {0,1}]   ;;  %s8333_s2 = inlined_call_operand.vmem [shape: bf16[9,64,64], index: 2, kind: input, shape index: {}]   ;;  %s8334_s3 = inlined_call_operand.vmem [shape: f32[1,64], index: 3, kind: input, shape index: {}]   ;;  %s8335_s4 = inlined_call_operand.vmem [shape: bf16[2,8,8,64], index: 4, kind: output, shape index: {}]  }
   0x1   :  { %s6167_s17 = smov 0  }
   0x2 LB: > { %s26_s18 = sadd.s32 1, %s6131_s16  ;;  %p5626_p0 = scmp.ge.s32.totalorder %s6135_s17, 1  ;;  %s6135_s17 = sphi %s6167_s17, %s14_s17   ;;  %s6131_s16 = sphi %s6165_s16, %s8696_s16   ;;  %s6127_s15 = sphi %s6163_s15, %s8695_s15  }
   0x3   : > { %p28_p1 = scmp.ge.s32.totalorder %s26_s18, 2  ;;  %p220_p2 = scmp.lt.s32.totalorder %s6135_s17, 3 }
   0x5   : > { %s8698_s18 = smov (%p28_p1, %s26_s18), 0  ;;  %p221_p3 = pnand %p5626_p0, %p220_p2 }
   0x7   : > { %224 = sbr.rel (%p221_p3) target bundleno = 585 (0x249), region = 36 }
   0xc   : > { %v6076_v0 = vld [vmem:[%s8333_s2 + $0x38] sm:$0xff]   ;;  %p278_p4 = scmp.lt.s32.totalorder %s6127_s15, 1  ;;  %v6078_v2 = vld [vmem:[%s8333_s2 + $0x30] sm:$0xff]   ;;  %v6080_v4 = vld [vmem:[%s8333_s2 + $0x28] sm:$0xff]   ;;  %v405_v6 = vlaneseq  ;;  %v6137_v11 = vmov 1966171168  }
   0xd   : > { %v6077_v1 = vld [vmem:[%s8333_s2 + $0x18] sm:$0xff]   ;;  %5896 = vmatprep.subr.bf16.mxu0 %v6076_v0  ;;  %v6079_v3 = vld [vmem:[%s8333_s2 + $0x10] sm:$0xff]   ;;  %v6081_v5 = vld [vmem:[%s8333_s2 + $0x8] sm:$0xff]   ;;  %v403_v12 = vunpack.c.l.s4 %v6137_v11  ;;  %vm1868_vm0 = vcmask 1041409   ;;  %vm1871_vm1 = vcmask 1042434   ;;  %vm1874_vm2 = vcmask 1043459  }
   0xe   : > { %s8700_s15 = smov (!%p278_p4, %s6127_s15), 1  ;;  %5912 = vmatprep.subr.bf16.mxu1 %v6077_v1  ;;  %5897 = vmatpush3.bf16.msra.mxu0 %v6076_v0  ;;  %v6082_v7 = vld [vmem:[%s8333_s2 + $0x20] sm:$0xff]   ;;  %v406_v13 = vshrl.u32 %v405_v6, 7  ;;  %v6222_v19 = vld [vmem:[%s8333_s2 + $0x58] sm:$0xff]   ;;  %vm1877_vm3 = vcmask 1044484   ;;  %vm1880_vm4 = vcmask 1045509  }
   0xf   : > { %5913 = vmatpush3.bf16.msra.mxu1 %v6077_v1  ;;  %5898 = vmatprep.subr.bf16.mxu0 %v6078_v2  ;;  %s6048_s29 = smul.u32 216, %s8700_s15  ;;  %v6083_v9 = vld [vmem:[%s8333_s2] sm:$0xff]   ;;  %v404_v17 = vunpack.c.0.s8 %v403_v12  ;;  %v6255_v37 = vld [vmem:[%s8333_s2 + $0x78] sm:$0xff]   ;;  %vm1883_vm5 = vcmask 1046534   ;;  %vm1886_vm6 = vcmask 1047559   ;;  %vm2014_vm7 = vcmask 523264  }
  0x10   : > { %5914 = vmatprep.subr.bf16.mxu1 %v6079_v3  ;;  %8439 = vst [vmem:[#allocation2_spill] sm:$0xff] %v6255_v37  ;;  %s5823_s14 = sshll.u32 %s8700_s15, 5  ;;  %vm5502_vm8 = vcmask 519168  }
  0x11   : > { %s6207_s8 = scalar_lea.vmem %s8331_s0, %s6048_s29  ;;  %v6226_v24 = vsub.s32 %v404_v17, %v406_v13  ;;  %s5822_s9 = sadd.s32 192, %s6048_s29 }
  0x12   : > { %5899 = vmatpush3.bf16.msra.mxu0 %v6078_v2  ;;  %v5631_v8 = vld.sshfl [vmem:[%s6207_s8] sm:$0x33 pattern:$0x75316420]  ;;  %s7695_s11 = scalar_lea.vmem %s8332_s1, %s5822_s9  ;;  %s8304_s21 = scalar_lea.vmem %s8335_s4, %s5823_s14 }
  0x13   : > { %5915 = vmatpush3.bf16.msra.mxu1 %v6079_v3  ;;  %5900 = vmatprep.subr.bf16.mxu0 %v6080_v4  ;;  %v5632_v10 = vld.sshfl [vmem:[%s6207_s8 + $0x4] sm:$0x33 pattern:$0x75316420]  ;;  %v401_v16 = vcombine.high %v5631_v8, %v5631_v8  ;;  %v408_v28 = vrot.slane %v5631_v8, %v6226_v24 }
  0x14   : > { %5916 = vmatprep.subr.bf16.mxu1 %v6081_v5  ;;  %v5634_v14 = vld.sshfl [vmem:[%s6207_s8 + $0x18] sm:$0x33 pattern:$0x75316420]  ;;  %v425_v18 = vcombine.high %v5632_v10, %v5632_v10  ;;  %v6234_v30 = vrot.slane %v5632_v10, %v6226_v24 }
  0x15   : > { %v5635_v15 = vld.sshfl [vmem:[%s6207_s8 + $0x1c] sm:$0x33 pattern:$0x75316420]  ;;  %v463_v21 = vcombine.high %v5634_v14, %v5634_v14  ;;  %v415_v29 = vrot.slane %v401_v16, %v6226_v24  ;;  %v6241_v33 = vrot.slane %v5634_v14, %v6226_v24  ;;  %v416_v39 = vcombine.high %v408_v28, %v408_v28 }
  0x16   : > { %5901 = vmatpush3.bf16.msra.mxu0 %v6080_v4  ;;  %v5637_v20 = vld.sshfl [vmem:[%s6207_s8 + $0x30] sm:$0x33 pattern:$0x75316420]  ;;  %v487_v22 = vcombine.high %v5635_v15, %v5635_v15  ;;  %v6237_v31 = vrot.slane %v425_v18, %v6226_v24  ;;  %v6247_v35 = vrot.slane %v5635_v15, %v6226_v24  ;;  %v440_v41 = vcombine.high %v6234_v30, %v6234_v30 }
  0x17   : > { %5917 = vmatpush3.bf16.msra.mxu1 %v6081_v5  ;;  %5902 = vmatprep.subr.bf16.mxu0 %v6082_v7  ;;  %v5638_v23 = vld.sshfl [vmem:[%s6207_s8 + $0x34] sm:$0x33 pattern:$0x75316420]  ;;  %v525_v25 = vcombine.high %v5637_v20, %v5637_v20  ;;  %v6244_v34 = vrot.slane %v463_v21, %v6226_v24  ;;  %v417_v40 = vcombine.high %v415_v29, %v415_v29 }
  0x18   : > { %5918 = vmatprep.subr.bf16.mxu1 %v6083_v9  ;;  %v549_v26 = vcombine.high %v5638_v23, %v5638_v23  ;;  %v6229_v27 = vld.sshfl [vmem:[%s6207_s8 + $0x38] sm:$0x1 pattern:$0x75316420]  ;;  %v6250_v36 = vrot.slane %v487_v22, %v6226_v24  ;;  %v441_v42 = vcombine.high %v6237_v31, %v6237_v31  ;;  %v478_v45 = vcombine.high %v6241_v33, %v6241_v33 }
  0x19   : > { %v5640_v32 = vld.sshfl [vmem:[%s6207_s8 + $0x48] sm:$0x33 pattern:$0x75316420]  ;;  %v479_v46 = vcombine.high %v6244_v34, %v6244_v34  ;;  %v502_v47 = vcombine.high %v6247_v35, %v6247_v35  ;;  %v6278_v50 = vrot.slane %v5637_v20, %v6226_v24  ;;  %v6281_v51 = vrot.slane %v525_v25, %v6226_v24 }
  0x1a   : > { %5903 = vmatpush3.bf16.msra.mxu0 %v6082_v7  ;;  %v5641_v38 = vld.sshfl [vmem:[%s6207_s8 + $0x4c] sm:$0x33 pattern:$0x75316420]  ;;  %v503_v48 = vcombine.high %v6250_v36, %v6250_v36  ;;  %v6284_v52 = vrot.slane %v5638_v23, %v6226_v24  ;;  %v6287_v53 = vrot.slane %v549_v26, %v6226_v24  ;;  %v587_v55 = vcombine.high %v5640_v32, %v5640_v32 }
  0x1b   : > { %5919 = vmatpush3.bf16.msra.mxu1 %v6083_v9  ;;  %5928 = vmatprep.subr.bf16.mxu0 %v6222_v19  ;;  %v6264_v43 = vld.sshfl [vmem:[%s6207_s8 + $0x50] sm:$0x1 pattern:$0x75316420]  ;;  %v6292_v56 = vrot.slane %v5640_v32, %v6226_v24  ;;  %v611_v57 = vcombine.high %v5641_v38, %v5641_v38  ;;  %v540_v58 = vcombine.high %v6278_v50, %v6278_v50 }
  0x1c   : > { %v5643_v44 = vld.sshfl [vmem:[%s6207_s8 + $0x60] sm:$0x33 pattern:$0x75316420]  ;;  %5944 = vmatprep.subr.bf16.mxu1 %v6255_v37  ;;  %v541_v59 = vcombine.high %v6281_v51, %v6281_v51  ;;  %v564_v60 = vcombine.high %v6284_v52, %v6284_v52  ;;  %v565_v61 = vcombine.high %v6287_v53, %v6287_v53  ;;  %v6303_v62 = vrot.slane %v587_v55, %v6226_v24 }
  0x1d   : > { %v5644_v49 = vld.sshfl [vmem:[%s6207_s8 + $0x64] sm:$0x33 pattern:$0x75316420]  ;;  %v602_v63 = vcombine.high %v6292_v56, %v6292_v56  ;;  %v6308_v0 = vrot.slane %v5641_v38, %v6226_v24  ;;  %v6311_v1 = vrot.slane %v611_v57, %v6226_v24  ;;  %v649_v3 = vcombine.high %v5643_v44, %v5643_v44 }
  0x1e   : > { %v6316_v4 = vrot.slane %v5643_v44, %v6226_v24  ;;  %v673_v5 = vcombine.high %v5644_v49, %v5644_v49  ;;  %v603_v6 = vcombine.high %v6303_v62, %v6303_v62  ;;  %v6325_v9 = vrot.slane %v5644_v49, %v6226_v24 }
  0x1f   : > { %v626_v7 = vcombine.high %v6308_v0, %v6308_v0  ;;  %v627_v8 = vcombine.high %v6311_v1, %v6311_v1  ;;  %v6328_v10 = vrot.slane %v649_v3, %v6226_v24  ;;  %v913_v13 = vrot.slane %v408_v28, %v6226_v24 }
  0x20   : > { %v664_v11 = vcombine.high %v6316_v4, %v6316_v4  ;;  %v6333_v12 = vrot.slane %v673_v5, %v6226_v24  ;;  %v688_v14 = vcombine.high %v6325_v9, %v6325_v9  ;;  %v927_v15 = vrot.slane %v415_v29, %v6226_v24 }
  0x21   : > { %v6340_v16 = vrot.slane %v416_v39, %v6226_v24  ;;  %v6343_v17 = vrot.slane %v417_v40, %v6226_v24  ;;  %v665_v18 = vcombine.high %v6328_v10, %v6328_v10  ;;  %v6350_v21 = vrot.slane %v913_v13, %v6226_v24 }
  0x22   : > { %v689_v20 = vcombine.high %v6333_v12, %v6333_v12  ;;  %v969_v22 = vrot.slane %v6234_v30, %v6226_v24  ;;  %v6355_v23 = vrot.slane %v927_v15, %v6226_v24  ;;  %v983_v28 = vrot.slane %v6237_v31, %v6226_v24 }
  0x23   : > { %v948_v25 = vrot.slane %v6340_v16, %v6226_v24  ;;  %v962_v26 = vrot.slane %v6343_v17, %v6226_v24  ;;  %v6367_v32 = vrot.slane %v440_v41, %v6226_v24  ;;  %v6370_v30 = vrot.slane %v441_v42, %v6226_v24 }
  0x24   : > { %v6364_v29 = vrot.slane %v969_v22, %v6226_v24  ;;  %v1025_v38 = vrot.slane %v6241_v33, %v6226_v24  ;;  %v6375_v39 = vrot.slane %v983_v28, %v6226_v24  ;;  %v1039_v40 = vrot.slane %v6244_v34, %v6226_v24 }
  0x25   : > { %v6380_v31 = vrot.slane %v478_v45, %v6226_v24  ;;  %v6383_v44 = vrot.slane %v479_v46, %v6226_v24  ;;  %v1004_v41 = vrot.slane %v6367_v32, %v6226_v24  ;;  %v1018_v42 = vrot.slane %v6370_v30, %v6226_v24 }
  0x26   : > { %v6390_v33 = vrot.slane %v1025_v38, %v6226_v24  ;;  %v1081_v49 = vrot.slane %v6247_v35, %v6226_v24  ;;  %v6395_v34 = vrot.slane %v1039_v40, %v6226_v24  ;;  %v1095_v55 = vrot.slane %v6250_v36, %v6226_v24 }
  0x27   : > { %v1060_v45 = vrot.slane %v6380_v31, %v6226_v24  ;;  %v1074_v46 = vrot.slane %v6383_v44, %v6226_v24  ;;  %v6407_v3 = vrot.slane %v502_v47, %v6226_v24  ;;  %v6410_v35 = vrot.slane %v503_v48, %v6226_v24 }
  0x28   : > { %v6404_v57 = vrot.slane %v1081_v49, %v6226_v24  ;;  %v1137_v5 = vrot.slane %v6278_v50, %v6226_v24  ;;  %v6415_v13 = vrot.slane %v1095_v55, %v6226_v24  ;;  %v1151_v15 = vrot.slane %v6281_v51, %v6226_v24 }
  0x29   : > { %v6420_v36 = vrot.slane %v540_v58, %v6226_v24  ;;  %v6423_v22 = vrot.slane %v541_v59, %v6226_v24  ;;  %v1116_v47 = vrot.slane %v6407_v3, %v6226_v24  ;;  %v1130_v48 = vrot.slane %v6410_v35, %v6226_v24 }
  0x2a   : > { %v6430_v50 = vrot.slane %v1137_v5, %v6226_v24  ;;  %v1193_v28 = vrot.slane %v6284_v52, %v6226_v24  ;;  %v1158_v51 = vrot.slane %v1151_v15, %v6226_v24  ;;  %v1207_v38 = vrot.slane %v6287_v53, %v6226_v24 }
  0x2b   : > { %v1172_v58 = vrot.slane %v6420_v36, %v6226_v24  ;;  %v1186_v59 = vrot.slane %v6423_v22, %v6226_v24  ;;  %v6448_v49 = vrot.slane %v564_v60, %v6226_v24  ;;  %v6454_v55 = vrot.slane %v565_v61, %v6226_v24 }
  0x2c   : > { %v6442_v40 = vrot.slane %v1193_v28, %v6226_v24  ;;  %v1249_v3 = vrot.slane %v6292_v56, %v6226_v24  ;;  %v6459_v35 = vrot.slane %v1207_v38, %v6226_v24  ;;  %v1263_v5 = vrot.slane %v6303_v62, %v6226_v24 }
  0x2d   : > { %v6467_v52 = vrot.slane %v602_v63, %v6226_v24  ;;  %v6470_v60 = vrot.slane %v603_v6, %v6226_v24  ;;  %v1228_v53 = vrot.slane %v6448_v49, %v6226_v24  ;;  %v1242_v61 = vrot.slane %v6454_v55, %v6226_v24 }
  0x2e   : > { %v6477_v15 = vrot.slane %v1249_v3, %v6226_v24  ;;  %v1305_v62 = vrot.slane %v6308_v0, %v6226_v24  ;;  %v1270_v36 = vrot.slane %v1263_v5, %v6226_v24  ;;  %v1319_v6 = vrot.slane %v6311_v1, %v6226_v24 }
  0x2f   : > { %v1284_v56 = vrot.slane %v6467_v52, %v6226_v24  ;;  %v1298_v63 = vrot.slane %v6470_v60, %v6226_v24  ;;  %v1333_v28 = vrot.slane %v626_v7, %v6226_v24  ;;  %v1347_v38 = vrot.slane %v627_v8, %v6226_v24 }
  0x30   : > { %8440 = vst [vmem:[#allocation3_spill] sm:$0xff] %v6477_v15  ;;  %v6489_v22 = vrot.slane %v1305_v62, %v6226_v24  ;;  %v1361_v49 = vrot.slane %v6316_v4, %v6226_v24  ;;  %v6502_v55 = vrot.slane %v1319_v6, %v6226_v24  ;;  %v1375_v3 = vrot.slane %v6328_v10, %v6226_v24 }
  0x31   : > { %v1389_v0 = vrot.slane %v664_v11, %v6226_v24  ;;  %v1403_v1 = vrot.slane %v665_v18, %v6226_v24  ;;  %v1340_v7 = vrot.slane %v1333_v28, %v6226_v24  ;;  %v1354_v8 = vrot.slane %v1347_v38, %v6226_v24 }
  0x32   : > { %8441 = vst [vmem:[#allocation4_spill] sm:$0xff] %v6489_v22  ;;  %8442 = vst [vmem:[#allocation5_spill] sm:$0xff] %v6502_v55  ;;  %v6517_v5 = vrot.slane %v1361_v49, %v6226_v24  ;;  %v1417_v52 = vrot.slane %v6325_v9, %v6226_v24  ;;  %v1382_v60 = vrot.slane %v1375_v3, %v6226_v24  ;;  %v8336_v28 = vunpack.c.l.b16 %v6350_v21 }
  0x33   : > { %v1396_v4 = vrot.slane %v1389_v0, %v6226_v24  ;;  %v1410_v11 = vrot.slane %v1403_v1, %v6226_v24  ;;  %v1431_v10 = vrot.slane %v6333_v12, %v6226_v24  ;;  %v1445_v62 = vrot.slane %v688_v14, %v6226_v24 }
  0x34   : > { %8443 = vst [vmem:[#allocation6_spill] sm:$0xff] %v6517_v5  ;;  %v6527_v18 = vrot.slane %v1417_v52, %v6226_v24  ;;  %v1459_v6 = vrot.slane %v689_v20, %v6226_v24  ;;  %v6542_v49 = vunpack.c.l.b16 %v6355_v23  ;;  %v6547_v3 = vunpack.c.l.b16 %v948_v25 }
  0x35   : > { %v6539_v38 = vrot.slane %v1431_v10, %v6226_v24  ;;  %v6552_v9 = vunpack.c.l.b16 %v962_v26  ;;  %v1452_v12 = vrot.slane %v1445_v62, %v6226_v24  ;;  %v8337_v20 = vunpack.c.l.b16 %v6364_v29 }
  0x36   : > { %v1466_v14 = vrot.slane %v1459_v6, %v6226_v24  ;;  %v8338_v0 = vunpack.c.l.b16 %v6375_v39  ;;  %v6561_v16 = vunpack.c.l.b16 %v1004_v41  ;;  %v6566_v17 = vunpack.c.l.b16 %v1018_v42 }
  0x37   : > { %8444 = vst [vmem:[#allocation7_spill] sm:$0xff] %v6539_v38  ;;  %v8339_v23 = vunpack.c.l.b16 %v6390_v33  ;;  %v6570_v25 = vunpack.c.l.b16 %v6395_v34  ;;  %v6575_v26 = vunpack.c.l.b16 %v1060_v45  ;;  %v6580_v32 = vunpack.c.l.b16 %v1074_v46 }
  0x38   : > { %v8341_v30 = vunpack.c.l.b16 %v6404_v57  ;;  %v8342_v41 = vunpack.c.l.b16 %v6415_v13  ;;  %v6584_v42 = vunpack.c.l.b16 %v1116_v47  ;;  %v6586_v34 = vunpack.c.l.b16 %v1130_v48 }
  0x39   : > { %v8345_v1 = vunpack.c.l.b16 %v6430_v50  ;;  %v6589_v52 = vunpack.c.l.b16 %v1158_v51  ;;  %v6591_v31 = vunpack.c.l.b16 %v1172_v58  ;;  %v6593_v45 = vunpack.c.l.b16 %v1186_v59 }
  0x3a   : > { %v8347_v44 = vunpack.c.l.b16 %v6442_v40  ;;  %v6597_v10 = vunpack.c.l.b16 %v1228_v53  ;;  %v6599_v47 = vunpack.c.l.b16 %v1242_v61  ;;  %v6602_v62 = vunpack.c.l.b16 %v1270_v36 }
  0x3b   : > { %v6604_v51 = vunpack.c.l.b16 %v1284_v56  ;;  %v6606_v58 = vunpack.c.l.b16 %v1298_v63  ;;  %v6610_v2 = vunpack.c.l.b16 %v1340_v7  ;;  %v6612_v53 = vunpack.c.l.b16 %v1354_v8 }
  0x3c   : > { %v6615_v54 = vunpack.c.l.b16 %v1382_v60  ;;  %v6617_v36 = vunpack.c.l.b16 %v1396_v4  ;;  %v6619_v48 = vunpack.c.l.b16 %v1410_v11  ;;  %v6623_v59 = vunpack.c.l.b16 %v1452_v12 }
  0x3d   : > { %8445 = vst [vmem:[#allocation8_spill] sm:$0xff] %v6604_v51  ;;  %8446 = vst [vmem:[#allocation9_spill] sm:$0xff] %v6606_v58  ;;  %v6625_v6 = vunpack.c.l.b16 %v1466_v14  ;;  %v1867_v7 = vrot.slane %v8336_v28, 1  ;;  %v8340_v8 = vrot.slane %v6547_v3, 7  ;;  %v8343_v60 = vrot.slane %v6552_v9, 6 }
  0x3e   : > { %8447 = vst [vmem:[#allocation10_spill] sm:$0xff] %v6610_v2  ;;  %8448 = vst [vmem:[#allocation11_spill] sm:$0xff] %v6612_v53  ;;  %v6633_v4 = vrot.slane %v8337_v20, 5  ;;  %v6637_v11 = vrot.slane %v8338_v0, 4  ;;  %v1888_v28 = vrot.slane %v8339_v23, 1  ;;  %v8344_v56 = vrot.slane %v6575_v26, 7 }
  0x3f   : > { %v1869_v14 = vsel %vm1868_vm0, %v6542_v49, %v1867_v7  ;;  %v8346_v61 = vrot.slane %v6580_v32, 6  ;;  %v6652_v0 = vrot.slane %v8341_v30, 5  ;;  %v6656_v7 = vrot.slane %v8342_v41, 4 }
  0x40   : > { %8449 = vst [vmem:[#allocation12_spill] sm:$0xff] %v6633_v4  ;;  %8450 = vst [vmem:[#allocation13_spill] sm:$0xff] %v6637_v11  ;;  %v1872_v20 = vsel %vm1871_vm1, %v8340_v8, %v1869_v14  ;;  %v1889_v63 = vsel %vm1868_vm0, %v6570_v25, %v1888_v28  ;;  %v1902_v41 = vrot.slane %v8345_v1, 1  ;;  %v1904_v12 = vrot.slane %v6591_v31, 7 }
  0x41   : > { %8451 = vst [vmem:[#allocation14_spill] sm:$0xff] %v6652_v0  ;;  %8452 = vst [vmem:[#allocation15_spill] sm:$0xff] %v6656_v7  ;;  %v1875_v23 = vsel %vm1874_vm2, %v8343_v60, %v1872_v20  ;;  %v1891_v30 = vsel %vm1871_vm1, %v8344_v56, %v1889_v63  ;;  %v1906_v60 = vrot.slane %v6593_v45, 6  ;;  %v8453_v14 = vrot.slane %v6561_v16, 3 }
  0x42   : > { %v1878_v8 = vsel %vm1877_vm3, %v6633_v4, %v1875_v23  ;;  %v1893_v28 = vsel %vm1874_vm2, %v8346_v61, %v1891_v30  ;;  %v1908_v23 = vrot.slane %v8347_v44, 5  ;;  %v1903_v1 = vsel %vm1868_vm0, %v6589_v52, %v1902_v41 }
  0x43   : > { %v1881_v20 = vsel %vm1880_vm4, %v6637_v11, %v1878_v8  ;;  %v1895_v56 = vsel %vm1877_vm3, %v6652_v0, %v1893_v28  ;;  %v8454_v8 = vunpack.c.l.b16 %v6459_v35  ;;  %v8455_v30 = vrot.slane %v6566_v17, 2 }
  0x44   : > { %v1884_v63 = vsel %vm1883_vm5, %v8453_v14, %v1881_v20  ;;  %v1897_v44 = vsel %vm1880_vm4, %v6656_v7, %v1895_v56  ;;  %v1905_v11 = vsel %vm1871_vm1, %v1904_v12, %v1903_v1  ;;  %v1912_v14 = vrot.slane %v6597_v10, 3 }
  0x45   : > { %v1910_v46 = vrot.slane %v8454_v8, 4  ;;  %v1887_v61 = vsel %vm1886_vm6, %v8455_v30, %v1884_v63  ;;  %v8456_v20 = vrot.slane %v6584_v42, 3  ;;  %v1907_v41 = vsel %vm1874_vm2, %v1906_v60, %v1905_v11 }
  0x46   : > { %v1914_v8 = vrot.slane %v6599_v47, 2  ;;  %v8457_v0 = vunpack.c.l.b16 %v6477_v15  ;;  %v8458_v63 = vrot.slane %v6586_v34, 2  ;;  %v1909_v1 = vsel %vm1877_vm3, %v1908_v23, %v1907_v41 }
  0x47   : > { %v1899_v28 = vsel %vm1883_vm5, %v8456_v20, %v1897_v44  ;;  %v1918_v56 = vrot.slane %v6604_v51, 7  ;;  %v1920_v7 = vrot.slane %v6606_v58, 6  ;;  %v1911_v44 = vsel %vm1880_vm4, %v1910_v46, %v1909_v1 }
  0x48   : > { %v1916_v4 = vrot.slane %v8457_v0, 1  ;;  %v6707_v30 = vsel %vm1886_vm6, %v8458_v63, %v1899_v28  ;;  %v8460_v20 = vunpack.c.l.b16 %v6489_v22  ;;  %v8461_v0 = vunpack.c.l.b16 %v6502_v55 }
  0x49   : > { %8459 = vst [vmem:[#allocation16_spill] sm:$0xff] %v6707_v30  ;;  %v1913_v28 = vsel %vm1883_vm5, %v1912_v14, %v1911_v44  ;;  %v1926_v41 = vrot.slane %v6610_v2, 3  ;;  %v1928_v51 = vrot.slane %v6612_v53, 2  ;;  %v8465_v53 = vunpack.c.l.b16 %v6539_v38 }
  0x4a   : > { %v1917_v11 = vsel %vm1868_vm0, %v6602_v62, %v1916_v4  ;;  %v1922_v37 = vrot.slane %v8460_v20, 5  ;;  %v1924_v15 = vrot.slane %v8461_v0, 4  ;;  %v6724_v58 = vsel %vm1886_vm6, %v1914_v8, %v1913_v28 }
  0x4b   : > { %v1919_v63 = vsel %vm1871_vm1, %v1918_v56, %v1917_v11  ;;  %8462 = vst [vmem:[#allocation17_spill] sm:$0xff] %v6724_v58  ;;  %v8463_v4 = vunpack.c.l.b16 %v6517_v5  ;;  %v8464_v11 = vunpack.c.l.b16 %v6527_v18  ;;  %v6738_v2 = vrot.slane %v8465_v53, 4 }
  0x4c   : > { %v1921_v1 = vsel %vm1874_vm2, %v1920_v7, %v1919_v63  ;;  %v8466_v44 = vrot.slane %v6617_v36, 7  ;;  %v1986_v5 = vpack.c.b16 %v6707_v30, %v1887_v61  ;;  %v8467_v53 = vrot.slane %v6229_v27, %v6226_v24 }
  0x4d   : > { %v1930_v22 = vrot.slane %v8463_v4, 1  ;;  %v1923_v0 = vsel %vm1877_vm3, %v1922_v37, %v1921_v1  ;;  %v6734_v55 = vrot.slane %v8464_v11, 5  ;;  %v2454_v61 = vsel %vm1868_vm0, %v1904_v12, %v6589_v52 }
  0x4e   : > { %v1925_v28 = vsel %vm1880_vm4, %v1924_v15, %v1923_v0  ;;  %v2352_v0 = vrot.slane %v8467_v53, %v6226_v24  ;;  %5904 = vmatprep.mubr.msk.bf16.mxu0 %vm2014_vm7, %v1986_v5  ;;  %v2462_v53 = vsel %vm1868_vm0, %v1918_v56, %v6602_v62  ;;  %v8471_v5 = vrot.slane %v6623_v59, 3 }
  0x4f   : > { %v1931_v63 = vsel %vm1868_vm0, %v6615_v54, %v1930_v22  ;;  %v1927_v1 = vsel %vm1883_vm5, %v1926_v41, %v1925_v28  ;;  %v8469_v22 = vrot.slane %v6619_v48, 6  ;;  %v8470_v28 = vrot.slane %v6264_v43, %v6226_v24  ;;  %v6086_v43 = vld [vmem:[%s8333_s2 + $0x50] sm:$0xff]  }
  0x50   : > { %v1933_v11 = vsel %vm1871_vm1, %v8466_v44, %v1931_v63  ;;  %v6755_v38 = vsel %vm1886_vm6, %v1928_v51, %v1927_v1  ;;  %v2359_v63 = vrot.slane %v2352_v0, %v6226_v24  ;;  %v2455_v1 = vsel %vm1871_vm1, %v1906_v60, %v2454_v61 }
  0x51   : > { %8468 = vst [vmem:[#allocation18_spill] sm:$0xff] %v6755_v38  ;;  %v1935_v20 = vsel %vm1874_vm2, %v8469_v22, %v1933_v11  ;;  %v2366_v4 = vrot.slane %v8470_v28, %v6226_v24  ;;  %v1987_v27 = vpack.c.b16 %v6755_v38, %v6724_v58  ;;  %v2463_v28 = vsel %vm1871_vm1, %v1920_v7, %v2462_v53 }
  0x52   : > { %v1937_v44 = vsel %vm1877_vm3, %v6734_v55, %v1935_v20  ;;  %v2456_v20 = vsel %vm1874_vm2, %v1908_v23, %v2455_v1  ;;  %v2432_v22 = vunpack.c.l.b16 %v2359_v63  ;;  %v8472_v61 = vrot.slane %v6625_v6, 2 }
  0x53   : > { %v1939_v11 = vsel %vm1880_vm4, %v6738_v2, %v1937_v44  ;;  %v2373_v12 = vrot.slane %v2366_v4, %v6226_v24  ;;  %v2457_v60 = vsel %vm1877_vm3, %v1910_v46, %v2456_v20  ;;  %5905 = vmatmul.mubr.msk.bf16.vlgmr.msra.gmra.mxu0 %vm2014_vm7, %v1987_v27  ;;  %v2464_v56 = vsel %vm1874_vm2, %v1922_v37, %v2463_v28  ;;  %v6088_v27 = vld [vmem:[%s8333_s2 + $0x48] sm:$0xff]  }
  0x54   : > { %v1941_v0 = vsel %vm1883_vm5, %v8471_v5, %v1939_v11  ;;  %v2458_v44 = vsel %vm1880_vm4, %v1912_v14, %v2457_v60  ;;  %5929 = vmatpush3.bf16.msra.mxu0 %v6222_v19  ;;  %v2460_v1 = vrot.slane %v2432_v22, 1  ;;  %v2465_v46 = vsel %vm1877_vm3, %v1924_v15, %v2464_v56 }
  0x55   : > { %v6791_v4 = vsel %vm1886_vm6, %v8472_v61, %v1941_v0  ;;  %v2433_v23 = vunpack.c.l.b16 %v2373_v12  ;;  %v2459_v63 = vsel %vm1883_vm5, %v1914_v8, %v2458_v44  ;;  %5930 = vmatprep.subr.bf16.mxu0 %v6086_v43  ;;  %v2466_v11 = vsel %vm1880_vm4, %v1926_v41, %v2465_v46 }
  0x56   : > { %8473 = vst [vmem:[#allocation19_spill] sm:$0xff] %v6791_v4  ;;  %v2092_v19 = vrot.slane %v6542_v49, 7  ;;  %v6808_v8 = vsel %vm1886_vm6, %v2460_v1, %v2459_v63  ;;  %v2467_v15 = vsel %vm1883_vm5, %v1928_v51, %v2466_v11  ;;  %v2094_v12 = vrot.slane %v6547_v3, 6 }
  0x57   : > { %v2468_v14 = vrot.slane %v2433_v23, 1  ;;  %8474 = vst [vmem:[#allocation20_spill] sm:$0xff] %v6808_v8  ;;  %v2096_v20 = vrot.slane %v6552_v9, 5  ;;  %v8476_v41 = vunpack.c.l.b16 %v6350_v21  ;;  %v8477_v0 = vunpack.c.l.b16 %v6364_v29  ;;  %v6090_v21 = vld [vmem:[%s8333_s2 + $0x40] sm:$0xff]  }
  0x58   : > { %v8478_v60 = vunpack.c.l.b16 %v6375_v39  ;;  %5931 = vmatpush3.bf16.msra.mxu0 %v6086_v43  ;;  %v2102_v23 = vrot.slane %v6561_v16, 2  ;;  %v2104_v44 = vrot.slane %v6566_v17, 1  ;;  %v2106_v39 = vrot.slane %v6570_v25, 7 }
  0x59   : > { %v6814_v53 = vsel %vm1886_vm6, %v2468_v14, %v2467_v15  ;;  %v2093_v5 = vsel %vm1868_vm0, %v2092_v19, %v8476_v41  ;;  %v2098_v22 = vrot.slane %v8477_v0, 4  ;;  %5932 = vmatprep.subr.bf16.mxu0 %v6088_v27  ;;  %v2108_v43 = vrot.slane %v6575_v26, 6 }
  0x5a   : > { %8475 = vst [vmem:[#allocation21_spill] sm:$0xff] %v6814_v53  ;;  %v2100_v28 = vrot.slane %v8478_v60, 3  ;;  %v2095_v61 = vsel %vm1871_vm1, %v2094_v12, %v2093_v5  ;;  %v2110_v56 = vrot.slane %v6580_v32, 5  ;;  %v8479_v1 = vunpack.c.l.b16 %v6404_v57 }
  0x5b   : > { %v2097_v29 = vsel %vm1874_vm2, %v2096_v20, %v2095_v61  ;;  %v8480_v11 = vunpack.c.l.b16 %v6415_v13  ;;  %v2116_v19 = vrot.slane %v6584_v42, 2  ;;  %v8481_v12 = vunpack.c.l.b16 %v6390_v33  ;;  %v6854_v33 = vld [vmem:[%s8333_s2 + $0x98] sm:$0xff]  }
  0x5c   : > { %v2099_v63 = vsel %vm1877_vm3, %v2098_v22, %v2097_v29  ;;  %v2112_v46 = vrot.slane %v8479_v1, 4  ;;  %v2118_v41 = vrot.slane %v6586_v34, 1  ;;  %v2120_v5 = vrot.slane %v6589_v52, 7  ;;  %5933 = vmatpush3.bf16.msra.mxu0 %v6088_v27 }
  0x5d   : > { %v2114_v14 = vrot.slane %v8480_v11, 3  ;;  %v2101_v15 = vsel %vm1880_vm4, %v2100_v28, %v2099_v63  ;;  %v2107_v20 = vsel %vm1868_vm0, %v2106_v39, %v8481_v12  ;;  %v2122_v13 = vrot.slane %v6591_v31, 6  ;;  %5934 = vmatprep.subr.bf16.mxu0 %v6090_v21 }
  0x5e   : > { %v2103_v0 = vsel %vm1883_vm5, %v2102_v23, %v2101_v15  ;;  %v2109_v57 = vsel %vm1871_vm1, %v2108_v43, %v2107_v20  ;;  %v2124_v22 = vrot.slane %v6593_v45, 5  ;;  %v8482_v52 = vunpack.c.l.b16 %v6430_v50 }
  0x5f   : > { %v2105_v60 = vsel %vm1886_vm6, %v2104_v44, %v2103_v0  ;;  %v2111_v28 = vsel %vm1874_vm2, %v2110_v56, %v2109_v57  ;;  %v8483_v61 = vunpack.c.l.b16 %v6442_v40  ;;  %v8484_v29 = vunpack.c.l.b16 %v6459_v35  ;;  %v8486_v35 = vld [vmem:[#allocation9_spill] sm:$0xff] }
  0x60   : > { %v2121_v27 = vsel %vm1868_vm0, %v2120_v5, %v8482_v52  ;;  %v2113_v31 = vsel %vm1877_vm3, %v2112_v46, %v2111_v28  ;;  %v2130_v43 = vrot.slane %v6597_v10, 2  ;;  %v2132_v50 = vrot.slane %v6599_v47, 1  ;;  %5935 = vmatpush3.bf16.msra.mxu0 %v6090_v21  ;;  %v8485_v46 = vld [vmem:[#allocation8_spill] sm:$0xff]  ;;  %v8488_v47 = vld [vmem:[#allocation3_spill] sm:$0xff]  ;;  %v8492_v57 = vld [vmem:[#allocation5_spill] sm:$0xff] }
  0x61   : > { %v2126_v23 = vrot.slane %v8483_v61, 4  ;;  %v2123_v45 = vsel %vm1871_vm1, %v2122_v13, %v2121_v27  ;;  %v2128_v39 = vrot.slane %v8484_v29, 3  ;;  %v2115_v44 = vsel %vm1880_vm4, %v2114_v14, %v2113_v31  ;;  %5960 = vmatprep.subr.bf16.mxu0 %v6854_v33  ;;  %v8490_v21 = vld [vmem:[#allocation4_spill] sm:$0xff]  ;;  %v8494_v28 = vld [vmem:[#allocation10_spill] sm:$0xff]  ;;  %v8496_v61 = vld [vmem:[#allocation11_spill] sm:$0xff] }
  0x62   : > { %v2125_v56 = vsel %vm1874_vm2, %v2124_v22, %v2123_v45  ;;  %v2134_v63 = vrot.slane %v6602_v62, 7  ;;  %v2117_v40 = vsel %vm1883_vm5, %v2116_v19, %v2115_v44  ;;  %v2136_v11 = vrot.slane %v8485_v46, 6  ;;  %v5646_v45 = vld.sshfl [vmem:[%s6207_s8 + $0x78] sm:$0x33 pattern:$0x75316420] }
  0x63   : > { %v2127_v1 = vsel %vm1877_vm3, %v2126_v23, %v2125_v56  ;;  %v2138_v15 = vrot.slane %v8486_v35, 5  ;;  %v6878_v10 = vsel %vm1886_vm6, %v2118_v41, %v2117_v40  ;;  %v8489_v12 = vunpack.c.l.b16 %v8488_v47  ;;  %v8500_v46 = vld [vmem:[#allocation7_spill] sm:$0xff] }
  0x64   : > { %8487 = vst [vmem:[#allocation8_spill] sm:$0xff] %v6878_v10  ;;  %v2129_v14 = vsel %vm1880_vm4, %v2128_v39, %v2127_v1  ;;  %v8491_v19 = vunpack.c.l.b16 %v8490_v21  ;;  %v8493_v13 = vunpack.c.l.b16 %v8492_v57  ;;  %v2144_v41 = vrot.slane %v8494_v28, 2  ;;  %v6916_v21 = vld.sshfl [vmem:[%s6207_s8 + $0x90] sm:$0x33 pattern:$0x75316420] }
  0x65   : > { %v2135_v62 = vsel %vm1868_vm0, %v2134_v63, %v8489_v12  ;;  %v2131_v5 = vsel %vm1883_vm5, %v2130_v43, %v2129_v14  ;;  %v2146_v23 = vrot.slane %v8496_v61, 1  ;;  %v2148_v31 = vrot.slane %v6615_v54, 7  ;;  %v8498_v63 = vld [vmem:[#allocation6_spill] sm:$0xff] }
  0x66   : > { %v2140_v20 = vrot.slane %v8491_v19, 4  ;;  %v2137_v0 = vsel %vm1871_vm1, %v2136_v11, %v2135_v62  ;;  %v2142_v22 = vrot.slane %v8493_v13, 3  ;;  %v6892_v52 = vsel %vm1886_vm6, %v2132_v50, %v2131_v5  ;;  %v5647_v14 = vld.sshfl [vmem:[%s6207_s8 + $0x7c] sm:$0x33 pattern:$0x75316420] }
  0x67   : > { %8495 = vst [vmem:[#allocation9_spill] sm:$0xff] %v6892_v52  ;;  %v2139_v27 = vsel %vm1874_vm2, %v2138_v15, %v2137_v0  ;;  %v2150_v39 = vrot.slane %v6617_v36, 6  ;;  %v2152_v43 = vrot.slane %v6619_v48, 5  ;;  %v8497_v44 = vunpack.c.l.b16 %v6527_v18 }
  0x68   : > { %v2141_v29 = vsel %vm1877_vm3, %v2140_v20, %v2139_v27  ;;  %v8499_v40 = vunpack.c.l.b16 %v8498_v63  ;;  %v8501_v11 = vunpack.c.l.b16 %v8500_v46  ;;  %v2158_v15 = vrot.slane %v6623_v59, 2 }
  0x69   : > { %v2154_v56 = vrot.slane %v8497_v44, 4  ;;  %v2143_v50 = vsel %vm1880_vm4, %v2142_v22, %v2141_v29  ;;  %v2160_v62 = vrot.slane %v6625_v6, 1  ;;  %v2204_v18 = vpack.c.b16 %v6878_v10, %v2105_v60  ;;  %v6087_v60 = vld [vmem:[%s8333_s2 + $0x70] sm:$0xff]   ;;  %v8504_v44 = vld [vmem:[#allocation2_spill] sm:$0xff] }
  0x6a   : > { %v2149_v1 = vsel %vm1868_vm0, %v2148_v31, %v8499_v40  ;;  %v2156_v35 = vrot.slane %v8501_v11, 3  ;;  %v2145_v47 = vsel %vm1883_vm5, %v2144_v41, %v2143_v50  ;;  %v711_v0 = vcombine.high %v5646_v45, %v5646_v45 }
  0x6b   : > { %v2151_v12 = vsel %vm1871_vm1, %v2150_v39, %v2149_v1  ;;  %v6919_v19 = vsel %vm1886_vm6, %v2146_v23, %v2145_v47  ;;  %5920 = vmatprep.mubr.msk.bf16.mxu1 %vm2014_vm7, %v2204_v18  ;;  %v718_v22 = vrot.slane %v5646_v45, %v6226_v24  ;;  %v735_v28 = vcombine.high %v5647_v14, %v5647_v14 }
  0x6c   : > { %8502 = vst [vmem:[#allocation3_spill] sm:$0xff] %v6919_v19  ;;  %v2153_v20 = vsel %vm1874_vm2, %v2152_v43, %v2151_v12  ;;  %v2205_v13 = vpack.c.b16 %v6919_v19, %v6892_v52  ;;  %v725_v27 = vrot.slane %v711_v0, %v6226_v24  ;;  %v742_v61 = vrot.slane %v5647_v14, %v6226_v24 }
  0x6d   : > { %v2155_v57 = vsel %vm1877_vm3, %v2154_v56, %v2153_v20  ;;  %v773_v23 = vcombine.high %v6916_v21, %v6916_v21  ;;  %v726_v29 = vcombine.high %v718_v22, %v718_v22  ;;  %v749_v39 = vrot.slane %v735_v28, %v6226_v24 }
  0x6e   : > { %v2157_v41 = vsel %vm1880_vm4, %v2156_v35, %v2155_v57  ;;  %5921 = vmatmul.mubr.msk.bf16.vlgmr.msra.gmra.mxu1 %vm2014_vm7, %v2205_v13  ;;  %v1473_v43 = vrot.slane %v718_v22, %v6226_v24  ;;  %v727_v56 = vcombine.high %v725_v27, %v725_v27  ;;  %v750_v50 = vcombine.high %v742_v61, %v742_v61  ;;  %v6089_v35 = vld [vmem:[%s8333_s2 + $0x68] sm:$0xff]  }
  0x6f   : > { %v2159_v31 = vsel %vm1883_vm5, %v2158_v15, %v2157_v41  ;;  %5945 = vmatpush3.bf16.msra.mxu1 %v8504_v44  ;;  %v1487_v63 = vrot.slane %v725_v27, %v6226_v24  ;;  %v751_v1 = vcombine.high %v749_v39, %v749_v39  ;;  %v1501_v11 = vrot.slane %v726_v29, %v6226_v24 }
  0x70   : > { %v6942_v45 = vsel %vm1886_vm6, %v2160_v62, %v2159_v31  ;;  %5946 = vmatprep.subr.bf16.mxu1 %v6087_v60  ;;  %v1480_v46 = vrot.slane %v1473_v43, %v6226_v24  ;;  %v1515_v14 = vrot.slane %v727_v56, %v6226_v24  ;;  %v1529_v47 = vrot.slane %v742_v61, %v6226_v24 }
  0x71   : > { %8503 = vst [vmem:[#allocation4_spill] sm:$0xff] %v6942_v45  ;;  %v1494_v15 = vrot.slane %v1487_v63, %v6226_v24  ;;  %v1543_v12 = vrot.slane %v749_v39, %v6226_v24  ;;  %v1508_v62 = vrot.slane %v1501_v11, %v6226_v24  ;;  %v1557_v18 = vrot.slane %v750_v50, %v6226_v24 }
  0x72   : > { %v1571_v20 = vrot.slane %v751_v1, %v6226_v24  ;;  %v1843_v0 = vunpack.c.l.b16 %v1480_v46  ;;  %v1522_v57 = vrot.slane %v1515_v14, %v6226_v24  ;;  %v1536_v13 = vrot.slane %v1529_v47, %v6226_v24  ;;  %v5650_v47 = vld.sshfl [vmem:[%s6207_s8 + $0x94] sm:$0x33 pattern:$0x75316420] }
  0x73   : > { %5947 = vmatpush3.bf16.msra.mxu1 %v6087_v60  ;;  %v1550_v22 = vrot.slane %v1543_v12, %v6226_v24  ;;  %v6963_v28 = vunpack.c.l.b16 %v1494_v15  ;;  %v1564_v41 = vrot.slane %v1557_v18, %v6226_v24  ;;  %v6967_v61 = vunpack.c.l.b16 %v1508_v62  ;;  %v6091_v60 = vld [vmem:[%s8333_s2 + $0x60] sm:$0xff]  }
  0x74   : > { %v1578_v27 = vrot.slane %v1571_v20, %v6226_v24  ;;  %v1944_v31 = vrot.slane %v1843_v0, 1  ;;  %5948 = vmatprep.subr.bf16.mxu1 %v6089_v35  ;;  %v6972_v29 = vunpack.c.l.b16 %v1522_v57  ;;  %v1847_v39 = vunpack.c.l.b16 %v1536_v13  ;;  %v6998_v57 = vld [vmem:[%s8333_s2 + $0xb8] sm:$0xff]  }
  0x75   : > { %v1848_v43 = vunpack.c.l.b16 %v1550_v22  ;;  %v2162_v44 = vrot.slane %v6963_v28, 7  ;;  %v6975_v56 = vunpack.c.l.b16 %v1564_v41  ;;  %v8365_v1 = vrot.slane %v6967_v61, 7 }
  0x76   : > { %v6977_v50 = vunpack.c.l.b16 %v1578_v27  ;;  %v1945_v63 = vsel %vm1868_vm0, %v6963_v28, %v1944_v31  ;;  %v8364_v46 = vrot.slane %v6972_v29, 6  ;;  %v6983_v11 = vrot.slane %v1847_v39, 5 }
  0x77   : > { %v6985_v15 = vrot.slane %v1848_v43, 4  ;;  %v2163_v14 = vsel %vm1868_vm0, %v2162_v44, %v1843_v0  ;;  %5949 = vmatpush3.bf16.msra.mxu1 %v6089_v35  ;;  %v1947_v12 = vsel %vm1871_vm1, %v8365_v1, %v1945_v63  ;;  %v8363_v62 = vrot.slane %v6975_v56, 3 }
  0x78   : > { %v8362_v18 = vrot.slane %v6977_v50, 2  ;;  %v2164_v20 = vrot.slane %v6967_v61, 6  ;;  %5950 = vmatprep.subr.bf16.mxu1 %v6091_v60  ;;  %v1949_v35 = vsel %vm1874_vm2, %v8364_v46, %v1947_v12  ;;  %v2166_v0 = vrot.slane %v6972_v29, 5 }
  0x79   : > { %v2168_v13 = vrot.slane %v1847_v39, 4  ;;  %v2170_v22 = vrot.slane %v1848_v43, 3  ;;  %v1951_v41 = vsel %vm1877_vm3, %v6983_v11, %v1949_v35  ;;  %v2172_v31 = vrot.slane %v6975_v56, 2 }
  0x7a   : > { %v2165_v27 = vsel %vm1871_vm1, %v2164_v20, %v2163_v14  ;;  %v2174_v44 = vrot.slane %v6977_v50, 1  ;;  %v1953_v63 = vsel %vm1880_vm4, %v6985_v15, %v1951_v41  ;;  %v5652_v12 = vld.sshfl [vmem:[%s6207_s8 + $0xa8] sm:$0x33 pattern:$0x75316420]  ;;  %v780_v40 = vrot.slane %v6916_v21, %v6226_v24 }
  0x7b   : > { %v2167_v37 = vsel %vm1874_vm2, %v2166_v0, %v2165_v27  ;;  %v787_v39 = vrot.slane %v773_v23, %v6226_v24  ;;  %5951 = vmatpush3.bf16.msra.mxu1 %v6091_v60  ;;  %v1955_v43 = vsel %vm1883_vm5, %v8363_v62, %v1953_v63  ;;  %v5653_v20 = vld.sshfl [vmem:[%s6207_s8 + $0xac] sm:$0x33 pattern:$0x75316420]  ;;  %v797_v35 = vcombine.high %v5650_v47, %v5650_v47 }
  0x7c   : > { %v2169_v14 = vsel %vm1877_vm3, %v2168_v13, %v2167_v37  ;;  %v804_v0 = vrot.slane %v5650_v47, %v6226_v24  ;;  %5976 = vmatprep.subr.bf16.mxu1 %v6998_v57  ;;  %v7029_v41 = vsel %vm1886_vm6, %v8362_v18, %v1955_v43  ;;  %v788_v23 = vcombine.high %v780_v40, %v780_v40 }
  0x7d   : > { %8505 = vst [vmem:[#allocation5_spill] sm:$0xff] %v7029_v41  ;;  %v2171_v21 = vsel %vm1880_vm4, %v2170_v22, %v2169_v14  ;;  %v789_v60 = vcombine.high %v787_v39, %v787_v39  ;;  %v1988_v27 = vpack.c.b16 %v7029_v41, %v6791_v4  ;;  %v811_v13 = vrot.slane %v797_v35, %v6226_v24 }
  0x7e   : > { %v2173_v37 = vsel %vm1883_vm5, %v2172_v31, %v2171_v21  ;;  %v812_v63 = vcombine.high %v804_v0, %v804_v0  ;;  %v835_v7 = vcombine.high %v5652_v12, %v5652_v12  ;;  %v842_v5 = vrot.slane %v5652_v12, %v6226_v24 }
  0x7f   : > { %v7037_v47 = vsel %vm1886_vm6, %v2174_v44, %v2173_v37  ;;  %v859_v43 = vcombine.high %v5653_v20, %v5653_v20  ;;  %5908 = vmatprep.mubr.msk.bf16.mxu0 %vm2014_vm7, %v1988_v27  ;;  %v813_v14 = vcombine.high %v811_v13, %v811_v13  ;;  %v866_v18 = vrot.slane %v5653_v20, %v6226_v24 }
  0x80   : > { %8506 = vst [vmem:[#allocation10_spill] sm:$0xff] %v7037_v47  ;;  %v2206_v22 = vpack.c.b16 %v7037_v47, %v6942_v45  ;;  %v1585_v31 = vrot.slane %v780_v40, %v6226_v24  ;;  %v849_v35 = vrot.slane %v835_v7, %v6226_v24  ;;  %v850_v21 = vcombine.high %v842_v5, %v842_v5 }
  0x81   : > { %v873_v44 = vrot.slane %v859_v43, %v6226_v24  ;;  %v1599_v37 = vrot.slane %v787_v39, %v6226_v24  ;;  %v874_v12 = vcombine.high %v866_v18, %v866_v18  ;;  %v1613_v62 = vrot.slane %v788_v23, %v6226_v24 }
  0x82   : > { %5924 = vmatprep.mubr.msk.bf16.mxu1 %vm2014_vm7, %v2206_v22  ;;  %v7050_v27 = vrot.slane %v1585_v31, %v6226_v24  ;;  %v1627_v46 = vrot.slane %v789_v60, %v6226_v24  ;;  %v851_v20 = vcombine.high %v849_v35, %v849_v35  ;;  %v1641_v7 = vrot.slane %v804_v0, %v6226_v24 }
  0x83   : > { %v875_v1 = vcombine.high %v873_v44, %v873_v44  ;;  %v1606_v40 = vrot.slane %v1599_v37, %v6226_v24  ;;  %v1620_v43 = vrot.slane %v1613_v62, %v6226_v24  ;;  %v1655_v22 = vrot.slane %v811_v13, %v6226_v24 }
  0x84   : > { %v1634_v39 = vrot.slane %v1627_v46, %v6226_v24  ;;  %v1669_v51 = vrot.slane %v812_v63, %v6226_v24  ;;  %v7061_v31 = vrot.slane %v1641_v7, %v6226_v24  ;;  %v1683_v23 = vrot.slane %v813_v14, %v6226_v24 }
  0x85   : > { %v1697_v60 = vrot.slane %v842_v5, %v6226_v24  ;;  %v1711_v38 = vrot.slane %v849_v35, %v6226_v24  ;;  %v7067_v37 = vrot.slane %v1655_v22, %v6226_v24  ;;  %v1725_v46 = vrot.slane %v850_v21, %v6226_v24 }
  0x86   : > { %v1676_v62 = vrot.slane %v1669_v51, %v6226_v24  ;;  %v1739_v0 = vrot.slane %v851_v20, %v6226_v24  ;;  %v1690_v13 = vrot.slane %v1683_v23, %v6226_v24  ;;  %v1753_v5 = vrot.slane %v866_v18, %v6226_v24 }
  0x87   : > { %v7074_v63 = vrot.slane %v1697_v60, %v6226_v24  ;;  %v1718_v14 = vrot.slane %v1711_v38, %v6226_v24  ;;  %v1732_v35 = vrot.slane %v1725_v46, %v6226_v24  ;;  %v1767_v22 = vrot.slane %v873_v44, %v6226_v24 }
  0x88   : > { %v1746_v7 = vrot.slane %v1739_v0, %v6226_v24  ;;  %v1781_v51 = vrot.slane %v874_v12, %v6226_v24  ;;  %v7083_v21 = vrot.slane %v1753_v5, %v6226_v24  ;;  %v1795_v20 = vrot.slane %v875_v1, %v6226_v24 }
  0x89   : > { %v1851_v23 = vunpack.c.l.b16 %v7050_v27  ;;  %v7087_v60 = vunpack.c.l.b16 %v1606_v40  ;;  %v7090_v38 = vrot.slane %v1767_v22, %v6226_v24  ;;  %v7093_v46 = vunpack.c.l.b16 %v1620_v43 }
  0x8a   : > { %v1788_v18 = vrot.slane %v1781_v51, %v6226_v24  ;;  %v7095_v0 = vunpack.c.l.b16 %v1634_v39  ;;  %v1802_v44 = vrot.slane %v1795_v20, %v6226_v24  ;;  %v1855_v12 = vunpack.c.l.b16 %v7061_v31 }
  0x8b   : > { %v1856_v5 = vunpack.c.l.b16 %v7067_v37  ;;  %v7100_v1 = vunpack.c.l.b16 %v1676_v62  ;;  %v7102_v27 = vunpack.c.l.b16 %v1690_v13  ;;  %v1859_v40 = vunpack.c.l.b16 %v7074_v63 }
  0x8c   : > { %v7105_v22 = vunpack.c.l.b16 %v1718_v14  ;;  %v7107_v4 = vunpack.c.l.b16 %v1732_v35  ;;  %v7109_v43 = vunpack.c.l.b16 %v1746_v7  ;;  %v1863_v39 = vunpack.c.l.b16 %v7083_v21 }
  0x8d   : > { %v1864_v51 = vunpack.c.l.b16 %v7090_v38  ;;  %v7113_v20 = vunpack.c.l.b16 %v1788_v18  ;;  %v7115_v31 = vunpack.c.l.b16 %v1802_v44  ;;  %v1958_v37 = vrot.slane %v1851_v23, 1 }
  0x8e   : > { %v8371_v62 = vrot.slane %v7093_v46, 7  ;;  %v7119_v63 = vrot.slane %v1855_v12, 5  ;;  %v7121_v14 = vrot.slane %v1856_v5, 4  ;;  %v1972_v38 = vrot.slane %v1859_v40, 1 }
  0x8f   : > { %v1959_v21 = vsel %vm1868_vm0, %v7087_v60, %v1958_v37  ;;  %v7132_v41 = vrot.slane %v1863_v39, 5  ;;  %v7134_v19 = vrot.slane %v1864_v51, 4  ;;  %v8509_v7 = vrot.slane %v7095_v0, 6 }
  0x90   : > { %8507 = vst [vmem:[#allocation11_spill] sm:$0xff] %v7121_v14  ;;  %v1961_v13 = vsel %vm1871_vm1, %v8371_v62, %v1959_v21  ;;  %v1973_v37 = vsel %vm1868_vm0, %v7105_v22, %v1972_v38  ;;  %v2176_v44 = vrot.slane %v7087_v60, 7  ;;  %v8510_v62 = vrot.slane %v7107_v4, 7 }
  0x91   : > { %8508 = vst [vmem:[#allocation6_spill] sm:$0xff] %v7134_v19  ;;  %v1963_v45 = vsel %vm1874_vm2, %v8509_v7, %v1961_v13  ;;  %v2178_v35 = vrot.slane %v7093_v46, 6  ;;  %v2180_v58 = vrot.slane %v7095_v0, 5  ;;  %v8511_v7 = vrot.slane %v7109_v43, 6 }
  0x92   : > { %v1965_v21 = vsel %vm1877_vm3, %v7119_v63, %v1963_v45  ;;  %v1975_v30 = vsel %vm1871_vm1, %v8510_v62, %v1973_v37  ;;  %v2177_v18 = vsel %vm1868_vm0, %v2176_v44, %v1851_v23  ;;  %v2182_v47 = vrot.slane %v1855_v12, 4 }
  0x93   : > { %v1967_v13 = vsel %vm1880_vm4, %v7121_v14, %v1965_v21  ;;  %v1977_v38 = vsel %vm1874_vm2, %v8511_v7, %v1975_v30  ;;  %v8512_v45 = vrot.slane %v7100_v1, 3  ;;  %v2179_v37 = vsel %vm1871_vm1, %v2178_v35, %v2177_v18 }
  0x94   : > { %v1979_v62 = vsel %vm1877_vm3, %v7132_v41, %v1977_v38  ;;  %v2184_v52 = vrot.slane %v1856_v5, 3  ;;  %v8513_v21 = vrot.slane %v7102_v27, 2  ;;  %v2181_v23 = vsel %vm1874_vm2, %v2180_v58, %v2179_v37  ;;  %v5636_v37 = vld.sshfl [vmem:[%s6207_s8 + $0x20] sm:$0x1 pattern:$0x75316420] }
  0x95   : > { %v1969_v10 = vsel %vm1883_vm5, %v8512_v45, %v1967_v13  ;;  %v1981_v30 = vsel %vm1880_vm4, %v7134_v19, %v1979_v62  ;;  %v2186_v12 = vrot.slane %v7100_v1, 2  ;;  %v8515_v44 = vrot.slane %v7113_v20, 3 }
  0x96   : > { %v7166_v14 = vsel %vm1886_vm6, %v8513_v21, %v1969_v10  ;;  %v2183_v35 = vsel %vm1877_vm3, %v2182_v47, %v2181_v23  ;;  %v2188_v5 = vrot.slane %v7102_v27, 1  ;;  %v2190_v18 = vrot.slane %v7105_v22, 7  ;;  %v5633_v10 = vld.sshfl [vmem:[%s6207_s8 + $0x8] sm:$0x1 pattern:$0x75316420] }
  0x97   : > { %8514 = vst [vmem:[#allocation7_spill] sm:$0xff] %v7166_v14  ;;  %v1983_v13 = vsel %vm1883_vm5, %v8515_v44, %v1981_v30  ;;  %v8516_v7 = vrot.slane %v7115_v31, 2  ;;  %v2185_v58 = vsel %vm1880_vm4, %v2184_v52, %v2183_v35  ;;  %v2192_v45 = vrot.slane %v7107_v4, 6 }
  0x98   : > { %v2194_v62 = vrot.slane %v7109_v43, 5  ;;  %v2187_v21 = vsel %vm1883_vm5, %v2186_v12, %v2185_v58  ;;  %v2191_v30 = vsel %vm1868_vm0, %v2190_v18, %v1859_v40  ;;  %v2196_v23 = vrot.slane %v1863_v39, 4  ;;  %v5695_v44 = vld.sshfl [vmem:[%s6207_s8 + $0xc] sm:$0x33 pattern:$0x75316420] }
  0x99   : > { %v7182_v38 = vsel %vm1886_vm6, %v8516_v7, %v1983_v13  ;;  %v7194_v19 = vsel %vm1886_vm6, %v2188_v5, %v2187_v21  ;;  %v2193_v13 = vsel %vm1871_vm1, %v2192_v45, %v2191_v30  ;;  %v2198_v52 = vrot.slane %v1864_v51, 3 }
  0x9a   : > { %8517 = vst [vmem:[#allocation2_spill] sm:$0xff] %v7182_v38  ;;  %v1989_v47 = vpack.c.b16 %v7182_v38, %v7166_v14  ;;  %8518 = vst [vmem:[#allocation22_spill] sm:$0xff] %v7194_v19  ;;  %v2200_v35 = vrot.slane %v7113_v20, 2  ;;  %v2195_v7 = vsel %vm1874_vm2, %v2194_v62, %v2193_v13  ;;  %v2202_v38 = vrot.slane %v7115_v31, 1 }
  0x9b   : > { %v455_v12 = vrot.slane %v5633_v10, %v6226_v24  ;;  %v517_v40 = vrot.slane %v5636_v37, %v6226_v24  ;;  %v2197_v39 = vsel %vm1877_vm3, %v2196_v23, %v2195_v7  ;;  %v8519_v5 = vrot.slane %v6547_v3, 7  ;;  %v8525_v7 = vld [vmem:[#allocation13_spill] sm:$0xff] }
  0x9c   : > { %5909 = vmatmul.mubr.msk.bf16.gmra.mxu0 %vm2014_vm7, %v1989_v47  ;;  %v8520_v18 = vrot.slane %v6575_v26, 7  ;;  %v2646_v45 = vcombine.high %v5695_v44, %v5695_v44  ;;  %v2199_v62 = vsel %vm1880_vm4, %v2198_v52, %v2197_v39  ;;  %v8521_v47 = vrot.slane %v6552_v9, 6 }
  0x9d   : > { %v2438_v51 = vsel %vm1868_vm0, %v8519_v5, %v6542_v49  ;;  %v2324_v10 = vrot.slane %v455_v12, %v6226_v24  ;;  %v2338_v37 = vrot.slane %v517_v40, %v6226_v24  ;;  %v2201_v21 = vsel %vm1883_vm5, %v2200_v35, %v2199_v62  ;;  %v8522_v49 = vld [vmem:[#allocation12_spill] sm:$0xff]  ;;  %v8527_v5 = vld [vmem:[#allocation14_spill] sm:$0xff] }
  0x9e   : > { %v2446_v58 = vsel %vm1868_vm0, %v8520_v18, %v6570_v25  ;;  %v2439_v3 = vsel %vm1871_vm1, %v8521_v47, %v2438_v51  ;;  %v8523_v26 = vrot.slane %v6580_v32, 6  ;;  %v2653_v23 = vrot.slane %v5695_v44, %v6226_v24  ;;  %v5696_v12 = vld.sshfl [vmem:[%s6207_s8 + $0x10] sm:$0x33 pattern:$0x75316420] }
  0x9f   : > { %v2440_v30 = vsel %vm1874_vm2, %v8522_v49, %v2439_v3  ;;  %v7226_v13 = vsel %vm1886_vm6, %v2202_v38, %v2201_v21  ;;  %v2331_v52 = vrot.slane %v2324_v10, %v6226_v24  ;;  %v2345_v9 = vrot.slane %v2338_v37, %v6226_v24  ;;  %v5698_v38 = vld.sshfl [vmem:[%s6207_s8 + $0x24] sm:$0x33 pattern:$0x75316420]  ;;  %v8529_v37 = vld [vmem:[#allocation15_spill] sm:$0xff] }
  0xa0   : > { %v2447_v25 = vsel %vm1871_vm1, %v8523_v26, %v2446_v58  ;;  %8524 = vst [vmem:[#allocation12_spill] sm:$0xff] %v7226_v13  ;;  %v2441_v35 = vsel %vm1877_vm3, %v8525_v7, %v2440_v30  ;;  %v2207_v40 = vpack.c.b16 %v7226_v13, %v7194_v19  ;;  %v8526_v32 = vrot.slane %v6561_v16, 3  ;;  %v5699_v3 = vld.sshfl [vmem:[%s6207_s8 + $0x28] sm:$0x33 pattern:$0x75316420] }
  0xa1   : > { %v2448_v44 = vsel %vm1874_vm2, %v8527_v5, %v2447_v25  ;;  %v2660_v51 = vrot.slane %v2646_v45, %v6226_v24  ;;  %v2430_v18 = vunpack.c.l.b16 %v2331_v52  ;;  %v2431_v58 = vunpack.c.l.b16 %v2345_v9 }
  0xa2   : > { %v2442_v39 = vsel %vm1880_vm4, %v8526_v32, %v2441_v35  ;;  %v8528_v62 = vrot.slane %v6566_v17, 2  ;;  %v2449_v47 = vsel %vm1877_vm3, %v8529_v37, %v2448_v44  ;;  %5925 = vmatmul.mubr.msk.bf16.gmra.mxu1 %vm2014_vm7, %v2207_v40  ;;  %v8530_v16 = vrot.slane %v6584_v42, 3 }
  0xa3   : > { %v2661_v49 = vcombine.high %v2653_v23, %v2653_v23  ;;  %v2662_v30 = vcombine.high %v2660_v51, %v2660_v51  ;;  %v2670_v26 = vcombine.high %v5696_v12, %v5696_v12  ;;  %v2444_v45 = vrot.slane %v2430_v18, 1 }
  0xa4   : > { %v2443_v10 = vsel %vm1883_vm5, %v8528_v62, %v2442_v39  ;;  %v2450_v21 = vsel %vm1880_vm4, %v8530_v16, %v2449_v47  ;;  %v8531_v25 = vrot.slane %v6586_v34, 2  ;;  %v2452_v52 = vrot.slane %v2431_v58, 1 }
  0xa5   : > { %v2677_v9 = vrot.slane %v5696_v12, %v6226_v24  ;;  %v2684_v7 = vrot.slane %v2670_v26, %v6226_v24  ;;  %v2708_v35 = vcombine.high %v5698_v38, %v5698_v38  ;;  %v2715_v40 = vrot.slane %v5698_v38, %v6226_v24 }
  0xa6   : > { %v2451_v17 = vsel %vm1883_vm5, %v8531_v25, %v2450_v21  ;;  %v2732_v32 = vcombine.high %v5699_v3, %v5699_v3  ;;  %v2445_v42 = vsel %vm1886_vm6, %v2444_v45, %v2443_v10  ;;  %v2739_v44 = vrot.slane %v5699_v3, %v6226_v24  ;;  %v6094_v10 = vld [vmem:[%s8333_s2 + $0x90] sm:$0xff]  }
  0xa7   : > { %v7260_v39 = vsel %vm1886_vm6, %v2452_v52, %v2451_v17  ;;  %v2685_v5 = vcombine.high %v2677_v9, %v2677_v9  ;;  %v2686_v18 = vcombine.high %v2684_v7, %v2684_v7  ;;  %v2722_v58 = vrot.slane %v2708_v35, %v6226_v24 }
  0xa8   : > { %8532 = vst [vmem:[#allocation13_spill] sm:$0xff] %v7260_v39  ;;  %v2502_v34 = vpack.c.b16 %v7260_v39, %v2445_v42  ;;  %v2723_v12 = vcombine.high %v2715_v40, %v2715_v40  ;;  %v2746_v62 = vrot.slane %v2732_v32, %v6226_v24  ;;  %v2747_v37 = vcombine.high %v2739_v44, %v2739_v44 }
  0xa9   : > { %v3150_v38 = vrot.slane %v2653_v23, %v6226_v24  ;;  %v3164_v47 = vrot.slane %v2660_v51, %v6226_v24  ;;  %v2724_v3 = vcombine.high %v2722_v58, %v2722_v58  ;;  %v3178_v16 = vrot.slane %v2661_v49, %v6226_v24 }
  0xaa   : > { %5936 = vmatprep.mubr.msk.bf16.mxu0 %vm2014_vm7, %v2502_v34  ;;  %v3192_v21 = vrot.slane %v2662_v30, %v6226_v24  ;;  %v3206_v26 = vrot.slane %v2677_v9, %v6226_v24  ;;  %v2748_v45 = vcombine.high %v2746_v62, %v2746_v62  ;;  %v3220_v51 = vrot.slane %v2684_v7, %v6226_v24  ;;  %v6096_v34 = vld [vmem:[%s8333_s2 + $0x88] sm:$0xff]  }
  0xab   : > { %v7276_v25 = vrot.slane %v3150_v38, %v6226_v24  ;;  %v3171_v23 = vrot.slane %v3164_v47, %v6226_v24  ;;  %v8533_v17 = vpack.c.b16 %v6814_v53, %v6808_v8  ;;  %v3185_v52 = vrot.slane %v3178_v16, %v6226_v24 }
  0xac   : > { %v3199_v49 = vrot.slane %v3192_v21, %v6226_v24  ;;  %v7287_v30 = vrot.slane %v3206_v26, %v6226_v24  ;;  %v3234_v9 = vrot.slane %v2685_v5, %v6226_v24  ;;  %v7292_v35 = vrot.slane %v3220_v51, %v6226_v24 }
  0xad   : > { %5937 = vmatmul.mubr.msk.bf16.vlgmr.msra.gmra.mxu0 %vm2014_vm7, %v8533_v17  ;;  %v3248_v7 = vrot.slane %v2686_v18, %v6226_v24  ;;  %v3262_v32 = vrot.slane %v2715_v40, %v6226_v24  ;;  %v3276_v42 = vrot.slane %v2722_v58, %v6226_v24  ;;  %v3290_v5 = vrot.slane %v2723_v12, %v6226_v24 }
  0xae   : > { %5961 = vmatpush3.bf16.msra.mxu0 %v6854_v33  ;;  %v3241_v38 = vrot.slane %v3234_v9, %v6226_v24  ;;  %v3304_v33 = vrot.slane %v2724_v3, %v6226_v24  ;;  %v3318_v47 = vrot.slane %v2739_v44, %v6226_v24  ;;  %v3332_v58 = vrot.slane %v2746_v62, %v6226_v24  ;;  %v6098_v62 = vld [vmem:[%s8333_s2 + $0x80] sm:$0xff]  }
  0xaf   : > { %5962 = vmatprep.subr.bf16.mxu0 %v6094_v10  ;;  %v3255_v16 = vrot.slane %v3248_v7, %v6226_v24  ;;  %v7306_v18 = vrot.slane %v3262_v32, %v6226_v24  ;;  %v3283_v40 = vrot.slane %v3276_v42, %v6226_v24  ;;  %v3297_v21 = vrot.slane %v3290_v5, %v6226_v24 }
  0xb0   : > { %v3311_v26 = vrot.slane %v3304_v33, %v6226_v24  ;;  %v7313_v51 = vrot.slane %v3318_v47, %v6226_v24  ;;  %v3346_v12 = vrot.slane %v2747_v37, %v6226_v24  ;;  %v7317_v44 = vrot.slane %v3332_v58, %v6226_v24 }
  0xb1   : > { %v3360_v3 = vrot.slane %v2748_v45, %v6226_v24  ;;  %v7321_v9 = vunpack.c.l.b16 %v3171_v23  ;;  %v7327_v32 = vunpack.c.l.b16 %v3185_v52  ;;  %v7329_v37 = vunpack.c.l.b16 %v3199_v49 }
  0xb2   : > { %8534 = vst [vmem:[#allocation14_spill] sm:$0xff] %v7313_v51  ;;  %5963 = vmatpush3.bf16.msra.mxu0 %v6094_v10  ;;  %8535 = vst [vmem:[#allocation15_spill] sm:$0xff] %v7317_v44  ;;  %v3353_v7 = vrot.slane %v3346_v12, %v6226_v24  ;;  %v8384_v10 = vunpack.c.l.b16 %v7287_v30  ;;  %v8386_v42 = vunpack.c.l.b16 %v7292_v35  ;;  %v7334_v23 = vunpack.c.l.b16 %v3241_v38  ;;  %v5702_v12 = vld.sshfl [vmem:[%s6207_s8 + $0x40] sm:$0x33 pattern:$0x75316420] }
  0xb3   : > { %5964 = vmatprep.subr.bf16.mxu0 %v6096_v34  ;;  %v3367_v45 = vrot.slane %v3360_v3, %v6226_v24  ;;  %v7336_v5 = vunpack.c.l.b16 %v3255_v16  ;;  %v7339_v47 = vunpack.c.l.b16 %v3283_v40  ;;  %v7341_v52 = vunpack.c.l.b16 %v3297_v21  ;;  %v5701_v16 = vld.sshfl [vmem:[%s6207_s8 + $0x3c] sm:$0x33 pattern:$0x75316420] }
  0xb4   : > { %8536 = vst [vmem:[#allocation23_spill] sm:$0xff] %v7334_v23  ;;  %v7343_v58 = vunpack.c.l.b16 %v3311_v26  ;;  %v7347_v3 = vunpack.c.l.b16 %v3353_v7  ;;  %v6100_v40 = vld [vmem:[%s8333_s2 + $0xd8] sm:$0xff]   ;;  %v4104_v21 = vrot.slane %v7321_v9, 7  ;;  %v4106_v26 = vrot.slane %v7327_v32, 6 }
  0xb5   : > { %8537 = vst [vmem:[#allocation24_spill] sm:$0xff] %v7336_v5  ;;  %8538 = vst [vmem:[#allocation25_spill] sm:$0xff] %v7339_v47  ;;  %v7349_v38 = vunpack.c.l.b16 %v3367_v45  ;;  %v4110_v33 = vrot.slane %v8384_v10, 4  ;;  %v4112_v7 = vrot.slane %v8386_v42, 3  ;;  %v4114_v45 = vrot.slane %v7334_v23, 2 }
  0xb6   : > { %8539 = vst [vmem:[#allocation26_spill] sm:$0xff] %v7341_v52  ;;  %8540 = vst [vmem:[#allocation27_spill] sm:$0xff] %v7343_v58  ;;  %5965 = vmatpush3.bf16.msra.mxu0 %v6096_v34  ;;  %v4108_v34 = vrot.slane %v7329_v37, 5  ;;  %v4116_v49 = vrot.slane %v7336_v5, 1  ;;  %v4118_v17 = vrot.slane %v7339_v47, 7  ;;  %v8543_v53 = vunpack.c.l.b16 %v7276_v25 }
  0xb7   : > { %8541 = vst [vmem:[#allocation28_spill] sm:$0xff] %v7347_v3  ;;  %8542 = vst [vmem:[#allocation29_spill] sm:$0xff] %v7349_v38  ;;  %5966 = vmatprep.subr.bf16.mxu0 %v6098_v62  ;;  %v4120_v39 = vrot.slane %v7341_v52, 6  ;;  %v4122_v13 = vrot.slane %v7343_v58, 5  ;;  %v8544_v10 = vunpack.c.l.b16 %v7313_v51  ;;  %v8545_v19 = vunpack.c.l.b16 %v7306_v18 }
  0xb8   : > { %v4105_v8 = vsel %vm1868_vm0, %v4104_v21, %v8543_v53  ;;  %v8546_v47 = vunpack.c.l.b16 %v7317_v44  ;;  %v4128_v53 = vrot.slane %v7347_v3, 2 }
  0xb9   : > { %v4124_v14 = vrot.slane %v8544_v10, 4  ;;  %v4107_v42 = vsel %vm1871_vm1, %v4106_v26, %v4105_v8  ;;  %v4119_v5 = vsel %vm1868_vm0, %v4118_v17, %v8545_v19  ;;  %v2770_v10 = vcombine.high %v5701_v16, %v5701_v16 }
  0xba   : > { %5967 = vmatpush3.bf16.msra.mxu0 %v6098_v62  ;;  %v4126_v23 = vrot.slane %v8546_v47, 3  ;;  %v4109_v21 = vsel %vm1874_vm2, %v4108_v34, %v4107_v42  ;;  %v4121_v51 = vsel %vm1871_vm1, %v4120_v39, %v4119_v5  ;;  %v4130_v62 = vrot.slane %v7349_v38, 1  ;;  %v5705_v34 = vld.sshfl [vmem:[%s6207_s8 + $0x58] sm:$0x33 pattern:$0x75316420] }
  0xbb   : > { %5992 = vmatprep.subr.bf16.mxu0 %v6100_v40  ;;  %v4111_v8 = vsel %vm1877_vm3, %v4110_v33, %v4109_v21  ;;  %v4123_v26 = vsel %vm1874_vm2, %v4122_v13, %v4121_v51  ;;  %v2777_v19 = vrot.slane %v5701_v16, %v6226_v24  ;;  %v2794_v17 = vcombine.high %v5702_v12, %v5702_v12  ;;  %v5704_v40 = vld.sshfl [vmem:[%s6207_s8 + $0x54] sm:$0x33 pattern:$0x75316420] }
  0xbc   : > { %v4113_v47 = vsel %vm1880_vm4, %v4112_v7, %v4111_v8  ;;  %v4125_v3 = vsel %vm1877_vm3, %v4124_v14, %v4123_v26  ;;  %v2784_v44 = vrot.slane %v2770_v10, %v6226_v24  ;;  %v2801_v42 = vrot.slane %v5702_v12, %v6226_v24  ;;  %v5645_v38 = vld.sshfl [vmem:[%s6207_s8 + $0x68] sm:$0x1 pattern:$0x75316420] }
  0xbd   : > { %v4115_v39 = vsel %vm1883_vm5, %v4114_v45, %v4113_v47  ;;  %v4127_v5 = vsel %vm1880_vm4, %v4126_v23, %v4125_v3  ;;  %v2785_v33 = vcombine.high %v2777_v19, %v2777_v19  ;;  %v2808_v13 = vrot.slane %v2794_v17, %v6226_v24 }
  0xbe   : > { %v4117_v51 = vsel %vm1886_vm6, %v4116_v49, %v4115_v39  ;;  %v4129_v16 = vsel %vm1883_vm5, %v4128_v53, %v4127_v5  ;;  %v2786_v7 = vcombine.high %v2784_v44, %v2784_v44  ;;  %v2809_v21 = vcombine.high %v2801_v42, %v2801_v42 }
  0xbf   : > { %v4131_v14 = vsel %vm1886_vm6, %v4130_v62, %v4129_v16  ;;  %v2810_v8 = vcombine.high %v2808_v13, %v2808_v13  ;;  %v2832_v10 = vcombine.high %v5704_v40, %v5704_v40  ;;  %v2839_v12 = vrot.slane %v5704_v40, %v6226_v24 }
  0xc0   : > { %v4216_v26 = vpack.c.b16 %v4131_v14, %v4117_v51  ;;  %v2856_v45 = vcombine.high %v5705_v34, %v5705_v34  ;;  %v2863_v23 = vrot.slane %v5705_v34, %v6226_v24  ;;  %v3374_v3 = vrot.slane %v2777_v19, %v6226_v24 }
  0xc1   : > { %v2846_v17 = vrot.slane %v2832_v10, %v6226_v24  ;;  %v2847_v47 = vcombine.high %v2839_v12, %v2839_v12  ;;  %v3388_v49 = vrot.slane %v2784_v44, %v6226_v24  ;;  %v3402_v53 = vrot.slane %v2785_v33, %v6226_v24 }
  0xc2   : > { %5952 = vmatprep.mubr.msk.bf16.mxu1 %vm2014_vm7, %v4216_v26  ;;  %v2870_v62 = vrot.slane %v2856_v45, %v6226_v24  ;;  %v2871_v39 = vcombine.high %v2863_v23, %v2863_v23  ;;  %v7407_v40 = vrot.slane %v3374_v3, %v6226_v24  ;;  %v3416_v5 = vrot.slane %v2786_v7, %v6226_v24 }
  0xc3   : > { %v2848_v34 = vcombine.high %v2846_v17, %v2846_v17  ;;  %v3395_v19 = vrot.slane %v3388_v49, %v6226_v24  ;;  %v3409_v51 = vrot.slane %v3402_v53, %v6226_v24  ;;  %v3430_v16 = vrot.slane %v2801_v42, %v6226_v24 }
  0xc4   : > { %8547 = vst [vmem:[#allocation30_spill] sm:$0xff] %v7407_v40  ;;  %v2872_v44 = vcombine.high %v2870_v62, %v2870_v62  ;;  %v3423_v33 = vrot.slane %v3416_v5, %v6226_v24  ;;  %v3444_v14 = vrot.slane %v2808_v13, %v6226_v24  ;;  %v3458_v10 = vrot.slane %v2809_v21, %v6226_v24 }
  0xc5   : > { %v7417_v26 = vrot.slane %v3430_v16, %v6226_v24  ;;  %v3472_v45 = vrot.slane %v2810_v8, %v6226_v24  ;;  %v3486_v7 = vrot.slane %v2839_v12, %v6226_v24  ;;  %v3500_v3 = vrot.slane %v2846_v17, %v6226_v24 }
  0xc6   : > { %v7423_v49 = vrot.slane %v3444_v14, %v6226_v24  ;;  %v3465_v42 = vrot.slane %v3458_v10, %v6226_v24  ;;  %v3514_v53 = vrot.slane %v2847_v47, %v6226_v24  ;;  %v3528_v13 = vrot.slane %v2848_v34, %v6226_v24 }
  0xc7   : > { %8548 = vst [vmem:[#allocation31_spill] sm:$0xff] %v7417_v26  ;;  %v3479_v21 = vrot.slane %v3472_v45, %v6226_v24  ;;  %v7430_v5 = vrot.slane %v3486_v7, %v6226_v24  ;;  %v3507_v8 = vrot.slane %v3500_v3, %v6226_v24  ;;  %v3542_v12 = vrot.slane %v2863_v23, %v6226_v24 }
  0xc8   : > { %8549 = vst [vmem:[#allocation32_spill] sm:$0xff] %v7423_v49  ;;  %v3521_v17 = vrot.slane %v3514_v53, %v6226_v24  ;;  %v3535_v16 = vrot.slane %v3528_v13, %v6226_v24  ;;  %v3556_v14 = vrot.slane %v2870_v62, %v6226_v24  ;;  %v3570_v10 = vrot.slane %v2871_v39, %v6226_v24 }
  0xc9   : > { %v7439_v47 = vrot.slane %v3542_v12, %v6226_v24  ;;  %v3584_v34 = vrot.slane %v2872_v44, %v6226_v24  ;;  %v7443_v7 = vunpack.c.l.b16 %v3395_v19  ;;  %v7449_v53 = vunpack.c.l.b16 %v3409_v51 }
  0xca   : > { %v7446_v3 = vrot.slane %v3556_v14, %v6226_v24  ;;  %v3577_v23 = vrot.slane %v3570_v10, %v6226_v24  ;;  %v7451_v62 = vunpack.c.l.b16 %v3423_v33  ;;  %v7456_v12 = vunpack.c.l.b16 %v3465_v42  ;;  %v5648_v14 = vld.sshfl [vmem:[%s6207_s8 + $0x80] sm:$0x1 pattern:$0x75316420] }
  0xcb   : > { %8550 = vst [vmem:[#allocation33_spill] sm:$0xff] %v7443_v7  ;;  %8551 = vst [vmem:[#allocation34_spill] sm:$0xff] %v7449_v53  ;;  %v3591_v39 = vrot.slane %v3584_v34, %v6226_v24  ;;  %v7458_v19 = vunpack.c.l.b16 %v3479_v21  ;;  %v7461_v45 = vunpack.c.l.b16 %v3507_v8  ;;  %v7463_v10 = vunpack.c.l.b16 %v3521_v17 }
  0xcc   : > { %8552 = vst [vmem:[#allocation35_spill] sm:$0xff] %v7451_v62  ;;  %8553 = vst [vmem:[#allocation36_spill] sm:$0xff] %v7456_v12  ;;  %v7465_v51 = vunpack.c.l.b16 %v3535_v16  ;;  %v7469_v13 = vunpack.c.l.b16 %v3577_v23  ;;  %v4132_v42 = vrot.slane %v7443_v7, 7  ;;  %v4134_v21 = vrot.slane %v7449_v53, 6 }
  0xcd   : > { %8554 = vst [vmem:[#allocation37_spill] sm:$0xff] %v7458_v19  ;;  %8555 = vst [vmem:[#allocation38_spill] sm:$0xff] %v7461_v45  ;;  %v7472_v44 = vunpack.c.l.b16 %v3591_v39  ;;  %v4136_v8 = vrot.slane %v7451_v62, 5  ;;  %v8557_v17 = vunpack.c.l.b16 %v7417_v26  ;;  %v8558_v58 = vunpack.c.l.b16 %v7423_v49 }
  0xce   : > { %8556 = vst [vmem:[#allocation39_spill] sm:$0xff] %v7465_v51  ;;  %v4142_v34 = vrot.slane %v7456_v12, 2  ;;  %v4144_v23 = vrot.slane %v7458_v19, 1  ;;  %v8559_v39 = vunpack.c.l.b16 %v7407_v40  ;;  %v4146_v7 = vrot.slane %v7461_v45, 7 }
  0xcf   : > { %v4138_v16 = vrot.slane %v8557_v17, 4  ;;  %v4140_v33 = vrot.slane %v8558_v58, 3  ;;  %v4148_v53 = vrot.slane %v7463_v10, 6  ;;  %v4150_v62 = vrot.slane %v7465_v51, 5 }
  0xd0   : > { %v4133_v52 = vsel %vm1868_vm0, %v4132_v42, %v8559_v39  ;;  %v8560_v17 = vunpack.c.l.b16 %v7439_v47  ;;  %v8561_v58 = vunpack.c.l.b16 %v7446_v3  ;;  %v4156_v19 = vrot.slane %v7469_v13, 2 }
  0xd1   : > { %v4135_v26 = vsel %vm1871_vm1, %v4134_v21, %v4133_v52  ;;  %v8562_v42 = vunpack.c.l.b16 %v7430_v5  ;;  %v4158_v45 = vrot.slane %v7472_v44, 1  ;;  %v703_v51 = vrot.slane %v5645_v38, %v6226_v24 }
  0xd2   : > { %v4152_v49 = vrot.slane %v8560_v17, 4  ;;  %v4154_v12 = vrot.slane %v8561_v58, 3  ;;  %v4137_v40 = vsel %vm1874_vm2, %v4136_v8, %v4135_v26  ;;  %v765_v17 = vrot.slane %v5648_v14, %v6226_v24 }
  0xd3   : > { %v4147_v39 = vsel %vm1868_vm0, %v4146_v7, %v8562_v42  ;;  %v4139_v52 = vsel %vm1877_vm3, %v4138_v16, %v4137_v40  ;;  %v8563_v58 = vrot.slane %v6617_v36, 7  ;;  %v2380_v42 = vrot.slane %v703_v51, %v6226_v24  ;;  %v5707_v51 = vld.sshfl [vmem:[%s6207_s8 + $0x6c] sm:$0x33 pattern:$0x75316420] }
  0xd4   : > { %v4149_v21 = vsel %vm1871_vm1, %v4148_v53, %v4147_v39  ;;  %v4141_v8 = vsel %vm1880_vm4, %v4140_v33, %v4139_v52  ;;  %v8564_v38 = vrot.slane %v6619_v48, 6  ;;  %v2394_v16 = vrot.slane %v765_v17, %v6226_v24 }
  0xd5   : > { %v2470_v26 = vsel %vm1868_vm0, %v8563_v58, %v6615_v54  ;;  %v4151_v7 = vsel %vm1874_vm2, %v4150_v62, %v4149_v21  ;;  %v4143_v53 = vsel %vm1883_vm5, %v4142_v34, %v4141_v8  ;;  %v2387_v33 = vrot.slane %v2380_v42, %v6226_v24 }
  0xd6   : > { %v2471_v40 = vsel %vm1871_vm1, %v8564_v38, %v2470_v26  ;;  %v4153_v14 = vsel %vm1877_vm3, %v4152_v49, %v4151_v7  ;;  %v4145_v36 = vsel %vm1886_vm6, %v4144_v23, %v4143_v53  ;;  %v2401_v34 = vrot.slane %v2394_v16, %v6226_v24 }
  0xd7   : > { %v2472_v54 = vsel %vm1874_vm2, %v6734_v55, %v2471_v40  ;;  %v4155_v62 = vsel %vm1880_vm4, %v4154_v12, %v4153_v14  ;;  %v8565_v49 = vrot.slane %v6623_v59, 3  ;;  %v8566_v55 = vrot.slane %v6967_v61, 7  ;;  %v5708_v12 = vld.sshfl [vmem:[%s6207_s8 + $0x70] sm:$0x33 pattern:$0x75316420] }
  0xd8   : > { %v2473_v48 = vsel %vm1877_vm3, %v6738_v2, %v2472_v54  ;;  %v4157_v39 = vsel %vm1883_vm5, %v4156_v19, %v4155_v62  ;;  %v2434_v17 = vunpack.c.l.b16 %v2387_v33  ;;  %v8567_v2 = vrot.slane %v6625_v6, 2  ;;  %v6095_v61 = vld [vmem:[%s8333_s2 + $0xb0] sm:$0xff]   ;;  %v5710_v14 = vld.sshfl [vmem:[%s6207_s8 + $0x84] sm:$0x33 pattern:$0x75316420] }
  0xd9   : > { %v2474_v52 = vsel %vm1880_vm4, %v8565_v49, %v2473_v48  ;;  %v2478_v23 = vsel %vm1868_vm0, %v8566_v55, %v6963_v28  ;;  %v4159_v21 = vsel %vm1886_vm6, %v4158_v45, %v4157_v39  ;;  %v8568_v58 = vrot.slane %v6972_v29, 6  ;;  %v5711_v62 = vld.sshfl [vmem:[%s6207_s8 + $0x88] sm:$0x33 pattern:$0x75316420] }
  0xda   : > { %v2475_v19 = vsel %vm1883_vm5, %v8567_v2, %v2474_v52  ;;  %v4217_v26 = vpack.c.b16 %v4159_v21, %v4145_v36  ;;  %v2435_v8 = vunpack.c.l.b16 %v2401_v34  ;;  %v2894_v45 = vcombine.high %v5707_v51, %v5707_v51 }
  0xdb   : > { %v2479_v59 = vsel %vm1871_vm1, %v8568_v58, %v2478_v23  ;;  %v2476_v7 = vrot.slane %v2434_v17, 1  ;;  %v2901_v42 = vrot.slane %v5707_v51, %v6226_v24  ;;  %v2918_v29 = vcombine.high %v5708_v12, %v5708_v12 }
  0xdc   : > { %v2480_v28 = vsel %vm1874_vm2, %v6983_v11, %v2479_v59  ;;  %5953 = vmatmul.mubr.msk.bf16.vlgmr.msra.gmra.mxu1 %vm2014_vm7, %v4217_v26  ;;  %v8569_v38 = vrot.slane %v6975_v56, 3  ;;  %v2484_v53 = vrot.slane %v2435_v8, 1  ;;  %v2908_v16 = vrot.slane %v2894_v45, %v6226_v24 }
  0xdd   : > { %v2481_v6 = vsel %vm1877_vm3, %v6985_v15, %v2480_v28  ;;  %v2925_v11 = vrot.slane %v5708_v12, %v6226_v24  ;;  %5977 = vmatpush3.bf16.msra.mxu1 %v6998_v57  ;;  %v7560_v54 = vsel %vm1886_vm6, %v2476_v7, %v2475_v19  ;;  %v8571_v15 = vrot.slane %v6977_v50, 2  ;;  %v6097_v57 = vld [vmem:[%s8333_s2 + $0xa8] sm:$0xff]  }
  0xde   : > { %v2482_v40 = vsel %vm1880_vm4, %v8569_v38, %v2481_v6  ;;  %8570 = vst [vmem:[#allocation40_spill] sm:$0xff] %v7560_v54  ;;  %v2909_v33 = vcombine.high %v2901_v42, %v2901_v42  ;;  %v2932_v56 = vrot.slane %v2918_v29, %v6226_v24  ;;  %5978 = vmatprep.subr.bf16.mxu1 %v6095_v61 }
  0xdf   : > { %v2483_v36 = vsel %vm1883_vm5, %v8571_v15, %v2482_v40  ;;  %v2910_v51 = vcombine.high %v2908_v16, %v2908_v16  ;;  %v2933_v39 = vcombine.high %v2925_v11, %v2925_v11  ;;  %v2956_v49 = vcombine.high %v5710_v14, %v5710_v14 }
  0xe0   : > { %v7568_v48 = vsel %vm1886_vm6, %v2484_v53, %v2483_v36  ;;  %v2934_v50 = vcombine.high %v2932_v56, %v2932_v56  ;;  %v2963_v52 = vrot.slane %v5710_v14, %v6226_v24  ;;  %v2980_v55 = vcombine.high %v5711_v62, %v5711_v62 }
  0xe1   : > { %8572 = vst [vmem:[#allocation41_spill] sm:$0xff] %v7568_v48  ;;  %v2504_v34 = vpack.c.b16 %v7568_v48, %v7560_v54  ;;  %v2987_v23 = vrot.slane %v5711_v62, %v6226_v24  ;;  %v3598_v12 = vrot.slane %v2901_v42, %v6226_v24  ;;  %v3612_v21 = vrot.slane %v2908_v16, %v6226_v24 }
  0xe2   : > { %5979 = vmatpush3.bf16.msra.mxu1 %v6095_v61  ;;  %v2970_v17 = vrot.slane %v2956_v49, %v6226_v24  ;;  %v2971_v2 = vcombine.high %v2963_v52, %v2963_v52  ;;  %v3626_v19 = vrot.slane %v2909_v33, %v6226_v24  ;;  %v2994_v58 = vrot.slane %v2980_v55, %v6226_v24  ;;  %v6099_v61 = vld [vmem:[%s8333_s2 + $0xa0] sm:$0xff]  }
  0xe3   : > { %5940 = vmatprep.mubr.msk.bf16.mxu0 %vm2014_vm7, %v2504_v34  ;;  %v2995_v59 = vcombine.high %v2987_v23, %v2987_v23  ;;  %v7584_v26 = vrot.slane %v3598_v12, %v6226_v24  ;;  %v3619_v8 = vrot.slane %v3612_v21, %v6226_v24  ;;  %5980 = vmatprep.subr.bf16.mxu1 %v6097_v57 }
  0xe4   : > { %v2972_v28 = vcombine.high %v2970_v17, %v2970_v17  ;;  %v3633_v45 = vrot.slane %v3626_v19, %v6226_v24  ;;  %v3640_v7 = vrot.slane %v2910_v51, %v6226_v24  ;;  %v3654_v6 = vrot.slane %v2925_v11, %v6226_v24 }
  0xe5   : > { %v2996_v42 = vcombine.high %v2994_v58, %v2994_v58  ;;  %v3668_v29 = vrot.slane %v2932_v56, %v6226_v24  ;;  %v3682_v38 = vrot.slane %v2933_v39, %v6226_v24  ;;  %v3696_v40 = vrot.slane %v2934_v50, %v6226_v24  ;;  %v7611_v56 = vld [vmem:[%s8333_s2 + $0xf8] sm:$0xff]  }
  0xe6   : > { %v3647_v53 = vrot.slane %v3640_v7, %v6226_v24  ;;  %v7598_v14 = vrot.slane %v3654_v6, %v6226_v24  ;;  %v3710_v16 = vrot.slane %v2963_v52, %v6226_v24  ;;  %v3724_v15 = vrot.slane %v2970_v17, %v6226_v24  ;;  %5981 = vmatpush3.bf16.msra.mxu1 %v6097_v57 }
  0xe7   : > { %v7603_v36 = vrot.slane %v3668_v29, %v6226_v24  ;;  %v3689_v11 = vrot.slane %v3682_v38, %v6226_v24  ;;  %v3703_v62 = vrot.slane %v3696_v40, %v6226_v24  ;;  %v3738_v33 = vrot.slane %v2971_v2, %v6226_v24  ;;  %5982 = vmatprep.subr.bf16.mxu1 %v6099_v61 }
  0xe8   : > { %8573 = vst [vmem:[#allocation42_spill] sm:$0xff] %v7611_v56  ;;  %v7614_v51 = vrot.slane %v3710_v16, %v6226_v24  ;;  %v3731_v39 = vrot.slane %v3724_v15, %v6226_v24  ;;  %v3752_v57 = vrot.slane %v2972_v28, %v6226_v24  ;;  %v3766_v34 = vrot.slane %v2987_v23, %v6226_v24  ;;  %v5651_v15 = vld.sshfl [vmem:[%s6207_s8 + $0x98] sm:$0x1 pattern:$0x75316420] }
  0xe9   : > { %v3745_v50 = vrot.slane %v3738_v33, %v6226_v24  ;;  %v3780_v49 = vrot.slane %v2994_v58, %v6226_v24  ;;  %v3794_v52 = vrot.slane %v2995_v59, %v6226_v24  ;;  %v3808_v55 = vrot.slane %v2996_v42, %v6226_v24 }
  0xea   : > { %v3759_v12 = vrot.slane %v3752_v57, %v6226_v24  ;;  %v7625_v21 = vrot.slane %v3766_v34, %v6226_v24  ;;  %v8413_v17 = vunpack.c.l.b16 %v7584_v26  ;;  %v7628_v2 = vunpack.c.l.b16 %v3619_v8  ;;  %5983 = vmatpush3.bf16.msra.mxu1 %v6099_v61  ;;  %v5654_v57 = vld.sshfl [vmem:[%s6207_s8 + $0xb0] sm:$0x1 pattern:$0x75316420] }
  0xeb   : > { %v7631_v23 = vrot.slane %v3780_v49, %v6226_v24  ;;  %v3801_v19 = vrot.slane %v3794_v52, %v6226_v24  ;;  %v3815_v58 = vrot.slane %v3808_v55, %v6226_v24  ;;  %v7635_v59 = vunpack.c.l.b16 %v3633_v45  ;;  %6008 = vmatprep.subr.bf16.mxu1 %v7611_v56 }
  0xec   : > { %v7638_v28 = vunpack.c.l.b16 %v3647_v53  ;;  %v8410_v7 = vunpack.c.l.b16 %v7598_v14  ;;  %v8411_v8 = vunpack.c.l.b16 %v7603_v36  ;;  %v7642_v61 = vunpack.c.l.b16 %v3689_v11 }
  0xed   : > { %v7644_v6 = vunpack.c.l.b16 %v3703_v62  ;;  %v7647_v29 = vunpack.c.l.b16 %v3731_v39  ;;  %v7649_v38 = vunpack.c.l.b16 %v3745_v50  ;;  %v7651_v45 = vunpack.c.l.b16 %v3759_v12 }
  0xee   : > { %v8419_v40 = vunpack.c.l.b16 %v7625_v21  ;;  %v8418_v53 = vunpack.c.l.b16 %v7631_v23  ;;  %v7655_v16 = vunpack.c.l.b16 %v3801_v19  ;;  %v7658_v11 = vunpack.c.l.b16 %v3815_v58 }
  0xef   : > { %8574 = vst [vmem:[#allocation43_spill] sm:$0xff] %v7647_v29  ;;  %v4160_v62 = vrot.slane %v7628_v2, 7  ;;  %v4162_v33 = vrot.slane %v7635_v59, 6  ;;  %v4164_v39 = vrot.slane %v7638_v28, 5  ;;  %v4166_v34 = vrot.slane %v8410_v7, 4 }
  0xf0   : > { %v4168_v50 = vrot.slane %v8411_v8, 3  ;;  %v4170_v49 = vrot.slane %v7642_v61, 2  ;;  %v4172_v52 = vrot.slane %v7644_v6, 1  ;;  %v4174_v12 = vrot.slane %v7647_v29, 7 }
  0xf1   : > { %v4161_v55 = vsel %vm1868_vm0, %v4160_v62, %v8413_v17  ;;  %v4176_v19 = vrot.slane %v7649_v38, 6  ;;  %v4178_v58 = vrot.slane %v7651_v45, 5  ;;  %v4180_v8 = vrot.slane %v8419_v40, 4 }
  0xf2   : > { %v4163_v7 = vsel %vm1871_vm1, %v4162_v33, %v4161_v55  ;;  %v4182_v42 = vrot.slane %v8418_v53, 3  ;;  %v4184_v54 = vrot.slane %v7655_v16, 2  ;;  %v8575_v17 = vunpack.c.l.b16 %v7614_v51 }
  0xf3   : > { %v4165_v62 = vsel %vm1874_vm2, %v4164_v39, %v4163_v7  ;;  %v4186_v56 = vrot.slane %v7658_v11, 1  ;;  %v827_v29 = vrot.slane %v5651_v15, %v6226_v24  ;;  %v889_v7 = vrot.slane %v5654_v57, %v6226_v24 }
  0xf4   : > { %v4175_v48 = vsel %vm1868_vm0, %v4174_v12, %v8575_v17  ;;  %v4167_v33 = vsel %vm1877_vm3, %v4166_v34, %v4165_v62  ;;  %v8576_v39 = vrot.slane %v7093_v46, 7  ;;  %v8577_v12 = vrot.slane %v7095_v0, 6 }
  0xf5   : > { %v4177_v55 = vsel %vm1871_vm1, %v4176_v19, %v4175_v48  ;;  %v4169_v15 = vsel %vm1880_vm4, %v4168_v50, %v4167_v33  ;;  %v2408_v48 = vrot.slane %v827_v29, %v6226_v24  ;;  %v2422_v53 = vrot.slane %v889_v7, %v6226_v24  ;;  %v8578_v33 = vld [vmem:[#allocation11_spill] sm:$0xff] }
  0xf6   : > { %v2486_v17 = vsel %vm1868_vm0, %v8576_v39, %v7087_v60  ;;  %v4179_v34 = vsel %vm1874_vm2, %v4178_v58, %v4177_v55  ;;  %v4171_v62 = vsel %vm1883_vm5, %v4170_v49, %v4169_v15  ;;  %v5767_v58 = vld.sshfl [vmem:[%s7695_s11] sm:$0x33 pattern:$0x75316420]  ;;  %v8579_v7 = vrot.slane %v7100_v1, 3 }
  0xf7   : > { %v2487_v19 = vsel %vm1871_vm1, %v8577_v12, %v2486_v17  ;;  %v4181_v57 = vsel %vm1877_vm3, %v4180_v8, %v4179_v34  ;;  %v4173_v60 = vsel %vm1886_vm6, %v4172_v52, %v4171_v62  ;;  %v2415_v29 = vrot.slane %v2408_v48, %v6226_v24  ;;  %v5768_v49 = vld.sshfl [vmem:[%s7695_s11 + $0x4] sm:$0x33 pattern:$0x75316420] }
  0xf8   : > { %v2488_v46 = vsel %vm1874_vm2, %v7119_v63, %v2487_v19  ;;  %v4183_v50 = vsel %vm1880_vm4, %v4182_v42, %v4181_v57  ;;  %v2429_v8 = vrot.slane %v2422_v53, %v6226_v24  ;;  %v8580_v63 = vrot.slane %v7107_v4, 7  ;;  %v8583_v62 = vld [vmem:[#allocation6_spill] sm:$0xff] }
  0xf9   : > { %v2489_v0 = vsel %vm1877_vm3, %v8578_v33, %v2488_v46  ;;  %v4185_v55 = vsel %vm1883_vm5, %v4184_v54, %v4183_v50  ;;  %v2436_v17 = vunpack.c.l.b16 %v2415_v29  ;;  %v8581_v15 = vrot.slane %v7102_v27, 2 }
  0xfa   : > { %v2490_v39 = vsel %vm1880_vm4, %v8579_v7, %v2489_v0  ;;  %v2494_v42 = vsel %vm1868_vm0, %v8580_v63, %v7105_v22  ;;  %v4187_v52 = vsel %vm1886_vm6, %v4186_v56, %v4185_v55  ;;  %v8582_v54 = vrot.slane %v7109_v43, 6 }
  0xfb   : > { %v2491_v34 = vsel %vm1883_vm5, %v8581_v15, %v2490_v39  ;;  %v4218_v48 = vpack.c.b16 %v4187_v52, %v4173_v60  ;;  %v2437_v1 = vunpack.c.l.b16 %v2429_v8  ;;  %v4879_v19 = vcombine.high %v5767_v58, %v5767_v58  ;;  %v5713_v52 = vld.sshfl [vmem:[%s6207_s8 + $0x9c] sm:$0x33 pattern:$0x75316420] }
  0xfc   : > { %v2495_v53 = vsel %vm1871_vm1, %v8582_v54, %v2494_v42  ;;  %v2492_v4 = vrot.slane %v2436_v17, 1  ;;  %v7741_v56 = vrot.slane %v5767_v58, %v6226_v24  ;;  %v4903_v27 = vcombine.high %v5768_v49, %v5768_v49  ;;  %v7770_v17 = vld.sshfl [vmem:[%s7695_s11 + $0x8] sm:$0x1 pattern:$0x75316420] }
  0xfd   : > { %v2496_v12 = vsel %vm1874_vm2, %v7132_v41, %v2495_v53  ;;  %5956 = vmatprep.mubr.msk.bf16.mxu1 %vm2014_vm7, %v4218_v48  ;;  %v8585_v43 = vrot.slane %v7113_v20, 3  ;;  %v2500_v46 = vrot.slane %v2437_v1, 1  ;;  %v4893_v60 = vrot.slane %v4879_v19, %v6226_v24  ;;  %8589 = vst [vmem:[#allocation45_spill] sm:$0xff] %v7770_v17 }
  0xfe   : > { %v2497_v22 = vsel %vm1877_vm3, %v8583_v62, %v2496_v12  ;;  %8584 = vst [vmem:[#allocation11_spill] sm:$0xff] %v7741_v56  ;;  %v4910_v41 = vrot.slane %v5768_v49, %v6226_v24  ;;  %v7750_v50 = vsel %vm1886_vm6, %v2492_v4, %v2491_v34  ;;  %v8587_v58 = vrot.slane %v7115_v31, 2  ;;  %v5714_v12 = vld.sshfl [vmem:[%s6207_s8 + $0xa0] sm:$0x33 pattern:$0x75316420] }
  0xff   : > { %v2498_v57 = vsel %vm1880_vm4, %v8585_v43, %v2497_v22  ;;  %8586 = vst [vmem:[#allocation6_spill] sm:$0xff] %v7750_v50  ;;  %v4894_v33 = vcombine.high %v7741_v56, %v7741_v56  ;;  %v4917_v20 = vrot.slane %v4903_v27, %v6226_v24  ;;  %v4895_v55 = vcombine.high %v4893_v60, %v4893_v60  ;;  %v5716_v22 = vld.sshfl [vmem:[%s6207_s8 + $0xb4] sm:$0x33 pattern:$0x75316420] }
 0x100   : > { %v2499_v29 = vsel %vm1883_vm5, %v8587_v58, %v2498_v57  ;;  %v4918_v8 = vcombine.high %v4910_v41, %v4910_v41  ;;  %v4963_v31 = vrot.slane %v4893_v60, %v6226_v24  ;;  %v5005_v42 = vrot.slane %v4910_v41, %v6226_v24 }
 0x101   : > { %v7759_v0 = vsel %vm1886_vm6, %v2500_v46, %v2499_v29  ;;  %v4919_v7 = vcombine.high %v4917_v20, %v4917_v20  ;;  %v4977_v39 = vrot.slane %v4894_v33, %v6226_v24  ;;  %v4991_v63 = vrot.slane %v4895_v55, %v6226_v24  ;;  %v5717_v29 = vld.sshfl [vmem:[%s6207_s8 + $0xb8] sm:$0x33 pattern:$0x75316420] }
 0x102   : > { %8588 = vst [vmem:[#allocation44_spill] sm:$0xff] %v7759_v0  ;;  %v2505_v49 = vpack.c.b16 %v7759_v0, %v7750_v50  ;;  %v5019_v15 = vrot.slane %v4917_v20, %v6226_v24  ;;  %v5033_v34 = vrot.slane %v4918_v8, %v6226_v24  ;;  %v4970_v53 = vrot.slane %v4963_v31, %v6226_v24 }
 0x103   : > { %v5047_v54 = vrot.slane %v4919_v7, %v6226_v24  ;;  %v4984_v48 = vrot.slane %v4977_v39, %v6226_v24  ;;  %v4998_v1 = vrot.slane %v4991_v63, %v6226_v24  ;;  %v3018_v19 = vcombine.high %v5713_v52, %v5713_v52 }
 0x104   : > { %5941 = vmatmul.mubr.msk.bf16.gmra.mxu0 %vm2014_vm7, %v2505_v49  ;;  %v7782_v62 = vrot.slane %v5005_v42, %v6226_v24  ;;  %v8591_v27 = vunpack.c.l.b16 %v7276_v25  ;;  %v7792_v46 = vrot.slane %v5019_v15, %v6226_v24  ;;  %v5040_v60 = vrot.slane %v5033_v34, %v6226_v24 }
 0x105   : > { %v3025_v41 = vrot.slane %v5713_v52, %v6226_v24  ;;  %v5054_v58 = vrot.slane %v5047_v54, %v6226_v24  ;;  %v3032_v33 = vrot.slane %v3018_v19, %v6226_v24  ;;  %v3042_v20 = vcombine.high %v5714_v12, %v5714_v12 }
 0x106   : > { %8590 = vst [vmem:[#allocation46_spill] sm:$0xff] %v7782_v62  ;;  %v7787_v43 = vrot.slane %v8591_v27, 1  ;;  %8592 = vst [vmem:[#allocation47_spill] sm:$0xff] %v7792_v46  ;;  %v3049_v25 = vrot.slane %v5714_v12, %v6226_v24  ;;  %v7800_v55 = vunpack.c.l.b16 %v4970_v53  ;;  %v7802_v49 = vunpack.c.l.b16 %v4984_v48 }
 0x107   : > { %v7804_v8 = vunpack.c.l.b16 %v4998_v1  ;;  %v3080_v7 = vcombine.high %v5716_v22, %v5716_v22  ;;  %v3033_v39 = vcombine.high %v3025_v41, %v3025_v41  ;;  %v3056_v63 = vrot.slane %v3042_v20, %v6226_v24 }
 0x108   : > { %8593 = vst [vmem:[#allocation48_spill] sm:$0xff] %v7800_v55  ;;  %8594 = vst [vmem:[#allocation49_spill] sm:$0xff] %v7802_v49  ;;  %v3087_v42 = vrot.slane %v5716_v22, %v6226_v24  ;;  %v3034_v15 = vcombine.high %v3032_v33, %v3032_v33  ;;  %v3104_v54 = vcombine.high %v5717_v29, %v5717_v29  ;;  %v7811_v53 = vunpack.c.l.b16 %v5040_v60 }
 0x109   : > { %8595 = vst [vmem:[#allocation50_spill] sm:$0xff] %v7804_v8  ;;  %v3094_v34 = vrot.slane %v3080_v7, %v6226_v24  ;;  %v3057_v48 = vcombine.high %v3049_v25, %v3049_v25  ;;  %v3111_v1 = vrot.slane %v5717_v29, %v6226_v24  ;;  %v3822_v12 = vrot.slane %v3025_v41, %v6226_v24 }
 0x10a   : > { %8596 = vst [vmem:[#allocation51_spill] sm:$0xff] %v7811_v53  ;;  %v7815_v19 = vunpack.c.l.b16 %v5054_v58  ;;  %v3058_v27 = vcombine.high %v3056_v63, %v3056_v63  ;;  %v3118_v20 = vrot.slane %v3104_v54, %v6226_v24  ;;  %v3836_v22 = vrot.slane %v3032_v33, %v6226_v24 }
 0x10b   : > { %v3095_v4 = vcombine.high %v3087_v42, %v3087_v42  ;;  %v3096_v52 = vcombine.high %v3094_v34, %v3094_v34  ;;  %v3119_v57 = vcombine.high %v3111_v1, %v3111_v1  ;;  %v3850_v7 = vrot.slane %v3033_v39, %v6226_v24 }
 0x10c   : > { %8597 = vst [vmem:[#allocation52_spill] sm:$0xff] %v7815_v19  ;;  %v3120_v31 = vcombine.high %v3118_v20, %v3118_v20  ;;  %v7821_v60 = vrot.slane %v3822_v12, %v6226_v24  ;;  %v3843_v29 = vrot.slane %v3836_v22, %v6226_v24  ;;  %v3864_v41 = vrot.slane %v3034_v15, %v6226_v24 }
 0x10d   : > { %v3857_v58 = vrot.slane %v3850_v7, %v6226_v24  ;;  %v3878_v40 = vrot.slane %v3049_v25, %v6226_v24  ;;  %v3892_v54 = vrot.slane %v3056_v63, %v6226_v24  ;;  %v3906_v33 = vrot.slane %v3057_v48, %v6226_v24 }
 0x10e   : > { %v3871_v0 = vrot.slane %v3864_v41, %v6226_v24  ;;  %v3920_v39 = vrot.slane %v3058_v27, %v6226_v24  ;;  %v3934_v50 = vrot.slane %v3087_v42, %v6226_v24  ;;  %v3948_v12 = vrot.slane %v3094_v34, %v6226_v24 }
 0x10f   : > { %v7834_v22 = vrot.slane %v3878_v40, %v6226_v24  ;;  %v7837_v15 = vrot.slane %v3892_v54, %v6226_v24  ;;  %v3913_v25 = vrot.slane %v3906_v33, %v6226_v24  ;;  %v3962_v63 = vrot.slane %v3095_v4, %v6226_v24 }
 0x110   : > { %v3927_v48 = vrot.slane %v3920_v39, %v6226_v24  ;;  %v7843_v7 = vrot.slane %v3934_v50, %v6226_v24  ;;  %v3955_v27 = vrot.slane %v3948_v12, %v6226_v24  ;;  %v3976_v42 = vrot.slane %v3096_v52, %v6226_v24 }
 0x111   : > { %v3969_v34 = vrot.slane %v3962_v63, %v6226_v24  ;;  %v3990_v40 = vrot.slane %v3111_v1, %v6226_v24  ;;  %v4004_v41 = vrot.slane %v3118_v20, %v6226_v24  ;;  %v4018_v54 = vrot.slane %v3119_v57, %v6226_v24 }
 0x112   : > { %v3983_v33 = vrot.slane %v3976_v42, %v6226_v24  ;;  %v4032_v4 = vrot.slane %v3120_v31, %v6226_v24  ;;  %v7854_v50 = vunpack.c.l.b16 %v3843_v29  ;;  %v7863_v63 = vunpack.c.l.b16 %v3857_v58 }
 0x113   : > { %v7857_v12 = vrot.slane %v3990_v40, %v6226_v24  ;;  %v7860_v52 = vrot.slane %v4004_v41, %v6226_v24  ;;  %v4025_v1 = vrot.slane %v4018_v54, %v6226_v24  ;;  %v7866_v20 = vunpack.c.l.b16 %v3871_v0 }
 0x114   : > { %v4039_v57 = vrot.slane %v4032_v4, %v6226_v24  ;;  %v8429_v42 = vunpack.c.l.b16 %v7837_v15  ;;  %v7870_v29 = vunpack.c.l.b16 %v3913_v25  ;;  %v7872_v39 = vunpack.c.l.b16 %v3927_v48 }
 0x115   : > { %8598 = vst [vmem:[#allocation53_spill] sm:$0xff] %v7860_v52  ;;  %v7875_v41 = vunpack.c.l.b16 %v3955_v27  ;;  %v7877_v17 = vunpack.c.l.b16 %v3969_v34  ;;  %v7879_v58 = vunpack.c.l.b16 %v3983_v33  ;;  %v7883_v4 = vunpack.c.l.b16 %v4025_v1 }
 0x116   : > { %v7885_v31 = vunpack.c.l.b16 %v4039_v57  ;;  %v4188_v25 = vrot.slane %v7854_v50, 7  ;;  %v4190_v48 = vrot.slane %v7863_v63, 6  ;;  %v4192_v40 = vrot.slane %v7866_v20, 5 }
 0x117   : > { %8599 = vst [vmem:[#allocation54_spill] sm:$0xff] %v7875_v41  ;;  %8600 = vst [vmem:[#allocation55_spill] sm:$0xff] %v7883_v4  ;;  %v8602_v27 = vunpack.c.l.b16 %v7834_v22  ;;  %v4196_v33 = vrot.slane %v8429_v42, 3  ;;  %v4198_v54 = vrot.slane %v7870_v29, 2  ;;  %v8603_v0 = vunpack.c.l.b16 %v7821_v60 }
 0x118   : > { %8601 = vst [vmem:[#allocation56_spill] sm:$0xff] %v7885_v31  ;;  %v4200_v57 = vrot.slane %v7872_v39, 1  ;;  %v4202_v19 = vrot.slane %v7875_v41, 7  ;;  %v4204_v53 = vrot.slane %v7877_v17, 6  ;;  %v4206_v55 = vrot.slane %v7879_v58, 5 }
 0x119   : > { %v4194_v34 = vrot.slane %v8602_v27, 4  ;;  %v4189_v1 = vsel %vm1868_vm0, %v4188_v25, %v8603_v0  ;;  %v8604_v27 = vunpack.c.l.b16 %v7857_v12  ;;  %v8605_v42 = vunpack.c.l.b16 %v7860_v52 }
 0x11a   : > { %v4191_v46 = vsel %vm1871_vm1, %v4190_v48, %v4189_v1  ;;  %v8606_v0 = vunpack.c.l.b16 %v7843_v7  ;;  %v4212_v49 = vrot.slane %v7883_v4, 2  ;;  %v4214_v41 = vrot.slane %v7885_v31, 1 }
 0x11b   : > { %v4208_v56 = vrot.slane %v8604_v27, 4  ;;  %v4210_v62 = vrot.slane %v8605_v42, 3  ;;  %v4193_v8 = vsel %vm1874_vm2, %v4192_v40, %v4191_v46  ;;  %v4339_v27 = vsel %vm1868_vm0, %v7321_v9, %v7787_v43 }
 0x11c   : > { %v4203_v25 = vsel %vm1868_vm0, %v4202_v19, %v8606_v0  ;;  %v4195_v48 = vsel %vm1877_vm3, %v4194_v34, %v4193_v8  ;;  %v4340_v42 = vrot.slane %v7327_v32, 7  ;;  %v4342_v19 = vrot.slane %v7329_v37, 6  ;;  %v8609_v37 = vld [vmem:[#allocation23_spill] sm:$0xff] }
 0x11d   : > { %v4205_v1 = vsel %vm1871_vm1, %v4204_v53, %v4203_v25  ;;  %v4197_v46 = vsel %vm1880_vm4, %v4196_v33, %v4195_v48  ;;  %v8607_v0 = vunpack.c.l.b16 %v7287_v30  ;;  %v8608_v43 = vunpack.c.l.b16 %v7292_v35 }
 0x11e   : > { %v4207_v40 = vsel %vm1874_vm2, %v4206_v55, %v4205_v1  ;;  %v4199_v8 = vsel %vm1883_vm5, %v4198_v54, %v4197_v46  ;;  %v4341_v34 = vsel %vm1871_vm1, %v4340_v42, %v4339_v27  ;;  %v4348_v48 = vrot.slane %v8609_v37, 3  ;;  %v8610_v1 = vld [vmem:[#allocation24_spill] sm:$0xff]  ;;  %v8615_v37 = vld [vmem:[#allocation14_spill] sm:$0xff] }
 0x11f   : > { %v4344_v31 = vrot.slane %v8607_v0, 5  ;;  %v4209_v53 = vsel %vm1877_vm3, %v4208_v56, %v4207_v40  ;;  %v4346_v32 = vrot.slane %v8608_v43, 4  ;;  %v4201_v33 = vsel %vm1886_vm6, %v4200_v57, %v4199_v8  ;;  %v5697_v40 = vld.sshfl [vmem:[%s6207_s8 + $0x14] sm:$0x1 pattern:$0x75316420] }
 0x120   : > { %v4211_v25 = vsel %vm1880_vm4, %v4210_v62, %v4209_v53  ;;  %v4343_v55 = vsel %vm1874_vm2, %v4342_v19, %v4341_v34  ;;  %v4350_v56 = vrot.slane %v8610_v1, 2  ;;  %v8611_v46 = vunpack.c.l.b16 %v7306_v18  ;;  %v8612_v0 = vld [vmem:[#allocation26_spill] sm:$0xff]  ;;  %v8613_v8 = vld [vmem:[#allocation27_spill] sm:$0xff] }
 0x121   : > { %v4213_v30 = vsel %vm1883_vm5, %v4212_v49, %v4211_v25  ;;  %v4345_v54 = vsel %vm1877_vm3, %v4344_v31, %v4343_v55  ;;  %v4354_v62 = vrot.slane %v8612_v0, 7  ;;  %v4356_v53 = vrot.slane %v8613_v8, 6  ;;  %v5700_v34 = vld.sshfl [vmem:[%s6207_s8 + $0x2c] sm:$0x1 pattern:$0x75316420] }
 0x122   : > { %v4352_v27 = vrot.slane %v8611_v46, 1  ;;  %v4215_v35 = vsel %vm1886_vm6, %v4214_v41, %v4213_v30  ;;  %v4347_v57 = vsel %vm1880_vm4, %v4346_v32, %v4345_v54  ;;  %v8614_v25 = vld [vmem:[#allocation25_spill] sm:$0xff]  ;;  %v8616_v1 = vunpack.c.l.b16 %v8615_v37  ;;  %v8617_v30 = vld [vmem:[#allocation15_spill] sm:$0xff]  ;;  %v8619_v0 = vld [vmem:[#allocation28_spill] sm:$0xff] }
 0x123   : > { %v4219_v43 = vpack.c.b16 %v4215_v35, %v4201_v33  ;;  %v4349_v49 = vsel %vm1883_vm5, %v4348_v48, %v4347_v57  ;;  %v8618_v54 = vunpack.c.l.b16 %v8617_v30  ;;  %v4362_v52 = vrot.slane %v8619_v0, 3  ;;  %v8620_v35 = vld [vmem:[#allocation29_spill] sm:$0xff] }
 0x124   : > { %v4353_v55 = vsel %vm1868_vm0, %v8614_v25, %v4352_v27  ;;  %v4358_v18 = vrot.slane %v8616_v1, 5  ;;  %v4351_v46 = vsel %vm1886_vm6, %v4350_v56, %v4349_v49  ;;  %v4364_v57 = vrot.slane %v8620_v35, 2  ;;  %v8621_v1 = vld [vmem:[#allocation30_spill] sm:$0xff] }
 0x125   : > { %v4355_v41 = vsel %vm1871_vm1, %v4354_v62, %v4353_v55  ;;  %v4360_v4 = vrot.slane %v8618_v54, 4  ;;  %5957 = vmatmul.mubr.msk.bf16.gmra.mxu1 %vm2014_vm7, %v4219_v43  ;;  %v2700_v27 = vrot.slane %v5697_v40, %v6226_v24  ;;  %v2762_v8 = vrot.slane %v5700_v34, %v6226_v24 }
 0x126   : > { %v4357_v33 = vsel %vm1874_vm2, %v4356_v53, %v4355_v41  ;;  %v4692_v49 = vsel %vm1868_vm0, %v4340_v42, %v7321_v9  ;;  %v4700_v55 = vsel %vm1868_vm0, %v4354_v62, %v8614_v25  ;;  %v8622_v30 = vunpack.c.l.b16 %v8621_v1  ;;  %v8623_v42 = vld [vmem:[#allocation33_spill] sm:$0xff]  ;;  %v8624_v1 = vld [vmem:[#allocation34_spill] sm:$0xff] }
 0x127   : > { %v4359_v37 = vsel %vm1877_vm3, %v4358_v18, %v4357_v33  ;;  %v4578_v41 = vrot.slane %v2700_v27, %v6226_v24  ;;  %v4592_v0 = vrot.slane %v2762_v8, %v6226_v24  ;;  %v4693_v40 = vsel %vm1871_vm1, %v4342_v19, %v4692_v49 }
 0x128   : > { %v4366_v54 = vrot.slane %v8622_v30, 1  ;;  %v4361_v43 = vsel %vm1880_vm4, %v4360_v4, %v4359_v37  ;;  %v4694_v33 = vsel %vm1874_vm2, %v4344_v31, %v4693_v40  ;;  %v4701_v9 = vsel %vm1871_vm1, %v4356_v53, %v4700_v55 }
 0x129   : > { %v4363_v34 = vsel %vm1883_vm5, %v4362_v52, %v4361_v43  ;;  %v4585_v35 = vrot.slane %v4578_v41, %v6226_v24  ;;  %v4599_v37 = vrot.slane %v4592_v0, %v6226_v24  ;;  %v4695_v27 = vsel %vm1877_vm3, %v4346_v32, %v4694_v33 }
 0x12a   : > { %v4367_v62 = vsel %vm1868_vm0, %v8623_v42, %v4366_v54  ;;  %v4365_v25 = vsel %vm1886_vm6, %v4364_v57, %v4363_v34  ;;  %v4696_v19 = vsel %vm1880_vm4, %v4348_v48, %v4695_v27  ;;  %v4702_v49 = vsel %vm1874_vm2, %v4358_v18, %v4701_v9  ;;  %v8626_v48 = vld [vmem:[#allocation31_spill] sm:$0xff] }
 0x12b   : > { %v4450_v8 = vpack.c.b16 %v4365_v25, %v4351_v46  ;;  %v4368_v31 = vrot.slane %v8624_v1, 7  ;;  %v4684_v30 = vunpack.c.l.b16 %v4585_v35  ;;  %v4685_v53 = vunpack.c.l.b16 %v4599_v37  ;;  %v8625_v46 = vld [vmem:[#allocation35_spill] sm:$0xff]  ;;  %v8630_v35 = vld [vmem:[#allocation36_spill] sm:$0xff]  ;;  %v8631_v37 = vld [vmem:[#allocation37_spill] sm:$0xff] }
 0x12c   : > { %v4697_v55 = vsel %vm1883_vm5, %v4350_v56, %v4696_v19  ;;  %v4703_v54 = vsel %vm1877_vm3, %v4360_v4, %v4702_v49  ;;  %v4370_v41 = vrot.slane %v8625_v46, 6  ;;  %v8627_v0 = vunpack.c.l.b16 %v8626_v48  ;;  %v8628_v56 = vld [vmem:[#allocation32_spill] sm:$0xff]  ;;  %v8634_v46 = vld [vmem:[#allocation39_spill] sm:$0xff] }
 0x12d   : > { %5968 = vmatprep.mubr.msk.bf16.mxu0 %vm2014_vm7, %v4450_v8  ;;  %v4704_v43 = vsel %vm1880_vm4, %v4362_v52, %v4703_v54  ;;  %v4369_v32 = vsel %vm1871_vm1, %v4368_v31, %v4367_v62  ;;  %v4698_v40 = vrot.slane %v4684_v30, 1  ;;  %v4706_v33 = vrot.slane %v4685_v53, 1  ;;  %v5703_v30 = vld.sshfl [vmem:[%s6207_s8 + $0x44] sm:$0x1 pattern:$0x75316420] }
 0x12e   : > { %v4372_v18 = vrot.slane %v8627_v0, 5  ;;  %v4705_v34 = vsel %vm1883_vm5, %v4364_v57, %v4704_v43  ;;  %v8629_v9 = vunpack.c.l.b16 %v8628_v56  ;;  %v4371_v25 = vsel %vm1874_vm2, %v4370_v41, %v4369_v32  ;;  %v8633_v43 = vld [vmem:[#allocation38_spill] sm:$0xff]  ;;  %v5706_v0 = vld.sshfl [vmem:[%s6207_s8 + $0x5c] sm:$0x1 pattern:$0x75316420] }
 0x12f   : > { %v4376_v52 = vrot.slane %v8630_v35, 3  ;;  %v4378_v27 = vrot.slane %v8631_v37, 2  ;;  %v8632_v62 = vunpack.c.l.b16 %v7430_v5  ;;  %v4699_v19 = vsel %vm1886_vm6, %v4698_v40, %v4697_v55 }
 0x130   : > { %v4374_v4 = vrot.slane %v8629_v9, 4  ;;  %v4707_v49 = vsel %vm1886_vm6, %v4706_v33, %v4705_v34  ;;  %v4373_v57 = vsel %vm1877_vm3, %v4372_v18, %v4371_v25  ;;  %v4382_v1 = vrot.slane %v7463_v10, 7 }
 0x131   : > { %v4380_v8 = vrot.slane %v8632_v62, 1  ;;  %v4756_v53 = vpack.c.b16 %v4707_v49, %v4699_v19  ;;  %v4384_v48 = vrot.slane %v8634_v46, 6  ;;  %v8635_v40 = vunpack.c.l.b16 %v7439_v47 }
 0x132   : > { %v4375_v54 = vsel %vm1880_vm4, %v4374_v4, %v4373_v57  ;;  %v8636_v33 = vunpack.c.l.b16 %v7446_v3  ;;  %v4390_v25 = vrot.slane %v7469_v13, 3  ;;  %v4392_v35 = vrot.slane %v7472_v44, 2 }
 0x133   : > { %v4381_v32 = vsel %vm1868_vm0, %v8633_v43, %v4380_v8  ;;  %v4377_v5 = vsel %vm1883_vm5, %v4376_v52, %v4375_v54  ;;  %v4386_v34 = vrot.slane %v8635_v40, 5  ;;  %5984 = vmatprep.mubr.msk.bf16.mxu1 %vm2014_vm7, %v4756_v53  ;;  %v2824_v62 = vrot.slane %v5703_v30, %v6226_v24 }
 0x134   : > { %v4383_v55 = vsel %vm1871_vm1, %v4382_v1, %v4381_v32  ;;  %v4388_v10 = vrot.slane %v8636_v33, 4  ;;  %v4379_v56 = vsel %vm1886_vm6, %v4378_v27, %v4377_v5  ;;  %v2886_v47 = vrot.slane %v5706_v0, %v6226_v24 }
 0x135   : > { %v4385_v9 = vsel %vm1874_vm2, %v4384_v48, %v4383_v55  ;;  %v4708_v3 = vsel %vm1868_vm0, %v4368_v31, %v8623_v42  ;;  %v4716_v49 = vsel %vm1868_vm0, %v4382_v1, %v8633_v43  ;;  %v8637_v13 = vunpack.c.l.b16 %v7584_v26 }
 0x136   : > { %v4387_v37 = vsel %vm1877_vm3, %v4386_v34, %v4385_v9  ;;  %v4709_v19 = vsel %vm1871_vm1, %v4370_v41, %v4708_v3  ;;  %v4606_v53 = vrot.slane %v2824_v62, %v6226_v24  ;;  %v4620_v30 = vrot.slane %v2886_v47, %v6226_v24  ;;  %v5709_v47 = vld.sshfl [vmem:[%s6207_s8 + $0x74] sm:$0x1 pattern:$0x75316420]  ;;  %v6104_v3 = vld [vmem:[%s8333_s2 + $0xc8] sm:$0xff]  }
 0x137   : > { %v4389_v8 = vsel %vm1880_vm4, %v4388_v10, %v4387_v37  ;;  %v4394_v57 = vrot.slane %v8637_v13, 1  ;;  %v4710_v54 = vsel %vm1874_vm2, %v4372_v18, %v4709_v19  ;;  %v4717_v41 = vsel %vm1871_vm1, %v4384_v48, %v4716_v49  ;;  %v6102_v18 = vld [vmem:[%s8333_s2 + $0xd0] sm:$0xff]  }
 0x138   : > { %v4391_v44 = vsel %vm1883_vm5, %v4390_v25, %v4389_v8  ;;  %v4711_v31 = vsel %vm1877_vm3, %v4374_v4, %v4710_v54  ;;  %v4613_v26 = vrot.slane %v4606_v53, %v6226_v24  ;;  %v4627_v32 = vrot.slane %v4620_v30, %v6226_v24  ;;  %v5712_v53 = vld.sshfl [vmem:[%s6207_s8 + $0x8c] sm:$0x1 pattern:$0x75316420]  ;;  %v6103_v54 = vld [vmem:[%s8333_s2 + $0xf0] sm:$0xff]  }
 0x139   : > { %v4393_v42 = vsel %vm1886_vm6, %v4392_v35, %v4391_v44  ;;  %v4395_v1 = vsel %vm1868_vm0, %v7628_v2, %v4394_v57  ;;  %v4712_v46 = vsel %vm1880_vm4, %v4376_v52, %v4711_v31  ;;  %v4718_v4 = vsel %vm1874_vm2, %v4386_v34, %v4717_v41 }
 0x13a   : > { %v4451_v43 = vpack.c.b16 %v4393_v42, %v4379_v56  ;;  %v4713_v0 = vsel %vm1883_vm5, %v4378_v27, %v4712_v46  ;;  %v4396_v48 = vrot.slane %v7635_v59, 7  ;;  %v4398_v5 = vrot.slane %v7638_v28, 6  ;;  %v6112_v27 = vld [vmem:[%s8333_s2 + $0xd8] sm:$0xff]  }
 0x13b   : > { %v4686_v55 = vunpack.c.l.b16 %v4613_v26  ;;  %v4687_v40 = vunpack.c.l.b16 %v4627_v32  ;;  %v4719_v33 = vsel %vm1877_vm3, %v4388_v10, %v4718_v4  ;;  %v8638_v52 = vunpack.c.l.b16 %v7598_v14  ;;  %v8644_v4 = vld [vmem:[#allocation42_spill] sm:$0xff] }
 0x13c   : > { %5969 = vmatmul.mubr.msk.bf16.vlgmr.msra.gmra.mxu0 %vm2014_vm7, %v4451_v43  ;;  %v4720_v9 = vsel %vm1880_vm4, %v4390_v25, %v4719_v33  ;;  %v4397_v59 = vsel %vm1871_vm1, %v4396_v48, %v4395_v1  ;;  %v8639_v28 = vunpack.c.l.b16 %v7603_v36  ;;  %v4404_v37 = vrot.slane %v7642_v61, 3 }
 0x13d   : > { %v4400_v56 = vrot.slane %v8638_v52, 5  ;;  %5993 = vmatpush3.bf16.msra.mxu0 %v6112_v27  ;;  %v4714_v62 = vrot.slane %v4686_v55, 1  ;;  %v4721_v10 = vsel %vm1883_vm5, %v4392_v35, %v4720_v9  ;;  %v4722_v14 = vrot.slane %v4687_v40, 1 }
 0x13e   : > { %v4402_v34 = vrot.slane %v8639_v28, 4  ;;  %5994 = vmatprep.subr.bf16.mxu0 %v6102_v18  ;;  %v4399_v25 = vsel %vm1874_vm2, %v4398_v5, %v4397_v59  ;;  %v4406_v36 = vrot.slane %v7644_v6, 2  ;;  %v8640_v19 = vunpack.c.l.b16 %v7614_v51  ;;  %v8641_v6 = vld [vmem:[#allocation43_spill] sm:$0xff] }
 0x13f   : > { %v4401_v8 = vsel %vm1877_vm3, %v4400_v56, %v4399_v25  ;;  %v4410_v49 = vrot.slane %v7649_v38, 7  ;;  %v4715_v35 = vsel %vm1886_vm6, %v4714_v62, %v4713_v0  ;;  %v4723_v13 = vsel %vm1886_vm6, %v4722_v14, %v4721_v10  ;;  %v6106_v0 = vld [vmem:[%s8333_s2 + $0xc0] sm:$0xff]   ;;  %v6105_v59 = vld [vmem:[%s8333_s2 + $0xe8] sm:$0xff]   ;;  %v8125_v25 = vld [vmem:[%s8333_s2 + $0x118] sm:$0xff]  }
 0x140   : > { %v4408_v61 = vrot.slane %v8640_v19, 1  ;;  %v4403_v57 = vsel %vm1880_vm4, %v4402_v34, %v4401_v8  ;;  %v4412_v44 = vrot.slane %v7651_v45, 6  ;;  %v4757_v30 = vpack.c.b16 %v4723_v13, %v4715_v35  ;;  %v6107_v35 = vld [vmem:[%s8333_s2 + $0xe0] sm:$0xff]  }
 0x141   : > { %5995 = vmatpush3.bf16.msra.mxu0 %v6102_v18  ;;  %v4405_v51 = vsel %vm1883_vm5, %v4404_v37, %v4403_v57  ;;  %v8642_v42 = vunpack.c.l.b16 %v7625_v21  ;;  %v8643_v45 = vunpack.c.l.b16 %v7631_v23  ;;  %v4418_v26 = vrot.slane %v7655_v16, 3 }
 0x142   : > { %v4409_v38 = vsel %vm1868_vm0, %v8641_v6, %v4408_v61  ;;  %v4407_v41 = vsel %vm1886_vm6, %v4406_v36, %v4405_v51  ;;  %5996 = vmatprep.subr.bf16.mxu0 %v6104_v3  ;;  %5985 = vmatmul.mubr.msk.bf16.vlgmr.msra.gmra.mxu1 %vm2014_vm7, %v4757_v30  ;;  %v4420_v46 = vrot.slane %v7658_v11, 2  ;;  %v2948_v18 = vrot.slane %v5709_v47, %v6226_v24 }
 0x143   : > { %v4414_v31 = vrot.slane %v8642_v42, 5  ;;  %v4411_v1 = vsel %vm1871_vm1, %v4410_v49, %v4409_v38  ;;  %v4416_v43 = vrot.slane %v8643_v45, 4  ;;  %v3010_v21 = vrot.slane %v5712_v53, %v6226_v24  ;;  %6009 = vmatpush3.bf16.msra.mxu1 %v8644_v4  ;;  %v5715_v45 = vld.sshfl [vmem:[%s6207_s8 + $0xa4] sm:$0x1 pattern:$0x75316420] }
 0x144   : > { %v4413_v32 = vsel %vm1874_vm2, %v4412_v44, %v4411_v1  ;;  %v4724_v16 = vsel %vm1868_vm0, %v4396_v48, %v7628_v2  ;;  %v4732_v55 = vsel %vm1868_vm0, %v4410_v49, %v8641_v6  ;;  %v8645_v11 = vunpack.c.l.b16 %v7821_v60  ;;  %6010 = vmatprep.subr.bf16.mxu1 %v6103_v54  ;;  %v8651_v4 = vld [vmem:[#allocation53_spill] sm:$0xff] }
 0x145   : > { %v4415_v23 = vsel %vm1877_vm3, %v4414_v31, %v4413_v32  ;;  %v4634_v52 = vrot.slane %v2948_v18, %v6226_v24  ;;  %v4648_v9 = vrot.slane %v3010_v21, %v6226_v24  ;;  %v4725_v27 = vsel %vm1871_vm1, %v4398_v5, %v4724_v16  ;;  %5997 = vmatpush3.bf16.msra.mxu0 %v6104_v3  ;;  %v5718_v32 = vld.sshfl [vmem:[%s6207_s8 + $0xbc] sm:$0x1 pattern:$0x75316420] }
 0x146   : > { %v4422_v40 = vrot.slane %v8645_v11, 1  ;;  %v4417_v33 = vsel %vm1880_vm4, %v4416_v43, %v4415_v23  ;;  %v4726_v48 = vsel %vm1874_vm2, %v4400_v56, %v4725_v27  ;;  %v4733_v60 = vsel %vm1871_vm1, %v4412_v44, %v4732_v55  ;;  %5998 = vmatprep.subr.bf16.mxu0 %v6106_v0  ;;  %v8653_v16 = vld [vmem:[#allocation49_spill] sm:$0xff] }
 0x147   : > { %v4419_v2 = vsel %vm1883_vm5, %v4418_v26, %v4417_v33  ;;  %v4641_v10 = vrot.slane %v4634_v52, %v6226_v24  ;;  %v4655_v5 = vrot.slane %v4648_v9, %v6226_v24  ;;  %v4727_v14 = vsel %vm1877_vm3, %v4402_v34, %v4726_v48  ;;  %6011 = vmatpush3.bf16.msra.mxu1 %v6103_v54 }
 0x148   : > { %v4423_v28 = vsel %vm1868_vm0, %v7854_v50, %v4422_v40  ;;  %v4421_v62 = vsel %vm1886_vm6, %v4420_v46, %v4419_v2  ;;  %v4728_v47 = vsel %vm1880_vm4, %v4404_v37, %v4727_v14  ;;  %v4734_v3 = vsel %vm1874_vm2, %v4414_v31, %v4733_v60  ;;  %6012 = vmatprep.subr.bf16.mxu1 %v6105_v59  ;;  %v8654_v40 = vld [vmem:[#allocation55_spill] sm:$0xff] }
 0x149   : > { %v4452_v56 = vpack.c.b16 %v4421_v62, %v4407_v41  ;;  %v4424_v8 = vrot.slane %v7863_v63, 7  ;;  %v4688_v19 = vunpack.c.l.b16 %v4641_v10  ;;  %v4689_v61 = vunpack.c.l.b16 %v4655_v5  ;;  %5999 = vmatpush3.bf16.msra.mxu0 %v6106_v0 }
 0x14a   : > { %v4729_v49 = vsel %vm1883_vm5, %v4406_v36, %v4728_v47  ;;  %v4735_v34 = vsel %vm1877_vm3, %v4416_v43, %v4734_v3  ;;  %v4426_v57 = vrot.slane %v7866_v20, 6  ;;  %v8646_v63 = vunpack.c.l.b16 %v7834_v22  ;;  %6024 = vmatprep.subr.bf16.mxu0 %v8125_v25 }
 0x14b   : > { %5972 = vmatprep.mubr.msk.bf16.mxu0 %vm2014_vm7, %v4452_v56  ;;  %v4736_v13 = vsel %vm1880_vm4, %v4418_v26, %v4735_v34  ;;  %v4425_v37 = vsel %vm1871_vm1, %v4424_v8, %v4423_v28  ;;  %v4730_v36 = vrot.slane %v4688_v19, 1  ;;  %v4738_v30 = vrot.slane %v4689_v61, 1  ;;  %6013 = vmatpush3.bf16.msra.mxu1 %v6105_v59 }
 0x14c   : > { %v4428_v44 = vrot.slane %v8646_v63, 5  ;;  %v4737_v53 = vsel %vm1883_vm5, %v4420_v46, %v4736_v13  ;;  %v8647_v54 = vunpack.c.l.b16 %v7837_v15  ;;  %v4427_v6 = vsel %vm1874_vm2, %v4426_v57, %v4425_v37  ;;  %6014 = vmatprep.subr.bf16.mxu1 %v6107_v35  ;;  %v8659_v63 = vld [vmem:[#allocation11_spill] sm:$0xff] }
 0x14d   : > { %v4432_v38 = vrot.slane %v7870_v29, 3  ;;  %v4434_v20 = vrot.slane %v7872_v39, 2  ;;  %v8648_v22 = vunpack.c.l.b16 %v7843_v7  ;;  %v4731_v31 = vsel %vm1886_vm6, %v4730_v36, %v4729_v49  ;;  %v8649_v29 = vld [vmem:[#allocation54_spill] sm:$0xff] }
 0x14e   : > { %v4430_v51 = vrot.slane %v8647_v54, 4  ;;  %v4739_v41 = vsel %vm1886_vm6, %v4738_v30, %v4737_v53  ;;  %v4429_v15 = vsel %vm1877_vm3, %v4428_v44, %v4427_v6  ;;  %v4438_v1 = vrot.slane %v7877_v17, 7  ;;  %v8661_v53 = vld [vmem:[#allocation48_spill] sm:$0xff] }
 0x14f   : > { %v4436_v42 = vrot.slane %v8648_v22, 1  ;;  %v4758_v43 = vpack.c.b16 %v4739_v41, %v4731_v31  ;;  %v4440_v7 = vrot.slane %v7879_v58, 6  ;;  %v8650_v21 = vunpack.c.l.b16 %v7857_v12  ;;  %v8655_v58 = vld [vmem:[#allocation56_spill] sm:$0xff]  ;;  %6015 = vmatpush3.bf16.msra.mxu1 %v6107_v35  ;;  %v8657_v35 = vld [vmem:[#allocation46_spill] sm:$0xff]  ;;  %v8662_v31 = vld [vmem:[#allocation9_spill] sm:$0xff] }
 0x150   : > { %v4431_v26 = vsel %vm1880_vm4, %v4430_v51, %v4429_v15  ;;  %v8652_v17 = vunpack.c.l.b16 %v8651_v4  ;;  %v5201_v55 = vrot.slane %v8653_v16, 7  ;;  %v4446_v33 = vrot.slane %v8654_v40, 3  ;;  %6040 = vmatprep.subr.bf16.mxu1 %v8125_v25  ;;  %v8663_v41 = vld [vmem:[#allocation8_spill] sm:$0xff] }
 0x151   : > { %v4437_v39 = vsel %vm1868_vm0, %v8649_v29, %v4436_v42  ;;  %v4433_v46 = vsel %vm1883_vm5, %v4432_v38, %v4431_v26  ;;  %v4442_v0 = vrot.slane %v8650_v21, 5  ;;  %5988 = vmatprep.mubr.msk.bf16.mxu1 %vm2014_vm7, %v4758_v43  ;;  %v4448_v52 = vrot.slane %v8655_v58, 2  ;;  %v8670_v58 = vld [vmem:[#allocation10_spill] sm:$0xff] }
 0x152   : > { %v4439_v18 = vsel %vm1871_vm1, %v4438_v1, %v4437_v39  ;;  %v4444_v23 = vrot.slane %v8652_v17, 4  ;;  %v3072_v27 = vrot.slane %v5715_v45, %v6226_v24  ;;  %v3134_v12 = vrot.slane %v5718_v32, %v6226_v24  ;;  %v8666_v32 = vld [vmem:[#allocation47_spill] sm:$0xff] }
 0x153   : > { %v4441_v11 = vsel %vm1874_vm2, %v4440_v7, %v4439_v18  ;;  %v4740_v59 = vsel %vm1868_vm0, %v4424_v8, %v7854_v50  ;;  %v4435_v2 = vsel %vm1886_vm6, %v4434_v20, %v4433_v46  ;;  %v4748_v28 = vsel %vm1868_vm0, %v4438_v1, %v8649_v29  ;;  %v8656_v50 = vld [vmem:[#allocation50_spill] sm:$0xff] }
 0x154   : > { %v4443_v9 = vsel %vm1877_vm3, %v4442_v0, %v4441_v11  ;;  %v4741_v60 = vsel %vm1871_vm1, %v4426_v57, %v4740_v59  ;;  %v4662_v10 = vrot.slane %v3072_v27, %v6226_v24  ;;  %v4676_v5 = vrot.slane %v3134_v12, %v6226_v24  ;;  %v8669_v11 = vld [vmem:[#allocation51_spill] sm:$0xff] }
 0x155   : > { %v4445_v48 = vsel %vm1880_vm4, %v4444_v23, %v4443_v9  ;;  %v4742_v14 = vsel %vm1874_vm2, %v4428_v44, %v4741_v60  ;;  %v5203_v56 = vrot.slane %v8656_v50, 6  ;;  %v4749_v8 = vsel %vm1871_vm1, %v4440_v7, %v4748_v28  ;;  %v8672_v60 = vld [vmem:[#allocation52_spill] sm:$0xff] }
 0x156   : > { %v4447_v62 = vsel %vm1883_vm5, %v4446_v33, %v4445_v48  ;;  %v4743_v3 = vsel %vm1877_vm3, %v4430_v51, %v4742_v14  ;;  %v4669_v61 = vrot.slane %v4662_v10, %v6226_v24  ;;  %v4683_v49 = vrot.slane %v4676_v5, %v6226_v24  ;;  %v8673_v14 = vld [vmem:[#allocation45_spill] sm:$0xff] }
 0x157   : > { %v4449_v47 = vsel %vm1886_vm6, %v4448_v52, %v4447_v62  ;;  %v4744_v34 = vsel %vm1880_vm4, %v4432_v38, %v4743_v3  ;;  %v8658_v13 = vunpack.c.l.b16 %v8657_v35  ;;  %v4750_v57 = vsel %vm1874_vm2, %v4442_v0, %v4749_v8  ;;  %v8675_v3 = vld [vmem:[#allocation17_spill] sm:$0xff]  ;;  %v8676_v8 = vld [vmem:[#allocation16_spill] sm:$0xff] }
 0x158   : > { %v4453_v19 = vpack.c.b16 %v4449_v47, %v4435_v2  ;;  %v8660_v44 = vrot.slane %v8659_v63, %v6226_v24  ;;  %v5063_v30 = vrot.slane %v8661_v53, 7  ;;  %v4690_v54 = vunpack.c.l.b16 %v4669_v61  ;;  %v6109_v2 = vld [vmem:[%s8333_s2 + $0x110] sm:$0xff]   ;;  %v6110_v63 = vld [vmem:[%s8333_s2 + $0x108] sm:$0xff]  }
 0x159   : > { %v5205_v37 = vrot.slane %v8658_v13, 5  ;;  %v4691_v51 = vunpack.c.l.b16 %v4683_v49  ;;  %v4751_v6 = vsel %vm1877_vm3, %v4444_v23, %v4750_v57  ;;  %v5065_v38 = vrot.slane %v8653_v16, 6  ;;  %v8678_v61 = vld [vmem:[#allocation4_spill] sm:$0xff]  ;;  %v8679_v49 = vld [vmem:[#allocation3_spill] sm:$0xff] }
 0x15a   : > { %v4956_v36 = vrot.slane %v8660_v44, %v6226_v24  ;;  %5973 = vmatmul.mubr.msk.bf16.gmra.mxu0 %vm2014_vm7, %v4453_v19  ;;  %v4745_v22 = vsel %vm1883_vm5, %v4434_v20, %v4744_v34  ;;  %v4752_v42 = vsel %vm1880_vm4, %v4446_v33, %v4751_v6  ;;  %v8664_v15 = vpack.c.b16 %v8662_v31, %v8663_v41  ;;  %v8684_v31 = vld [vmem:[#allocation13_spill] sm:$0xff]  ;;  %v8685_v41 = vld [vmem:[#allocation20_spill] sm:$0xff] }
 0x15b   : > { %v5067_v45 = vrot.slane %v8656_v50, 5  ;;  %v4746_v43 = vrot.slane %v4690_v54, 1  ;;  %v4753_v26 = vsel %vm1883_vm5, %v4448_v52, %v4752_v42  ;;  %v4754_v29 = vrot.slane %v4691_v51, 1  ;;  %v8671_v52 = vld [vmem:[#allocation22_spill] sm:$0xff]  ;;  %v8682_v51 = vld [vmem:[#allocation7_spill] sm:$0xff] }
 0x15c   : > { %6000 = vmatprep.mubr.msk.bf16.mxu0 %vm2014_vm7, %v8664_v15  ;;  %v5055_v1 = vunpack.c.l.b16 %v4956_v36  ;;  %v8665_v39 = vmov %v8658_v13  ;;  %v8667_v46 = vunpack.c.l.b16 %v8666_v32  ;;  %v5073_v40 = vrot.slane %v8669_v11, 2 }
 0x15d   : > { %v5069_v7 = vrot.slane %v8665_v39, 4  ;;  %v4747_v17 = vsel %vm1886_vm6, %v4746_v43, %v4745_v22  ;;  %v4755_v23 = vsel %vm1886_vm6, %v4754_v29, %v4753_v26  ;;  %v5079_v9 = vpack.c.b16 %v8671_v52, %v8670_v58  ;;  %v8687_v43 = vld [vmem:[#allocation18_spill] sm:$0xff]  ;;  %v5922_v58 = vpop.f32.mrf.mxu1 }
 0x15e   : > { %v5207_v20 = vrot.slane %v8667_v46, 4  ;;  %v5064_v18 = vsel %vm1868_vm0, %v5063_v30, %v5055_v1  ;;  %v8668_v21 = vmov %v8667_v46  ;;  %v5199_v4 = vrot.slane %v5055_v1, 1 }
 0x15f   : > { %v5071_v0 = vrot.slane %v8668_v21, 3  ;;  %v5066_v16 = vsel %vm1871_vm1, %v5065_v38, %v5064_v18  ;;  %v4759_v33 = vpack.c.b16 %v4755_v23, %v4747_v17  ;;  %v5350_v59 = vsel %vm1868_vm0, %v5201_v55, %v8661_v53  ;;  %v8683_v38 = vld [vmem:[#allocation12_spill] sm:$0xff]  ;;  %v8691_v18 = vld [vmem:[#allocation6_spill] sm:$0xff]  ;;  %v8692_v21 = vld [vmem:[#allocation21_spill] sm:$0xff] }
 0x160   : > { %v5068_v27 = vsel %vm1874_vm2, %v5067_v45, %v5066_v16  ;;  %v5200_v12 = vsel %vm1868_vm0, %v8661_v53, %v5199_v4  ;;  %v5075_v28 = vrot.slane %v8672_v60, 1  ;;  %v8674_v50 = vrot.slane %v8673_v14, %v6226_v24  ;;  %v8686_v45 = vld [vmem:[#allocation19_spill] sm:$0xff]  ;;  %v8694_v16 = vld [vmem:[#allocation44_spill] sm:$0xff] }
 0x161   : > { %v5070_v48 = vsel %vm1877_vm3, %v5069_v7, %v5068_v27  ;;  %v5202_v62 = vsel %vm1871_vm1, %v5201_v55, %v5200_v12  ;;  %5989 = vmatmul.mubr.msk.bf16.gmra.mxu1 %vm2014_vm7, %v4759_v33  ;;  %v8677_v19 = vpack.c.b16 %v8675_v3, %v8676_v8  ;;  %v8680_v34 = vpack.c.b16 %v8678_v61, %v8679_v49  ;;  %v8689_v7 = vld [vmem:[#allocation2_spill] sm:$0xff] }
 0x162   : > { %v5072_v10 = vsel %vm1880_vm4, %v5071_v0, %v5070_v48  ;;  %v5204_v5 = vsel %vm1874_vm2, %v5203_v56, %v5202_v62  ;;  %v5341_v47 = vrot.slane %v8674_v50, %v6226_v24  ;;  %v5209_v13 = vrot.slane %v8669_v11, 3  ;;  %v8693_v0 = vld [vmem:[#allocation40_spill] sm:$0xff] }
 0x163   : > { %6016 = vmatprep.mubr.msk.bf16.mxu1 %vm2014_vm7, %v8677_v19  ;;  %6001 = vmatmul.mubr.msk.bf16.vlgmr.msra.gmra.mxu0 %vm2014_vm7, %v8680_v34  ;;  %v5074_v55 = vsel %vm1883_vm5, %v5073_v40, %v5072_v10  ;;  %v5206_v35 = vsel %vm1877_vm3, %v5205_v37, %v5204_v5  ;;  %v5351_v57 = vsel %vm1871_vm1, %v5203_v56, %v5350_v59  ;;  %v5211_v53 = vrot.slane %v8672_v60, 2  ;;  %v8681_v56 = vld [vmem:[#allocation5_spill] sm:$0xff]  ;;  %v5906_v40 = vpop.f32.mrf.mxu0 }
 0x164   : > { %6025 = vmatpush3.bf16.msra.mxu0 %v8125_v25  ;;  %6004 = vmatprep.mubr.msk.bf16.mxu0 %vm2014_vm7, %v5079_v9  ;;  %v5076_v44 = vsel %vm1886_vm6, %v5075_v28, %v5074_v55  ;;  %v5208_v36 = vsel %vm1880_vm4, %v5207_v20, %v5206_v35  ;;  %v5348_v30 = vrot.slane %v5341_v47, %v6226_v24  ;;  %v6111_v24 = vld [vmem:[%s8333_s2 + $0x100] sm:$0xff]   ;;  %v2278_v9 = vpop.f32.mrf.mxu1 }
 0x165   : > { %6026 = vmatprep.subr.bf16.mxu0 %v6109_v2  ;;  %v5352_v54 = vsel %vm1874_vm2, %v5205_v37, %v5351_v57  ;;  %v5215_v6 = vpack.c.b16 %v8682_v51, %v8681_v56  ;;  %v5080_v22 = vpack.c.b16 %v5076_v44, %v8683_v38  ;;  %v5210_v42 = vsel %vm1883_vm5, %v5209_v13, %v5208_v36  ;;  %v2061_v33 = vpop.f32.mrf.mxu0 }
 0x166   : > { %v5358_v15 = vpack.c.b16 %v8685_v41, %v8684_v31  ;;  %v5353_v1 = vsel %vm1877_vm3, %v5207_v20, %v5352_v54  ;;  %v8688_v26 = vpack.c.b16 %v8686_v45, %v8687_v43  ;;  %v5349_v37 = vunpack.c.l.b16 %v5348_v30  ;;  %v8690_v20 = vld [vmem:[#allocation41_spill] sm:$0xff]  ;;  %v5923_v12 = vpop.f32.mrf.mxu1 }
 0x167   : > { %v5212_v29 = vsel %vm1886_vm6, %v5211_v53, %v5210_v42  ;;  %v5354_v39 = vsel %vm1880_vm4, %v5209_v13, %v5353_v1  ;;  %v5359_v4 = vpack.c.b16 %v8693_v0, %v8692_v21  ;;  %v5907_v52 = vpop.f32.mrf.mxu0  ;;  %v2287_v1 = vadd.f32 %v5922_v58, %v5906_v40 }
 0x168   : > { %6027 = vmatpush3.bf16.msra.mxu0 %v6109_v2  ;;  %v5216_v32 = vpack.c.b16 %v5212_v29, %v8689_v7  ;;  %v5356_v46 = vrot.slane %v5349_v37, 1  ;;  %v5355_v17 = vsel %vm1883_vm5, %v5211_v53, %v5354_v39  ;;  %v2290_v39 = vadd.f32 %v5923_v12, %v5907_v52 }
 0x169   : > { %6028 = vmatprep.subr.bf16.mxu0 %v6110_v63  ;;  %6017 = vmatmul.mubr.msk.bf16.vlgmr.msra.gmra.mxu1 %vm2014_vm7, %v8688_v26  ;;  %v2064_v27 = vpop.f32.mrf.mxu0  ;;  %v2279_v26 = vadd.f32 %v2278_v9, %v2061_v33 }
 0x16a   : > { %6044 = vmatpush3.bf16.msra.mxu1 %v8125_v25  ;;  %6020 = vmatprep.mubr.msk.bf16.mxu1 %vm2014_vm7, %v5215_v6  ;;  %v5360_v25 = vpack.c.b16 %v8691_v18, %v8690_v20  ;;  %v5357_v23 = vsel %vm1886_vm6, %v5356_v46, %v5355_v17 }
 0x16b   : > { %6041 = vmatprep.subr.bf16.mxu1 %v6109_v2  ;;  %6005 = vmatmul.mubr.msk.bf16.gmra.mxu0 %vm2014_vm7, %v5080_v22  ;;  %v5361_v11 = vpack.c.b16 %v5357_v23, %v8694_v16  ;;  %v5910_v59 = vpop.f32.mrf.mxu0 }
 0x16c   : > { %6029 = vmatpush3.bf16.msra.mxu0 %v6110_v63  ;;  %6032 = vmatprep.mubr.msk.bf16.mxu0 %vm2014_vm7, %v5358_v15 }
 0x16d   : > { %6030 = vmatprep.subr.bf16.mxu0 %v6111_v24  ;;  %v2077_v48 = vpop.f32.mrf.mxu0 }
 0x16e   : > { %6045 = vmatpush3.bf16.msra.mxu1 %v6109_v2  ;;  %v2281_v2 = vpop.f32.mrf.mxu1 }
 0x16f   : > { %6042 = vmatprep.subr.bf16.mxu1 %v6110_v63  ;;  %v5911_v28 = vpop.f32.mrf.mxu0  ;;  %v2282_v0 = vadd.f32 %v2281_v2, %v2064_v27 }
 0x170   : > { %6031 = vmatpush3.bf16.msra.mxu0 %v6111_v24  ;;  %v5926_v60 = vpop.f32.mrf.mxu1 }
 0x171   : > { %6021 = vmatmul.mubr.msk.bf16.gmra.mxu1 %vm2014_vm7, %v5216_v32  ;;  %v2080_v10 = vpop.f32.mrf.mxu0  ;;  %v2303_v20 = vadd.f32 %v5926_v60, %v5910_v59 }
 0x172   : > { %6046 = vmatpush3.bf16.msra.mxu1 %v6110_v63  ;;  %6036 = vmatprep.mubr.msk.bf16.mxu1 %vm2014_vm7, %v5360_v25  ;;  %v2294_v62 = vpop.f32.mrf.mxu1 }
 0x173   : > { %6043 = vmatprep.subr.bf16.mxu1 %v6111_v24  ;;  %6033 = vmatmul.mubr.msk.bf16.vlgmr.msra.gmra.mxu0 %vm2014_vm7, %v5359_v4  ;;  %v5938_v14 = vpop.f32.mrf.mxu0  ;;  %v2295_v4 = vadd.f32 %v2294_v62, %v2077_v48 }
 0x174   : > { %v5927_v5 = vpop.f32.mrf.mxu1 }
 0x175   : > { %v2576_v47 = vpop.f32.mrf.mxu0  ;;  %v2306_v58 = vadd.f32 %v5927_v5, %v5911_v28 }
 0x176   : > { %6047 = vmatpush3.bf16.msra.mxu1 %v6111_v24  ;;  %v2297_v50 = vpop.f32.mrf.mxu1  ;;  %v2609_v24 = vadd.f32 %v5938_v14, %v2287_v1  ;;  %v2607_v7 = vadd.f32 %v2576_v47, %v2279_v26 }
 0x177   : > { %v5939_v8 = vpop.f32.mrf.mxu0  ;;  %v2298_v12 = vadd.f32 %v2297_v50, %v2080_v10 }
 0x178   : > { %v2610_v25 = vadd.f32 %v5939_v8, %v2290_v39 }
 0x179   : > { %6037 = vmatmul.mubr.msk.bf16.vlgmr.msra.gmra.mxu1 %vm2014_vm7, %v5361_v11  ;;  %v2579_v61 = vpop.f32.mrf.mxu0 }
 0x17a   : > { %v2608_v33 = vadd.f32 %v2579_v61, %v2282_v0 }
 0x19c   : > { %v5954_v3 = vpop.f32.mrf.mxu1 }
 0x19d   : > { %v4323_v18 = vadd.f32 %v5954_v3, %v2609_v24 }
 0x19e   : > { %v4290_v19 = vpop.f32.mrf.mxu1 }
 0x19f   : > { %v4321_v23 = vadd.f32 %v4290_v19, %v2607_v7 }
 0x1a0   : > { %v5955_v49 = vpop.f32.mrf.mxu1 }
 0x1a1   : > { %v4324_v1 = vadd.f32 %v5955_v49, %v2610_v25 }
 0x1a2   : > { %v4293_v55 = vpop.f32.mrf.mxu1 }
 0x1a3   : > { %v4322_v27 = vadd.f32 %v4293_v55, %v2608_v33 }
 0x1c4   : > { %v5942_v34 = vpop.f32.mrf.mxu0 }
 0x1c5   : > { %v2613_v16 = vadd.f32 %v5942_v34, %v2303_v20 }
 0x1c6   : > { %v2592_v35 = vpop.f32.mrf.mxu0 }
 0x1c7   : > { %v2611_v9 = vadd.f32 %v2592_v35, %v2295_v4 }
 0x1c8   : > { %v5943_v57 = vpop.f32.mrf.mxu0 }
 0x1c9   : > { %v2614_v47 = vadd.f32 %v5943_v57, %v2306_v58 }
 0x1ca   : > { %v2595_v44 = vpop.f32.mrf.mxu0 }
 0x1cb   : > { %v2612_v48 = vadd.f32 %v2595_v44, %v2298_v12 }
 0x1e5   : > { %v5958_v13 = vpop.f32.mrf.mxu1 }
 0x1e6   : > { %v4327_v60 = vadd.f32 %v5958_v13, %v2613_v16 }
 0x1e7   : > { %v4306_v63 = vpop.f32.mrf.mxu1 }
 0x1e8   : > { %v4325_v2 = vadd.f32 %v4306_v63, %v2611_v9 }
 0x1e9   : > { %v5959_v36 = vpop.f32.mrf.mxu1 }
 0x1ea   : > { %v4328_v5 = vadd.f32 %v5959_v36, %v2614_v47  ;;  %v5818_v36 = vld [vmem:[%s8334_s3] ss:$0 sm:$0xff] }
 0x1eb   : > { %v4309_v30 = vpop.f32.mrf.mxu1 }
 0x1ec   : > { %v4326_v57 = vadd.f32 %v4309_v30, %v2612_v48 }
 0x1fc   : > { %v5970_v53 = vpop.f32.mrf.mxu0 }
 0x1fd   : > { %v4557_v11 = vadd.f32 %v5970_v53, %v4323_v18 }
 0x1fe   : > { %v4524_v54 = vpop.f32.mrf.mxu0 }
 0x1ff   : > { %v4555_v52 = vadd.f32 %v4524_v54, %v4321_v23 }
 0x200   : > { %v5971_v51 = vpop.f32.mrf.mxu0 }
 0x201   : > { %v4558_v8 = vadd.f32 %v5971_v51, %v4324_v1 }
 0x202   : > { %v5986_v56 = vpop.f32.mrf.mxu1  ;;  %v4527_v38 = vpop.f32.mrf.mxu0 }
 0x203   : > { %v4863_v3 = vadd.f32 %v5986_v56, %v4557_v11  ;;  %v4556_v61 = vadd.f32 %v4527_v38, %v4322_v27 }
 0x204   : > { %v4830_v6 = vpop.f32.mrf.mxu1 }
 0x205   : > { %v4861_v34 = vadd.f32 %v4830_v6, %v4555_v52 }
 0x206   : > { %v5987_v22 = vpop.f32.mrf.mxu1 }
 0x207   : > { %v4864_v10 = vadd.f32 %v5987_v22, %v4558_v8 }
 0x208   : > { %v4833_v41 = vpop.f32.mrf.mxu1 }
 0x209   : > { %v4862_v44 = vadd.f32 %v4833_v41, %v4556_v61 }
 0x21a   : > { %v5974_v42 = vpop.f32.mrf.mxu0 }
 0x21b   : > { %v4561_v53 = vadd.f32 %v5974_v42, %v4327_v60 }
 0x21c   : > { %v4540_v31 = vpop.f32.mrf.mxu0 }
 0x21d   : > { %v4559_v35 = vadd.f32 %v4540_v31, %v4325_v2 }
 0x21e   : > { %v5975_v15 = vpop.f32.mrf.mxu0 }
 0x21f   : > { %v4562_v24 = vadd.f32 %v5975_v15, %v4328_v5 }
 0x220   : > { %v4543_v45 = vpop.f32.mrf.mxu0 }
 0x221   : > { %v5990_v43 = vpop.f32.mrf.mxu1  ;;  %v4560_v6 = vadd.f32 %v4543_v45, %v4326_v57 }
 0x222   : > { %v4867_v51 = vadd.f32 %v5990_v43, %v4561_v53 }
 0x223   : > { %v6002_v37 = vpop.f32.mrf.mxu0  ;;  %v4846_v29 = vpop.f32.mrf.mxu1 }
 0x224   : > { %v5184_v28 = vadd.f32 %v6002_v37, %v4863_v3  ;;  %v4865_v39 = vadd.f32 %v4846_v29, %v4559_v35 }
 0x225   : > { %v5151_v32 = vpop.f32.mrf.mxu0  ;;  %v5991_v46 = vpop.f32.mrf.mxu1 }
 0x226   : > { %v5182_v50 = vadd.f32 %v5151_v32, %v4861_v34  ;;  %v4868_v30 = vadd.f32 %v5991_v46, %v4562_v24 }
 0x227   : > { %v6003_v21 = vpop.f32.mrf.mxu0  ;;  %v4849_v17 = vpop.f32.mrf.mxu1 }
 0x228   : > { %v5185_v63 = vadd.f32 %v6003_v21, %v4864_v10  ;;  %v4866_v29 = vadd.f32 %v4849_v17, %v4560_v6 }
 0x229   : > { %v5154_v40 = vpop.f32.mrf.mxu0  ;;  %v6018_v14 = vpop.f32.mrf.mxu1 }
 0x22a   : > { %v5320_v55 = vadd.f32 %v6018_v14, %v5184_v28  ;;  %v5183_v15 = vadd.f32 %v5154_v40, %v4862_v44 }
 0x22b   : > { %v5287_v26 = vpop.f32.mrf.mxu1  ;;  %v6006_v59 = vpop.f32.mrf.mxu0 }
 0x22c   : > { %v5318_v38 = vadd.f32 %v5287_v26, %v5182_v50  ;;  %v5188_v22 = vadd.f32 %v6006_v59, %v4867_v51 }
 0x22d   : > { %v6019_v62 = vpop.f32.mrf.mxu1  ;;  %v5167_v19 = vpop.f32.mrf.mxu0 }
 0x22e   : > { %v5186_v7 = vadd.f32 %v5167_v19, %v4865_v39  ;;  %v5321_v20 = vadd.f32 %v6019_v62, %v5185_v63 }
 0x22f   : > { %v5290_v49 = vpop.f32.mrf.mxu1  ;;  %v6007_v54 = vpop.f32.mrf.mxu0 }
 0x230   : > { %v5189_v45 = vadd.f32 %v6007_v54, %v4868_v30  ;;  %v5319_v11 = vadd.f32 %v5290_v49, %v5183_v15 }
 0x231   : > { %v6022_v13 = vpop.f32.mrf.mxu1  ;;  %v5170_v56 = vpop.f32.mrf.mxu0 }
 0x232   : > { %v5324_v0 = vadd.f32 %v6022_v13, %v5188_v22  ;;  %v5187_v33 = vadd.f32 %v5170_v56, %v4866_v29 }
 0x233   : > { %v5303_v42 = vpop.f32.mrf.mxu1  ;;  %v6034_v37 = vpop.f32.mrf.mxu0 }
 0x234   : > { %v5465_v31 = vadd.f32 %v6034_v37, %v5320_v55  ;;  %v5322_v58 = vadd.f32 %v5303_v42, %v5186_v7 }
 0x235   : > { %v6023_v32 = vpop.f32.mrf.mxu1  ;;  %v5432_v43 = vpop.f32.mrf.mxu0 }
 0x236   : > { %v5480_v18 = vadd.f32 %v5818_v36, %v5465_v31  ;;  %v5463_v41 = vadd.f32 %v5432_v43, %v5318_v38  ;;  %v5325_v52 = vadd.f32 %v6023_v32, %v5189_v45 }
 0x237   : > { %v5306_v25 = vpop.f32.mrf.mxu1  ;;  %v6035_v21 = vpop.f32.mrf.mxu0 }
 0x238   : > { %v5488_v4 = vmax.f32 %v5480_v18, 0.0  ;;  %v5478_v23 = vadd.f32 %v5818_v36, %v5463_v41  ;;  %v5466_v16 = vadd.f32 %v6035_v21, %v5321_v20  ;;  %v5323_v8 = vadd.f32 %v5306_v25, %v5187_v33 }
 0x239   : > { %v6038_v46 = vpop.f32.mrf.mxu1  ;;  %v5435_v40 = vpop.f32.mrf.mxu0 }
 0x23a   : > { %v5496_v17 = vpack.c.bf16 %v5488_v4, %v5488_v4  ;;  %v5469_v9 = vadd.f32 %v6038_v46, %v5324_v0  ;;  %v5486_v14 = vmax.f32 %v5478_v23, 0.0  ;;  %v5481_v1 = vadd.f32 %v5818_v36, %v5466_v16 }
 0x23b   : > { %v5448_v12 = vpop.f32.mrf.mxu1  ;;  %v5464_v47 = vadd.f32 %v5435_v40, %v5319_v11 }
 0x23c   : > { %5505 = vst.msk [vmem:[%s8304_s21 + $0x8] sm:$0xf] %vm5502_vm8, %v5496_v17  ;;  %v5484_v26 = vadd.f32 %v5818_v36, %v5469_v9  ;;  %v5494_v59 = vpack.c.bf16 %v5486_v14, %v5486_v14  ;;  %v5467_v60 = vadd.f32 %v5448_v12, %v5322_v58  ;;  %v5489_v3 = vmax.f32 %v5481_v1, 0.0 }
 0x23d   : > { %v6039_v27 = vpop.f32.mrf.mxu1  ;;  %v5479_v2 = vadd.f32 %v5818_v36, %v5464_v47 }
 0x23e   : > { %v5492_v48 = vmax.f32 %v5484_v26, 0.0  ;;  %5503 = vst.msk [vmem:[%s8304_s21] sm:$0xf] %vm5502_vm8, %v5494_v59  ;;  %v5482_v62 = vadd.f32 %v5818_v36, %v5467_v60  ;;  %v5497_v19 = vpack.c.bf16 %v5489_v3, %v5489_v3  ;;  %v5470_v34 = vadd.f32 %v6039_v27, %v5325_v52 }
 0x23f   : > { %v5487_v53 = vmax.f32 %v5479_v2, 0.0  ;;  %v5451_v28 = vpop.f32.mrf.mxu1 }
 0x240   : > { %v5500_v5 = vpack.c.bf16 %v5492_v48, %v5492_v48  ;;  %v5490_v61 = vmax.f32 %v5482_v62, 0.0  ;;  %5506 = vst.msk [vmem:[%s8304_s21 + $0xc] sm:$0xf] %vm5502_vm8, %v5497_v19  ;;  %v5485_v35 = vadd.f32 %v5818_v36, %v5470_v34  ;;  %v5468_v49 = vadd.f32 %v5451_v28, %v5323_v8 }
 0x241   : > { %v5495_v54 = vpack.c.bf16 %v5487_v53, %v5487_v53 }
 0x242   : > { %5509 = vst.msk [vmem:[%s8304_s21 + $0x18] sm:$0xf] %vm5502_vm8, %v5500_v5  ;;  %v5498_v10 = vpack.c.bf16 %v5490_v61, %v5490_v61  ;;  %v5493_v50 = vmax.f32 %v5485_v35, 0.0  ;;  %v5483_v57 = vadd.f32 %v5818_v36, %v5468_v49 }
 0x243   : > { %5504 = vst.msk [vmem:[%s8304_s21 + $0x4] sm:$0xf] %vm5502_vm8, %v5495_v54 }
 0x244   : > { %5507 = vst.msk [vmem:[%s8304_s21 + $0x10] sm:$0xf] %vm5502_vm8, %v5498_v10  ;;  %v5501_v24 = vpack.c.bf16 %v5493_v50, %v5493_v50  ;;  %v5491_v13 = vmax.f32 %v5483_v57, 0.0 }
 0x246   : > { %5510 = vst.msk [vmem:[%s8304_s21 + $0x1c] sm:$0xf] %vm5502_vm8, %v5501_v24  ;;  %v5499_v56 = vpack.c.bf16 %v5491_v13, %v5491_v13 }
 0x248   : > { %5508 = vst.msk [vmem:[%s8304_s21 + $0x14] sm:$0xf] %vm5502_vm8, %v5499_v56 }
 0x249 PF: > { %s14_s17 = sadd.s32 1, %s6135_s17   ;;  %s8695_s15 = smov %s6131_s16 }
 0x24a   : > { %p11_p5 = scmp.ge.s32.totalorder %s14_s17, 4   ;;  %s8696_s16 = smov %s8698_s18 }
 0x24c   :  { %13 = sbr.rel (!%p11_p5) target bundleno = 2 (0x2), region = 77 }

</bundles_post_ra>
